<compile_context>
chip_gen: v5e
topology: v5e:2x2
jax: 0.10.0
libtpu: 0.0.40
codegen_flags: <defaults>
</compile_context>

<pallas_src>
import functools

import jax
import jax.numpy as jnp
from jax.experimental import pallas as pl
from jax.experimental.pallas import tpu as pltpu


# ------------------------------- fused kernel -------------------------------


def _subnet_kernel(x_ref, m_ref, w0_ref, b0_ref, wb_ref, bb_ref,
                   w2_ref, b2_ref, w8_ref, b8_ref, o_ref, patch_ref,
                   *, W, nhw, cin_pad, num_feature, num_blocks,
                   neg_slope, tap_dtype):
    """One shard = `nb` images folded on the lane axis; act layout (C, nb*H*W)."""
    F = num_feature
    slope = jnp.float32(neg_slope)

    def leaky(v):
        # valid for 0 < slope < 1; drops the compare of jnp.where
        return jnp.maximum(v, slope * v)

    masks = m_ref[...]                        # (8, nhw), already in tap_dtype

    def conv3x3(act, w, b, cin):
        # act: (cin, nhw) f32 ; w: (Cout, 9*cin) tap_dtype ; b: (Cout, 1) f32
        a = act.astype(tap_dtype)
        t = 0
        for ky in range(3):
            for kx in range(3):
                dy, dx = ky - 1, kx - 1
                off = dy * W + dx             # flat spatial shift of this tap
                row = (ky * 3 + kx) * cin
                if off == 0:
                    patch_ref[row:row + cin, :] = a
                else:
                    # shifted[p] = a[p + off]; wrap-around and cross-image
                    # seam reads are zeroed by the precomputed mask.
                    piece = pltpu.roll(a, (-off) % nhw, 1)
                    patch_ref[row:row + cin, :] = piece * masks[t:t + 1, :]
                    t += 1
        y = jnp.dot(w, patch_ref[0:9 * cin, :],
                    preferred_element_type=jnp.float32)
        return y + b

    def conv1x1(act, w, b):
        return jnp.dot(w, act, preferred_element_type=jnp.float32) + b

    xin = x_ref[0].astype(jnp.float32)        # (cin_pad, nhw)

    act = leaky(conv3x3(xin, w0_ref[...], b0_ref[...], cin_pad))      # conv_0

    def block_body(a):
        a = leaky(conv3x3(a, wb_ref[0], bb_ref[0], F))                # conv_1
        a = leaky(conv1x1(a, w2_ref[...], b2_ref[...]))               # conv_2
        a = leaky(conv3x3(a, wb_ref[1], bb_ref[1], F))                # conv_3
        a = leaky(conv3x3(a, wb_ref[2], bb_ref[2], F))                # conv_4
        a = leaky(conv3x3(a, wb_ref[3], bb_ref[3], F))                # conv_5
        a = leaky(conv3x3(a, wb_ref[4], bb_ref[4], F))                # conv_6
        a = leaky(conv3x3(a, wb_ref[5], bb_ref[5], F))                # conv_7
        return a

    if num_blocks <= 4:                       # small depth: full unroll
        for _ in range(num_blocks):
            act = block_body(act)
    else:                                     # bound code size / vreg ranges
        act = jax.lax.fori_loop(0, num_blocks,
                                lambda i, a: block_body(a), act)

    out = conv1x1(act, w8_ref[...], b8_ref[...])                      # conv_8
    out = out + xin[:3, :]                                            # residual
    o_ref[0] = out.astype(o_ref.dtype)


# ------------------------------ Subnet forward -------------------------------


def subnet_forward(images_nchw, params, num_blocks, *, neg_slope=0.2,
                   num_shards=1, tap_dtype=jnp.float32, core_parallel=False):
    """Fused Pallas implementation of Subnet.forward (NCHW in / NCHW out).

    num_shards:    grid size; each grid step handles B/num_shards images folded
                   onto the lane axis.  Use 1 on v5e/v6e; 2 (+core_parallel=True)
                   on v7x so both TensorCores get work.
    tap_dtype:     jnp.float32 (exact; keep on v5e - no bf16 VPU) or
                   jnp.bfloat16 (halves XLU/VPU tap traffic on v6e/v7x;
                   accumulation stays f32).  bf16 may exceed a 1e-4 check.
    """
    B, Cin, H, W = images_nchw.shape
    assert B % num_shards == 0
    nb = B // num_shards
    HW = H * W
    NHW = nb * HW
    F = params["conv_0"][0].shape[0]
    cin_pad = 8   # pad input channels 3 -> 8 so tap rows stay sublane-aligned

    # ---- weights: flatten 3x3 taps (tap-major, channel-minor) --------------
    def flat3x3(w_oihw, pad_to=None):
        cout, cin = w_oihw.shape[0], w_oihw.shape[1]
        w = jnp.transpose(w_oihw, (0, 2, 3, 1))        # (cout, ky, kx, cin)
        if pad_to is not None and pad_to > cin:
            w = jnp.pad(w, ((0, 0), (0, 0), (0, 0), (0, pad_to - cin)))
            cin = pad_to
        return w.reshape(cout, 9 * cin)

    w0 = flat3x3(params["conv_0"][0], pad_to=cin_pad).astype(tap_dtype)  # (F,72)
    b0 = params["conv_0"][1].reshape(F, 1)
    blk = ["conv_1", "conv_3", "conv_4", "conv_5", "conv_6", "conv_7"]
    wb = jnp.stack([flat3x3(params[n][0]) for n in blk]).astype(tap_dtype)
    bb = jnp.stack([params[n][1].reshape(F, 1) for n in blk])           # (6,F,1)
    w2 = params["conv_2"][0].reshape(F, F)
    b2 = params["conv_2"][1].reshape(F, 1)
    w8 = params["conv_8"][0].reshape(3, F)
    b8 = params["conv_8"][1].reshape(3, 1)

    # ---- activations: NCHW -> (num_shards, C, nb*H*W), channel-major -------
    x_flat = images_nchw.reshape(B, Cin, HW)
    x_pad = jnp.pad(x_flat, ((0, 0), (0, cin_pad - Cin), (0, 0)))
    x_fold = (x_pad.reshape(num_shards, nb, cin_pad, HW)
              .transpose(0, 2, 1, 3)
              .reshape(num_shards, cin_pad, NHW))

    # ---- boundary masks for the 8 non-center taps (host precompute) --------
    pos = jnp.arange(NHW, dtype=jnp.int32)
    yy = (pos // W) % H      # per-image row index (handles folded batch seams)
    xx = pos % W
    rows = []
    for dy in (-1, 0, 1):
        for dx in (-1, 0, 1):
            if dy == 0 and dx == 0:
                continue
            ok = jnp.ones((NHW,), jnp.bool_)
            if dy == -1:
                ok = ok & (yy >= 1)
            if dy == 1:
                ok = ok & (yy <= H - 2)
            if dx == -1:
                ok = ok & (xx >= 1)
            if dx == 1:
                ok = ok & (xx <= W - 2)
            rows.append(ok)
    masks = jnp.stack(rows).astype(tap_dtype)            # (8, NHW)

    # VMEM budget guard: patch scratch scales linearly with nb*H*W.  For much
    # larger images, tile HW into row blocks (masks already handle edges) or
    # raise vmem_limit_bytes in CompilerParams.
    patch_bytes = 9 * F * NHW * jnp.dtype(tap_dtype).itemsize
    assert patch_bytes <= 16 * 1024 * 1024, (
        "patch scratch too big for default scoped VMEM; tile HW or raise "
        "vmem_limit_bytes")

    kern = functools.partial(_subnet_kernel, W=W, nhw=NHW, cin_pad=cin_pad,
                             num_feature=F, num_blocks=num_blocks,
                             neg_slope=neg_slope, tap_dtype=tap_dtype)

    def full(n):
        return lambda s: (0,) * n

    sem = pltpu.CORE_PARALLEL if core_parallel else "parallel"

    out_fold = pl.pallas_call(
        kern,
        out_shape=jax.ShapeDtypeStruct((num_shards, 3, NHW),
                                       images_nchw.dtype),
        grid=(num_shards,),
        in_specs=[
            pl.BlockSpec((1, cin_pad, NHW), lambda s: (s, 0, 0)),
            pl.BlockSpec(masks.shape, full(2)),
            pl.BlockSpec(w0.shape, full(2)),
            pl.BlockSpec(b0.shape, full(2)),
            pl.BlockSpec(wb.shape, full(3)),
            pl.BlockSpec(bb.shape, full(3)),
            pl.BlockSpec(w2.shape, full(2)),
            pl.BlockSpec(b2.shape, full(2)),
            pl.BlockSpec(w8.shape, full(2)),
            pl.BlockSpec(b8.shape, full(2)),
        ],
        out_specs=pl.BlockSpec((1, 3, NHW), lambda s: (s, 0, 0)),
        scratch_shapes=[pltpu.VMEM((9 * F, NHW), tap_dtype)],   # im2col patch
        compiler_params=pltpu.CompilerParams(dimension_semantics=(sem,)),
    )(x_fold, masks, w0, b0, wb, bb, w2, b2, w8, b8)

    out = (out_fold.reshape(num_shards, 3, nb, HW)
           .transpose(0, 2, 1, 3)
           .reshape(B, 3, H, W))
    return out


# ----------------------------- parameter init --------------------------------


def init_subnet_params(key, num_feature):
    """Deterministic parameter init (shapes identical to the PyTorch module)."""
    def conv_param(k, cout, cin, ksz):
        kw, kb = jax.random.split(k)
        fan_in = cin * ksz * ksz
        scale = 1.0 / jnp.sqrt(jnp.float32(fan_in))
        w = jax.random.uniform(kw, (cout, cin, ksz, ksz),
                               jnp.float32, -scale, scale)
        b = jax.random.uniform(kb, (cout,), jnp.float32, -scale, scale)
        return w, b

    keys = jax.random.split(key, 9)
    params = {}
    params["conv_0"] = conv_param(keys[0], num_feature, 3, 3)
    params["conv_1"] = conv_param(keys[1], num_feature, num_feature, 3)
    params["conv_2"] = conv_param(keys[2], num_feature, num_feature, 1)
    params["conv_3"] = conv_param(keys[3], num_feature, num_feature, 3)
    params["conv_4"] = conv_param(keys[4], num_feature, num_feature, 3)
    params["conv_5"] = conv_param(keys[5], num_feature, num_feature, 3)
    params["conv_6"] = conv_param(keys[6], num_feature, num_feature, 3)
    params["conv_7"] = conv_param(keys[7], num_feature, num_feature, 3)
    params["conv_8"] = conv_param(keys[8], 3, num_feature, 1)
    return params


# ------------------------------ reference (JAX) ------------------------------


def _ref_conv(x_nhwc, w_oihw, b, relu):
    w_hwio = jnp.transpose(w_oihw, (2, 3, 1, 0))
    pad = "SAME" if w_oihw.shape[-1] == 3 else "VALID"
    y = jax.lax.conv_general_dilated(
        x_nhwc, w_hwio, (1, 1), pad,
        dimension_numbers=("NHWC", "HWIO", "NHWC"),
        precision=jax.lax.Precision.HIGHEST)
    y = y + b.reshape(1, 1, 1, -1)
    if relu:
        y = jnp.where(y >= 0, y, 0.2 * y)
    return y


def subnet_reference(images_nchw, params, num_blocks):
    x = jnp.transpose(images_nchw, (0, 2, 3, 1))
    out = _ref_conv(x, *params["conv_0"], True)
    for _ in range(num_blocks):
        for name in ["conv_1", "conv_2", "conv_3", "conv_4",
                     "conv_5", "conv_6", "conv_7"]:
            out = _ref_conv(out, *params[name], True)
    out = _ref_conv(out, *params["conv_8"], False)
    out = out + x
    return jnp.transpose(out, (0, 3, 1, 2))


# ----------------------------------- main ------------------------------------


if __name__ == "__main__":
    B, H, W = 2, 16, 16
    num_feature = 16
    num_blocks = 2

    key = jax.random.PRNGKey(0)
    k_img, k_par = jax.random.split(key)
    images = jax.random.normal(k_img, (B, 3, H, W), jnp.float32)  # NCHW
    params = init_subnet_params(k_par, num_feature)

    # Default config: whole batch folded onto lanes, one grid step, f32 taps.
    # On v7x pass num_shards=2, core_parallel=True; on v6e/v7x optionally
    # tap_dtype=jnp.bfloat16 (re-validate tolerance).
    out = subnet_forward(images, params, num_blocks)
    out = jax.block_until_ready(out)

    ref = jax.block_until_ready(subnet_reference(images, params, num_blocks))

    assert out.shape == (B, 3, H, W)
    max_err = float(jnp.max(jnp.abs(out - ref)))
    assert jnp.allclose(out, ref, atol=1e-4, rtol=1e-4), max_err

    print("KERNEL_OK")
</pallas_src>

<mosaic_0001>
module attributes {stable_mosaic.version = 11 : i64} {
  func.func @_subnet_kernel(%arg0: i32, %arg1: memref<1x8x512xf32, #tpu.memory_space<vmem>>, %arg2: memref<8x512xf32, #tpu.memory_space<vmem>>, %arg3: memref<16x72xf32, #tpu.memory_space<vmem>>, %arg4: memref<16x1xf32, #tpu.memory_space<vmem>>, %arg5: memref<6x16x144xf32, #tpu.memory_space<vmem>>, %arg6: memref<6x16x1xf32, #tpu.memory_space<vmem>>, %arg7: memref<16x16xf32, #tpu.memory_space<vmem>>, %arg8: memref<16x1xf32, #tpu.memory_space<vmem>>, %arg9: memref<3x16xf32, #tpu.memory_space<vmem>>, %arg10: memref<3x1xf32, #tpu.memory_space<vmem>>, %arg11: memref<1x3x512xf32, #tpu.memory_space<vmem>>, %arg12: memref<144x512xf32, #tpu.memory_space<vmem>>) attributes {dimension_semantics = [#tpu.dimension_semantics<parallel>], iteration_bounds = array<i64: 1>, scalar_prefetch = 0 : i64, scratch_operands = 1 : i64, tpu.core_type = #tpu.core_type<tc>, window_params = [{transform_indices = @transform_0, window_bounds = array<i64: 1, 8, 512>}, {pipeline_mode = #tpu.pipeline_mode<synchronous>, transform_indices = @transform_1, window_bounds = array<i64: 8, 512>}, {pipeline_mode = #tpu.pipeline_mode<synchronous>, transform_indices = @transform_2, window_bounds = array<i64: 16, 72>}, {pipeline_mode = #tpu.pipeline_mode<synchronous>, transform_indices = @transform_3, window_bounds = array<i64: 16, 1>}, {pipeline_mode = #tpu.pipeline_mode<synchronous>, transform_indices = @transform_4, window_bounds = array<i64: 6, 16, 144>}, {pipeline_mode = #tpu.pipeline_mode<synchronous>, transform_indices = @transform_5, window_bounds = array<i64: 6, 16, 1>}, {pipeline_mode = #tpu.pipeline_mode<synchronous>, transform_indices = @transform_6, window_bounds = array<i64: 16, 16>}, {pipeline_mode = #tpu.pipeline_mode<synchronous>, transform_indices = @transform_7, window_bounds = array<i64: 16, 1>}, {pipeline_mode = #tpu.pipeline_mode<synchronous>, transform_indices = @transform_8, window_bounds = array<i64: 3, 16>}, {pipeline_mode = #tpu.pipeline_mode<synchronous>, transform_indices = @transform_9, window_bounds = array<i64: 3, 1>}, {transform_indices = @transform_10, window_bounds = array<i64: 1, 3, 512>}]} {
    %c0 = arith.constant 0 : index
    %c0_0 = arith.constant 0 : index
    %0 = vector.load %arg2[%c0, %c0_0] : memref<8x512xf32, #tpu.memory_space<vmem>>, vector<8x512xf32>
    %c0_1 = arith.constant 0 : index
    %c0_2 = arith.constant 0 : index
    %c0_3 = arith.constant 0 : index
    %1 = vector.load %arg1[%c0_1, %c0_2, %c0_3] : memref<1x8x512xf32, #tpu.memory_space<vmem>>, vector<1x8x512xf32>
    %2 = vector.shape_cast %1 : vector<1x8x512xf32> to vector<8x512xf32>
    %c0_4 = arith.constant 0 : index
    %c0_5 = arith.constant 0 : index
    %3 = vector.load %arg3[%c0_4, %c0_5] : memref<16x72xf32, #tpu.memory_space<vmem>>, vector<16x72xf32>
    %c0_6 = arith.constant 0 : index
    %c0_7 = arith.constant 0 : index
    %4 = vector.load %arg4[%c0_6, %c0_7] : memref<16x1xf32, #tpu.memory_space<vmem>>, vector<16x1xf32>
    %c17_i32 = arith.constant 17 : i32
    %5 = tpu.dynamic_rotate %2 by %c17_i32 dim 1 : vector<8x512xf32>, i32 -> vector<8x512xf32>
    %6 = vector.extract_strided_slice %0 {offsets = [0, 0], sizes = [1, 512], strides = [1, 1]} : vector<8x512xf32> to vector<1x512xf32>
    %7 = vector.broadcast %6 : vector<1x512xf32> to vector<8x512xf32>
    %8 = arith.mulf %5, %7 : vector<8x512xf32>
    %c0_8 = arith.constant 0 : index
    %c0_9 = arith.constant 0 : index
    %9 = vector.load %arg12[%c0_8, %c0_9] : memref<144x512xf32, #tpu.memory_space<vmem>>, vector<8x512xf32>
    tpu.vector_store %arg12[%c0_8, %c0_9], %8 {strides = array<i32>} : memref<144x512xf32, #tpu.memory_space<vmem>>, vector<8x512xf32>,
    %c16_i32 = arith.constant 16 : i32
    %10 = tpu.dynamic_rotate %2 by %c16_i32 dim 1 : vector<8x512xf32>, i32 -> vector<8x512xf32>
    %11 = vector.extract_strided_slice %0 {offsets = [1, 0], sizes = [1, 512], strides = [1, 1]} : vector<8x512xf32> to vector<1x512xf32>
    %12 = vector.broadcast %11 : vector<1x512xf32> to vector<8x512xf32>
    %13 = arith.mulf %10, %12 : vector<8x512xf32>
    %c8 = arith.constant 8 : index
    %c0_10 = arith.constant 0 : index
    %14 = vector.load %arg12[%c8, %c0_10] : memref<144x512xf32, #tpu.memory_space<vmem>>, vector<8x512xf32>
    tpu.vector_store %arg12[%c8, %c0_10], %13 {strides = array<i32>} : memref<144x512xf32, #tpu.memory_space<vmem>>, vector<8x512xf32>,
    %c15_i32 = arith.constant 15 : i32
    %15 = tpu.dynamic_rotate %2 by %c15_i32 dim 1 : vector<8x512xf32>, i32 -> vector<8x512xf32>
    %16 = vector.extract_strided_slice %0 {offsets = [2, 0], sizes = [1, 512], strides = [1, 1]} : vector<8x512xf32> to vector<1x512xf32>
    %17 = vector.broadcast %16 : vector<1x512xf32> to vector<8x512xf32>
    %18 = arith.mulf %15, %17 : vector<8x512xf32>
    %c16 = arith.constant 16 : index
    %c0_11 = arith.constant 0 : index
    %19 = vector.load %arg12[%c16, %c0_11] : memref<144x512xf32, #tpu.memory_space<vmem>>, vector<8x512xf32>
    tpu.vector_store %arg12[%c16, %c0_11], %18 {strides = array<i32>} : memref<144x512xf32, #tpu.memory_space<vmem>>, vector<8x512xf32>,
    %c1_i32 = arith.constant 1 : i32
    %20 = tpu.dynamic_rotate %2 by %c1_i32 dim 1 : vector<8x512xf32>, i32 -> vector<8x512xf32>
    %21 = vector.extract_strided_slice %0 {offsets = [3, 0], sizes = [1, 512], strides = [1, 1]} : vector<8x512xf32> to vector<1x512xf32>
    %22 = vector.broadcast %21 : vector<1x512xf32> to vector<8x512xf32>
    %23 = arith.mulf %20, %22 : vector<8x512xf32>
    %c24 = arith.constant 24 : index
    %c0_12 = arith.constant 0 : index
    %24 = vector.load %arg12[%c24, %c0_12] : memref<144x512xf32, #tpu.memory_space<vmem>>, vector<8x512xf32>
    tpu.vector_store %arg12[%c24, %c0_12], %23 {strides = array<i32>} : memref<144x512xf32, #tpu.memory_space<vmem>>, vector<8x512xf32>,
    %c32 = arith.constant 32 : index
    %c0_13 = arith.constant 0 : index
    %25 = vector.load %arg12[%c32, %c0_13] : memref<144x512xf32, #tpu.memory_space<vmem>>, vector<8x512xf32>
    tpu.vector_store %arg12[%c32, %c0_13], %2 {strides = array<i32>} : memref<144x512xf32, #tpu.memory_space<vmem>>, vector<8x512xf32>,
    %c511_i32 = arith.constant 511 : i32
    %26 = tpu.dynamic_rotate %2 by %c511_i32 dim 1 : vector<8x512xf32>, i32 -> vector<8x512xf32>
    %27 = vector.extract_strided_slice %0 {offsets = [4, 0], sizes = [1, 512], strides = [1, 1]} : vector<8x512xf32> to vector<1x512xf32>
    %28 = vector.broadcast %27 : vector<1x512xf32> to vector<8x512xf32>
    %29 = arith.mulf %26, %28 : vector<8x512xf32>
    %c40 = arith.constant 40 : index
    %c0_14 = arith.constant 0 : index
    %30 = vector.load %arg12[%c40, %c0_14] : memref<144x512xf32, #tpu.memory_space<vmem>>, vector<8x512xf32>
    tpu.vector_store %arg12[%c40, %c0_14], %29 {strides = array<i32>} : memref<144x512xf32, #tpu.memory_space<vmem>>, vector<8x512xf32>,
    %c497_i32 = arith.constant 497 : i32
    %31 = tpu.dynamic_rotate %2 by %c497_i32 dim 1 : vector<8x512xf32>, i32 -> vector<8x512xf32>
    %32 = vector.extract_strided_slice %0 {offsets = [5, 0], sizes = [1, 512], strides = [1, 1]} : vector<8x512xf32> to vector<1x512xf32>
    %33 = vector.broadcast %32 : vector<1x512xf32> to vector<8x512xf32>
    %34 = arith.mulf %31, %33 : vector<8x512xf32>
    %c48 = arith.constant 48 : index
    %c0_15 = arith.constant 0 : index
    %35 = vector.load %arg12[%c48, %c0_15] : memref<144x512xf32, #tpu.memory_space<vmem>>, vector<8x512xf32>
    tpu.vector_store %arg12[%c48, %c0_15], %34 {strides = array<i32>} : memref<144x512xf32, #tpu.memory_space<vmem>>, vector<8x512xf32>,
    %c496_i32 = arith.constant 496 : i32
    %36 = tpu.dynamic_rotate %2 by %c496_i32 dim 1 : vector<8x512xf32>, i32 -> vector<8x512xf32>
    %37 = vector.extract_strided_slice %0 {offsets = [6, 0], sizes = [1, 512], strides = [1, 1]} : vector<8x512xf32> to vector<1x512xf32>
    %38 = vector.broadcast %37 : vector<1x512xf32> to vector<8x512xf32>
    %39 = arith.mulf %36, %38 : vector<8x512xf32>
    %c56 = arith.constant 56 : index
    %c0_16 = arith.constant 0 : index
    %40 = vector.load %arg12[%c56, %c0_16] : memref<144x512xf32, #tpu.memory_space<vmem>>, vector<8x512xf32>
    tpu.vector_store %arg12[%c56, %c0_16], %39 {strides = array<i32>} : memref<144x512xf32, #tpu.memory_space<vmem>>, vector<8x512xf32>,
    %c495_i32 = arith.constant 495 : i32
    %41 = tpu.dynamic_rotate %2 by %c495_i32 dim 1 : vector<8x512xf32>, i32 -> vector<8x512xf32>
    %42 = vector.extract_strided_slice %0 {offsets = [7, 0], sizes = [1, 512], strides = [1, 1]} : vector<8x512xf32> to vector<1x512xf32>
    %43 = vector.broadcast %42 : vector<1x512xf32> to vector<8x512xf32>
    %44 = arith.mulf %41, %43 : vector<8x512xf32>
    %c64 = arith.constant 64 : index
    %c0_17 = arith.constant 0 : index
    %45 = vector.load %arg12[%c64, %c0_17] : memref<144x512xf32, #tpu.memory_space<vmem>>, vector<8x512xf32>
    tpu.vector_store %arg12[%c64, %c0_17], %44 {strides = array<i32>} : memref<144x512xf32, #tpu.memory_space<vmem>>, vector<8x512xf32>,
    %c0_18 = arith.constant 0 : index
    %c0_19 = arith.constant 0 : index
    %46 = vector.load %arg12[%c0_18, %c0_19] : memref<144x512xf32, #tpu.memory_space<vmem>>, vector<72x512xf32>
    %cst = arith.constant dense<0.000000e+00> : vector<16x512xf32>
    %47 = tpu.matmul %3, %46, %cst {dimension_numbers = #tpu.dot_dimension_numbers<[1], [0], [0], [1], [0, 0, 1, 1], [], []>} : vector<16x72xf32>, vector<72x512xf32>, vector<16x512xf32> -> vector<16x512xf32>
    %48 = vector.broadcast %4 : vector<16x1xf32> to vector<16x512xf32>
    %49 = arith.addf %47, %48 : vector<16x512xf32>
    %cst_20 = arith.constant 2.000000e-01 : f32
    %50 = vector.broadcast %cst_20 : f32 to vector<16x512xf32>
    %51 = arith.mulf %50, %49 : vector<16x512xf32>
    %52 = arith.maximumf %49, %51 : vector<16x512xf32>
    %c0_21 = arith.constant 0 : index
    %c0_22 = arith.constant 0 : index
    %c0_23 = arith.constant 0 : index
    %53 = vector.load %arg5[%c0_21, %c0_22, %c0_23] : memref<6x16x144xf32, #tpu.memory_space<vmem>>, vector<1x16x144xf32>
    %54 = vector.shape_cast %53 : vector<1x16x144xf32> to vector<16x144xf32>
    %c0_24 = arith.constant 0 : index
    %c0_25 = arith.constant 0 : index
    %c0_26 = arith.constant 0 : index
    %55 = vector.load %arg6[%c0_24, %c0_25, %c0_26] : memref<6x16x1xf32, #tpu.memory_space<vmem>>, vector<1x16x1xf32>
    %56 = vector.shape_cast %55 : vector<1x16x1xf32> to vector<16x1xf32>
    %c17_i32_27 = arith.constant 17 : i32
    %57 = tpu.dynamic_rotate %52 by %c17_i32_27 dim 1 : vector<16x512xf32>, i32 -> vector<16x512xf32>
    %58 = vector.extract_strided_slice %0 {offsets = [0, 0], sizes = [1, 512], strides = [1, 1]} : vector<8x512xf32> to vector<1x512xf32>
    %59 = vector.broadcast %58 : vector<1x512xf32> to vector<16x512xf32>
    %60 = arith.mulf %57, %59 : vector<16x512xf32>
    %c0_28 = arith.constant 0 : index
    %c0_29 = arith.constant 0 : index
    %61 = vector.load %arg12[%c0_28, %c0_29] : memref<144x512xf32, #tpu.memory_space<vmem>>, vector<16x512xf32>
    tpu.vector_store %arg12[%c0_28, %c0_29], %60 {strides = array<i32>} : memref<144x512xf32, #tpu.memory_space<vmem>>, vector<16x512xf32>,
    %c16_i32_30 = arith.constant 16 : i32
    %62 = tpu.dynamic_rotate %52 by %c16_i32_30 dim 1 : vector<16x512xf32>, i32 -> vector<16x512xf32>
    %63 = vector.extract_strided_slice %0 {offsets = [1, 0], sizes = [1, 512], strides = [1, 1]} : vector<8x512xf32> to vector<1x512xf32>
    %64 = vector.broadcast %63 : vector<1x512xf32> to vector<16x512xf32>
    %65 = arith.mulf %62, %64 : vector<16x512xf32>
    %c16_31 = arith.constant 16 : index
    %c0_32 = arith.constant 0 : index
    %66 = vector.load %arg12[%c16_31, %c0_32] : memref<144x512xf32, #tpu.memory_space<vmem>>, vector<16x512xf32>
    tpu.vector_store %arg12[%c16_31, %c0_32], %65 {strides = array<i32>} : memref<144x512xf32, #tpu.memory_space<vmem>>, vector<16x512xf32>,
    %c15_i32_33 = arith.constant 15 : i32
    %67 = tpu.dynamic_rotate %52 by %c15_i32_33 dim 1 : vector<16x512xf32>, i32 -> vector<16x512xf32>
    %68 = vector.extract_strided_slice %0 {offsets = [2, 0], sizes = [1, 512], strides = [1, 1]} : vector<8x512xf32> to vector<1x512xf32>
    %69 = vector.broadcast %68 : vector<1x512xf32> to vector<16x512xf32>
    %70 = arith.mulf %67, %69 : vector<16x512xf32>
    %c32_34 = arith.constant 32 : index
    %c0_35 = arith.constant 0 : index
    %71 = vector.load %arg12[%c32_34, %c0_35] : memref<144x512xf32, #tpu.memory_space<vmem>>, vector<16x512xf32>
    tpu.vector_store %arg12[%c32_34, %c0_35], %70 {strides = array<i32>} : memref<144x512xf32, #tpu.memory_space<vmem>>, vector<16x512xf32>,
    %c1_i32_36 = arith.constant 1 : i32
    %72 = tpu.dynamic_rotate %52 by %c1_i32_36 dim 1 : vector<16x512xf32>, i32 -> vector<16x512xf32>
    %73 = vector.extract_strided_slice %0 {offsets = [3, 0], sizes = [1, 512], strides = [1, 1]} : vector<8x512xf32> to vector<1x512xf32>
    %74 = vector.broadcast %73 : vector<1x512xf32> to vector<16x512xf32>
    %75 = arith.mulf %72, %74 : vector<16x512xf32>
    %c48_37 = arith.constant 48 : index
    %c0_38 = arith.constant 0 : index
    %76 = vector.load %arg12[%c48_37, %c0_38] : memref<144x512xf32, #tpu.memory_space<vmem>>, vector<16x512xf32>
    tpu.vector_store %arg12[%c48_37, %c0_38], %75 {strides = array<i32>} : memref<144x512xf32, #tpu.memory_space<vmem>>, vector<16x512xf32>,
    %c64_39 = arith.constant 64 : index
    %c0_40 = arith.constant 0 : index
    %77 = vector.load %arg12[%c64_39, %c0_40] : memref<144x512xf32, #tpu.memory_space<vmem>>, vector<16x512xf32>
    tpu.vector_store %arg12[%c64_39, %c0_40], %52 {strides = array<i32>} : memref<144x512xf32, #tpu.memory_space<vmem>>, vector<16x512xf32>,
    %c511_i32_41 = arith.constant 511 : i32
    %78 = tpu.dynamic_rotate %52 by %c511_i32_41 dim 1 : vector<16x512xf32>, i32 -> vector<16x512xf32>
    %79 = vector.extract_strided_slice %0 {offsets = [4, 0], sizes = [1, 512], strides = [1, 1]} : vector<8x512xf32> to vector<1x512xf32>
    %80 = vector.broadcast %79 : vector<1x512xf32> to vector<16x512xf32>
    %81 = arith.mulf %78, %80 : vector<16x512xf32>
    %c80 = arith.constant 80 : index
    %c0_42 = arith.constant 0 : index
    %82 = vector.load %arg12[%c80, %c0_42] : memref<144x512xf32, #tpu.memory_space<vmem>>, vector<16x512xf32>
    tpu.vector_store %arg12[%c80, %c0_42], %81 {strides = array<i32>} : memref<144x512xf32, #tpu.memory_space<vmem>>, vector<16x512xf32>,
    %c497_i32_43 = arith.constant 497 : i32
    %83 = tpu.dynamic_rotate %52 by %c497_i32_43 dim 1 : vector<16x512xf32>, i32 -> vector<16x512xf32>
    %84 = vector.extract_strided_slice %0 {offsets = [5, 0], sizes = [1, 512], strides = [1, 1]} : vector<8x512xf32> to vector<1x512xf32>
    %85 = vector.broadcast %84 : vector<1x512xf32> to vector<16x512xf32>
    %86 = arith.mulf %83, %85 : vector<16x512xf32>
    %c96 = arith.constant 96 : index
    %c0_44 = arith.constant 0 : index
    %87 = vector.load %arg12[%c96, %c0_44] : memref<144x512xf32, #tpu.memory_space<vmem>>, vector<16x512xf32>
    tpu.vector_store %arg12[%c96, %c0_44], %86 {strides = array<i32>} : memref<144x512xf32, #tpu.memory_space<vmem>>, vector<16x512xf32>,
    %c496_i32_45 = arith.constant 496 : i32
    %88 = tpu.dynamic_rotate %52 by %c496_i32_45 dim 1 : vector<16x512xf32>, i32 -> vector<16x512xf32>
    %89 = vector.extract_strided_slice %0 {offsets = [6, 0], sizes = [1, 512], strides = [1, 1]} : vector<8x512xf32> to vector<1x512xf32>
    %90 = vector.broadcast %89 : vector<1x512xf32> to vector<16x512xf32>
    %91 = arith.mulf %88, %90 : vector<16x512xf32>
    %c112 = arith.constant 112 : index
    %c0_46 = arith.constant 0 : index
    %92 = vector.load %arg12[%c112, %c0_46] : memref<144x512xf32, #tpu.memory_space<vmem>>, vector<16x512xf32>
    tpu.vector_store %arg12[%c112, %c0_46], %91 {strides = array<i32>} : memref<144x512xf32, #tpu.memory_space<vmem>>, vector<16x512xf32>,
    %c495_i32_47 = arith.constant 495 : i32
    %93 = tpu.dynamic_rotate %52 by %c495_i32_47 dim 1 : vector<16x512xf32>, i32 -> vector<16x512xf32>
    %94 = vector.extract_strided_slice %0 {offsets = [7, 0], sizes = [1, 512], strides = [1, 1]} : vector<8x512xf32> to vector<1x512xf32>
    %95 = vector.broadcast %94 : vector<1x512xf32> to vector<16x512xf32>
    %96 = arith.mulf %93, %95 : vector<16x512xf32>
    %c128 = arith.constant 128 : index
    %c0_48 = arith.constant 0 : index
    %97 = vector.load %arg12[%c128, %c0_48] : memref<144x512xf32, #tpu.memory_space<vmem>>, vector<16x512xf32>
    tpu.vector_store %arg12[%c128, %c0_48], %96 {strides = array<i32>} : memref<144x512xf32, #tpu.memory_space<vmem>>, vector<16x512xf32>,
    %c0_49 = arith.constant 0 : index
    %c0_50 = arith.constant 0 : index
    %98 = vector.load %arg12[%c0_49, %c0_50] : memref<144x512xf32, #tpu.memory_space<vmem>>, vector<144x512xf32>
    %cst_51 = arith.constant dense<0.000000e+00> : vector<16x512xf32>
    %99 = tpu.matmul %54, %98, %cst_51 {dimension_numbers = #tpu.dot_dimension_numbers<[1], [0], [0], [1], [0, 0, 1, 1], [], []>} : vector<16x144xf32>, vector<144x512xf32>, vector<16x512xf32> -> vector<16x512xf32>
    %100 = vector.broadcast %56 : vector<16x1xf32> to vector<16x512xf32>
    %101 = arith.addf %99, %100 : vector<16x512xf32>
    %cst_52 = arith.constant 2.000000e-01 : f32
    %102 = vector.broadcast %cst_52 : f32 to vector<16x512xf32>
    %103 = arith.mulf %102, %101 : vector<16x512xf32>
    %104 = arith.maximumf %101, %103 : vector<16x512xf32>
    %c0_53 = arith.constant 0 : index
    %c0_54 = arith.constant 0 : index
    %105 = vector.load %arg7[%c0_53, %c0_54] : memref<16x16xf32, #tpu.memory_space<vmem>>, vector<16x16xf32>
    %c0_55 = arith.constant 0 : index
    %c0_56 = arith.constant 0 : index
    %106 = vector.load %arg8[%c0_55, %c0_56] : memref<16x1xf32, #tpu.memory_space<vmem>>, vector<16x1xf32>
    %cst_57 = arith.constant dense<0.000000e+00> : vector<16x512xf32>
    %107 = tpu.matmul %105, %104, %cst_57 {dimension_numbers = #tpu.dot_dimension_numbers<[1], [0], [0], [1], [0, 0, 1, 1], [], []>} : vector<16x16xf32>, vector<16x512xf32>, vector<16x512xf32> -> vector<16x512xf32>
    %108 = vector.broadcast %106 : vector<16x1xf32> to vector<16x512xf32>
    %109 = arith.addf %107, %108 : vector<16x512xf32>
    %cst_58 = arith.constant 2.000000e-01 : f32
    %110 = vector.broadcast %cst_58 : f32 to vector<16x512xf32>
    %111 = arith.mulf %110, %109 : vector<16x512xf32>
    %112 = arith.maximumf %109, %111 : vector<16x512xf32>
    %c1 = arith.constant 1 : index
    %c0_59 = arith.constant 0 : index
    %c0_60 = arith.constant 0 : index
    %113 = vector.load %arg5[%c1, %c0_59, %c0_60] : memref<6x16x144xf32, #tpu.memory_space<vmem>>, vector<1x16x144xf32>
    %114 = vector.shape_cast %113 : vector<1x16x144xf32> to vector<16x144xf32>
    %c1_61 = arith.constant 1 : index
    %c0_62 = arith.constant 0 : index
    %c0_63 = arith.constant 0 : index
    %115 = vector.load %arg6[%c1_61, %c0_62, %c0_63] : memref<6x16x1xf32, #tpu.memory_space<vmem>>, vector<1x16x1xf32>
    %116 = vector.shape_cast %115 : vector<1x16x1xf32> to vector<16x1xf32>
    %c17_i32_64 = arith.constant 17 : i32
    %117 = tpu.dynamic_rotate %112 by %c17_i32_64 dim 1 : vector<16x512xf32>, i32 -> vector<16x512xf32>
    %118 = vector.extract_strided_slice %0 {offsets = [0, 0], sizes = [1, 512], strides = [1, 1]} : vector<8x512xf32> to vector<1x512xf32>
    %119 = vector.broadcast %118 : vector<1x512xf32> to vector<16x512xf32>
    %120 = arith.mulf %117, %119 : vector<16x512xf32>
    %c0_65 = arith.constant 0 : index
    %c0_66 = arith.constant 0 : index
    %121 = vector.load %arg12[%c0_65, %c0_66] : memref<144x512xf32, #tpu.memory_space<vmem>>, vector<16x512xf32>
    tpu.vector_store %arg12[%c0_65, %c0_66], %120 {strides = array<i32>} : memref<144x512xf32, #tpu.memory_space<vmem>>, vector<16x512xf32>,
    %c16_i32_67 = arith.constant 16 : i32
    %122 = tpu.dynamic_rotate %112 by %c16_i32_67 dim 1 : vector<16x512xf32>, i32 -> vector<16x512xf32>
    %123 = vector.extract_strided_slice %0 {offsets = [1, 0], sizes = [1, 512], strides = [1, 1]} : vector<8x512xf32> to vector<1x512xf32>
    %124 = vector.broadcast %123 : vector<1x512xf32> to vector<16x512xf32>
    %125 = arith.mulf %122, %124 : vector<16x512xf32>
    %c16_68 = arith.constant 16 : index
    %c0_69 = arith.constant 0 : index
    %126 = vector.load %arg12[%c16_68, %c0_69] : memref<144x512xf32, #tpu.memory_space<vmem>>, vector<16x512xf32>
    tpu.vector_store %arg12[%c16_68, %c0_69], %125 {strides = array<i32>} : memref<144x512xf32, #tpu.memory_space<vmem>>, vector<16x512xf32>,
    %c15_i32_70 = arith.constant 15 : i32
    %127 = tpu.dynamic_rotate %112 by %c15_i32_70 dim 1 : vector<16x512xf32>, i32 -> vector<16x512xf32>
    %128 = vector.extract_strided_slice %0 {offsets = [2, 0], sizes = [1, 512], strides = [1, 1]} : vector<8x512xf32> to vector<1x512xf32>
    %129 = vector.broadcast %128 : vector<1x512xf32> to vector<16x512xf32>
    %130 = arith.mulf %127, %129 : vector<16x512xf32>
    %c32_71 = arith.constant 32 : index
    %c0_72 = arith.constant 0 : index
    %131 = vector.load %arg12[%c32_71, %c0_72] : memref<144x512xf32, #tpu.memory_space<vmem>>, vector<16x512xf32>
    tpu.vector_store %arg12[%c32_71, %c0_72], %130 {strides = array<i32>} : memref<144x512xf32, #tpu.memory_space<vmem>>, vector<16x512xf32>,
    %c1_i32_73 = arith.constant 1 : i32
    %132 = tpu.dynamic_rotate %112 by %c1_i32_73 dim 1 : vector<16x512xf32>, i32 -> vector<16x512xf32>
    %133 = vector.extract_strided_slice %0 {offsets = [3, 0], sizes = [1, 512], strides = [1, 1]} : vector<8x512xf32> to vector<1x512xf32>
    %134 = vector.broadcast %133 : vector<1x512xf32> to vector<16x512xf32>
    %135 = arith.mulf %132, %134 : vector<16x512xf32>
    %c48_74 = arith.constant 48 : index
    %c0_75 = arith.constant 0 : index
    %136 = vector.load %arg12[%c48_74, %c0_75] : memref<144x512xf32, #tpu.memory_space<vmem>>, vector<16x512xf32>
    tpu.vector_store %arg12[%c48_74, %c0_75], %135 {strides = array<i32>} : memref<144x512xf32, #tpu.memory_space<vmem>>, vector<16x512xf32>,
    %c64_76 = arith.constant 64 : index
    %c0_77 = arith.constant 0 : index
    %137 = vector.load %arg12[%c64_76, %c0_77] : memref<144x512xf32, #tpu.memory_space<vmem>>, vector<16x512xf32>
    tpu.vector_store %arg12[%c64_76, %c0_77], %112 {strides = array<i32>} : memref<144x512xf32, #tpu.memory_space<vmem>>, vector<16x512xf32>,
    %c511_i32_78 = arith.constant 511 : i32
    %138 = tpu.dynamic_rotate %112 by %c511_i32_78 dim 1 : vector<16x512xf32>, i32 -> vector<16x512xf32>
    %139 = vector.extract_strided_slice %0 {offsets = [4, 0], sizes = [1, 512], strides = [1, 1]} : vector<8x512xf32> to vector<1x512xf32>
    %140 = vector.broadcast %139 : vector<1x512xf32> to vector<16x512xf32>
    %141 = arith.mulf %138, %140 : vector<16x512xf32>
    %c80_79 = arith.constant 80 : index
    %c0_80 = arith.constant 0 : index
    %142 = vector.load %arg12[%c80_79, %c0_80] : memref<144x512xf32, #tpu.memory_space<vmem>>, vector<16x512xf32>
    tpu.vector_store %arg12[%c80_79, %c0_80], %141 {strides = array<i32>} : memref<144x512xf32, #tpu.memory_space<vmem>>, vector<16x512xf32>,
    %c497_i32_81 = arith.constant 497 : i32
    %143 = tpu.dynamic_rotate %112 by %c497_i32_81 dim 1 : vector<16x512xf32>, i32 -> vector<16x512xf32>
    %144 = vector.extract_strided_slice %0 {offsets = [5, 0], sizes = [1, 512], strides = [1, 1]} : vector<8x512xf32> to vector<1x512xf32>
    %145 = vector.broadcast %144 : vector<1x512xf32> to vector<16x512xf32>
    %146 = arith.mulf %143, %145 : vector<16x512xf32>
    %c96_82 = arith.constant 96 : index
    %c0_83 = arith.constant 0 : index
    %147 = vector.load %arg12[%c96_82, %c0_83] : memref<144x512xf32, #tpu.memory_space<vmem>>, vector<16x512xf32>
    tpu.vector_store %arg12[%c96_82, %c0_83], %146 {strides = array<i32>} : memref<144x512xf32, #tpu.memory_space<vmem>>, vector<16x512xf32>,
    %c496_i32_84 = arith.constant 496 : i32
    %148 = tpu.dynamic_rotate %112 by %c496_i32_84 dim 1 : vector<16x512xf32>, i32 -> vector<16x512xf32>
    %149 = vector.extract_strided_slice %0 {offsets = [6, 0], sizes = [1, 512], strides = [1, 1]} : vector<8x512xf32> to vector<1x512xf32>
    %150 = vector.broadcast %149 : vector<1x512xf32> to vector<16x512xf32>
    %151 = arith.mulf %148, %150 : vector<16x512xf32>
    %c112_85 = arith.constant 112 : index
    %c0_86 = arith.constant 0 : index
    %152 = vector.load %arg12[%c112_85, %c0_86] : memref<144x512xf32, #tpu.memory_space<vmem>>, vector<16x512xf32>
    tpu.vector_store %arg12[%c112_85, %c0_86], %151 {strides = array<i32>} : memref<144x512xf32, #tpu.memory_space<vmem>>, vector<16x512xf32>,
    %c495_i32_87 = arith.constant 495 : i32
    %153 = tpu.dynamic_rotate %112 by %c495_i32_87 dim 1 : vector<16x512xf32>, i32 -> vector<16x512xf32>
    %154 = vector.extract_strided_slice %0 {offsets = [7, 0], sizes = [1, 512], strides = [1, 1]} : vector<8x512xf32> to vector<1x512xf32>
    %155 = vector.broadcast %154 : vector<1x512xf32> to vector<16x512xf32>
    %156 = arith.mulf %153, %155 : vector<16x512xf32>
    %c128_88 = arith.constant 128 : index
    %c0_89 = arith.constant 0 : index
    %157 = vector.load %arg12[%c128_88, %c0_89] : memref<144x512xf32, #tpu.memory_space<vmem>>, vector<16x512xf32>
    tpu.vector_store %arg12[%c128_88, %c0_89], %156 {strides = array<i32>} : memref<144x512xf32, #tpu.memory_space<vmem>>, vector<16x512xf32>,
    %c0_90 = arith.constant 0 : index
    %c0_91 = arith.constant 0 : index
    %158 = vector.load %arg12[%c0_90, %c0_91] : memref<144x512xf32, #tpu.memory_space<vmem>>, vector<144x512xf32>
    %cst_92 = arith.constant dense<0.000000e+00> : vector<16x512xf32>
    %159 = tpu.matmul %114, %158, %cst_92 {dimension_numbers = #tpu.dot_dimension_numbers<[1], [0], [0], [1], [0, 0, 1, 1], [], []>} : vector<16x144xf32>, vector<144x512xf32>, vector<16x512xf32> -> vector<16x512xf32>
    %160 = vector.broadcast %116 : vector<16x1xf32> to vector<16x512xf32>
    %161 = arith.addf %159, %160 : vector<16x512xf32>
    %cst_93 = arith.constant 2.000000e-01 : f32
    %162 = vector.broadcast %cst_93 : f32 to vector<16x512xf32>
    %163 = arith.mulf %162, %161 : vector<16x512xf32>
    %164 = arith.maximumf %161, %163 : vector<16x512xf32>
    %c2 = arith.constant 2 : index
    %c0_94 = arith.constant 0 : index
    %c0_95 = arith.constant 0 : index
    %165 = vector.load %arg5[%c2, %c0_94, %c0_95] : memref<6x16x144xf32, #tpu.memory_space<vmem>>, vector<1x16x144xf32>
    %166 = vector.shape_cast %165 : vector<1x16x144xf32> to vector<16x144xf32>
    %c2_96 = arith.constant 2 : index
    %c0_97 = arith.constant 0 : index
    %c0_98 = arith.constant 0 : index
    %167 = vector.load %arg6[%c2_96, %c0_97, %c0_98] : memref<6x16x1xf32, #tpu.memory_space<vmem>>, vector<1x16x1xf32>
    %168 = vector.shape_cast %167 : vector<1x16x1xf32> to vector<16x1xf32>
    %c17_i32_99 = arith.constant 17 : i32
    %169 = tpu.dynamic_rotate %164 by %c17_i32_99 dim 1 : vector<16x512xf32>, i32 -> vector<16x512xf32>
    %170 = vector.extract_strided_slice %0 {offsets = [0, 0], sizes = [1, 512], strides = [1, 1]} : vector<8x512xf32> to vector<1x512xf32>
    %171 = vector.broadcast %170 : vector<1x512xf32> to vector<16x512xf32>
    %172 = arith.mulf %169, %171 : vector<16x512xf32>
    %c0_100 = arith.constant 0 : index
    %c0_101 = arith.constant 0 : index
    %173 = vector.load %arg12[%c0_100, %c0_101] : memref<144x512xf32, #tpu.memory_space<vmem>>, vector<16x512xf32>
    tpu.vector_store %arg12[%c0_100, %c0_101], %172 {strides = array<i32>} : memref<144x512xf32, #tpu.memory_space<vmem>>, vector<16x512xf32>,
    %c16_i32_102 = arith.constant 16 : i32
    %174 = tpu.dynamic_rotate %164 by %c16_i32_102 dim 1 : vector<16x512xf32>, i32 -> vector<16x512xf32>
    %175 = vector.extract_strided_slice %0 {offsets = [1, 0], sizes = [1, 512], strides = [1, 1]} : vector<8x512xf32> to vector<1x512xf32>
    %176 = vector.broadcast %175 : vector<1x512xf32> to vector<16x512xf32>
    %177 = arith.mulf %174, %176 : vector<16x512xf32>
    %c16_103 = arith.constant 16 : index
    %c0_104 = arith.constant 0 : index
    %178 = vector.load %arg12[%c16_103, %c0_104] : memref<144x512xf32, #tpu.memory_space<vmem>>, vector<16x512xf32>
    tpu.vector_store %arg12[%c16_103, %c0_104], %177 {strides = array<i32>} : memref<144x512xf32, #tpu.memory_space<vmem>>, vector<16x512xf32>,
    %c15_i32_105 = arith.constant 15 : i32
    %179 = tpu.dynamic_rotate %164 by %c15_i32_105 dim 1 : vector<16x512xf32>, i32 -> vector<16x512xf32>
    %180 = vector.extract_strided_slice %0 {offsets = [2, 0], sizes = [1, 512], strides = [1, 1]} : vector<8x512xf32> to vector<1x512xf32>
    %181 = vector.broadcast %180 : vector<1x512xf32> to vector<16x512xf32>
    %182 = arith.mulf %179, %181 : vector<16x512xf32>
    %c32_106 = arith.constant 32 : index
    %c0_107 = arith.constant 0 : index
    %183 = vector.load %arg12[%c32_106, %c0_107] : memref<144x512xf32, #tpu.memory_space<vmem>>, vector<16x512xf32>
    tpu.vector_store %arg12[%c32_106, %c0_107], %182 {strides = array<i32>} : memref<144x512xf32, #tpu.memory_space<vmem>>, vector<16x512xf32>,
    %c1_i32_108 = arith.constant 1 : i32
    %184 = tpu.dynamic_rotate %164 by %c1_i32_108 dim 1 : vector<16x512xf32>, i32 -> vector<16x512xf32>
    %185 = vector.extract_strided_slice %0 {offsets = [3, 0], sizes = [1, 512], strides = [1, 1]} : vector<8x512xf32> to vector<1x512xf32>
    %186 = vector.broadcast %185 : vector<1x512xf32> to vector<16x512xf32>
    %187 = arith.mulf %184, %186 : vector<16x512xf32>
    %c48_109 = arith.constant 48 : index
    %c0_110 = arith.constant 0 : index
    %188 = vector.load %arg12[%c48_109, %c0_110] : memref<144x512xf32, #tpu.memory_space<vmem>>, vector<16x512xf32>
    tpu.vector_store %arg12[%c48_109, %c0_110], %187 {strides = array<i32>} : memref<144x512xf32, #tpu.memory_space<vmem>>, vector<16x512xf32>,
    %c64_111 = arith.constant 64 : index
    %c0_112 = arith.constant 0 : index
    %189 = vector.load %arg12[%c64_111, %c0_112] : memref<144x512xf32, #tpu.memory_space<vmem>>, vector<16x512xf32>
    tpu.vector_store %arg12[%c64_111, %c0_112], %164 {strides = array<i32>} : memref<144x512xf32, #tpu.memory_space<vmem>>, vector<16x512xf32>,
    %c511_i32_113 = arith.constant 511 : i32
    %190 = tpu.dynamic_rotate %164 by %c511_i32_113 dim 1 : vector<16x512xf32>, i32 -> vector<16x512xf32>
    %191 = vector.extract_strided_slice %0 {offsets = [4, 0], sizes = [1, 512], strides = [1, 1]} : vector<8x512xf32> to vector<1x512xf32>
    %192 = vector.broadcast %191 : vector<1x512xf32> to vector<16x512xf32>
    %193 = arith.mulf %190, %192 : vector<16x512xf32>
    %c80_114 = arith.constant 80 : index
    %c0_115 = arith.constant 0 : index
    %194 = vector.load %arg12[%c80_114, %c0_115] : memref<144x512xf32, #tpu.memory_space<vmem>>, vector<16x512xf32>
    tpu.vector_store %arg12[%c80_114, %c0_115], %193 {strides = array<i32>} : memref<144x512xf32, #tpu.memory_space<vmem>>, vector<16x512xf32>,
    %c497_i32_116 = arith.constant 497 : i32
    %195 = tpu.dynamic_rotate %164 by %c497_i32_116 dim 1 : vector<16x512xf32>, i32 -> vector<16x512xf32>
    %196 = vector.extract_strided_slice %0 {offsets = [5, 0], sizes = [1, 512], strides = [1, 1]} : vector<8x512xf32> to vector<1x512xf32>
    %197 = vector.broadcast %196 : vector<1x512xf32> to vector<16x512xf32>
    %198 = arith.mulf %195, %197 : vector<16x512xf32>
    %c96_117 = arith.constant 96 : index
    %c0_118 = arith.constant 0 : index
    %199 = vector.load %arg12[%c96_117, %c0_118] : memref<144x512xf32, #tpu.memory_space<vmem>>, vector<16x512xf32>
    tpu.vector_store %arg12[%c96_117, %c0_118], %198 {strides = array<i32>} : memref<144x512xf32, #tpu.memory_space<vmem>>, vector<16x512xf32>,
    %c496_i32_119 = arith.constant 496 : i32
    %200 = tpu.dynamic_rotate %164 by %c496_i32_119 dim 1 : vector<16x512xf32>, i32 -> vector<16x512xf32>
    %201 = vector.extract_strided_slice %0 {offsets = [6, 0], sizes = [1, 512], strides = [1, 1]} : vector<8x512xf32> to vector<1x512xf32>
    %202 = vector.broadcast %201 : vector<1x512xf32> to vector<16x512xf32>
    %203 = arith.mulf %200, %202 : vector<16x512xf32>
    %c112_120 = arith.constant 112 : index
    %c0_121 = arith.constant 0 : index
    %204 = vector.load %arg12[%c112_120, %c0_121] : memref<144x512xf32, #tpu.memory_space<vmem>>, vector<16x512xf32>
    tpu.vector_store %arg12[%c112_120, %c0_121], %203 {strides = array<i32>} : memref<144x512xf32, #tpu.memory_space<vmem>>, vector<16x512xf32>,
    %c495_i32_122 = arith.constant 495 : i32
    %205 = tpu.dynamic_rotate %164 by %c495_i32_122 dim 1 : vector<16x512xf32>, i32 -> vector<16x512xf32>
    %206 = vector.extract_strided_slice %0 {offsets = [7, 0], sizes = [1, 512], strides = [1, 1]} : vector<8x512xf32> to vector<1x512xf32>
    %207 = vector.broadcast %206 : vector<1x512xf32> to vector<16x512xf32>
    %208 = arith.mulf %205, %207 : vector<16x512xf32>
    %c128_123 = arith.constant 128 : index
    %c0_124 = arith.constant 0 : index
    %209 = vector.load %arg12[%c128_123, %c0_124] : memref<144x512xf32, #tpu.memory_space<vmem>>, vector<16x512xf32>
    tpu.vector_store %arg12[%c128_123, %c0_124], %208 {strides = array<i32>} : memref<144x512xf32, #tpu.memory_space<vmem>>, vector<16x512xf32>,
    %c0_125 = arith.constant 0 : index
    %c0_126 = arith.constant 0 : index
    %210 = vector.load %arg12[%c0_125, %c0_126] : memref<144x512xf32, #tpu.memory_space<vmem>>, vector<144x512xf32>
    %cst_127 = arith.constant dense<0.000000e+00> : vector<16x512xf32>
    %211 = tpu.matmul %166, %210, %cst_127 {dimension_numbers = #tpu.dot_dimension_numbers<[1], [0], [0], [1], [0, 0, 1, 1], [], []>} : vector<16x144xf32>, vector<144x512xf32>, vector<16x512xf32> -> vector<16x512xf32>
    %212 = vector.broadcast %168 : vector<16x1xf32> to vector<16x512xf32>
    %213 = arith.addf %211, %212 : vector<16x512xf32>
    %cst_128 = arith.constant 2.000000e-01 : f32
    %214 = vector.broadcast %cst_128 : f32 to vector<16x512xf32>
    %215 = arith.mulf %214, %213 : vector<16x512xf32>
    %216 = arith.maximumf %213, %215 : vector<16x512xf32>
    %c3 = arith.constant 3 : index
    %c0_129 = arith.constant 0 : index
    %c0_130 = arith.constant 0 : index
    %217 = vector.load %arg5[%c3, %c0_129, %c0_130] : memref<6x16x144xf32, #tpu.memory_space<vmem>>, vector<1x16x144xf32>
    %218 = vector.shape_cast %217 : vector<1x16x144xf32> to vector<16x144xf32>
    %c3_131 = arith.constant 3 : index
    %c0_132 = arith.constant 0 : index
    %c0_133 = arith.constant 0 : index
    %219 = vector.load %arg6[%c3_131, %c0_132, %c0_133] : memref<6x16x1xf32, #tpu.memory_space<vmem>>, vector<1x16x1xf32>
    %220 = vector.shape_cast %219 : vector<1x16x1xf32> to vector<16x1xf32>
    %c17_i32_134 = arith.constant 17 : i32
    %221 = tpu.dynamic_rotate %216 by %c17_i32_134 dim 1 : vector<16x512xf32>, i32 -> vector<16x512xf32>
    %222 = vector.extract_strided_slice %0 {offsets = [0, 0], sizes = [1, 512], strides = [1, 1]} : vector<8x512xf32> to vector<1x512xf32>
    %223 = vector.broadcast %222 : vector<1x512xf32> to vector<16x512xf32>
    %224 = arith.mulf %221, %223 : vector<16x512xf32>
    %c0_135 = arith.constant 0 : index
    %c0_136 = arith.constant 0 : index
    %225 = vector.load %arg12[%c0_135, %c0_136] : memref<144x512xf32, #tpu.memory_space<vmem>>, vector<16x512xf32>
    tpu.vector_store %arg12[%c0_135, %c0_136], %224 {strides = array<i32>} : memref<144x512xf32, #tpu.memory_space<vmem>>, vector<16x512xf32>,
    %c16_i32_137 = arith.constant 16 : i32
    %226 = tpu.dynamic_rotate %216 by %c16_i32_137 dim 1 : vector<16x512xf32>, i32 -> vector<16x512xf32>
    %227 = vector.extract_strided_slice %0 {offsets = [1, 0], sizes = [1, 512], strides = [1, 1]} : vector<8x512xf32> to vector<1x512xf32>
    %228 = vector.broadcast %227 : vector<1x512xf32> to vector<16x512xf32>
    %229 = arith.mulf %226, %228 : vector<16x512xf32>
    %c16_138 = arith.constant 16 : index
    %c0_139 = arith.constant 0 : index
    %230 = vector.load %arg12[%c16_138, %c0_139] : memref<144x512xf32, #tpu.memory_space<vmem>>, vector<16x512xf32>
    tpu.vector_store %arg12[%c16_138, %c0_139], %229 {strides = array<i32>} : memref<144x512xf32, #tpu.memory_space<vmem>>, vector<16x512xf32>,
    %c15_i32_140 = arith.constant 15 : i32
    %231 = tpu.dynamic_rotate %216 by %c15_i32_140 dim 1 : vector<16x512xf32>, i32 -> vector<16x512xf32>
    %232 = vector.extract_strided_slice %0 {offsets = [2, 0], sizes = [1, 512], strides = [1, 1]} : vector<8x512xf32> to vector<1x512xf32>
    %233 = vector.broadcast %232 : vector<1x512xf32> to vector<16x512xf32>
    %234 = arith.mulf %231, %233 : vector<16x512xf32>
    %c32_141 = arith.constant 32 : index
    %c0_142 = arith.constant 0 : index
    %235 = vector.load %arg12[%c32_141, %c0_142] : memref<144x512xf32, #tpu.memory_space<vmem>>, vector<16x512xf32>
    tpu.vector_store %arg12[%c32_141, %c0_142], %234 {strides = array<i32>} : memref<144x512xf32, #tpu.memory_space<vmem>>, vector<16x512xf32>,
    %c1_i32_143 = arith.constant 1 : i32
    %236 = tpu.dynamic_rotate %216 by %c1_i32_143 dim 1 : vector<16x512xf32>, i32 -> vector<16x512xf32>
    %237 = vector.extract_strided_slice %0 {offsets = [3, 0], sizes = [1, 512], strides = [1, 1]} : vector<8x512xf32> to vector<1x512xf32>
    %238 = vector.broadcast %237 : vector<1x512xf32> to vector<16x512xf32>
    %239 = arith.mulf %236, %238 : vector<16x512xf32>
    %c48_144 = arith.constant 48 : index
    %c0_145 = arith.constant 0 : index
    %240 = vector.load %arg12[%c48_144, %c0_145] : memref<144x512xf32, #tpu.memory_space<vmem>>, vector<16x512xf32>
    tpu.vector_store %arg12[%c48_144, %c0_145], %239 {strides = array<i32>} : memref<144x512xf32, #tpu.memory_space<vmem>>, vector<16x512xf32>,
    %c64_146 = arith.constant 64 : index
    %c0_147 = arith.constant 0 : index
    %241 = vector.load %arg12[%c64_146, %c0_147] : memref<144x512xf32, #tpu.memory_space<vmem>>, vector<16x512xf32>
    tpu.vector_store %arg12[%c64_146, %c0_147], %216 {strides = array<i32>} : memref<144x512xf32, #tpu.memory_space<vmem>>, vector<16x512xf32>,
    %c511_i32_148 = arith.constant 511 : i32
    %242 = tpu.dynamic_rotate %216 by %c511_i32_148 dim 1 : vector<16x512xf32>, i32 -> vector<16x512xf32>
    %243 = vector.extract_strided_slice %0 {offsets = [4, 0], sizes = [1, 512], strides = [1, 1]} : vector<8x512xf32> to vector<1x512xf32>
    %244 = vector.broadcast %243 : vector<1x512xf32> to vector<16x512xf32>
    %245 = arith.mulf %242, %244 : vector<16x512xf32>
    %c80_149 = arith.constant 80 : index
    %c0_150 = arith.constant 0 : index
    %246 = vector.load %arg12[%c80_149, %c0_150] : memref<144x512xf32, #tpu.memory_space<vmem>>, vector<16x512xf32>
    tpu.vector_store %arg12[%c80_149, %c0_150], %245 {strides = array<i32>} : memref<144x512xf32, #tpu.memory_space<vmem>>, vector<16x512xf32>,
    %c497_i32_151 = arith.constant 497 : i32
    %247 = tpu.dynamic_rotate %216 by %c497_i32_151 dim 1 : vector<16x512xf32>, i32 -> vector<16x512xf32>
    %248 = vector.extract_strided_slice %0 {offsets = [5, 0], sizes = [1, 512], strides = [1, 1]} : vector<8x512xf32> to vector<1x512xf32>
    %249 = vector.broadcast %248 : vector<1x512xf32> to vector<16x512xf32>
    %250 = arith.mulf %247, %249 : vector<16x512xf32>
    %c96_152 = arith.constant 96 : index
    %c0_153 = arith.constant 0 : index
    %251 = vector.load %arg12[%c96_152, %c0_153] : memref<144x512xf32, #tpu.memory_space<vmem>>, vector<16x512xf32>
    tpu.vector_store %arg12[%c96_152, %c0_153], %250 {strides = array<i32>} : memref<144x512xf32, #tpu.memory_space<vmem>>, vector<16x512xf32>,
    %c496_i32_154 = arith.constant 496 : i32
    %252 = tpu.dynamic_rotate %216 by %c496_i32_154 dim 1 : vector<16x512xf32>, i32 -> vector<16x512xf32>
    %253 = vector.extract_strided_slice %0 {offsets = [6, 0], sizes = [1, 512], strides = [1, 1]} : vector<8x512xf32> to vector<1x512xf32>
    %254 = vector.broadcast %253 : vector<1x512xf32> to vector<16x512xf32>
    %255 = arith.mulf %252, %254 : vector<16x512xf32>
    %c112_155 = arith.constant 112 : index
    %c0_156 = arith.constant 0 : index
    %256 = vector.load %arg12[%c112_155, %c0_156] : memref<144x512xf32, #tpu.memory_space<vmem>>, vector<16x512xf32>
    tpu.vector_store %arg12[%c112_155, %c0_156], %255 {strides = array<i32>} : memref<144x512xf32, #tpu.memory_space<vmem>>, vector<16x512xf32>,
    %c495_i32_157 = arith.constant 495 : i32
    %257 = tpu.dynamic_rotate %216 by %c495_i32_157 dim 1 : vector<16x512xf32>, i32 -> vector<16x512xf32>
    %258 = vector.extract_strided_slice %0 {offsets = [7, 0], sizes = [1, 512], strides = [1, 1]} : vector<8x512xf32> to vector<1x512xf32>
    %259 = vector.broadcast %258 : vector<1x512xf32> to vector<16x512xf32>
    %260 = arith.mulf %257, %259 : vector<16x512xf32>
    %c128_158 = arith.constant 128 : index
    %c0_159 = arith.constant 0 : index
    %261 = vector.load %arg12[%c128_158, %c0_159] : memref<144x512xf32, #tpu.memory_space<vmem>>, vector<16x512xf32>
    tpu.vector_store %arg12[%c128_158, %c0_159], %260 {strides = array<i32>} : memref<144x512xf32, #tpu.memory_space<vmem>>, vector<16x512xf32>,
    %c0_160 = arith.constant 0 : index
    %c0_161 = arith.constant 0 : index
    %262 = vector.load %arg12[%c0_160, %c0_161] : memref<144x512xf32, #tpu.memory_space<vmem>>, vector<144x512xf32>
    %cst_162 = arith.constant dense<0.000000e+00> : vector<16x512xf32>
    %263 = tpu.matmul %218, %262, %cst_162 {dimension_numbers = #tpu.dot_dimension_numbers<[1], [0], [0], [1], [0, 0, 1, 1], [], []>} : vector<16x144xf32>, vector<144x512xf32>, vector<16x512xf32> -> vector<16x512xf32>
    %264 = vector.broadcast %220 : vector<16x1xf32> to vector<16x512xf32>
    %265 = arith.addf %263, %264 : vector<16x512xf32>
    %cst_163 = arith.constant 2.000000e-01 : f32
    %266 = vector.broadcast %cst_163 : f32 to vector<16x512xf32>
    %267 = arith.mulf %266, %265 : vector<16x512xf32>
    %268 = arith.maximumf %265, %267 : vector<16x512xf32>
    %c4 = arith.constant 4 : index
    %c0_164 = arith.constant 0 : index
    %c0_165 = arith.constant 0 : index
    %269 = vector.load %arg5[%c4, %c0_164, %c0_165] : memref<6x16x144xf32, #tpu.memory_space<vmem>>, vector<1x16x144xf32>
    %270 = vector.shape_cast %269 : vector<1x16x144xf32> to vector<16x144xf32>
    %c4_166 = arith.constant 4 : index
    %c0_167 = arith.constant 0 : index
    %c0_168 = arith.constant 0 : index
    %271 = vector.load %arg6[%c4_166, %c0_167, %c0_168] : memref<6x16x1xf32, #tpu.memory_space<vmem>>, vector<1x16x1xf32>
    %272 = vector.shape_cast %271 : vector<1x16x1xf32> to vector<16x1xf32>
    %c17_i32_169 = arith.constant 17 : i32
    %273 = tpu.dynamic_rotate %268 by %c17_i32_169 dim 1 : vector<16x512xf32>, i32 -> vector<16x512xf32>
    %274 = vector.extract_strided_slice %0 {offsets = [0, 0], sizes = [1, 512], strides = [1, 1]} : vector<8x512xf32> to vector<1x512xf32>
    %275 = vector.broadcast %274 : vector<1x512xf32> to vector<16x512xf32>
    %276 = arith.mulf %273, %275 : vector<16x512xf32>
    %c0_170 = arith.constant 0 : index
    %c0_171 = arith.constant 0 : index
    %277 = vector.load %arg12[%c0_170, %c0_171] : memref<144x512xf32, #tpu.memory_space<vmem>>, vector<16x512xf32>
    tpu.vector_store %arg12[%c0_170, %c0_171], %276 {strides = array<i32>} : memref<144x512xf32, #tpu.memory_space<vmem>>, vector<16x512xf32>,
    %c16_i32_172 = arith.constant 16 : i32
    %278 = tpu.dynamic_rotate %268 by %c16_i32_172 dim 1 : vector<16x512xf32>, i32 -> vector<16x512xf32>
    %279 = vector.extract_strided_slice %0 {offsets = [1, 0], sizes = [1, 512], strides = [1, 1]} : vector<8x512xf32> to vector<1x512xf32>
    %280 = vector.broadcast %279 : vector<1x512xf32> to vector<16x512xf32>
    %281 = arith.mulf %278, %280 : vector<16x512xf32>
    %c16_173 = arith.constant 16 : index
    %c0_174 = arith.constant 0 : index
    %282 = vector.load %arg12[%c16_173, %c0_174] : memref<144x512xf32, #tpu.memory_space<vmem>>, vector<16x512xf32>
    tpu.vector_store %arg12[%c16_173, %c0_174], %281 {strides = array<i32>} : memref<144x512xf32, #tpu.memory_space<vmem>>, vector<16x512xf32>,
    %c15_i32_175 = arith.constant 15 : i32
    %283 = tpu.dynamic_rotate %268 by %c15_i32_175 dim 1 : vector<16x512xf32>, i32 -> vector<16x512xf32>
    %284 = vector.extract_strided_slice %0 {offsets = [2, 0], sizes = [1, 512], strides = [1, 1]} : vector<8x512xf32> to vector<1x512xf32>
    %285 = vector.broadcast %284 : vector<1x512xf32> to vector<16x512xf32>
    %286 = arith.mulf %283, %285 : vector<16x512xf32>
    %c32_176 = arith.constant 32 : index
    %c0_177 = arith.constant 0 : index
    %287 = vector.load %arg12[%c32_176, %c0_177] : memref<144x512xf32, #tpu.memory_space<vmem>>, vector<16x512xf32>
    tpu.vector_store %arg12[%c32_176, %c0_177], %286 {strides = array<i32>} : memref<144x512xf32, #tpu.memory_space<vmem>>, vector<16x512xf32>,
    %c1_i32_178 = arith.constant 1 : i32
    %288 = tpu.dynamic_rotate %268 by %c1_i32_178 dim 1 : vector<16x512xf32>, i32 -> vector<16x512xf32>
    %289 = vector.extract_strided_slice %0 {offsets = [3, 0], sizes = [1, 512], strides = [1, 1]} : vector<8x512xf32> to vector<1x512xf32>
    %290 = vector.broadcast %289 : vector<1x512xf32> to vector<16x512xf32>
    %291 = arith.mulf %288, %290 : vector<16x512xf32>
    %c48_179 = arith.constant 48 : index
    %c0_180 = arith.constant 0 : index
    %292 = vector.load %arg12[%c48_179, %c0_180] : memref<144x512xf32, #tpu.memory_space<vmem>>, vector<16x512xf32>
    tpu.vector_store %arg12[%c48_179, %c0_180], %291 {strides = array<i32>} : memref<144x512xf32, #tpu.memory_space<vmem>>, vector<16x512xf32>,
    %c64_181 = arith.constant 64 : index
    %c0_182 = arith.constant 0 : index
    %293 = vector.load %arg12[%c64_181, %c0_182] : memref<144x512xf32, #tpu.memory_space<vmem>>, vector<16x512xf32>
    tpu.vector_store %arg12[%c64_181, %c0_182], %268 {strides = array<i32>} : memref<144x512xf32, #tpu.memory_space<vmem>>, vector<16x512xf32>,
    %c511_i32_183 = arith.constant 511 : i32
    %294 = tpu.dynamic_rotate %268 by %c511_i32_183 dim 1 : vector<16x512xf32>, i32 -> vector<16x512xf32>
    %295 = vector.extract_strided_slice %0 {offsets = [4, 0], sizes = [1, 512], strides = [1, 1]} : vector<8x512xf32> to vector<1x512xf32>
    %296 = vector.broadcast %295 : vector<1x512xf32> to vector<16x512xf32>
    %297 = arith.mulf %294, %296 : vector<16x512xf32>
    %c80_184 = arith.constant 80 : index
    %c0_185 = arith.constant 0 : index
    %298 = vector.load %arg12[%c80_184, %c0_185] : memref<144x512xf32, #tpu.memory_space<vmem>>, vector<16x512xf32>
    tpu.vector_store %arg12[%c80_184, %c0_185], %297 {strides = array<i32>} : memref<144x512xf32, #tpu.memory_space<vmem>>, vector<16x512xf32>,
    %c497_i32_186 = arith.constant 497 : i32
    %299 = tpu.dynamic_rotate %268 by %c497_i32_186 dim 1 : vector<16x512xf32>, i32 -> vector<16x512xf32>
    %300 = vector.extract_strided_slice %0 {offsets = [5, 0], sizes = [1, 512], strides = [1, 1]} : vector<8x512xf32> to vector<1x512xf32>
    %301 = vector.broadcast %300 : vector<1x512xf32> to vector<16x512xf32>
    %302 = arith.mulf %299, %301 : vector<16x512xf32>
    %c96_187 = arith.constant 96 : index
    %c0_188 = arith.constant 0 : index
    %303 = vector.load %arg12[%c96_187, %c0_188] : memref<144x512xf32, #tpu.memory_space<vmem>>, vector<16x512xf32>
    tpu.vector_store %arg12[%c96_187, %c0_188], %302 {strides = array<i32>} : memref<144x512xf32, #tpu.memory_space<vmem>>, vector<16x512xf32>,
    %c496_i32_189 = arith.constant 496 : i32
    %304 = tpu.dynamic_rotate %268 by %c496_i32_189 dim 1 : vector<16x512xf32>, i32 -> vector<16x512xf32>
    %305 = vector.extract_strided_slice %0 {offsets = [6, 0], sizes = [1, 512], strides = [1, 1]} : vector<8x512xf32> to vector<1x512xf32>
    %306 = vector.broadcast %305 : vector<1x512xf32> to vector<16x512xf32>
    %307 = arith.mulf %304, %306 : vector<16x512xf32>
    %c112_190 = arith.constant 112 : index
    %c0_191 = arith.constant 0 : index
    %308 = vector.load %arg12[%c112_190, %c0_191] : memref<144x512xf32, #tpu.memory_space<vmem>>, vector<16x512xf32>
    tpu.vector_store %arg12[%c112_190, %c0_191], %307 {strides = array<i32>} : memref<144x512xf32, #tpu.memory_space<vmem>>, vector<16x512xf32>,
    %c495_i32_192 = arith.constant 495 : i32
    %309 = tpu.dynamic_rotate %268 by %c495_i32_192 dim 1 : vector<16x512xf32>, i32 -> vector<16x512xf32>
    %310 = vector.extract_strided_slice %0 {offsets = [7, 0], sizes = [1, 512], strides = [1, 1]} : vector<8x512xf32> to vector<1x512xf32>
    %311 = vector.broadcast %310 : vector<1x512xf32> to vector<16x512xf32>
    %312 = arith.mulf %309, %311 : vector<16x512xf32>
    %c128_193 = arith.constant 128 : index
    %c0_194 = arith.constant 0 : index
    %313 = vector.load %arg12[%c128_193, %c0_194] : memref<144x512xf32, #tpu.memory_space<vmem>>, vector<16x512xf32>
    tpu.vector_store %arg12[%c128_193, %c0_194], %312 {strides = array<i32>} : memref<144x512xf32, #tpu.memory_space<vmem>>, vector<16x512xf32>,
    %c0_195 = arith.constant 0 : index
    %c0_196 = arith.constant 0 : index
    %314 = vector.load %arg12[%c0_195, %c0_196] : memref<144x512xf32, #tpu.memory_space<vmem>>, vector<144x512xf32>
    %cst_197 = arith.constant dense<0.000000e+00> : vector<16x512xf32>
    %315 = tpu.matmul %270, %314, %cst_197 {dimension_numbers = #tpu.dot_dimension_numbers<[1], [0], [0], [1], [0, 0, 1, 1], [], []>} : vector<16x144xf32>, vector<144x512xf32>, vector<16x512xf32> -> vector<16x512xf32>
    %316 = vector.broadcast %272 : vector<16x1xf32> to vector<16x512xf32>
    %317 = arith.addf %315, %316 : vector<16x512xf32>
    %cst_198 = arith.constant 2.000000e-01 : f32
    %318 = vector.broadcast %cst_198 : f32 to vector<16x512xf32>
    %319 = arith.mulf %318, %317 : vector<16x512xf32>
    %320 = arith.maximumf %317, %319 : vector<16x512xf32>
    %c5 = arith.constant 5 : index
    %c0_199 = arith.constant 0 : index
    %c0_200 = arith.constant 0 : index
    %321 = vector.load %arg5[%c5, %c0_199, %c0_200] : memref<6x16x144xf32, #tpu.memory_space<vmem>>, vector<1x16x144xf32>
    %322 = vector.shape_cast %321 : vector<1x16x144xf32> to vector<16x144xf32>
    %c5_201 = arith.constant 5 : index
    %c0_202 = arith.constant 0 : index
    %c0_203 = arith.constant 0 : index
    %323 = vector.load %arg6[%c5_201, %c0_202, %c0_203] : memref<6x16x1xf32, #tpu.memory_space<vmem>>, vector<1x16x1xf32>
    %324 = vector.shape_cast %323 : vector<1x16x1xf32> to vector<16x1xf32>
    %c17_i32_204 = arith.constant 17 : i32
    %325 = tpu.dynamic_rotate %320 by %c17_i32_204 dim 1 : vector<16x512xf32>, i32 -> vector<16x512xf32>
    %326 = vector.extract_strided_slice %0 {offsets = [0, 0], sizes = [1, 512], strides = [1, 1]} : vector<8x512xf32> to vector<1x512xf32>
    %327 = vector.broadcast %326 : vector<1x512xf32> to vector<16x512xf32>
    %328 = arith.mulf %325, %327 : vector<16x512xf32>
    %c0_205 = arith.constant 0 : index
    %c0_206 = arith.constant 0 : index
    %329 = vector.load %arg12[%c0_205, %c0_206] : memref<144x512xf32, #tpu.memory_space<vmem>>, vector<16x512xf32>
    tpu.vector_store %arg12[%c0_205, %c0_206], %328 {strides = array<i32>} : memref<144x512xf32, #tpu.memory_space<vmem>>, vector<16x512xf32>,
    %c16_i32_207 = arith.constant 16 : i32
    %330 = tpu.dynamic_rotate %320 by %c16_i32_207 dim 1 : vector<16x512xf32>, i32 -> vector<16x512xf32>
    %331 = vector.extract_strided_slice %0 {offsets = [1, 0], sizes = [1, 512], strides = [1, 1]} : vector<8x512xf32> to vector<1x512xf32>
    %332 = vector.broadcast %331 : vector<1x512xf32> to vector<16x512xf32>
    %333 = arith.mulf %330, %332 : vector<16x512xf32>
    %c16_208 = arith.constant 16 : index
    %c0_209 = arith.constant 0 : index
    %334 = vector.load %arg12[%c16_208, %c0_209] : memref<144x512xf32, #tpu.memory_space<vmem>>, vector<16x512xf32>
    tpu.vector_store %arg12[%c16_208, %c0_209], %333 {strides = array<i32>} : memref<144x512xf32, #tpu.memory_space<vmem>>, vector<16x512xf32>,
    %c15_i32_210 = arith.constant 15 : i32
    %335 = tpu.dynamic_rotate %320 by %c15_i32_210 dim 1 : vector<16x512xf32>, i32 -> vector<16x512xf32>
    %336 = vector.extract_strided_slice %0 {offsets = [2, 0], sizes = [1, 512], strides = [1, 1]} : vector<8x512xf32> to vector<1x512xf32>
    %337 = vector.broadcast %336 : vector<1x512xf32> to vector<16x512xf32>
    %338 = arith.mulf %335, %337 : vector<16x512xf32>
    %c32_211 = arith.constant 32 : index
    %c0_212 = arith.constant 0 : index
    %339 = vector.load %arg12[%c32_211, %c0_212] : memref<144x512xf32, #tpu.memory_space<vmem>>, vector<16x512xf32>
    tpu.vector_store %arg12[%c32_211, %c0_212], %338 {strides = array<i32>} : memref<144x512xf32, #tpu.memory_space<vmem>>, vector<16x512xf32>,
    %c1_i32_213 = arith.constant 1 : i32
    %340 = tpu.dynamic_rotate %320 by %c1_i32_213 dim 1 : vector<16x512xf32>, i32 -> vector<16x512xf32>
    %341 = vector.extract_strided_slice %0 {offsets = [3, 0], sizes = [1, 512], strides = [1, 1]} : vector<8x512xf32> to vector<1x512xf32>
    %342 = vector.broadcast %341 : vector<1x512xf32> to vector<16x512xf32>
    %343 = arith.mulf %340, %342 : vector<16x512xf32>
    %c48_214 = arith.constant 48 : index
    %c0_215 = arith.constant 0 : index
    %344 = vector.load %arg12[%c48_214, %c0_215] : memref<144x512xf32, #tpu.memory_space<vmem>>, vector<16x512xf32>
    tpu.vector_store %arg12[%c48_214, %c0_215], %343 {strides = array<i32>} : memref<144x512xf32, #tpu.memory_space<vmem>>, vector<16x512xf32>,
    %c64_216 = arith.constant 64 : index
    %c0_217 = arith.constant 0 : index
    %345 = vector.load %arg12[%c64_216, %c0_217] : memref<144x512xf32, #tpu.memory_space<vmem>>, vector<16x512xf32>
    tpu.vector_store %arg12[%c64_216, %c0_217], %320 {strides = array<i32>} : memref<144x512xf32, #tpu.memory_space<vmem>>, vector<16x512xf32>,
    %c511_i32_218 = arith.constant 511 : i32
    %346 = tpu.dynamic_rotate %320 by %c511_i32_218 dim 1 : vector<16x512xf32>, i32 -> vector<16x512xf32>
    %347 = vector.extract_strided_slice %0 {offsets = [4, 0], sizes = [1, 512], strides = [1, 1]} : vector<8x512xf32> to vector<1x512xf32>
    %348 = vector.broadcast %347 : vector<1x512xf32> to vector<16x512xf32>
    %349 = arith.mulf %346, %348 : vector<16x512xf32>
    %c80_219 = arith.constant 80 : index
    %c0_220 = arith.constant 0 : index
    %350 = vector.load %arg12[%c80_219, %c0_220] : memref<144x512xf32, #tpu.memory_space<vmem>>, vector<16x512xf32>
    tpu.vector_store %arg12[%c80_219, %c0_220], %349 {strides = array<i32>} : memref<144x512xf32, #tpu.memory_space<vmem>>, vector<16x512xf32>,
    %c497_i32_221 = arith.constant 497 : i32
    %351 = tpu.dynamic_rotate %320 by %c497_i32_221 dim 1 : vector<16x512xf32>, i32 -> vector<16x512xf32>
    %352 = vector.extract_strided_slice %0 {offsets = [5, 0], sizes = [1, 512], strides = [1, 1]} : vector<8x512xf32> to vector<1x512xf32>
    %353 = vector.broadcast %352 : vector<1x512xf32> to vector<16x512xf32>
    %354 = arith.mulf %351, %353 : vector<16x512xf32>
    %c96_222 = arith.constant 96 : index
    %c0_223 = arith.constant 0 : index
    %355 = vector.load %arg12[%c96_222, %c0_223] : memref<144x512xf32, #tpu.memory_space<vmem>>, vector<16x512xf32>
    tpu.vector_store %arg12[%c96_222, %c0_223], %354 {strides = array<i32>} : memref<144x512xf32, #tpu.memory_space<vmem>>, vector<16x512xf32>,
    %c496_i32_224 = arith.constant 496 : i32
    %356 = tpu.dynamic_rotate %320 by %c496_i32_224 dim 1 : vector<16x512xf32>, i32 -> vector<16x512xf32>
    %357 = vector.extract_strided_slice %0 {offsets = [6, 0], sizes = [1, 512], strides = [1, 1]} : vector<8x512xf32> to vector<1x512xf32>
    %358 = vector.broadcast %357 : vector<1x512xf32> to vector<16x512xf32>
    %359 = arith.mulf %356, %358 : vector<16x512xf32>
    %c112_225 = arith.constant 112 : index
    %c0_226 = arith.constant 0 : index
    %360 = vector.load %arg12[%c112_225, %c0_226] : memref<144x512xf32, #tpu.memory_space<vmem>>, vector<16x512xf32>
    tpu.vector_store %arg12[%c112_225, %c0_226], %359 {strides = array<i32>} : memref<144x512xf32, #tpu.memory_space<vmem>>, vector<16x512xf32>,
    %c495_i32_227 = arith.constant 495 : i32
    %361 = tpu.dynamic_rotate %320 by %c495_i32_227 dim 1 : vector<16x512xf32>, i32 -> vector<16x512xf32>
    %362 = vector.extract_strided_slice %0 {offsets = [7, 0], sizes = [1, 512], strides = [1, 1]} : vector<8x512xf32> to vector<1x512xf32>
    %363 = vector.broadcast %362 : vector<1x512xf32> to vector<16x512xf32>
    %364 = arith.mulf %361, %363 : vector<16x512xf32>
    %c128_228 = arith.constant 128 : index
    %c0_229 = arith.constant 0 : index
    %365 = vector.load %arg12[%c128_228, %c0_229] : memref<144x512xf32, #tpu.memory_space<vmem>>, vector<16x512xf32>
    tpu.vector_store %arg12[%c128_228, %c0_229], %364 {strides = array<i32>} : memref<144x512xf32, #tpu.memory_space<vmem>>, vector<16x512xf32>,
    %c0_230 = arith.constant 0 : index
    %c0_231 = arith.constant 0 : index
    %366 = vector.load %arg12[%c0_230, %c0_231] : memref<144x512xf32, #tpu.memory_space<vmem>>, vector<144x512xf32>
    %cst_232 = arith.constant dense<0.000000e+00> : vector<16x512xf32>
    %367 = tpu.matmul %322, %366, %cst_232 {dimension_numbers = #tpu.dot_dimension_numbers<[1], [0], [0], [1], [0, 0, 1, 1], [], []>} : vector<16x144xf32>, vector<144x512xf32>, vector<16x512xf32> -> vector<16x512xf32>
    %368 = vector.broadcast %324 : vector<16x1xf32> to vector<16x512xf32>
    %369 = arith.addf %367, %368 : vector<16x512xf32>
    %cst_233 = arith.constant 2.000000e-01 : f32
    %370 = vector.broadcast %cst_233 : f32 to vector<16x512xf32>
    %371 = arith.mulf %370, %369 : vector<16x512xf32>
    %372 = arith.maximumf %369, %371 : vector<16x512xf32>
    %c0_234 = arith.constant 0 : index
    %c0_235 = arith.constant 0 : index
    %c0_236 = arith.constant 0 : index
    %373 = vector.load %arg5[%c0_234, %c0_235, %c0_236] : memref<6x16x144xf32, #tpu.memory_space<vmem>>, vector<1x16x144xf32>
    %374 = vector.shape_cast %373 : vector<1x16x144xf32> to vector<16x144xf32>
    %c0_237 = arith.constant 0 : index
    %c0_238 = arith.constant 0 : index
    %c0_239 = arith.constant 0 : index
    %375 = vector.load %arg6[%c0_237, %c0_238, %c0_239] : memref<6x16x1xf32, #tpu.memory_space<vmem>>, vector<1x16x1xf32>
    %376 = vector.shape_cast %375 : vector<1x16x1xf32> to vector<16x1xf32>
    %c17_i32_240 = arith.constant 17 : i32
    %377 = tpu.dynamic_rotate %372 by %c17_i32_240 dim 1 : vector<16x512xf32>, i32 -> vector<16x512xf32>
    %378 = vector.extract_strided_slice %0 {offsets = [0, 0], sizes = [1, 512], strides = [1, 1]} : vector<8x512xf32> to vector<1x512xf32>
    %379 = vector.broadcast %378 : vector<1x512xf32> to vector<16x512xf32>
    %380 = arith.mulf %377, %379 : vector<16x512xf32>
    %c0_241 = arith.constant 0 : index
    %c0_242 = arith.constant 0 : index
    %381 = vector.load %arg12[%c0_241, %c0_242] : memref<144x512xf32, #tpu.memory_space<vmem>>, vector<16x512xf32>
    tpu.vector_store %arg12[%c0_241, %c0_242], %380 {strides = array<i32>} : memref<144x512xf32, #tpu.memory_space<vmem>>, vector<16x512xf32>,
    %c16_i32_243 = arith.constant 16 : i32
    %382 = tpu.dynamic_rotate %372 by %c16_i32_243 dim 1 : vector<16x512xf32>, i32 -> vector<16x512xf32>
    %383 = vector.extract_strided_slice %0 {offsets = [1, 0], sizes = [1, 512], strides = [1, 1]} : vector<8x512xf32> to vector<1x512xf32>
    %384 = vector.broadcast %383 : vector<1x512xf32> to vector<16x512xf32>
    %385 = arith.mulf %382, %384 : vector<16x512xf32>
    %c16_244 = arith.constant 16 : index
    %c0_245 = arith.constant 0 : index
    %386 = vector.load %arg12[%c16_244, %c0_245] : memref<144x512xf32, #tpu.memory_space<vmem>>, vector<16x512xf32>
    tpu.vector_store %arg12[%c16_244, %c0_245], %385 {strides = array<i32>} : memref<144x512xf32, #tpu.memory_space<vmem>>, vector<16x512xf32>,
    %c15_i32_246 = arith.constant 15 : i32
    %387 = tpu.dynamic_rotate %372 by %c15_i32_246 dim 1 : vector<16x512xf32>, i32 -> vector<16x512xf32>
    %388 = vector.extract_strided_slice %0 {offsets = [2, 0], sizes = [1, 512], strides = [1, 1]} : vector<8x512xf32> to vector<1x512xf32>
    %389 = vector.broadcast %388 : vector<1x512xf32> to vector<16x512xf32>
    %390 = arith.mulf %387, %389 : vector<16x512xf32>
    %c32_247 = arith.constant 32 : index
    %c0_248 = arith.constant 0 : index
    %391 = vector.load %arg12[%c32_247, %c0_248] : memref<144x512xf32, #tpu.memory_space<vmem>>, vector<16x512xf32>
    tpu.vector_store %arg12[%c32_247, %c0_248], %390 {strides = array<i32>} : memref<144x512xf32, #tpu.memory_space<vmem>>, vector<16x512xf32>,
    %c1_i32_249 = arith.constant 1 : i32
    %392 = tpu.dynamic_rotate %372 by %c1_i32_249 dim 1 : vector<16x512xf32>, i32 -> vector<16x512xf32>
    %393 = vector.extract_strided_slice %0 {offsets = [3, 0], sizes = [1, 512], strides = [1, 1]} : vector<8x512xf32> to vector<1x512xf32>
    %394 = vector.broadcast %393 : vector<1x512xf32> to vector<16x512xf32>
    %395 = arith.mulf %392, %394 : vector<16x512xf32>
    %c48_250 = arith.constant 48 : index
    %c0_251 = arith.constant 0 : index
    %396 = vector.load %arg12[%c48_250, %c0_251] : memref<144x512xf32, #tpu.memory_space<vmem>>, vector<16x512xf32>
    tpu.vector_store %arg12[%c48_250, %c0_251], %395 {strides = array<i32>} : memref<144x512xf32, #tpu.memory_space<vmem>>, vector<16x512xf32>,
    %c64_252 = arith.constant 64 : index
    %c0_253 = arith.constant 0 : index
    %397 = vector.load %arg12[%c64_252, %c0_253] : memref<144x512xf32, #tpu.memory_space<vmem>>, vector<16x512xf32>
    tpu.vector_store %arg12[%c64_252, %c0_253], %372 {strides = array<i32>} : memref<144x512xf32, #tpu.memory_space<vmem>>, vector<16x512xf32>,
    %c511_i32_254 = arith.constant 511 : i32
    %398 = tpu.dynamic_rotate %372 by %c511_i32_254 dim 1 : vector<16x512xf32>, i32 -> vector<16x512xf32>
    %399 = vector.extract_strided_slice %0 {offsets = [4, 0], sizes = [1, 512], strides = [1, 1]} : vector<8x512xf32> to vector<1x512xf32>
    %400 = vector.broadcast %399 : vector<1x512xf32> to vector<16x512xf32>
    %401 = arith.mulf %398, %400 : vector<16x512xf32>
    %c80_255 = arith.constant 80 : index
    %c0_256 = arith.constant 0 : index
    %402 = vector.load %arg12[%c80_255, %c0_256] : memref<144x512xf32, #tpu.memory_space<vmem>>, vector<16x512xf32>
    tpu.vector_store %arg12[%c80_255, %c0_256], %401 {strides = array<i32>} : memref<144x512xf32, #tpu.memory_space<vmem>>, vector<16x512xf32>,
    %c497_i32_257 = arith.constant 497 : i32
    %403 = tpu.dynamic_rotate %372 by %c497_i32_257 dim 1 : vector<16x512xf32>, i32 -> vector<16x512xf32>
    %404 = vector.extract_strided_slice %0 {offsets = [5, 0], sizes = [1, 512], strides = [1, 1]} : vector<8x512xf32> to vector<1x512xf32>
    %405 = vector.broadcast %404 : vector<1x512xf32> to vector<16x512xf32>
    %406 = arith.mulf %403, %405 : vector<16x512xf32>
    %c96_258 = arith.constant 96 : index
    %c0_259 = arith.constant 0 : index
    %407 = vector.load %arg12[%c96_258, %c0_259] : memref<144x512xf32, #tpu.memory_space<vmem>>, vector<16x512xf32>
    tpu.vector_store %arg12[%c96_258, %c0_259], %406 {strides = array<i32>} : memref<144x512xf32, #tpu.memory_space<vmem>>, vector<16x512xf32>,
    %c496_i32_260 = arith.constant 496 : i32
    %408 = tpu.dynamic_rotate %372 by %c496_i32_260 dim 1 : vector<16x512xf32>, i32 -> vector<16x512xf32>
    %409 = vector.extract_strided_slice %0 {offsets = [6, 0], sizes = [1, 512], strides = [1, 1]} : vector<8x512xf32> to vector<1x512xf32>
    %410 = vector.broadcast %409 : vector<1x512xf32> to vector<16x512xf32>
    %411 = arith.mulf %408, %410 : vector<16x512xf32>
    %c112_261 = arith.constant 112 : index
    %c0_262 = arith.constant 0 : index
    %412 = vector.load %arg12[%c112_261, %c0_262] : memref<144x512xf32, #tpu.memory_space<vmem>>, vector<16x512xf32>
    tpu.vector_store %arg12[%c112_261, %c0_262], %411 {strides = array<i32>} : memref<144x512xf32, #tpu.memory_space<vmem>>, vector<16x512xf32>,
    %c495_i32_263 = arith.constant 495 : i32
    %413 = tpu.dynamic_rotate %372 by %c495_i32_263 dim 1 : vector<16x512xf32>, i32 -> vector<16x512xf32>
    %414 = vector.extract_strided_slice %0 {offsets = [7, 0], sizes = [1, 512], strides = [1, 1]} : vector<8x512xf32> to vector<1x512xf32>
    %415 = vector.broadcast %414 : vector<1x512xf32> to vector<16x512xf32>
    %416 = arith.mulf %413, %415 : vector<16x512xf32>
    %c128_264 = arith.constant 128 : index
    %c0_265 = arith.constant 0 : index
    %417 = vector.load %arg12[%c128_264, %c0_265] : memref<144x512xf32, #tpu.memory_space<vmem>>, vector<16x512xf32>
    tpu.vector_store %arg12[%c128_264, %c0_265], %416 {strides = array<i32>} : memref<144x512xf32, #tpu.memory_space<vmem>>, vector<16x512xf32>,
    %c0_266 = arith.constant 0 : index
    %c0_267 = arith.constant 0 : index
    %418 = vector.load %arg12[%c0_266, %c0_267] : memref<144x512xf32, #tpu.memory_space<vmem>>, vector<144x512xf32>
    %cst_268 = arith.constant dense<0.000000e+00> : vector<16x512xf32>
    %419 = tpu.matmul %374, %418, %cst_268 {dimension_numbers = #tpu.dot_dimension_numbers<[1], [0], [0], [1], [0, 0, 1, 1], [], []>} : vector<16x144xf32>, vector<144x512xf32>, vector<16x512xf32> -> vector<16x512xf32>
    %420 = vector.broadcast %376 : vector<16x1xf32> to vector<16x512xf32>
    %421 = arith.addf %419, %420 : vector<16x512xf32>
    %cst_269 = arith.constant 2.000000e-01 : f32
    %422 = vector.broadcast %cst_269 : f32 to vector<16x512xf32>
    %423 = arith.mulf %422, %421 : vector<16x512xf32>
    %424 = arith.maximumf %421, %423 : vector<16x512xf32>
    %c0_270 = arith.constant 0 : index
    %c0_271 = arith.constant 0 : index
    %425 = vector.load %arg7[%c0_270, %c0_271] : memref<16x16xf32, #tpu.memory_space<vmem>>, vector<16x16xf32>
    %c0_272 = arith.constant 0 : index
    %c0_273 = arith.constant 0 : index
    %426 = vector.load %arg8[%c0_272, %c0_273] : memref<16x1xf32, #tpu.memory_space<vmem>>, vector<16x1xf32>
    %cst_274 = arith.constant dense<0.000000e+00> : vector<16x512xf32>
    %427 = tpu.matmul %425, %424, %cst_274 {dimension_numbers = #tpu.dot_dimension_numbers<[1], [0], [0], [1], [0, 0, 1, 1], [], []>} : vector<16x16xf32>, vector<16x512xf32>, vector<16x512xf32> -> vector<16x512xf32>
    %428 = vector.broadcast %426 : vector<16x1xf32> to vector<16x512xf32>
    %429 = arith.addf %427, %428 : vector<16x512xf32>
    %cst_275 = arith.constant 2.000000e-01 : f32
    %430 = vector.broadcast %cst_275 : f32 to vector<16x512xf32>
    %431 = arith.mulf %430, %429 : vector<16x512xf32>
    %432 = arith.maximumf %429, %431 : vector<16x512xf32>
    %c1_276 = arith.constant 1 : index
    %c0_277 = arith.constant 0 : index
    %c0_278 = arith.constant 0 : index
    %433 = vector.load %arg5[%c1_276, %c0_277, %c0_278] : memref<6x16x144xf32, #tpu.memory_space<vmem>>, vector<1x16x144xf32>
    %434 = vector.shape_cast %433 : vector<1x16x144xf32> to vector<16x144xf32>
    %c1_279 = arith.constant 1 : index
    %c0_280 = arith.constant 0 : index
    %c0_281 = arith.constant 0 : index
    %435 = vector.load %arg6[%c1_279, %c0_280, %c0_281] : memref<6x16x1xf32, #tpu.memory_space<vmem>>, vector<1x16x1xf32>
    %436 = vector.shape_cast %435 : vector<1x16x1xf32> to vector<16x1xf32>
    %c17_i32_282 = arith.constant 17 : i32
    %437 = tpu.dynamic_rotate %432 by %c17_i32_282 dim 1 : vector<16x512xf32>, i32 -> vector<16x512xf32>
    %438 = vector.extract_strided_slice %0 {offsets = [0, 0], sizes = [1, 512], strides = [1, 1]} : vector<8x512xf32> to vector<1x512xf32>
    %439 = vector.broadcast %438 : vector<1x512xf32> to vector<16x512xf32>
    %440 = arith.mulf %437, %439 : vector<16x512xf32>
    %c0_283 = arith.constant 0 : index
    %c0_284 = arith.constant 0 : index
    %441 = vector.load %arg12[%c0_283, %c0_284] : memref<144x512xf32, #tpu.memory_space<vmem>>, vector<16x512xf32>
    tpu.vector_store %arg12[%c0_283, %c0_284], %440 {strides = array<i32>} : memref<144x512xf32, #tpu.memory_space<vmem>>, vector<16x512xf32>,
    %c16_i32_285 = arith.constant 16 : i32
    %442 = tpu.dynamic_rotate %432 by %c16_i32_285 dim 1 : vector<16x512xf32>, i32 -> vector<16x512xf32>
    %443 = vector.extract_strided_slice %0 {offsets = [1, 0], sizes = [1, 512], strides = [1, 1]} : vector<8x512xf32> to vector<1x512xf32>
    %444 = vector.broadcast %443 : vector<1x512xf32> to vector<16x512xf32>
    %445 = arith.mulf %442, %444 : vector<16x512xf32>
    %c16_286 = arith.constant 16 : index
    %c0_287 = arith.constant 0 : index
    %446 = vector.load %arg12[%c16_286, %c0_287] : memref<144x512xf32, #tpu.memory_space<vmem>>, vector<16x512xf32>
    tpu.vector_store %arg12[%c16_286, %c0_287], %445 {strides = array<i32>} : memref<144x512xf32, #tpu.memory_space<vmem>>, vector<16x512xf32>,
    %c15_i32_288 = arith.constant 15 : i32
    %447 = tpu.dynamic_rotate %432 by %c15_i32_288 dim 1 : vector<16x512xf32>, i32 -> vector<16x512xf32>
    %448 = vector.extract_strided_slice %0 {offsets = [2, 0], sizes = [1, 512], strides = [1, 1]} : vector<8x512xf32> to vector<1x512xf32>
    %449 = vector.broadcast %448 : vector<1x512xf32> to vector<16x512xf32>
    %450 = arith.mulf %447, %449 : vector<16x512xf32>
    %c32_289 = arith.constant 32 : index
    %c0_290 = arith.constant 0 : index
    %451 = vector.load %arg12[%c32_289, %c0_290] : memref<144x512xf32, #tpu.memory_space<vmem>>, vector<16x512xf32>
    tpu.vector_store %arg12[%c32_289, %c0_290], %450 {strides = array<i32>} : memref<144x512xf32, #tpu.memory_space<vmem>>, vector<16x512xf32>,
    %c1_i32_291 = arith.constant 1 : i32
    %452 = tpu.dynamic_rotate %432 by %c1_i32_291 dim 1 : vector<16x512xf32>, i32 -> vector<16x512xf32>
    %453 = vector.extract_strided_slice %0 {offsets = [3, 0], sizes = [1, 512], strides = [1, 1]} : vector<8x512xf32> to vector<1x512xf32>
    %454 = vector.broadcast %453 : vector<1x512xf32> to vector<16x512xf32>
    %455 = arith.mulf %452, %454 : vector<16x512xf32>
    %c48_292 = arith.constant 48 : index
    %c0_293 = arith.constant 0 : index
    %456 = vector.load %arg12[%c48_292, %c0_293] : memref<144x512xf32, #tpu.memory_space<vmem>>, vector<16x512xf32>
    tpu.vector_store %arg12[%c48_292, %c0_293], %455 {strides = array<i32>} : memref<144x512xf32, #tpu.memory_space<vmem>>, vector<16x512xf32>,
    %c64_294 = arith.constant 64 : index
    %c0_295 = arith.constant 0 : index
    %457 = vector.load %arg12[%c64_294, %c0_295] : memref<144x512xf32, #tpu.memory_space<vmem>>, vector<16x512xf32>
    tpu.vector_store %arg12[%c64_294, %c0_295], %432 {strides = array<i32>} : memref<144x512xf32, #tpu.memory_space<vmem>>, vector<16x512xf32>,
    %c511_i32_296 = arith.constant 511 : i32
    %458 = tpu.dynamic_rotate %432 by %c511_i32_296 dim 1 : vector<16x512xf32>, i32 -> vector<16x512xf32>
    %459 = vector.extract_strided_slice %0 {offsets = [4, 0], sizes = [1, 512], strides = [1, 1]} : vector<8x512xf32> to vector<1x512xf32>
    %460 = vector.broadcast %459 : vector<1x512xf32> to vector<16x512xf32>
    %461 = arith.mulf %458, %460 : vector<16x512xf32>
    %c80_297 = arith.constant 80 : index
    %c0_298 = arith.constant 0 : index
    %462 = vector.load %arg12[%c80_297, %c0_298] : memref<144x512xf32, #tpu.memory_space<vmem>>, vector<16x512xf32>
    tpu.vector_store %arg12[%c80_297, %c0_298], %461 {strides = array<i32>} : memref<144x512xf32, #tpu.memory_space<vmem>>, vector<16x512xf32>,
    %c497_i32_299 = arith.constant 497 : i32
    %463 = tpu.dynamic_rotate %432 by %c497_i32_299 dim 1 : vector<16x512xf32>, i32 -> vector<16x512xf32>
    %464 = vector.extract_strided_slice %0 {offsets = [5, 0], sizes = [1, 512], strides = [1, 1]} : vector<8x512xf32> to vector<1x512xf32>
    %465 = vector.broadcast %464 : vector<1x512xf32> to vector<16x512xf32>
    %466 = arith.mulf %463, %465 : vector<16x512xf32>
    %c96_300 = arith.constant 96 : index
    %c0_301 = arith.constant 0 : index
    %467 = vector.load %arg12[%c96_300, %c0_301] : memref<144x512xf32, #tpu.memory_space<vmem>>, vector<16x512xf32>
    tpu.vector_store %arg12[%c96_300, %c0_301], %466 {strides = array<i32>} : memref<144x512xf32, #tpu.memory_space<vmem>>, vector<16x512xf32>,
    %c496_i32_302 = arith.constant 496 : i32
    %468 = tpu.dynamic_rotate %432 by %c496_i32_302 dim 1 : vector<16x512xf32>, i32 -> vector<16x512xf32>
    %469 = vector.extract_strided_slice %0 {offsets = [6, 0], sizes = [1, 512], strides = [1, 1]} : vector<8x512xf32> to vector<1x512xf32>
    %470 = vector.broadcast %469 : vector<1x512xf32> to vector<16x512xf32>
    %471 = arith.mulf %468, %470 : vector<16x512xf32>
    %c112_303 = arith.constant 112 : index
    %c0_304 = arith.constant 0 : index
    %472 = vector.load %arg12[%c112_303, %c0_304] : memref<144x512xf32, #tpu.memory_space<vmem>>, vector<16x512xf32>
    tpu.vector_store %arg12[%c112_303, %c0_304], %471 {strides = array<i32>} : memref<144x512xf32, #tpu.memory_space<vmem>>, vector<16x512xf32>,
    %c495_i32_305 = arith.constant 495 : i32
    %473 = tpu.dynamic_rotate %432 by %c495_i32_305 dim 1 : vector<16x512xf32>, i32 -> vector<16x512xf32>
    %474 = vector.extract_strided_slice %0 {offsets = [7, 0], sizes = [1, 512], strides = [1, 1]} : vector<8x512xf32> to vector<1x512xf32>
    %475 = vector.broadcast %474 : vector<1x512xf32> to vector<16x512xf32>
    %476 = arith.mulf %473, %475 : vector<16x512xf32>
    %c128_306 = arith.constant 128 : index
    %c0_307 = arith.constant 0 : index
    %477 = vector.load %arg12[%c128_306, %c0_307] : memref<144x512xf32, #tpu.memory_space<vmem>>, vector<16x512xf32>
    tpu.vector_store %arg12[%c128_306, %c0_307], %476 {strides = array<i32>} : memref<144x512xf32, #tpu.memory_space<vmem>>, vector<16x512xf32>,
    %c0_308 = arith.constant 0 : index
    %c0_309 = arith.constant 0 : index
    %478 = vector.load %arg12[%c0_308, %c0_309] : memref<144x512xf32, #tpu.memory_space<vmem>>, vector<144x512xf32>
    %cst_310 = arith.constant dense<0.000000e+00> : vector<16x512xf32>
    %479 = tpu.matmul %434, %478, %cst_310 {dimension_numbers = #tpu.dot_dimension_numbers<[1], [0], [0], [1], [0, 0, 1, 1], [], []>} : vector<16x144xf32>, vector<144x512xf32>, vector<16x512xf32> -> vector<16x512xf32>
    %480 = vector.broadcast %436 : vector<16x1xf32> to vector<16x512xf32>
    %481 = arith.addf %479, %480 : vector<16x512xf32>
    %cst_311 = arith.constant 2.000000e-01 : f32
    %482 = vector.broadcast %cst_311 : f32 to vector<16x512xf32>
    %483 = arith.mulf %482, %481 : vector<16x512xf32>
    %484 = arith.maximumf %481, %483 : vector<16x512xf32>
    %c2_312 = arith.constant 2 : index
    %c0_313 = arith.constant 0 : index
    %c0_314 = arith.constant 0 : index
    %485 = vector.load %arg5[%c2_312, %c0_313, %c0_314] : memref<6x16x144xf32, #tpu.memory_space<vmem>>, vector<1x16x144xf32>
    %486 = vector.shape_cast %485 : vector<1x16x144xf32> to vector<16x144xf32>
    %c2_315 = arith.constant 2 : index
    %c0_316 = arith.constant 0 : index
    %c0_317 = arith.constant 0 : index
    %487 = vector.load %arg6[%c2_315, %c0_316, %c0_317] : memref<6x16x1xf32, #tpu.memory_space<vmem>>, vector<1x16x1xf32>
    %488 = vector.shape_cast %487 : vector<1x16x1xf32> to vector<16x1xf32>
    %c17_i32_318 = arith.constant 17 : i32
    %489 = tpu.dynamic_rotate %484 by %c17_i32_318 dim 1 : vector<16x512xf32>, i32 -> vector<16x512xf32>
    %490 = vector.extract_strided_slice %0 {offsets = [0, 0], sizes = [1, 512], strides = [1, 1]} : vector<8x512xf32> to vector<1x512xf32>
    %491 = vector.broadcast %490 : vector<1x512xf32> to vector<16x512xf32>
    %492 = arith.mulf %489, %491 : vector<16x512xf32>
    %c0_319 = arith.constant 0 : index
    %c0_320 = arith.constant 0 : index
    %493 = vector.load %arg12[%c0_319, %c0_320] : memref<144x512xf32, #tpu.memory_space<vmem>>, vector<16x512xf32>
    tpu.vector_store %arg12[%c0_319, %c0_320], %492 {strides = array<i32>} : memref<144x512xf32, #tpu.memory_space<vmem>>, vector<16x512xf32>,
    %c16_i32_321 = arith.constant 16 : i32
    %494 = tpu.dynamic_rotate %484 by %c16_i32_321 dim 1 : vector<16x512xf32>, i32 -> vector<16x512xf32>
    %495 = vector.extract_strided_slice %0 {offsets = [1, 0], sizes = [1, 512], strides = [1, 1]} : vector<8x512xf32> to vector<1x512xf32>
    %496 = vector.broadcast %495 : vector<1x512xf32> to vector<16x512xf32>
    %497 = arith.mulf %494, %496 : vector<16x512xf32>
    %c16_322 = arith.constant 16 : index
    %c0_323 = arith.constant 0 : index
    %498 = vector.load %arg12[%c16_322, %c0_323] : memref<144x512xf32, #tpu.memory_space<vmem>>, vector<16x512xf32>
    tpu.vector_store %arg12[%c16_322, %c0_323], %497 {strides = array<i32>} : memref<144x512xf32, #tpu.memory_space<vmem>>, vector<16x512xf32>,
    %c15_i32_324 = arith.constant 15 : i32
    %499 = tpu.dynamic_rotate %484 by %c15_i32_324 dim 1 : vector<16x512xf32>, i32 -> vector<16x512xf32>
    %500 = vector.extract_strided_slice %0 {offsets = [2, 0], sizes = [1, 512], strides = [1, 1]} : vector<8x512xf32> to vector<1x512xf32>
    %501 = vector.broadcast %500 : vector<1x512xf32> to vector<16x512xf32>
    %502 = arith.mulf %499, %501 : vector<16x512xf32>
    %c32_325 = arith.constant 32 : index
    %c0_326 = arith.constant 0 : index
    %503 = vector.load %arg12[%c32_325, %c0_326] : memref<144x512xf32, #tpu.memory_space<vmem>>, vector<16x512xf32>
    tpu.vector_store %arg12[%c32_325, %c0_326], %502 {strides = array<i32>} : memref<144x512xf32, #tpu.memory_space<vmem>>, vector<16x512xf32>,
    %c1_i32_327 = arith.constant 1 : i32
    %504 = tpu.dynamic_rotate %484 by %c1_i32_327 dim 1 : vector<16x512xf32>, i32 -> vector<16x512xf32>
    %505 = vector.extract_strided_slice %0 {offsets = [3, 0], sizes = [1, 512], strides = [1, 1]} : vector<8x512xf32> to vector<1x512xf32>
    %506 = vector.broadcast %505 : vector<1x512xf32> to vector<16x512xf32>
    %507 = arith.mulf %504, %506 : vector<16x512xf32>
    %c48_328 = arith.constant 48 : index
    %c0_329 = arith.constant 0 : index
    %508 = vector.load %arg12[%c48_328, %c0_329] : memref<144x512xf32, #tpu.memory_space<vmem>>, vector<16x512xf32>
    tpu.vector_store %arg12[%c48_328, %c0_329], %507 {strides = array<i32>} : memref<144x512xf32, #tpu.memory_space<vmem>>, vector<16x512xf32>,
    %c64_330 = arith.constant 64 : index
    %c0_331 = arith.constant 0 : index
    %509 = vector.load %arg12[%c64_330, %c0_331] : memref<144x512xf32, #tpu.memory_space<vmem>>, vector<16x512xf32>
    tpu.vector_store %arg12[%c64_330, %c0_331], %484 {strides = array<i32>} : memref<144x512xf32, #tpu.memory_space<vmem>>, vector<16x512xf32>,
    %c511_i32_332 = arith.constant 511 : i32
    %510 = tpu.dynamic_rotate %484 by %c511_i32_332 dim 1 : vector<16x512xf32>, i32 -> vector<16x512xf32>
    %511 = vector.extract_strided_slice %0 {offsets = [4, 0], sizes = [1, 512], strides = [1, 1]} : vector<8x512xf32> to vector<1x512xf32>
    %512 = vector.broadcast %511 : vector<1x512xf32> to vector<16x512xf32>
    %513 = arith.mulf %510, %512 : vector<16x512xf32>
    %c80_333 = arith.constant 80 : index
    %c0_334 = arith.constant 0 : index
    %514 = vector.load %arg12[%c80_333, %c0_334] : memref<144x512xf32, #tpu.memory_space<vmem>>, vector<16x512xf32>
    tpu.vector_store %arg12[%c80_333, %c0_334], %513 {strides = array<i32>} : memref<144x512xf32, #tpu.memory_space<vmem>>, vector<16x512xf32>,
    %c497_i32_335 = arith.constant 497 : i32
    %515 = tpu.dynamic_rotate %484 by %c497_i32_335 dim 1 : vector<16x512xf32>, i32 -> vector<16x512xf32>
    %516 = vector.extract_strided_slice %0 {offsets = [5, 0], sizes = [1, 512], strides = [1, 1]} : vector<8x512xf32> to vector<1x512xf32>
    %517 = vector.broadcast %516 : vector<1x512xf32> to vector<16x512xf32>
    %518 = arith.mulf %515, %517 : vector<16x512xf32>
    %c96_336 = arith.constant 96 : index
    %c0_337 = arith.constant 0 : index
    %519 = vector.load %arg12[%c96_336, %c0_337] : memref<144x512xf32, #tpu.memory_space<vmem>>, vector<16x512xf32>
    tpu.vector_store %arg12[%c96_336, %c0_337], %518 {strides = array<i32>} : memref<144x512xf32, #tpu.memory_space<vmem>>, vector<16x512xf32>,
    %c496_i32_338 = arith.constant 496 : i32
    %520 = tpu.dynamic_rotate %484 by %c496_i32_338 dim 1 : vector<16x512xf32>, i32 -> vector<16x512xf32>
    %521 = vector.extract_strided_slice %0 {offsets = [6, 0], sizes = [1, 512], strides = [1, 1]} : vector<8x512xf32> to vector<1x512xf32>
    %522 = vector.broadcast %521 : vector<1x512xf32> to vector<16x512xf32>
    %523 = arith.mulf %520, %522 : vector<16x512xf32>
    %c112_339 = arith.constant 112 : index
    %c0_340 = arith.constant 0 : index
    %524 = vector.load %arg12[%c112_339, %c0_340] : memref<144x512xf32, #tpu.memory_space<vmem>>, vector<16x512xf32>
    tpu.vector_store %arg12[%c112_339, %c0_340], %523 {strides = array<i32>} : memref<144x512xf32, #tpu.memory_space<vmem>>, vector<16x512xf32>,
    %c495_i32_341 = arith.constant 495 : i32
    %525 = tpu.dynamic_rotate %484 by %c495_i32_341 dim 1 : vector<16x512xf32>, i32 -> vector<16x512xf32>
    %526 = vector.extract_strided_slice %0 {offsets = [7, 0], sizes = [1, 512], strides = [1, 1]} : vector<8x512xf32> to vector<1x512xf32>
    %527 = vector.broadcast %526 : vector<1x512xf32> to vector<16x512xf32>
    %528 = arith.mulf %525, %527 : vector<16x512xf32>
    %c128_342 = arith.constant 128 : index
    %c0_343 = arith.constant 0 : index
    %529 = vector.load %arg12[%c128_342, %c0_343] : memref<144x512xf32, #tpu.memory_space<vmem>>, vector<16x512xf32>
    tpu.vector_store %arg12[%c128_342, %c0_343], %528 {strides = array<i32>} : memref<144x512xf32, #tpu.memory_space<vmem>>, vector<16x512xf32>,
    %c0_344 = arith.constant 0 : index
    %c0_345 = arith.constant 0 : index
    %530 = vector.load %arg12[%c0_344, %c0_345] : memref<144x512xf32, #tpu.memory_space<vmem>>, vector<144x512xf32>
    %cst_346 = arith.constant dense<0.000000e+00> : vector<16x512xf32>
    %531 = tpu.matmul %486, %530, %cst_346 {dimension_numbers = #tpu.dot_dimension_numbers<[1], [0], [0], [1], [0, 0, 1, 1], [], []>} : vector<16x144xf32>, vector<144x512xf32>, vector<16x512xf32> -> vector<16x512xf32>
    %532 = vector.broadcast %488 : vector<16x1xf32> to vector<16x512xf32>
    %533 = arith.addf %531, %532 : vector<16x512xf32>
    %cst_347 = arith.constant 2.000000e-01 : f32
    %534 = vector.broadcast %cst_347 : f32 to vector<16x512xf32>
    %535 = arith.mulf %534, %533 : vector<16x512xf32>
    %536 = arith.maximumf %533, %535 : vector<16x512xf32>
    %c3_348 = arith.constant 3 : index
    %c0_349 = arith.constant 0 : index
    %c0_350 = arith.constant 0 : index
    %537 = vector.load %arg5[%c3_348, %c0_349, %c0_350] : memref<6x16x144xf32, #tpu.memory_space<vmem>>, vector<1x16x144xf32>
    %538 = vector.shape_cast %537 : vector<1x16x144xf32> to vector<16x144xf32>
    %c3_351 = arith.constant 3 : index
    %c0_352 = arith.constant 0 : index
    %c0_353 = arith.constant 0 : index
    %539 = vector.load %arg6[%c3_351, %c0_352, %c0_353] : memref<6x16x1xf32, #tpu.memory_space<vmem>>, vector<1x16x1xf32>
    %540 = vector.shape_cast %539 : vector<1x16x1xf32> to vector<16x1xf32>
    %c17_i32_354 = arith.constant 17 : i32
    %541 = tpu.dynamic_rotate %536 by %c17_i32_354 dim 1 : vector<16x512xf32>, i32 -> vector<16x512xf32>
    %542 = vector.extract_strided_slice %0 {offsets = [0, 0], sizes = [1, 512], strides = [1, 1]} : vector<8x512xf32> to vector<1x512xf32>
    %543 = vector.broadcast %542 : vector<1x512xf32> to vector<16x512xf32>
    %544 = arith.mulf %541, %543 : vector<16x512xf32>
    %c0_355 = arith.constant 0 : index
    %c0_356 = arith.constant 0 : index
    %545 = vector.load %arg12[%c0_355, %c0_356] : memref<144x512xf32, #tpu.memory_space<vmem>>, vector<16x512xf32>
    tpu.vector_store %arg12[%c0_355, %c0_356], %544 {strides = array<i32>} : memref<144x512xf32, #tpu.memory_space<vmem>>, vector<16x512xf32>,
    %c16_i32_357 = arith.constant 16 : i32
    %546 = tpu.dynamic_rotate %536 by %c16_i32_357 dim 1 : vector<16x512xf32>, i32 -> vector<16x512xf32>
    %547 = vector.extract_strided_slice %0 {offsets = [1, 0], sizes = [1, 512], strides = [1, 1]} : vector<8x512xf32> to vector<1x512xf32>
    %548 = vector.broadcast %547 : vector<1x512xf32> to vector<16x512xf32>
    %549 = arith.mulf %546, %548 : vector<16x512xf32>
    %c16_358 = arith.constant 16 : index
    %c0_359 = arith.constant 0 : index
    %550 = vector.load %arg12[%c16_358, %c0_359] : memref<144x512xf32, #tpu.memory_space<vmem>>, vector<16x512xf32>
    tpu.vector_store %arg12[%c16_358, %c0_359], %549 {strides = array<i32>} : memref<144x512xf32, #tpu.memory_space<vmem>>, vector<16x512xf32>,
    %c15_i32_360 = arith.constant 15 : i32
    %551 = tpu.dynamic_rotate %536 by %c15_i32_360 dim 1 : vector<16x512xf32>, i32 -> vector<16x512xf32>
    %552 = vector.extract_strided_slice %0 {offsets = [2, 0], sizes = [1, 512], strides = [1, 1]} : vector<8x512xf32> to vector<1x512xf32>
    %553 = vector.broadcast %552 : vector<1x512xf32> to vector<16x512xf32>
    %554 = arith.mulf %551, %553 : vector<16x512xf32>
    %c32_361 = arith.constant 32 : index
    %c0_362 = arith.constant 0 : index
    %555 = vector.load %arg12[%c32_361, %c0_362] : memref<144x512xf32, #tpu.memory_space<vmem>>, vector<16x512xf32>
    tpu.vector_store %arg12[%c32_361, %c0_362], %554 {strides = array<i32>} : memref<144x512xf32, #tpu.memory_space<vmem>>, vector<16x512xf32>,
    %c1_i32_363 = arith.constant 1 : i32
    %556 = tpu.dynamic_rotate %536 by %c1_i32_363 dim 1 : vector<16x512xf32>, i32 -> vector<16x512xf32>
    %557 = vector.extract_strided_slice %0 {offsets = [3, 0], sizes = [1, 512], strides = [1, 1]} : vector<8x512xf32> to vector<1x512xf32>
    %558 = vector.broadcast %557 : vector<1x512xf32> to vector<16x512xf32>
    %559 = arith.mulf %556, %558 : vector<16x512xf32>
    %c48_364 = arith.constant 48 : index
    %c0_365 = arith.constant 0 : index
    %560 = vector.load %arg12[%c48_364, %c0_365] : memref<144x512xf32, #tpu.memory_space<vmem>>, vector<16x512xf32>
    tpu.vector_store %arg12[%c48_364, %c0_365], %559 {strides = array<i32>} : memref<144x512xf32, #tpu.memory_space<vmem>>, vector<16x512xf32>,
    %c64_366 = arith.constant 64 : index
    %c0_367 = arith.constant 0 : index
    %561 = vector.load %arg12[%c64_366, %c0_367] : memref<144x512xf32, #tpu.memory_space<vmem>>, vector<16x512xf32>
    tpu.vector_store %arg12[%c64_366, %c0_367], %536 {strides = array<i32>} : memref<144x512xf32, #tpu.memory_space<vmem>>, vector<16x512xf32>,
    %c511_i32_368 = arith.constant 511 : i32
    %562 = tpu.dynamic_rotate %536 by %c511_i32_368 dim 1 : vector<16x512xf32>, i32 -> vector<16x512xf32>
    %563 = vector.extract_strided_slice %0 {offsets = [4, 0], sizes = [1, 512], strides = [1, 1]} : vector<8x512xf32> to vector<1x512xf32>
    %564 = vector.broadcast %563 : vector<1x512xf32> to vector<16x512xf32>
    %565 = arith.mulf %562, %564 : vector<16x512xf32>
    %c80_369 = arith.constant 80 : index
    %c0_370 = arith.constant 0 : index
    %566 = vector.load %arg12[%c80_369, %c0_370] : memref<144x512xf32, #tpu.memory_space<vmem>>, vector<16x512xf32>
    tpu.vector_store %arg12[%c80_369, %c0_370], %565 {strides = array<i32>} : memref<144x512xf32, #tpu.memory_space<vmem>>, vector<16x512xf32>,
    %c497_i32_371 = arith.constant 497 : i32
    %567 = tpu.dynamic_rotate %536 by %c497_i32_371 dim 1 : vector<16x512xf32>, i32 -> vector<16x512xf32>
    %568 = vector.extract_strided_slice %0 {offsets = [5, 0], sizes = [1, 512], strides = [1, 1]} : vector<8x512xf32> to vector<1x512xf32>
    %569 = vector.broadcast %568 : vector<1x512xf32> to vector<16x512xf32>
    %570 = arith.mulf %567, %569 : vector<16x512xf32>
    %c96_372 = arith.constant 96 : index
    %c0_373 = arith.constant 0 : index
    %571 = vector.load %arg12[%c96_372, %c0_373] : memref<144x512xf32, #tpu.memory_space<vmem>>, vector<16x512xf32>
    tpu.vector_store %arg12[%c96_372, %c0_373], %570 {strides = array<i32>} : memref<144x512xf32, #tpu.memory_space<vmem>>, vector<16x512xf32>,
    %c496_i32_374 = arith.constant 496 : i32
    %572 = tpu.dynamic_rotate %536 by %c496_i32_374 dim 1 : vector<16x512xf32>, i32 -> vector<16x512xf32>
    %573 = vector.extract_strided_slice %0 {offsets = [6, 0], sizes = [1, 512], strides = [1, 1]} : vector<8x512xf32> to vector<1x512xf32>
    %574 = vector.broadcast %573 : vector<1x512xf32> to vector<16x512xf32>
    %575 = arith.mulf %572, %574 : vector<16x512xf32>
    %c112_375 = arith.constant 112 : index
    %c0_376 = arith.constant 0 : index
    %576 = vector.load %arg12[%c112_375, %c0_376] : memref<144x512xf32, #tpu.memory_space<vmem>>, vector<16x512xf32>
    tpu.vector_store %arg12[%c112_375, %c0_376], %575 {strides = array<i32>} : memref<144x512xf32, #tpu.memory_space<vmem>>, vector<16x512xf32>,
    %c495_i32_377 = arith.constant 495 : i32
    %577 = tpu.dynamic_rotate %536 by %c495_i32_377 dim 1 : vector<16x512xf32>, i32 -> vector<16x512xf32>
    %578 = vector.extract_strided_slice %0 {offsets = [7, 0], sizes = [1, 512], strides = [1, 1]} : vector<8x512xf32> to vector<1x512xf32>
    %579 = vector.broadcast %578 : vector<1x512xf32> to vector<16x512xf32>
    %580 = arith.mulf %577, %579 : vector<16x512xf32>
    %c128_378 = arith.constant 128 : index
    %c0_379 = arith.constant 0 : index
    %581 = vector.load %arg12[%c128_378, %c0_379] : memref<144x512xf32, #tpu.memory_space<vmem>>, vector<16x512xf32>
    tpu.vector_store %arg12[%c128_378, %c0_379], %580 {strides = array<i32>} : memref<144x512xf32, #tpu.memory_space<vmem>>, vector<16x512xf32>,
    %c0_380 = arith.constant 0 : index
    %c0_381 = arith.constant 0 : index
    %582 = vector.load %arg12[%c0_380, %c0_381] : memref<144x512xf32, #tpu.memory_space<vmem>>, vector<144x512xf32>
    %cst_382 = arith.constant dense<0.000000e+00> : vector<16x512xf32>
    %583 = tpu.matmul %538, %582, %cst_382 {dimension_numbers = #tpu.dot_dimension_numbers<[1], [0], [0], [1], [0, 0, 1, 1], [], []>} : vector<16x144xf32>, vector<144x512xf32>, vector<16x512xf32> -> vector<16x512xf32>
    %584 = vector.broadcast %540 : vector<16x1xf32> to vector<16x512xf32>
    %585 = arith.addf %583, %584 : vector<16x512xf32>
    %cst_383 = arith.constant 2.000000e-01 : f32
    %586 = vector.broadcast %cst_383 : f32 to vector<16x512xf32>
    %587 = arith.mulf %586, %585 : vector<16x512xf32>
    %588 = arith.maximumf %585, %587 : vector<16x512xf32>
    %c4_384 = arith.constant 4 : index
    %c0_385 = arith.constant 0 : index
    %c0_386 = arith.constant 0 : index
    %589 = vector.load %arg5[%c4_384, %c0_385, %c0_386] : memref<6x16x144xf32, #tpu.memory_space<vmem>>, vector<1x16x144xf32>
    %590 = vector.shape_cast %589 : vector<1x16x144xf32> to vector<16x144xf32>
    %c4_387 = arith.constant 4 : index
    %c0_388 = arith.constant 0 : index
    %c0_389 = arith.constant 0 : index
    %591 = vector.load %arg6[%c4_387, %c0_388, %c0_389] : memref<6x16x1xf32, #tpu.memory_space<vmem>>, vector<1x16x1xf32>
    %592 = vector.shape_cast %591 : vector<1x16x1xf32> to vector<16x1xf32>
    %c17_i32_390 = arith.constant 17 : i32
    %593 = tpu.dynamic_rotate %588 by %c17_i32_390 dim 1 : vector<16x512xf32>, i32 -> vector<16x512xf32>
    %594 = vector.extract_strided_slice %0 {offsets = [0, 0], sizes = [1, 512], strides = [1, 1]} : vector<8x512xf32> to vector<1x512xf32>
    %595 = vector.broadcast %594 : vector<1x512xf32> to vector<16x512xf32>
    %596 = arith.mulf %593, %595 : vector<16x512xf32>
    %c0_391 = arith.constant 0 : index
    %c0_392 = arith.constant 0 : index
    %597 = vector.load %arg12[%c0_391, %c0_392] : memref<144x512xf32, #tpu.memory_space<vmem>>, vector<16x512xf32>
    tpu.vector_store %arg12[%c0_391, %c0_392], %596 {strides = array<i32>} : memref<144x512xf32, #tpu.memory_space<vmem>>, vector<16x512xf32>,
    %c16_i32_393 = arith.constant 16 : i32
    %598 = tpu.dynamic_rotate %588 by %c16_i32_393 dim 1 : vector<16x512xf32>, i32 -> vector<16x512xf32>
    %599 = vector.extract_strided_slice %0 {offsets = [1, 0], sizes = [1, 512], strides = [1, 1]} : vector<8x512xf32> to vector<1x512xf32>
    %600 = vector.broadcast %599 : vector<1x512xf32> to vector<16x512xf32>
    %601 = arith.mulf %598, %600 : vector<16x512xf32>
    %c16_394 = arith.constant 16 : index
    %c0_395 = arith.constant 0 : index
    %602 = vector.load %arg12[%c16_394, %c0_395] : memref<144x512xf32, #tpu.memory_space<vmem>>, vector<16x512xf32>
    tpu.vector_store %arg12[%c16_394, %c0_395], %601 {strides = array<i32>} : memref<144x512xf32, #tpu.memory_space<vmem>>, vector<16x512xf32>,
    %c15_i32_396 = arith.constant 15 : i32
    %603 = tpu.dynamic_rotate %588 by %c15_i32_396 dim 1 : vector<16x512xf32>, i32 -> vector<16x512xf32>
    %604 = vector.extract_strided_slice %0 {offsets = [2, 0], sizes = [1, 512], strides = [1, 1]} : vector<8x512xf32> to vector<1x512xf32>
    %605 = vector.broadcast %604 : vector<1x512xf32> to vector<16x512xf32>
    %606 = arith.mulf %603, %605 : vector<16x512xf32>
    %c32_397 = arith.constant 32 : index
    %c0_398 = arith.constant 0 : index
    %607 = vector.load %arg12[%c32_397, %c0_398] : memref<144x512xf32, #tpu.memory_space<vmem>>, vector<16x512xf32>
    tpu.vector_store %arg12[%c32_397, %c0_398], %606 {strides = array<i32>} : memref<144x512xf32, #tpu.memory_space<vmem>>, vector<16x512xf32>,
    %c1_i32_399 = arith.constant 1 : i32
    %608 = tpu.dynamic_rotate %588 by %c1_i32_399 dim 1 : vector<16x512xf32>, i32 -> vector<16x512xf32>
    %609 = vector.extract_strided_slice %0 {offsets = [3, 0], sizes = [1, 512], strides = [1, 1]} : vector<8x512xf32> to vector<1x512xf32>
    %610 = vector.broadcast %609 : vector<1x512xf32> to vector<16x512xf32>
    %611 = arith.mulf %608, %610 : vector<16x512xf32>
    %c48_400 = arith.constant 48 : index
    %c0_401 = arith.constant 0 : index
    %612 = vector.load %arg12[%c48_400, %c0_401] : memref<144x512xf32, #tpu.memory_space<vmem>>, vector<16x512xf32>
    tpu.vector_store %arg12[%c48_400, %c0_401], %611 {strides = array<i32>} : memref<144x512xf32, #tpu.memory_space<vmem>>, vector<16x512xf32>,
    %c64_402 = arith.constant 64 : index
    %c0_403 = arith.constant 0 : index
    %613 = vector.load %arg12[%c64_402, %c0_403] : memref<144x512xf32, #tpu.memory_space<vmem>>, vector<16x512xf32>
    tpu.vector_store %arg12[%c64_402, %c0_403], %588 {strides = array<i32>} : memref<144x512xf32, #tpu.memory_space<vmem>>, vector<16x512xf32>,
    %c511_i32_404 = arith.constant 511 : i32
    %614 = tpu.dynamic_rotate %588 by %c511_i32_404 dim 1 : vector<16x512xf32>, i32 -> vector<16x512xf32>
    %615 = vector.extract_strided_slice %0 {offsets = [4, 0], sizes = [1, 512], strides = [1, 1]} : vector<8x512xf32> to vector<1x512xf32>
    %616 = vector.broadcast %615 : vector<1x512xf32> to vector<16x512xf32>
    %617 = arith.mulf %614, %616 : vector<16x512xf32>
    %c80_405 = arith.constant 80 : index
    %c0_406 = arith.constant 0 : index
    %618 = vector.load %arg12[%c80_405, %c0_406] : memref<144x512xf32, #tpu.memory_space<vmem>>, vector<16x512xf32>
    tpu.vector_store %arg12[%c80_405, %c0_406], %617 {strides = array<i32>} : memref<144x512xf32, #tpu.memory_space<vmem>>, vector<16x512xf32>,
    %c497_i32_407 = arith.constant 497 : i32
    %619 = tpu.dynamic_rotate %588 by %c497_i32_407 dim 1 : vector<16x512xf32>, i32 -> vector<16x512xf32>
    %620 = vector.extract_strided_slice %0 {offsets = [5, 0], sizes = [1, 512], strides = [1, 1]} : vector<8x512xf32> to vector<1x512xf32>
    %621 = vector.broadcast %620 : vector<1x512xf32> to vector<16x512xf32>
    %622 = arith.mulf %619, %621 : vector<16x512xf32>
    %c96_408 = arith.constant 96 : index
    %c0_409 = arith.constant 0 : index
    %623 = vector.load %arg12[%c96_408, %c0_409] : memref<144x512xf32, #tpu.memory_space<vmem>>, vector<16x512xf32>
    tpu.vector_store %arg12[%c96_408, %c0_409], %622 {strides = array<i32>} : memref<144x512xf32, #tpu.memory_space<vmem>>, vector<16x512xf32>,
    %c496_i32_410 = arith.constant 496 : i32
    %624 = tpu.dynamic_rotate %588 by %c496_i32_410 dim 1 : vector<16x512xf32>, i32 -> vector<16x512xf32>
    %625 = vector.extract_strided_slice %0 {offsets = [6, 0], sizes = [1, 512], strides = [1, 1]} : vector<8x512xf32> to vector<1x512xf32>
    %626 = vector.broadcast %625 : vector<1x512xf32> to vector<16x512xf32>
    %627 = arith.mulf %624, %626 : vector<16x512xf32>
    %c112_411 = arith.constant 112 : index
    %c0_412 = arith.constant 0 : index
    %628 = vector.load %arg12[%c112_411, %c0_412] : memref<144x512xf32, #tpu.memory_space<vmem>>, vector<16x512xf32>
    tpu.vector_store %arg12[%c112_411, %c0_412], %627 {strides = array<i32>} : memref<144x512xf32, #tpu.memory_space<vmem>>, vector<16x512xf32>,
    %c495_i32_413 = arith.constant 495 : i32
    %629 = tpu.dynamic_rotate %588 by %c495_i32_413 dim 1 : vector<16x512xf32>, i32 -> vector<16x512xf32>
    %630 = vector.extract_strided_slice %0 {offsets = [7, 0], sizes = [1, 512], strides = [1, 1]} : vector<8x512xf32> to vector<1x512xf32>
    %631 = vector.broadcast %630 : vector<1x512xf32> to vector<16x512xf32>
    %632 = arith.mulf %629, %631 : vector<16x512xf32>
    %c128_414 = arith.constant 128 : index
    %c0_415 = arith.constant 0 : index
    %633 = vector.load %arg12[%c128_414, %c0_415] : memref<144x512xf32, #tpu.memory_space<vmem>>, vector<16x512xf32>
    tpu.vector_store %arg12[%c128_414, %c0_415], %632 {strides = array<i32>} : memref<144x512xf32, #tpu.memory_space<vmem>>, vector<16x512xf32>,
    %c0_416 = arith.constant 0 : index
    %c0_417 = arith.constant 0 : index
    %634 = vector.load %arg12[%c0_416, %c0_417] : memref<144x512xf32, #tpu.memory_space<vmem>>, vector<144x512xf32>
    %cst_418 = arith.constant dense<0.000000e+00> : vector<16x512xf32>
    %635 = tpu.matmul %590, %634, %cst_418 {dimension_numbers = #tpu.dot_dimension_numbers<[1], [0], [0], [1], [0, 0, 1, 1], [], []>} : vector<16x144xf32>, vector<144x512xf32>, vector<16x512xf32> -> vector<16x512xf32>
    %636 = vector.broadcast %592 : vector<16x1xf32> to vector<16x512xf32>
    %637 = arith.addf %635, %636 : vector<16x512xf32>
    %cst_419 = arith.constant 2.000000e-01 : f32
    %638 = vector.broadcast %cst_419 : f32 to vector<16x512xf32>
    %639 = arith.mulf %638, %637 : vector<16x512xf32>
    %640 = arith.maximumf %637, %639 : vector<16x512xf32>
    %c5_420 = arith.constant 5 : index
    %c0_421 = arith.constant 0 : index
    %c0_422 = arith.constant 0 : index
    %641 = vector.load %arg5[%c5_420, %c0_421, %c0_422] : memref<6x16x144xf32, #tpu.memory_space<vmem>>, vector<1x16x144xf32>
    %642 = vector.shape_cast %641 : vector<1x16x144xf32> to vector<16x144xf32>
    %c5_423 = arith.constant 5 : index
    %c0_424 = arith.constant 0 : index
    %c0_425 = arith.constant 0 : index
    %643 = vector.load %arg6[%c5_423, %c0_424, %c0_425] : memref<6x16x1xf32, #tpu.memory_space<vmem>>, vector<1x16x1xf32>
    %644 = vector.shape_cast %643 : vector<1x16x1xf32> to vector<16x1xf32>
    %c17_i32_426 = arith.constant 17 : i32
    %645 = tpu.dynamic_rotate %640 by %c17_i32_426 dim 1 : vector<16x512xf32>, i32 -> vector<16x512xf32>
    %646 = vector.extract_strided_slice %0 {offsets = [0, 0], sizes = [1, 512], strides = [1, 1]} : vector<8x512xf32> to vector<1x512xf32>
    %647 = vector.broadcast %646 : vector<1x512xf32> to vector<16x512xf32>
    %648 = arith.mulf %645, %647 : vector<16x512xf32>
    %c0_427 = arith.constant 0 : index
    %c0_428 = arith.constant 0 : index
    %649 = vector.load %arg12[%c0_427, %c0_428] : memref<144x512xf32, #tpu.memory_space<vmem>>, vector<16x512xf32>
    tpu.vector_store %arg12[%c0_427, %c0_428], %648 {strides = array<i32>} : memref<144x512xf32, #tpu.memory_space<vmem>>, vector<16x512xf32>,
    %c16_i32_429 = arith.constant 16 : i32
    %650 = tpu.dynamic_rotate %640 by %c16_i32_429 dim 1 : vector<16x512xf32>, i32 -> vector<16x512xf32>
    %651 = vector.extract_strided_slice %0 {offsets = [1, 0], sizes = [1, 512], strides = [1, 1]} : vector<8x512xf32> to vector<1x512xf32>
    %652 = vector.broadcast %651 : vector<1x512xf32> to vector<16x512xf32>
    %653 = arith.mulf %650, %652 : vector<16x512xf32>
    %c16_430 = arith.constant 16 : index
    %c0_431 = arith.constant 0 : index
    %654 = vector.load %arg12[%c16_430, %c0_431] : memref<144x512xf32, #tpu.memory_space<vmem>>, vector<16x512xf32>
    tpu.vector_store %arg12[%c16_430, %c0_431], %653 {strides = array<i32>} : memref<144x512xf32, #tpu.memory_space<vmem>>, vector<16x512xf32>,
    %c15_i32_432 = arith.constant 15 : i32
    %655 = tpu.dynamic_rotate %640 by %c15_i32_432 dim 1 : vector<16x512xf32>, i32 -> vector<16x512xf32>
    %656 = vector.extract_strided_slice %0 {offsets = [2, 0], sizes = [1, 512], strides = [1, 1]} : vector<8x512xf32> to vector<1x512xf32>
    %657 = vector.broadcast %656 : vector<1x512xf32> to vector<16x512xf32>
    %658 = arith.mulf %655, %657 : vector<16x512xf32>
    %c32_433 = arith.constant 32 : index
    %c0_434 = arith.constant 0 : index
    %659 = vector.load %arg12[%c32_433, %c0_434] : memref<144x512xf32, #tpu.memory_space<vmem>>, vector<16x512xf32>
    tpu.vector_store %arg12[%c32_433, %c0_434], %658 {strides = array<i32>} : memref<144x512xf32, #tpu.memory_space<vmem>>, vector<16x512xf32>,
    %c1_i32_435 = arith.constant 1 : i32
    %660 = tpu.dynamic_rotate %640 by %c1_i32_435 dim 1 : vector<16x512xf32>, i32 -> vector<16x512xf32>
    %661 = vector.extract_strided_slice %0 {offsets = [3, 0], sizes = [1, 512], strides = [1, 1]} : vector<8x512xf32> to vector<1x512xf32>
    %662 = vector.broadcast %661 : vector<1x512xf32> to vector<16x512xf32>
    %663 = arith.mulf %660, %662 : vector<16x512xf32>
    %c48_436 = arith.constant 48 : index
    %c0_437 = arith.constant 0 : index
    %664 = vector.load %arg12[%c48_436, %c0_437] : memref<144x512xf32, #tpu.memory_space<vmem>>, vector<16x512xf32>
    tpu.vector_store %arg12[%c48_436, %c0_437], %663 {strides = array<i32>} : memref<144x512xf32, #tpu.memory_space<vmem>>, vector<16x512xf32>,
    %c64_438 = arith.constant 64 : index
    %c0_439 = arith.constant 0 : index
    %665 = vector.load %arg12[%c64_438, %c0_439] : memref<144x512xf32, #tpu.memory_space<vmem>>, vector<16x512xf32>
    tpu.vector_store %arg12[%c64_438, %c0_439], %640 {strides = array<i32>} : memref<144x512xf32, #tpu.memory_space<vmem>>, vector<16x512xf32>,
    %c511_i32_440 = arith.constant 511 : i32
    %666 = tpu.dynamic_rotate %640 by %c511_i32_440 dim 1 : vector<16x512xf32>, i32 -> vector<16x512xf32>
    %667 = vector.extract_strided_slice %0 {offsets = [4, 0], sizes = [1, 512], strides = [1, 1]} : vector<8x512xf32> to vector<1x512xf32>
    %668 = vector.broadcast %667 : vector<1x512xf32> to vector<16x512xf32>
    %669 = arith.mulf %666, %668 : vector<16x512xf32>
    %c80_441 = arith.constant 80 : index
    %c0_442 = arith.constant 0 : index
    %670 = vector.load %arg12[%c80_441, %c0_442] : memref<144x512xf32, #tpu.memory_space<vmem>>, vector<16x512xf32>
    tpu.vector_store %arg12[%c80_441, %c0_442], %669 {strides = array<i32>} : memref<144x512xf32, #tpu.memory_space<vmem>>, vector<16x512xf32>,
    %c497_i32_443 = arith.constant 497 : i32
    %671 = tpu.dynamic_rotate %640 by %c497_i32_443 dim 1 : vector<16x512xf32>, i32 -> vector<16x512xf32>
    %672 = vector.extract_strided_slice %0 {offsets = [5, 0], sizes = [1, 512], strides = [1, 1]} : vector<8x512xf32> to vector<1x512xf32>
    %673 = vector.broadcast %672 : vector<1x512xf32> to vector<16x512xf32>
    %674 = arith.mulf %671, %673 : vector<16x512xf32>
    %c96_444 = arith.constant 96 : index
    %c0_445 = arith.constant 0 : index
    %675 = vector.load %arg12[%c96_444, %c0_445] : memref<144x512xf32, #tpu.memory_space<vmem>>, vector<16x512xf32>
    tpu.vector_store %arg12[%c96_444, %c0_445], %674 {strides = array<i32>} : memref<144x512xf32, #tpu.memory_space<vmem>>, vector<16x512xf32>,
    %c496_i32_446 = arith.constant 496 : i32
    %676 = tpu.dynamic_rotate %640 by %c496_i32_446 dim 1 : vector<16x512xf32>, i32 -> vector<16x512xf32>
    %677 = vector.extract_strided_slice %0 {offsets = [6, 0], sizes = [1, 512], strides = [1, 1]} : vector<8x512xf32> to vector<1x512xf32>
    %678 = vector.broadcast %677 : vector<1x512xf32> to vector<16x512xf32>
    %679 = arith.mulf %676, %678 : vector<16x512xf32>
    %c112_447 = arith.constant 112 : index
    %c0_448 = arith.constant 0 : index
    %680 = vector.load %arg12[%c112_447, %c0_448] : memref<144x512xf32, #tpu.memory_space<vmem>>, vector<16x512xf32>
    tpu.vector_store %arg12[%c112_447, %c0_448], %679 {strides = array<i32>} : memref<144x512xf32, #tpu.memory_space<vmem>>, vector<16x512xf32>,
    %c495_i32_449 = arith.constant 495 : i32
    %681 = tpu.dynamic_rotate %640 by %c495_i32_449 dim 1 : vector<16x512xf32>, i32 -> vector<16x512xf32>
    %682 = vector.extract_strided_slice %0 {offsets = [7, 0], sizes = [1, 512], strides = [1, 1]} : vector<8x512xf32> to vector<1x512xf32>
    %683 = vector.broadcast %682 : vector<1x512xf32> to vector<16x512xf32>
    %684 = arith.mulf %681, %683 : vector<16x512xf32>
    %c128_450 = arith.constant 128 : index
    %c0_451 = arith.constant 0 : index
    %685 = vector.load %arg12[%c128_450, %c0_451] : memref<144x512xf32, #tpu.memory_space<vmem>>, vector<16x512xf32>
    tpu.vector_store %arg12[%c128_450, %c0_451], %684 {strides = array<i32>} : memref<144x512xf32, #tpu.memory_space<vmem>>, vector<16x512xf32>,
    %c0_452 = arith.constant 0 : index
    %c0_453 = arith.constant 0 : index
    %686 = vector.load %arg12[%c0_452, %c0_453] : memref<144x512xf32, #tpu.memory_space<vmem>>, vector<144x512xf32>
    %cst_454 = arith.constant dense<0.000000e+00> : vector<16x512xf32>
    %687 = tpu.matmul %642, %686, %cst_454 {dimension_numbers = #tpu.dot_dimension_numbers<[1], [0], [0], [1], [0, 0, 1, 1], [], []>} : vector<16x144xf32>, vector<144x512xf32>, vector<16x512xf32> -> vector<16x512xf32>
    %688 = vector.broadcast %644 : vector<16x1xf32> to vector<16x512xf32>
    %689 = arith.addf %687, %688 : vector<16x512xf32>
    %cst_455 = arith.constant 2.000000e-01 : f32
    %690 = vector.broadcast %cst_455 : f32 to vector<16x512xf32>
    %691 = arith.mulf %690, %689 : vector<16x512xf32>
    %692 = arith.maximumf %689, %691 : vector<16x512xf32>
    %c0_456 = arith.constant 0 : index
    %c0_457 = arith.constant 0 : index
    %693 = vector.load %arg9[%c0_456, %c0_457] : memref<3x16xf32, #tpu.memory_space<vmem>>, vector<3x16xf32>
    %c0_458 = arith.constant 0 : index
    %c0_459 = arith.constant 0 : index
    %694 = vector.load %arg10[%c0_458, %c0_459] : memref<3x1xf32, #tpu.memory_space<vmem>>, vector<3x1xf32>
    %cst_460 = arith.constant dense<0.000000e+00> : vector<3x512xf32>
    %695 = tpu.matmul %693, %692, %cst_460 {dimension_numbers = #tpu.dot_dimension_numbers<[1], [0], [0], [1], [0, 0, 1, 1], [], []>} : vector<3x16xf32>, vector<16x512xf32>, vector<3x512xf32> -> vector<3x512xf32>
    %696 = vector.broadcast %694 : vector<3x1xf32> to vector<3x512xf32>
    %697 = arith.addf %695, %696 : vector<3x512xf32>
    %698 = vector.extract_strided_slice %2 {offsets = [0, 0], sizes = [3, 512], strides = [1, 1]} : vector<8x512xf32> to vector<3x512xf32>
    %699 = arith.addf %697, %698 : vector<3x512xf32>
    %c0_461 = arith.constant 0 : index
    %c0_462 = arith.constant 0 : index
    %c0_463 = arith.constant 0 : index
    %700 = vector.load %arg11[%c0_461, %c0_462, %c0_463] : memref<1x3x512xf32, #tpu.memory_space<vmem>>, vector<1x3x512xf32>
    %701 = vector.shape_cast %700 : vector<1x3x512xf32> to vector<3x512xf32>
    %702 = vector.shape_cast %699 : vector<3x512xf32> to vector<1x3x512xf32>
    tpu.vector_store %arg11[%c0_461, %c0_462, %c0_463], %702 {strides = array<i32>} : memref<1x3x512xf32, #tpu.memory_space<vmem>>, vector<1x3x512xf32>,
    return
  }
  func.func @transform_0(%arg0: i32) -> (i32, i32, i32) {
    %c0_i32 = arith.constant 0 : i32
    %c0_i32_0 = arith.constant 0 : i32
    %c0_i32_1 = arith.constant 0 : i32
    return %arg0, %c0_i32, %c0_i32_0 : i32, i32, i32
  }
  func.func @transform_1(%arg0: i32) -> (i32, i32) {
    %c0_i32 = arith.constant 0 : i32
    %c0_i32_0 = arith.constant 0 : i32
    %c0_i32_1 = arith.constant 0 : i32
    return %c0_i32, %c0_i32_0 : i32, i32
  }
  func.func @transform_2(%arg0: i32) -> (i32, i32) {
    %c0_i32 = arith.constant 0 : i32
    %c0_i32_0 = arith.constant 0 : i32
    %c0_i32_1 = arith.constant 0 : i32
    return %c0_i32, %c0_i32_0 : i32, i32
  }
  func.func @transform_3(%arg0: i32) -> (i32, i32) {
    %c0_i32 = arith.constant 0 : i32
    %c0_i32_0 = arith.constant 0 : i32
    %c0_i32_1 = arith.constant 0 : i32
    return %c0_i32, %c0_i32_0 : i32, i32
  }
  func.func @transform_4(%arg0: i32) -> (i32, i32, i32) {
    %c0_i32 = arith.constant 0 : i32
    %c0_i32_0 = arith.constant 0 : i32
    %c0_i32_1 = arith.constant 0 : i32
    %c0_i32_2 = arith.constant 0 : i32
    return %c0_i32, %c0_i32_0, %c0_i32_1 : i32, i32, i32
  }
  func.func @transform_5(%arg0: i32) -> (i32, i32, i32) {
    %c0_i32 = arith.constant 0 : i32
    %c0_i32_0 = arith.constant 0 : i32
    %c0_i32_1 = arith.constant 0 : i32
    %c0_i32_2 = arith.constant 0 : i32
    return %c0_i32, %c0_i32_0, %c0_i32_1 : i32, i32, i32
  }
  func.func @transform_6(%arg0: i32) -> (i32, i32) {
    %c0_i32 = arith.constant 0 : i32
    %c0_i32_0 = arith.constant 0 : i32
    %c0_i32_1 = arith.constant 0 : i32
    return %c0_i32, %c0_i32_0 : i32, i32
  }
  func.func @transform_7(%arg0: i32) -> (i32, i32) {
    %c0_i32 = arith.constant 0 : i32
    %c0_i32_0 = arith.constant 0 : i32
    %c0_i32_1 = arith.constant 0 : i32
    return %c0_i32, %c0_i32_0 : i32, i32
  }
  func.func @transform_8(%arg0: i32) -> (i32, i32) {
    %c0_i32 = arith.constant 0 : i32
    %c0_i32_0 = arith.constant 0 : i32
    %c0_i32_1 = arith.constant 0 : i32
    return %c0_i32, %c0_i32_0 : i32, i32
  }
  func.func @transform_9(%arg0: i32) -> (i32, i32) {
    %c0_i32 = arith.constant 0 : i32
    %c0_i32_0 = arith.constant 0 : i32
    %c0_i32_1 = arith.constant 0 : i32
    return %c0_i32, %c0_i32_0 : i32, i32
  }
  func.func @transform_10(%arg0: i32) -> (i32, i32, i32) {
    %c0_i32 = arith.constant 0 : i32
    %c0_i32_0 = arith.constant 0 : i32
    %c0_i32_1 = arith.constant 0 : i32
    return %arg0, %c0_i32, %c0_i32_0 : i32, i32, i32
  }
}

</mosaic_0001>

<bundles_post_ra>
// kernel: tpu_custom_call.1
= control target key start
LH: loop header
LB: loop body
LE: loop exit
PB: predicated region body
PF: predicated region fallthrough
CT: control target
= control target key end

     0   :  { %15 = vsyncpa [#allocation4], 0  ;;  %s8461_s16 = smov [#allocation3]   ;;  %s8462_s18 = smov 256   ;;  %s16142_s0 = inlined_call_operand.vmem [shape: f32[1,8,512], index: 0, kind: input, shape index: {}]   ;;  %s16143_s1 = inlined_call_operand.vmem [shape: f32[8,512], index: 1, kind: input, shape index: {}]   ;;  %s16144_s2 = inlined_call_operand.vmem [shape: f32[16,72], index: 2, kind: input, shape index: {}]   ;;  %s16145_s3 = inlined_call_operand.vmem [shape: f32[16,1], index: 3, kind: input, shape index: {}]   ;;  %s16146_s4 = inlined_call_operand.hbm [shape: f32[6,16,144], index: 4, kind: input, shape index: {}]   ;;  %s16147_s5 = inlined_call_operand.vmem [shape: f32[6,16,1], index: 5, kind: input, shape index: {}]   ;;  %s16148_s6 = inlined_call_operand.vmem [shape: f32[16,16], index: 6, kind: input, shape index: {}]   ;;  %s16149_s7 = inlined_call_operand.vmem [shape: f32[16,1], index: 7, kind: input, shape index: {}]   ;;  %s16150_s8 = inlined_call_operand.vmem [shape: f32[3,16], index: 8, kind: input, shape index: {}]   ;;  %s16151_s9 = inlined_call_operand.vmem [shape: f32[3,1], index: 9, kind: input, shape index: {}]   ;;  %s16152_s10 = inlined_call_operand.vmem [shape: f32[1,3,512], index: 10, kind: output, shape index: {}]  }
   0x1   :  { %s28_s15 = sshll.u32 %s16146_s4, 4  ;;  %s30_s17 = sshll.u32 %s8461_s16, 4  ;;  %s29_s15 = int_to_ptr.hbm [resolvable:$true] %s28_s15  ;;  %s31_s17 = int_to_ptr.vmem [resolvable:$true] %s30_s17 }
   0x2   :  { %s8463_s19 = smov 16  }
   0x3   :  { %36 = dma.hbm_to_vmem [thread:$0]  %s29_s15, 3072, %s31_s17, [#allocation4], %s8462_s18, %s8462_s18, %s8463_s19  }
   0x4   :  { %8459 = dma.done.wait [#allocation4], 3072  }
   0x5   :  { %8460 = vsyncadd [#allocation4], 4294964224  ;;  %v8534_v0 = vld [vmem:[%s16142_s0 + $0x18] sm:$0xff]  ;;  %v8539_v1 = vld [vmem:[%s16142_s0 + $0x10] sm:$0xff]  ;;  %s8464_s25 = smov 111   ;;  %s8465_s26 = smov 112   ;;  %v71_v6 = vlaneseq }
   0x6   :  { %v8544_v2 = vld [vmem:[%s16142_s0] sm:$0xff]  ;;  %250 = vrot.lane.b32.xlu1 %v8534_v0, %s8464_s25  ;;  %223 = vrot.lane.b32.xlu2 %v8539_v1, %s8465_s26  ;;  %s8466_s27 = smov 113   ;;  %s8467_s28 = smov 127   ;;  %v8573_v3 = vld [vmem:[%s16142_s0 + $0x8] sm:$0xff]  ;;  %vm315_vm8 = vcmask 588800   ;;  %vm846_vm9 = vcmask 130048  }
   0x7   :  { %244 = vrot.lane.b32.xlu0 %v8544_v2, %s8464_s25  ;;  %s8468_s11 = smov 1   ;;  %s8469_s12 = smov 15   ;;  %v8617_v7 = vand.u32 127, %v71_v6  ;;  %v8622_v8 = vld [vmem:[%s16143_s1 + $0x18] sm:$0xff]  ;;  %v8634_v15 = vld [vmem:[%s16143_s1 + $0x10] sm:$0xff]  ;;  %v8693_v46 = vld [vmem:[%s16143_s1] sm:$0xff] }
   0x8   :  { %s8470_s13 = smov 17   ;;  %v8626_v9 = vperm.slane %v8622_v8, 7  ;;  %v8637_v16 = vperm.slane %v8622_v8, 6  ;;  %v8640_v17 = vperm.slane %v8634_v15, 7  ;;  %v8644_v20 = vperm.slane %v8634_v15, 6  ;;  %v8698_v47 = vld [vmem:[%s16143_s1 + $0x8] sm:$0xff] }
   0x9   :  { %vm252_vm0 = vcmp.lt.s32.totalorder %v8617_v7, 111  ;;  %vm227_vm1 = vcmp.lt.s32.totalorder %v8617_v7, 112  ;;  %v8657_v28 = vperm.slane %v8634_v15, 5  ;;  %vm202_vm2 = vcmp.lt.s32.totalorder %v8617_v7, 113 }
   0xa   :  { %16500 = vst [vmem:[#allocation6_spill] sm:$0xff] %v8626_v9  ;;  %v8661_v29 = vperm.slane %v8622_v8, 5  ;;  %v8672_v37 = vperm.slane %v8634_v15, 4  ;;  %vm177_vm3 = vcmp.lt.s32.totalorder %v8617_v7, 127  ;;  %v8676_v38 = vperm.slane %v8622_v8, 4 }
   0xb   :  { %16501 = vst [vmem:[#allocation7_spill] sm:$0xff] %v8637_v16  ;;  %v8702_v48 = vperm.slane %v8693_v46, 7  ;;  %v8705_v49 = vperm.slane %v8698_v47, 7  ;;  %v8709_v52 = vperm.slane %v8693_v46, 6  ;;  %v8712_v53 = vperm.slane %v8698_v47, 6 }
   0xc   :  { %16502 = vst [vmem:[#allocation8_spill] sm:$0xff] %v8640_v17  ;;  %v8726_v60 = vperm.slane %v8693_v46, 5  ;;  %v8729_v61 = vperm.slane %v8698_v47, 5  ;;  %vm148_vm4 = vcmp.lt.s32.totalorder %v8617_v7, 1  ;;  %v8741_v6 = vperm.slane %v8634_v15, 3 }
   0xd   :  { %16503 = vst [vmem:[#allocation9_spill] sm:$0xff] %v8644_v20  ;;  %vm123_vm5 = vcmp.lt.s32.totalorder %v8617_v7, 15  ;;  %vm98_vm6 = vcmp.lt.s32.totalorder %v8617_v7, 16  ;;  %vm73_vm7 = vcmp.lt.s32.totalorder %v8617_v7, 17  ;;  %vm8261_vm10 = vcmask 1043456  }
   0xe   :  { %225 = vrot.lane.b32.xlu2 %v8534_v0, %s8465_s26  ;;  %219 = vrot.lane.b32.xlu1 %v8544_v2, %s8465_s26  ;;  %16504 = vst [vmem:[#allocation10_spill] sm:$0xff] %v8657_v28 }
   0xf   :  { %248 = vrot.lane.b32.xlu0 %v8539_v1, %s8464_s25  ;;  %16505 = vst [vmem:[#allocation11_spill] sm:$0xff] %v8661_v29 }
  0x10   :  { %16506 = vst [vmem:[#allocation12_spill] sm:$0xff] %v8672_v37 }
  0x11   :  { %16507 = vst [vmem:[#allocation13_spill] sm:$0xff] %v8676_v38 }
  0x12   :  { %16508 = vst [vmem:[#allocation14_spill] sm:$0xff] %v8702_v48 }
  0x13   :  { %16509 = vst [vmem:[#allocation15_spill] sm:$0xff] %v8705_v49 }
  0x14   :  { %16510 = vst [vmem:[#allocation16_spill] sm:$0xff] %v8709_v52 }
  0x15   :  { %16511 = vst [vmem:[#allocation17_spill] sm:$0xff] %v8712_v53 }
  0x16   :  { %200 = vrot.lane.b32.xlu2 %v8534_v0, %s8466_s27  ;;  %198 = vrot.lane.b32.xlu1 %v8539_v1, %s8466_s27  ;;  %16512 = vst [vmem:[#allocation18_spill] sm:$0xff] %v8726_v60 }
  0x17   :  { %194 = vrot.lane.b32.xlu0 %v8544_v2, %s8466_s27  ;;  %16513 = vst [vmem:[#allocation19_spill] sm:$0xff] %v8729_v61 }
  0x18   :  { %16514 = vst [vmem:[#allocation20_spill] sm:$0xff] %v8741_v6 }
  0x1e   :  { %175 = vrot.lane.b32.xlu2 %v8534_v0, %s8467_s28  ;;  %173 = vrot.lane.b32.xlu1 %v8539_v1, %s8467_s28 }
  0x1f   :  { %169 = vrot.lane.b32.xlu0 %v8544_v2, %s8467_s28 }
  0x26   :  { %142 = vrot.lane.b32.xlu2 %v8573_v3, %s8468_s11  ;;  %221 = vrot.lane.b32.xlu1 %v8573_v3, %s8465_s26 }
  0x27   :  { %246 = vrot.lane.b32.xlu0 %v8573_v3, %s8464_s25 }
  0x2e   :  { %196 = vrot.lane.b32.xlu2 %v8573_v3, %s8466_s27  ;;  %146 = vrot.lane.b32.xlu1 %v8534_v0, %s8468_s11 }
  0x2f   :  { %144 = vrot.lane.b32.xlu0 %v8539_v1, %s8468_s11 }
  0x36   :  { %121 = vrot.lane.b32.xlu2 %v8534_v0, %s8469_s12  ;;  %119 = vrot.lane.b32.xlu1 %v8539_v1, %s8469_s12 }
  0x37   :  { %117 = vrot.lane.b32.xlu0 %v8573_v3, %s8469_s12 }
  0x3e   :  { %94 = vrot.lane.b32.xlu2 %v8539_v1, %s8463_s19  ;;  %92 = vrot.lane.b32.xlu1 %v8573_v3, %s8463_s19 }
  0x3f   :  { %171 = vrot.lane.b32.xlu0 %v8573_v3, %s8467_s28 }
  0x46   :  { %67 = vrot.lane.b32.xlu2 %v8539_v1, %s8470_s13  ;;  %65 = vrot.lane.b32.xlu1 %v8573_v3, %s8470_s13 }
  0x47   :  { %96 = vrot.lane.b32.xlu0 %v8534_v0, %s8463_s19 }
  0x4e   :  { %115 = vrot.lane.b32.xlu2 %v8544_v2, %s8469_s12  ;;  %140 = vrot.lane.b32.xlu1 %v8544_v2, %s8468_s11 }
  0x4f   :  { %69 = vrot.lane.b32.xlu0 %v8534_v0, %s8470_s13 }
  0x56   :  { %63 = vrot.lane.b32.xlu1 %v8544_v2, %s8470_s13 }
  0x57   :  { %90 = vrot.lane.b32.xlu0 %v8544_v2, %s8463_s19 }
  0x60   :  { %v8615_v4 = vpop.permute.xlu2 %223 }
  0x68   :  { %v226_v5 = vpop.permute.xlu2 %225 }
  0x69   :  { %v228_v24 = vsel %vm227_vm1, %v8615_v4, %v226_v5 }
  0x6a   :  { %v238_v27 = vmul.f32 %v8644_v20, %v228_v24 }
  0x70   :  { %v201_v10 = vpop.permute.xlu2 %200 }
  0x78   :  { %v251_v11 = vpop.permute.xlu1 %250  ;;  %v176_v22 = vpop.permute.xlu2 %175 }
  0x79   :  { %v245_v12 = vpop.permute.xlu0 %244 }
  0x7a   :  { %v256_v13 = vsel %vm252_vm0, %v251_v11, %v245_v12 }
  0x7b   :  { %v264_v14 = vmul.f32 %v8626_v9, %v256_v13 }
  0x7d   :  { %398 = vmatpush.msra.mxu3 %v264_v14 }
  0x80   :  { %v220_v18 = vpop.permute.xlu1 %219  ;;  %v8669_v36 = vpop.permute.xlu2 %142 }
  0x81   :  { %v249_v19 = vpop.permute.xlu0 %248  ;;  %v231_v21 = vsel %vm227_vm1, %v226_v5, %v220_v18 }
  0x82   :  { %v253_v23 = vsel %vm252_vm0, %v249_v19, %v251_v11  ;;  %v239_v25 = vmul.f32 %v8637_v16, %v231_v21 }
  0x83   :  { %v263_v26 = vmul.f32 %v8640_v17, %v253_v23  ;;  %v8763_v23 = vperm.slane %v8634_v15, 2 }
  0x84   :  { %399 = vmatpush.msra.mxu3 %v239_v25 }
  0x85   :  { %375 = vmatpush.msra.mxu2 %v263_v26  ;;  %16517 = vst [vmem:[#allocation23_spill] sm:$0xff] %v8763_v23 }
  0x87   :  { %376 = vmatpush.msra.mxu2 %v238_v27 }
  0x88   :  { %v199_v30 = vpop.permute.xlu1 %198  ;;  %v197_v45 = vpop.permute.xlu2 %196 }
  0x89   :  { %v195_v31 = vpop.permute.xlu0 %194  ;;  %v203_v32 = vsel %vm202_vm2, %v199_v30, %v201_v10  ;;  %v204_v63 = vsel %vm202_vm2, %v197_v45, %v199_v30 }
  0x8a   :  { %v206_v33 = vsel %vm202_vm2, %v201_v10, %v195_v31  ;;  %v213_v34 = vmul.f32 %v8657_v28, %v203_v32  ;;  %v205_v62 = vsel %vm202_vm2, %v195_v31, %v197_v45  ;;  %v212_v5 = vmul.f32 %v8729_v61, %v204_v63 }
  0x8b   :  { %v214_v35 = vmul.f32 %v8661_v29, %v206_v33  ;;  %v8744_v10 = vperm.slane %v8622_v8, 3  ;;  %v8774_v33 = vperm.slane %v8634_v15, 1  ;;  %v8471_v45 = vmov 0  }
  0x8c   :  { %377 = vmatpush.msra.mxu2 %v213_v34  ;;  %v8777_v34 = vperm.slane %v8693_v46, 4  ;;  %8429 = vset.pattern.permute.xlu0 %v8471_v45 }
  0x8d   :  { %400 = vmatpush.msra.mxu3 %v214_v35  ;;  %16515 = vst [vmem:[#allocation21_spill] sm:$0xff] %v8744_v10  ;;  %v8780_v35 = vperm.slane %v8698_v47, 4  ;;  %8428 = vset.pattern.permute.xlu2 %v8471_v45 }
  0x8e   :  { %16518 = vst [vmem:[#allocation24_spill] sm:$0xff] %v8774_v33  ;;  %8430 = vset.pattern.permute.xlu1 %v8471_v45 }
  0x8f   :  { %16519 = vst [vmem:[#allocation25_spill] sm:$0xff] %v8777_v34 }
  0x90   :  { %v8678_v39 = vpop.permute.xlu1 %173  ;;  %v8746_v11 = vpop.permute.xlu2 %121  ;;  %16520 = vst [vmem:[#allocation26_spill] sm:$0xff] %v8780_v35 }
  0x91   :  { %v8680_v40 = vpop.permute.xlu0 %169  ;;  %v178_v41 = vsel %vm177_vm3, %v8678_v39, %v176_v22 }
  0x92   :  { %v181_v42 = vsel %vm177_vm3, %v176_v22, %v8680_v40  ;;  %v188_v43 = vmul.f32 %v8672_v37, %v178_v41  ;;  %v8759_v22 = vperm.slane %v8622_v8, 2 }
  0x93   :  { %v189_v44 = vmul.f32 %v8676_v38, %v181_v42  ;;  %v61_v42 = vld [vmem:[%s16145_s3] sm:$0xff] }
  0x94   :  { %378 = vmatpush.msra.mxu2 %v188_v43  ;;  %16516 = vst [vmem:[#allocation22_spill] sm:$0xff] %v8759_v22  ;;  %307 = vperm.xlu0 %8429, %v61_v42  }
  0x95   :  { %401 = vmatpush.msra.mxu3 %v189_v44 }
  0x96   :  { %379 = vmatpush.msra.mxu2 %v8539_v1 }
  0x97   :  { %402 = vmatpush.msra.mxu3 %v8534_v0 }
  0x98   :  { %v222_v50 = vpop.permute.xlu1 %221  ;;  %v95_v27 = vpop.permute.xlu2 %94 }
  0x99   :  { %v247_v51 = vpop.permute.xlu0 %246  ;;  %v230_v56 = vsel %vm227_vm1, %v220_v18, %v222_v50  ;;  %v229_v57 = vsel %vm227_vm1, %v222_v50, %v8615_v4  ;;  %v211_v4 = vmul.f32 %v8726_v60, %v205_v62 }
  0x9a   :  { %v255_v54 = vsel %vm252_vm0, %v245_v12, %v247_v51  ;;  %v254_v55 = vsel %vm252_vm0, %v247_v51, %v249_v19  ;;  %v236_v0 = vmul.f32 %v8709_v52, %v230_v56  ;;  %v237_v1 = vmul.f32 %v8712_v53, %v229_v57 }
  0x9b   :  { %v261_v58 = vmul.f32 %v8702_v48, %v255_v54  ;;  %v262_v59 = vmul.f32 %v8705_v49, %v254_v55 }
  0x9d   :  { %329 = vmatpush.msra.mxu0 %v261_v58  ;;  %352 = vmatpush.msra.mxu1 %v262_v59  ;;  %v8804_v58 = vperm.slane %v8622_v8, 1  ;;  %v62_v59 = vld [vmem:[%s16145_s3 + $0x8] sm:$0xff] }
  0x9e   :  { %312 = vperm.xlu2 %8428, %v62_v59  }
  0x9f   :  { %330 = vmatpush.msra.mxu0 %v236_v0  ;;  %353 = vmatpush.msra.mxu1 %v237_v1  ;;  %16522 = vst [vmem:[#allocation28_spill] sm:$0xff] %v8804_v58 }
  0xa0   :  { %v8748_v12 = vpop.permute.xlu1 %146  ;;  %v68_v57 = vpop.permute.xlu2 %67 }
  0xa1   :  { %v145_v13 = vpop.permute.xlu0 %144  ;;  %331 = vmatpush.msra.mxu0 %v211_v4  ;;  %354 = vmatpush.msra.mxu1 %v212_v5  ;;  %v8822_v4 = vperm.slane %v8693_v46, 3  ;;  %v8825_v5 = vperm.slane %v8698_v47, 3 }
  0xa2   :  { %v150_v14 = vsel %vm148_vm4, %v8669_v36, %v145_v13  ;;  %v149_v18 = vsel %vm148_vm4, %v145_v13, %v8748_v12  ;;  %v8828_v13 = vperm.slane %v8622_v8, 0 }
  0xa3   :  { %v159_v19 = vmul.f32 %v8741_v6, %v150_v14  ;;  %v160_v21 = vmul.f32 %v8744_v10, %v149_v18  ;;  %16523 = vst [vmem:[#allocation29_spill] sm:$0xff] %v8822_v4  ;;  %v8831_v18 = vperm.slane %v8693_v46, 2 }
  0xa4   :  { %16524 = vst [vmem:[#allocation30_spill] sm:$0xff] %v8825_v5 }
  0xa5   :  { %380 = vmatpush.msra.mxu2 %v159_v19  ;;  %403 = vmatpush.msra.mxu3 %v160_v21  ;;  %16525 = vst [vmem:[#allocation31_spill] sm:$0xff] %v8828_v13  ;;  %v8834_v19 = vperm.slane %v8698_v47, 2 }
  0xa6   :  { %16526 = vst [vmem:[#allocation32_spill] sm:$0xff] %v8831_v18 }
  0xa7   :  { %16527 = vst [vmem:[#allocation33_spill] sm:$0xff] %v8834_v19 }
  0xa8   :  { %v120_v24 = vpop.permute.xlu1 %119  ;;  %v116_v1 = vpop.permute.xlu2 %115 }
  0xa9   :  { %v118_v25 = vpop.permute.xlu0 %117  ;;  %v124_v26 = vsel %vm123_vm5, %v120_v24, %v8746_v11  ;;  %v127_v8 = vsel %vm123_vm5, %v8746_v11, %v116_v1  ;;  %v60_v11 = vld [vmem:[%s16144_s2 + $0x8] sm:$0xff] }
  0xaa   :  { %v125_v30 = vsel %vm123_vm5, %v118_v25, %v120_v24  ;;  %v135_v31 = vmul.f32 %v8759_v22, %v124_v26  ;;  %v1055_v22 = vld [vmem:[%s16149_s7] sm:$0xff] }
  0xab   :  { %v134_v32 = vmul.f32 %v8763_v23, %v125_v30 }
  0xac   :  { %404 = vmatpush.msra.mxu3 %v135_v31 }
  0xad   :  { %381 = vmatpush.msra.mxu2 %v134_v32 }
  0xb0   :  { %v8782_v41 = vpop.permute.xlu1 %92 }
  0xb1   :  { %v172_v43 = vpop.permute.xlu0 %171  ;;  %v100_v44 = vsel %vm98_vm6, %v8782_v41, %v95_v27 }
  0xb2   :  { %v180_v50 = vsel %vm177_vm3, %v8680_v40, %v172_v43  ;;  %v179_v51 = vsel %vm177_vm3, %v172_v43, %v8678_v39  ;;  %v109_v54 = vmul.f32 %v8774_v33, %v100_v44  ;;  %v8801_v40 = vperm.slane %v8634_v15, 0 }
  0xb3   :  { %v186_v55 = vmul.f32 %v8777_v34, %v180_v50  ;;  %v187_v56 = vmul.f32 %v8780_v35, %v179_v51  ;;  %v8863_v43 = vperm.slane %v8698_v47, 1  ;;  %v8866_v50 = vperm.slane %v8693_v46, 0 }
  0xb4   :  { %382 = vmatpush.msra.mxu2 %v109_v54  ;;  %16521 = vst [vmem:[#allocation27_spill] sm:$0xff] %v8801_v40  ;;  %v8869_v51 = vperm.slane %v8698_v47, 0 }
  0xb5   :  { %332 = vmatpush.msra.mxu0 %v186_v55  ;;  %355 = vmatpush.msra.mxu1 %v187_v56  ;;  %16529 = vst [vmem:[#allocation35_spill] sm:$0xff] %v8863_v43 }
  0xb6   :  { %16530 = vst [vmem:[#allocation36_spill] sm:$0xff] %v8866_v50 }
  0xb7   :  { %333 = vmatpush.msra.mxu0 %v8544_v2  ;;  %356 = vmatpush.msra.mxu1 %v8573_v3  ;;  %v59_v2 = vld [vmem:[%s16144_s2] sm:$0xff]  ;;  %16531 = vst [vmem:[#allocation37_spill] sm:$0xff] %v8869_v51 }
  0xb8   :  { %v66_v39 = vpop.permute.xlu1 %65 }
  0xb9   :  { %v97_v62 = vpop.permute.xlu0 %96  ;;  %v75_v63 = vsel %vm73_vm7, %v66_v39, %v68_v57 }
  0xba   :  { %v99_v15 = vsel %vm98_vm6, %v95_v27, %v97_v62  ;;  %v84_v0 = vmul.f32 %v8801_v40, %v75_v63  ;;  %v126_v27 = vsel %vm123_vm5, %v116_v1, %v118_v25  ;;  %v8860_v25 = vperm.slane %v8693_v46, 1 }
  0xbb   :  { %v110_v3 = vmul.f32 %v8804_v58, %v99_v15  ;;  %v133_v42 = vmul.f32 %v8834_v19, %v126_v27 }
  0xbc   :  { %383 = vmatpush.msra.mxu2 %v84_v0  ;;  %16528 = vst [vmem:[#allocation34_spill] sm:$0xff] %v8860_v25 }
  0xbd   :  { %405 = vmatpush.msra.mxu3 %v110_v3  ;;  %8277 = vmatmul.msk.f32.vlgmr.msra.gmra.mxu2 %vm315_vm8, %v59_v2 }
  0xc0   :  { %v141_v14 = vpop.permute.xlu1 %140 }
  0xc1   :  { %v70_v21 = vpop.permute.xlu0 %69  ;;  %v152_v24 = vsel %vm148_vm4, %v8748_v12, %v141_v14  ;;  %v151_v26 = vsel %vm148_vm4, %v141_v14, %v8669_v36  ;;  %v132_v36 = vmul.f32 %v8831_v18, %v127_v8 }
  0xc2   :  { %v157_v30 = vmul.f32 %v8822_v4, %v152_v24  ;;  %v158_v31 = vmul.f32 %v8825_v5, %v151_v26  ;;  %v74_v32 = vsel %vm73_vm7, %v68_v57, %v70_v21 }
  0xc3   :  { %v85_v12 = vmul.f32 %v8828_v13, %v74_v32 }
  0xc4   :  { %334 = vmatpush.msra.mxu0 %v157_v30  ;;  %357 = vmatpush.msra.mxu1 %v158_v31 }
  0xc5   :  { %406 = vmatpush.msra.mxu3 %v85_v12  ;;  %8278 = vmatmul.msk.f32.gmra.mxu2 %vm315_vm8, %v60_v11 }
  0xc6   :  { %335 = vmatpush.msra.mxu0 %v132_v36  ;;  %358 = vmatpush.msra.mxu1 %v133_v42 }
  0xc7   :  { %8279 = vmatmul.msk.f32.vlgmr.msra.gmra.mxu3 %vm315_vm8, %v59_v2 }
  0xc8   :  { %v64_v44 = vpop.permute.xlu1 %63 }
  0xc9   :  { %v91_v45 = vpop.permute.xlu0 %90  ;;  %v77_v56 = vsel %vm73_vm7, %v70_v21, %v64_v44  ;;  %v76_v57 = vsel %vm73_vm7, %v64_v44, %v66_v39 }
  0xca   :  { %v102_v54 = vsel %vm98_vm6, %v97_v62, %v91_v45  ;;  %v101_v55 = vsel %vm98_vm6, %v91_v45, %v8782_v41  ;;  %v82_v47 = vmul.f32 %v8866_v50, %v77_v56  ;;  %v83_v62 = vmul.f32 %v8869_v51, %v76_v57 }
  0xcb   :  { %v107_v59 = vmul.f32 %v8860_v25, %v102_v54  ;;  %v108_v46 = vmul.f32 %v8863_v43, %v101_v55 }
  0xcd   :  { %336 = vmatpush.msra.mxu0 %v107_v59  ;;  %359 = vmatpush.msra.mxu1 %v108_v46 }
  0xcf   :  { %337 = vmatpush.msra.mxu0 %v82_v47  ;;  %360 = vmatpush.msra.mxu1 %v83_v62 }
  0xd0   :  { %8273 = vmatmul.msk.f32.vlgmr.msra.gmra.mxu0 %vm315_vm8, %v59_v2  ;;  %8275 = vmatmul.msk.f32.vlgmr.msra.gmra.mxu1 %vm315_vm8, %v59_v2 }
  0xd1   :  { %8280 = vmatmul.msk.f32.gmra.mxu3 %vm315_vm8, %v60_v11 }
  0xd8   :  { %8276 = vmatmul.msk.f32.gmra.mxu1 %vm315_vm8, %v60_v11  ;;  %8274 = vmatmul.msk.f32.gmra.mxu0 %vm315_vm8, %v60_v11 }
  0xf8   :  { %v313_v12 = vpop.permute.xlu2 %312 }
 0x106   :  { %v308_v41 = vpop.permute.xlu0 %307 }
 0x140   :  { %v385_v8 = vpop.f32.mrf.mxu2 }
 0x141   :  { %v386_v27 = vadd.f32 %v385_v8, %v308_v41 }
 0x143   :  { %v416_v31 = vmul.f32 0.2, %v386_v27 }
 0x145   :  { %v8919_v32 = vmax.f32 %v386_v27, %v416_v31 }
 0x148   :  { %v388_v59 = vpop.f32.mrf.mxu2 }
 0x149   :  { %v389_v62 = vadd.f32 %v388_v59, %v313_v12 }
 0x14a   :  { %v408_v21 = vpop.f32.mrf.mxu3 }
 0x14b   :  { %v409_v24 = vadd.f32 %v408_v21, %v308_v41 }
 0x14d   :  { %v362_v39 = vpop.f32.mrf.mxu1  ;;  %v339_v15 = vpop.f32.mrf.mxu0  ;;  %v417_v26 = vmul.f32 0.2, %v409_v24 }
 0x14e   :  { %v363_v63 = vadd.f32 %v362_v39, %v308_v41  ;;  %v340_v3 = vadd.f32 %v339_v15, %v308_v41  ;;  %v420_v39 = vmul.f32 0.2, %v389_v62 }
 0x14f   :  { %v8911_v30 = vmax.f32 %v409_v24, %v417_v26 }
 0x150   :  { %v415_v0 = vmul.f32 0.2, %v363_v63  ;;  %v414_v2 = vmul.f32 0.2, %v340_v3 }
 0x151   :  { %16532 = vst [vmem:[#allocation38_spill] sm:$0xff] %v8911_v30 }
 0x152   :  { %v8889_v1 = vmax.f32 %v363_v63, %v415_v0  ;;  %v8897_v14 = vmax.f32 %v340_v3, %v414_v2  ;;  %v8991_v0 = vmax.f32 %v389_v62, %v420_v39  ;;  %v435_v39 = vld [vmem:[%s16147_s5 + $0x8] sm:$0xff] }
 0x154   :  { %608 = vrot.lane.b32.xlu1 %v8889_v1, %s8467_s28  ;;  %648 = vrot.lane.b32.xlu0 %v8889_v1, %s8466_s27  ;;  %v411_v46 = vpop.f32.mrf.mxu3 }
 0x155   :  { %688 = vrot.lane.b32.xlu2 %v8889_v1, %s8465_s26  ;;  %v365_v36 = vpop.f32.mrf.mxu1  ;;  %v342_v44 = vpop.f32.mrf.mxu0  ;;  %v412_v41 = vadd.f32 %v411_v46, %v313_v12 }
 0x156   :  { %v366_v42 = vadd.f32 %v365_v36, %v313_v12  ;;  %v343_v54 = vadd.f32 %v342_v44, %v313_v12 }
 0x157   :  { %v421_v63 = vmul.f32 0.2, %v412_v41 }
 0x158   :  { %v419_v11 = vmul.f32 0.2, %v366_v42  ;;  %v418_v55 = vmul.f32 0.2, %v343_v54 }
 0x159   :  { %v8993_v3 = vmax.f32 %v412_v41, %v421_v63 }
 0x15a   :  { %v8939_v45 = vmax.f32 %v366_v42, %v419_v11  ;;  %v8947_v56 = vmax.f32 %v343_v54, %v418_v55 }
 0x15b   :  { %16533 = vst [vmem:[#allocation39_spill] sm:$0xff] %v8993_v3 }
 0x15c   :  { %644 = vrot.lane.b32.xlu1 %v8897_v14, %s8466_s27  ;;  %684 = vrot.lane.b32.xlu0 %v8897_v14, %s8465_s26 }
 0x15d   :  { %728 = vrot.lane.b32.xlu2 %v8889_v1, %s8464_s25 }
 0x164   :  { %724 = vrot.lane.b32.xlu1 %v8897_v14, %s8464_s25  ;;  %604 = vrot.lane.b32.xlu0 %v8897_v14, %s8467_s28 }
 0x165   :  { %556 = vrot.lane.b32.xlu2 %v8897_v14, %s8468_s11 }
 0x16c   :  { %520 = vrot.lane.b32.xlu1 %v8889_v1, %s8469_s12  ;;  %560 = vrot.lane.b32.xlu0 %v8889_v1, %s8468_s11 }
 0x16d   :  { %656 = vrot.lane.b32.xlu2 %v8911_v30, %s8466_s27 }
 0x174   :  { %480 = vrot.lane.b32.xlu1 %v8889_v1, %s8463_s19  ;;  %516 = vrot.lane.b32.xlu0 %v8897_v14, %s8469_s12 }
 0x175   :  { %612 = vrot.lane.b32.xlu2 %v8919_v32, %s8467_s28 }
 0x17c   :  { %696 = vrot.lane.b32.xlu1 %v8911_v30, %s8465_s26  ;;  %476 = vrot.lane.b32.xlu0 %v8897_v14, %s8463_s19 }
 0x17d   :  { %524 = vrot.lane.b32.xlu2 %v8919_v32, %s8469_s12 }
 0x184   :  { %652 = vrot.lane.b32.xlu1 %v8919_v32, %s8466_s27  ;;  %692 = vrot.lane.b32.xlu0 %v8919_v32, %s8465_s26 }
 0x185   :  { %484 = vrot.lane.b32.xlu2 %v8919_v32, %s8463_s19 }
 0x18c   :  { %564 = vrot.lane.b32.xlu1 %v8919_v32, %s8468_s11  ;;  %616 = vrot.lane.b32.xlu0 %v8911_v30, %s8467_s28 }
 0x18d   :  { %650 = vrot.lane.b32.xlu2 %v8939_v45, %s8466_s27 }
 0x194   :  { %736 = vrot.lane.b32.xlu1 %v8911_v30, %s8464_s25  ;;  %732 = vrot.lane.b32.xlu0 %v8919_v32, %s8464_s25 }
 0x195   :  { %686 = vrot.lane.b32.xlu2 %v8947_v56, %s8465_s26 }
 0x19c   :  { %690 = vrot.lane.b32.xlu1 %v8939_v45, %s8465_s26  ;;  %568 = vrot.lane.b32.xlu0 %v8911_v30, %s8468_s11 }
 0x19d   :  { %730 = vrot.lane.b32.xlu2 %v8939_v45, %s8464_s25 }
 0x1a4   :  { %610 = vrot.lane.b32.xlu1 %v8939_v45, %s8467_s28  ;;  %528 = vrot.lane.b32.xlu0 %v8911_v30, %s8469_s12 }
 0x1a5   :  { %726 = vrot.lane.b32.xlu2 %v8947_v56, %s8464_s25 }
 0x1ac   :  { %646 = vrot.lane.b32.xlu1 %v8947_v56, %s8466_s27  ;;  %562 = vrot.lane.b32.xlu0 %v8939_v45, %s8468_s11 }
 0x1ad   :  { %558 = vrot.lane.b32.xlu2 %v8947_v56, %s8468_s11 }
 0x1af   :  { %v8973_v57 = vpop.permute.xlu2 %688 }
 0x1b4   :  { %606 = vrot.lane.b32.xlu1 %v8947_v56, %s8467_s28  ;;  %522 = vrot.lane.b32.xlu0 %v8939_v45, %s8469_s12 }
 0x1b5   :  { %518 = vrot.lane.b32.xlu2 %v8947_v56, %s8469_s12 }
 0x1b7   :  { %v8981_v47 = vpop.permute.xlu2 %728 }
 0x1bc   :  { %478 = vrot.lane.b32.xlu1 %v8947_v56, %s8463_s19  ;;  %442 = vrot.lane.b32.xlu0 %v8939_v45, %s8470_s13 }
 0x1bd   :  { %482 = vrot.lane.b32.xlu2 %v8939_v45, %s8463_s19 }
 0x1bf   :  { %v8989_v15 = vpop.permute.xlu2 %556 }
 0x1c4   :  { %698 = vrot.lane.b32.xlu1 %v8993_v3, %s8465_s26  ;;  %654 = vrot.lane.b32.xlu0 %v8991_v0, %s8466_s27 }
 0x1c5   :  { %438 = vrot.lane.b32.xlu2 %v8947_v56, %s8470_s13 }
 0x1c6   :  { %v9001_v2 = vpop.permute.xlu1 %608  ;;  %v9003_v21 = vpop.permute.xlu0 %648 }
 0x1c7   :  { %v9005_v24 = vpop.permute.xlu2 %656 }
 0x1cc   :  { %658 = vrot.lane.b32.xlu1 %v8993_v3, %s8466_s27  ;;  %618 = vrot.lane.b32.xlu0 %v8993_v3, %s8467_s28 }
 0x1cd   :  { %694 = vrot.lane.b32.xlu2 %v8991_v0, %s8465_s26 }
 0x1ce   :  { %v9013_v26 = vpop.permute.xlu1 %644  ;;  %v9015_v8 = vpop.permute.xlu0 %684 }
 0x1cf   :  { %16534 = vst [vmem:[#allocation40_spill] sm:$0xff] %v9013_v26  ;;  %v9017_v27 = vpop.permute.xlu2 %612 }
 0x1d0   :  { %16535 = vst [vmem:[#allocation41_spill] sm:$0xff] %v9015_v8 }
 0x1d4   :  { %440 = vrot.lane.b32.xlu1 %v8889_v1, %s8470_s13  ;;  %734 = vrot.lane.b32.xlu0 %v8991_v0, %s8464_s25 }
 0x1d5   :  { %614 = vrot.lane.b32.xlu2 %v8991_v0, %s8467_s28 }
 0x1d6   :  { %v9025_v31 = vpop.permute.xlu1 %724  ;;  %v9027_v12 = vpop.permute.xlu0 %604 }
 0x1d7   :  { %16536 = vst [vmem:[#allocation42_spill] sm:$0xff] %v9027_v12  ;;  %v9029_v36 = vpop.permute.xlu2 %524 }
 0x1d8   :  { %16537 = vst [vmem:[#allocation43_spill] sm:$0xff] %v9029_v36 }
 0x1dc   :  { %566 = vrot.lane.b32.xlu1 %v8991_v0, %s8468_s11  ;;  %436 = vrot.lane.b32.xlu0 %v8897_v14, %s8470_s13 }
 0x1dd   :  { %444 = vrot.lane.b32.xlu2 %v8919_v32, %s8470_s13 }
 0x1de   :  { %v9037_v42 = vpop.permute.xlu1 %520  ;;  %v9039_v11 = vpop.permute.xlu0 %560 }
 0x1df   :  { %v9041_v44 = vpop.permute.xlu2 %484 }
 0x1e0   :  { %16538 = vst [vmem:[#allocation44_spill] sm:$0xff] %v9041_v44 }
 0x1e4   :  { %526 = vrot.lane.b32.xlu1 %v8991_v0, %s8469_s12  ;;  %486 = vrot.lane.b32.xlu0 %v8991_v0, %s8463_s19 }
 0x1e5   :  { %570 = vrot.lane.b32.xlu2 %v8993_v3, %s8468_s11 }
 0x1e6   :  { %v9049_v54 = vpop.permute.xlu1 %480  ;;  %v9051_v55 = vpop.permute.xlu0 %516 }
 0x1e7   :  { %v9053_v59 = vpop.permute.xlu2 %650 }
 0x1ec   :  { %530 = vrot.lane.b32.xlu1 %v8993_v3, %s8469_s12  ;;  %488 = vrot.lane.b32.xlu0 %v8911_v30, %s8463_s19 }
 0x1ed   :  { %738 = vrot.lane.b32.xlu2 %v8993_v3, %s8464_s25 }
 0x1ee   :  { %v9061_v46 = vpop.permute.xlu1 %696  ;;  %v9063_v62 = vpop.permute.xlu0 %476 }
 0x1ef   :  { %v9065_v41 = vpop.permute.xlu2 %686 }
 0x1f0   :  { %16539 = vst [vmem:[#allocation45_spill] sm:$0xff] %v9065_v41 }
 0x1f4   :  { %446 = vrot.lane.b32.xlu1 %v8991_v0, %s8470_s13  ;;  %843 = vperm.xlu0 %8429, %v435_v39  }
 0x1f5   :  { %490 = vrot.lane.b32.xlu2 %v8993_v3, %s8463_s19 }
 0x1f6   :  { %v9074_v63 = vpop.permute.xlu1 %652  ;;  %v693_v13 = vpop.permute.xlu0 %692 }
 0x1f7   :  { %v9076_v58 = vpop.permute.xlu2 %730 }
 0x1fc   :  { %450 = vrot.lane.b32.xlu1 %v8993_v3, %s8470_s13  ;;  %1059 = vperm.xlu0 %8429, %v1055_v22   ;;  %v744_v3 = vsel %vm252_vm0, %v9025_v31, %v8981_v47 }
 0x1fd   :  { %448 = vrot.lane.b32.xlu2 %v8911_v30, %s8470_s13  ;;  %v1056_v30 = vld [vmem:[%s16149_s7 + $0x8] sm:$0xff]  ;;  %v748_v16 = vmul.f32 %v744_v3, %v8702_v48 }
 0x1fe   :  { %v9085_v39 = vpop.permute.xlu1 %564  ;;  %v9087_v10 = vpop.permute.xlu0 %616 }
 0x1ff   :  { %v9089_v38 = vpop.permute.xlu2 %726 }
 0x200   :  { %v745_v29 = vsel %vm252_vm0, %v9089_v38, %v9076_v58 }
 0x201   :  { %v752_v22 = vmul.f32 %v745_v29, %v8702_v48 }
 0x203   :  { %890 = vmatpush.msrb.mxu1 %v752_v22 }
 0x205   :  { %1064 = vperm.xlu2 %8428, %v1056_v30   ;;  %891 = vmatpush.msrb.mxu1 %v748_v16  ;;  %v704_v16 = vsel %vm227_vm1, %v9015_v8, %v8973_v57 }
 0x206   :  { %v9104_v50 = vpop.permute.xlu1 %736  ;;  %v9106_v40 = vpop.permute.xlu0 %732  ;;  %v708_v3 = vmul.f32 %v704_v16, %v8709_v52  ;;  %v664_v16 = vsel %vm202_vm2, %v9013_v26, %v9003_v21  ;;  %v624_v26 = vsel %vm177_vm3, %v9027_v12, %v9001_v2 }
 0x207   :  { %v9108_v25 = vpop.permute.xlu2 %558 }
 0x20e   :  { %v691_v18 = vpop.permute.xlu1 %690  ;;  %v9110_v33 = vpop.permute.xlu0 %568 }
 0x20f   :  { %v9112_v44 = vpop.permute.xlu2 %518  ;;  %v705_v29 = vsel %vm227_vm1, %v9065_v41, %v691_v18 }
 0x210   :  { %v712_v30 = vmul.f32 %v705_v29, %v8709_v52 }
 0x212   :  { %853 = vmatpush.msrb.mxu0 %v712_v30 }
 0x214   :  { %854 = vmatpush.msrb.mxu0 %v708_v3  ;;  %v668_v3 = vmul.f32 %v664_v16, %v8726_v60 }
 0x216   :  { %v611_v22 = vpop.permute.xlu1 %610  ;;  %v9123_v48 = vpop.permute.xlu0 %528 }
 0x217   :  { %16540 = vst [vmem:[#allocation46_spill] sm:$0xff] %v9123_v48  ;;  %v9125_v23 = vpop.permute.xlu2 %482 }
 0x21e   :  { %v9127_v36 = vpop.permute.xlu1 %646  ;;  %v9129_v9 = vpop.permute.xlu0 %562 }
 0x21f   :  { %16541 = vst [vmem:[#allocation47_spill] sm:$0xff] %v9127_v36  ;;  %v9131_v41 = vpop.permute.xlu2 %438  ;;  %v665_v29 = vsel %vm202_vm2, %v9127_v36, %v9053_v59 }
 0x220   :  { %v672_v30 = vmul.f32 %v665_v29, %v8726_v60  ;;  %v628_v60 = vmul.f32 %v624_v26, %v8777_v34 }
 0x222   :  { %855 = vmatpush.msrb.mxu0 %v672_v30  ;;  %v702_v30 = vsel %vm227_vm1, %v8973_v57, %v693_v13  ;;  %v700_v57 = vsel %vm227_vm1, %v693_v13, %v9061_v46 }
 0x224   :  { %856 = vmatpush.msrb.mxu0 %v668_v3 }
 0x226   :  { %v9143_v52 = vpop.permute.xlu1 %606  ;;  %v9145_v8 = vpop.permute.xlu0 %522 }
 0x227   :  { %16542 = vst [vmem:[#allocation48_spill] sm:$0xff] %v9143_v52  ;;  %v695_v48 = vpop.permute.xlu2 %694  ;;  %v625_v36 = vsel %vm177_vm3, %v9143_v52, %v611_v22  ;;  %v709_v52 = vmul.f32 %v702_v30, %v8712_v53 }
 0x228   :  { %v632_v29 = vmul.f32 %v625_v36, %v8777_v34  ;;  %v703_v16 = vsel %vm227_vm1, %v691_v18, %v695_v48 }
 0x229   :  { %v713_v3 = vmul.f32 %v703_v16, %v8712_v53 }
 0x22a   :  { %857 = vmatpush.msrb.mxu0 %v632_v29 }
 0x22b   :  { %899 = vmatpush.msrb.mxu2 %v713_v3  ;;  %v710_v3 = vmul.f32 %v700_v57, %v8644_v20  ;;  %v660_v57 = vsel %vm202_vm2, %v9074_v63, %v9005_v24 }
 0x22c   :  { %858 = vmatpush.msrb.mxu0 %v628_v60 }
 0x22d   :  { %900 = vmatpush.msrb.mxu2 %v709_v52 }
 0x22e   :  { %v9163_v12 = vpop.permute.xlu1 %478  ;;  %859 = vmatpush.msrb.mxu0 %v8947_v56  ;;  %v9166_v36 = vpop.permute.xlu0 %442  ;;  %v9186_v56 = vld [vmem:[#allocation3 + $0x8] sm:$0xff] }
 0x22f   :  { %v615_v18 = vpop.permute.xlu2 %614  ;;  %8281 = vmatmul.msk.f32.vlgmr.msrb.gmra.mxu1 %vm846_vm9, %v9186_v56 }
 0x230   :  { %860 = vmatpush.msrb.mxu0 %v8897_v14  ;;  %v662_v14 = vsel %vm202_vm2, %v9003_v21, %v9074_v63  ;;  %v622_v21 = vsel %vm177_vm3, %v9001_v2, %v9017_v27  ;;  %v578_v63 = vsel %vm148_vm4, %v9110_v33, %v8989_v15 }
 0x236   :  { %v9172_v29 = vpop.permute.xlu1 %698  ;;  %v655_v26 = vpop.permute.xlu0 %654 }
 0x237   :  { %v9174_v16 = vpop.permute.xlu2 %444  ;;  %v701_v52 = vsel %vm227_vm1, %v695_v48, %v9172_v29  ;;  %v663_v60 = vsel %vm202_vm2, %v9053_v59, %v655_v26  ;;  %v623_v48 = vsel %vm177_vm3, %v611_v22, %v615_v18  ;;  %v669_v59 = vmul.f32 %v662_v14, %v8729_v61 }
 0x238   :  { %v714_v13 = vmul.f32 %v701_v52, %v8644_v20  ;;  %v673_v30 = vmul.f32 %v663_v60, %v8729_v61  ;;  %v633_v52 = vmul.f32 %v623_v48, %v8780_v35  ;;  %v629_v22 = vmul.f32 %v622_v21, %v8780_v35 }
 0x239   :  { %v670_v21 = vmul.f32 %v660_v57, %v8657_v28 }
 0x23a   :  { %901 = vmatpush.msrb.mxu2 %v673_v30  ;;  %945 = vmatpush.msra.mxu1 %v714_v13  ;;  %v9215_v13 = vld [vmem:[#allocation3 + $0x18] sm:$0xff] }
 0x23b   :  { %8282 = vmatmul.msk.f32.gmra.mxu1 %vm846_vm9, %v9215_v13 }
 0x23c   :  { %902 = vmatpush.msrb.mxu2 %v669_v59  ;;  %946 = vmatpush.msra.mxu1 %v710_v3  ;;  %v577_v3 = vsel %vm148_vm4, %v9108_v25, %v9129_v9 }
 0x23e   :  { %v9201_v60 = vpop.permute.xlu1 %658  ;;  %903 = vmatpush.msrb.mxu2 %v633_v52  ;;  %v9203_v34 = vpop.permute.xlu0 %618  ;;  %v620_v52 = vsel %vm177_vm3, %v9017_v27, %v9087_v10  ;;  %v537_v27 = vsel %vm123_vm5, %v9112_v44, %v9145_v8 }
 0x23f   :  { %v9210_v14 = vpop.permute.xlu2 %570  ;;  %v661_v2 = vsel %vm202_vm2, %v655_v26, %v9201_v60  ;;  %v621_v26 = vsel %vm177_vm3, %v615_v18, %v9203_v34  ;;  %v580_v18 = vmul.f32 %v578_v63, %v8822_v4  ;;  %v536_v63 = vsel %vm123_vm5, %v9051_v55, %v9037_v42 }
 0x240   :  { %904 = vmatpush.msrb.mxu2 %v629_v22  ;;  %v579_v30 = vsel %vm148_vm4, %v9210_v14, %v9108_v25  ;;  %v674_v48 = vmul.f32 %v661_v2, %v8657_v28  ;;  %v576_v22 = vsel %vm148_vm4, %v8989_v15, %v9039_v11  ;;  %v585_v25 = vmul.f32 %v577_v3, %v8825_v5 }
 0x241   :  { %v584_v59 = vmul.f32 %v579_v30, %v8822_v4  ;;  %v581_v15 = vmul.f32 %v576_v22, %v8825_v5  ;;  %v545_v3 = vmul.f32 %v537_v27, %v8834_v19  ;;  %v457_v27 = vsel %vm73_vm7, %v9131_v41, %v9166_v36 }
 0x242   :  { %905 = vmatpush.msrb.mxu2 %v8939_v45  ;;  %947 = vmatpush.msra.mxu1 %v674_v48  ;;  %v634_v45 = vmul.f32 %v621_v26, %v8672_v37  ;;  %v742_v26 = vsel %vm252_vm0, %v8981_v47, %v9106_v40  ;;  %v541_v47 = vmul.f32 %v536_v63, %v8834_v19  ;;  %v434_v63 = vld [vmem:[%s16147_s5] sm:$0xff] }
 0x243   :  { %861 = vmatpush.msrb.mxu0 %v584_v59  ;;  %838 = vperm.xlu1 %8430, %v434_v63  }
 0x244   :  { %906 = vmatpush.msrb.mxu2 %v8889_v1  ;;  %948 = vmatpush.msra.mxu1 %v670_v21  ;;  %v630_v1 = vmul.f32 %v620_v52, %v8672_v37  ;;  %v740_v52 = vsel %vm252_vm0, %v9106_v40, %v9104_v50 }
 0x245   :  { %862 = vmatpush.msrb.mxu0 %v580_v18  ;;  %v749_v18 = vmul.f32 %v742_v26, %v8705_v49  ;;  %v750_v40 = vmul.f32 %v740_v52, %v8640_v17  ;;  %v465_v26 = vmul.f32 %v457_v27, %v8869_v51  ;;  %v16543_v52 = vld [vmem:[#allocation6_spill] sm:$0xff] }
 0x246   :  { %v9254_v57 = vpop.permute.xlu1 %440  ;;  %907 = vmatpush.msrb.mxu2 %v585_v25  ;;  %949 = vmatpush.msra.mxu1 %v634_v45  ;;  %v735_v2 = vpop.permute.xlu0 %734  ;;  %v496_v25 = vsel %vm98_vm6, %v9063_v62, %v9049_v54 }
 0x247   :  { %v739_v30 = vpop.permute.xlu2 %738  ;;  %v743_v48 = vsel %vm252_vm0, %v9076_v58, %v735_v2  ;;  %v497_v58 = vsel %vm98_vm6, %v9163_v12, %v9125_v23 }
 0x248   :  { %v741_v59 = vsel %vm252_vm0, %v735_v2, %v739_v30  ;;  %908 = vmatpush.msrb.mxu2 %v581_v15  ;;  %950 = vmatpush.msra.mxu1 %v630_v1  ;;  %v753_v21 = vmul.f32 %v743_v48, %v8705_v49  ;;  %v505_v45 = vmul.f32 %v497_v58, %v8863_v43 }
 0x249   :  { %v754_v22 = vmul.f32 %v741_v59, %v8640_v17  ;;  %v501_v15 = vmul.f32 %v496_v25, %v8863_v43  ;;  %v746_v58 = vsel %vm252_vm0, %v9104_v50, %v9025_v31  ;;  %v16545_v25 = vld [vmem:[#allocation23_spill] sm:$0xff] }
 0x24a   :  { %909 = vmatpush.msrb.mxu2 %v545_v3  ;;  %936 = vmatpush.msrb.mxu3 %v753_v21  ;;  %v9325_v21 = vld [vmem:[#allocation3] sm:$0xff] }
 0x24b   :  { %951 = vmatpush.msra.mxu1 %v8991_v0 }
 0x24c   :  { %910 = vmatpush.msrb.mxu2 %v541_v47  ;;  %937 = vmatpush.msrb.mxu3 %v749_v18  ;;  %v751_v18 = vmul.f32 %v746_v58, %v16543_v52 }
 0x24d   :  { %952 = vmatpush.msra.mxu1 %v8919_v32  ;;  %8283 = vmatmul.msk.f32.vlgmr.msrb.gmra.mxu3 %vm846_vm9, %v9186_v56  ;;  %v574_v32 = vsel %vm148_vm4, %v9039_v11, %v9085_v39 }
 0x24e   :  { %982 = vmatpush.msra.mxu3 %v754_v22  ;;  %v9296_v0 = vpop.permute.xlu1 %566  ;;  %911 = vmatpush.msrb.mxu2 %v505_v45  ;;  %v9298_v2 = vpop.permute.xlu0 %436  ;;  %v582_v3 = vmul.f32 %v574_v32, %v8741_v6  ;;  %v16544_v22 = vld [vmem:[#allocation43_spill] sm:$0xff]  ;;  %v16546_v32 = vld [vmem:[#allocation44_spill] sm:$0xff] }
 0x24f   :  { %v575_v1 = vsel %vm148_vm4, %v9129_v9, %v9296_v0  ;;  %v456_v48 = vsel %vm73_vm7, %v9298_v2, %v9254_v57  ;;  %v747_v9 = vsel %vm252_vm0, %v739_v30, %v9089_v38  ;;  %v534_v50 = vsel %vm123_vm5, %v9037_v42, %v16544_v22 }
 0x250   :  { %983 = vmatpush.msra.mxu3 %v750_v40  ;;  %912 = vmatpush.msrb.mxu2 %v501_v15  ;;  %v586_v11 = vmul.f32 %v575_v1, %v8741_v6  ;;  %v461_v59 = vmul.f32 %v456_v48, %v8869_v51  ;;  %v755_v47 = vmul.f32 %v747_v9, %v16543_v52  ;;  %v9354_v15 = vld [vmem:[#allocation3 + $0x10] sm:$0xff]  ;;  %v9362_v48 = vpop.permute.xlu2 %490 }
 0x251   :  { %v542_v27 = vmul.f32 %v534_v50, %v16545_v25  ;;  %v494_v42 = vsel %vm98_vm6, %v9049_v54, %v16546_v32  ;;  %v499_v58 = vsel %vm98_vm6, %v9362_v48, %v9163_v12  ;;  %v454_v12 = vsel %vm73_vm7, %v9254_v57, %v9174_v16 }
 0x252   :  { %913 = vmatpush.msrb.mxu2 %v465_v26  ;;  %953 = vmatpush.msra.mxu1 %v586_v11  ;;  %v16548_v26 = vld [vmem:[#allocation46_spill] sm:$0xff] }
 0x253   :  { %v538_v11 = vsel %vm123_vm5, %v16548_v26, %v9051_v55  ;;  %v16550_v55 = vld [vmem:[#allocation34_spill] sm:$0xff] }
 0x254   :  { %914 = vmatpush.msrb.mxu2 %v461_v59  ;;  %954 = vmatpush.msra.mxu1 %v582_v3  ;;  %v16549_v59 = vld [vmem:[#allocation32_spill] sm:$0xff] }
 0x255   :  { %915 = vmatmul.f32.vlgmr.msrb.gmra.mxu2 %v9325_v21  ;;  %8284 = vmatmul.msk.f32.gmra.mxu3 %vm846_vm9, %v9215_v13 }
 0x256   :  { %1028 = vmatpush.msra.mxu2 %v755_v47  ;;  %v9333_v38 = vpop.permute.xlu1 %526  ;;  %v9335_v30 = vpop.permute.xlu0 %486  ;;  %v540_v47 = vmul.f32 %v538_v11, %v16549_v59 }
 0x257   :  { %v535_v31 = vsel %vm123_vm5, %v9145_v8, %v9333_v38  ;;  %v495_v40 = vsel %vm98_vm6, %v9125_v23, %v9335_v30  ;;  %v16547_v8 = vld [vmem:[#allocation24_spill] sm:$0xff] }
 0x258   :  { %1029 = vmatpush.msra.mxu2 %v751_v18  ;;  %v546_v45 = vmul.f32 %v535_v31, %v16545_v25  ;;  %v506_v1 = vmul.f32 %v495_v40, %v16547_v8  ;;  %v502_v23 = vmul.f32 %v494_v42, %v16547_v8  ;;  %v504_v18 = vmul.f32 %v499_v58, %v16550_v55 }
 0x25a   :  { %955 = vmatpush.msra.mxu1 %v546_v45  ;;  %v16551_v45 = vld [vmem:[#allocation27_spill] sm:$0xff] }
 0x25c   :  { %956 = vmatpush.msra.mxu1 %v542_v27  ;;  %v449_v27 = vpop.permute.xlu2 %448 }
 0x25d   :  { %918 = vmatmul.f32.gmra.mxu2 %v9354_v15  ;;  %8285 = vmatmul.msk.f32.vlgmr.msra.gmra.mxu3 %vm846_vm9, %v9186_v56 }
 0x25e   :  { %v9364_v63 = vpop.permute.xlu1 %530  ;;  %957 = vmatpush.msra.mxu1 %v506_v1  ;;  %v9377_v9 = vpop.permute.xlu0 %488  ;;  %v16552_v1 = vld [vmem:[#allocation36_spill] sm:$0xff] }
 0x25f   :  { %v539_v54 = vsel %vm123_vm5, %v9364_v63, %v9112_v44  ;;  %v498_v44 = vsel %vm98_vm6, %v9377_v9, %v9063_v62 }
 0x260   :  { %958 = vmatpush.msra.mxu1 %v502_v23  ;;  %v544_v3 = vmul.f32 %v539_v54, %v16549_v59  ;;  %v500_v31 = vmul.f32 %v498_v44, %v16550_v55  ;;  %v16553_v54 = vld [vmem:[#allocation45_spill] sm:$0xff]  ;;  %v16556_v44 = vld [vmem:[#allocation47_spill] sm:$0xff] }
 0x261   :  { %v707_v11 = vsel %vm227_vm1, %v9172_v29, %v16553_v54  ;;  %v16562_v54 = vld [vmem:[#allocation39_spill] sm:$0xff] }
 0x262   :  { %863 = vmatpush.msrb.mxu0 %v544_v3 }
 0x264   :  { %864 = vmatpush.msrb.mxu0 %v540_v47 }
 0x265   :  { %8287 = vmatmul.msk.f32.vlgmr.msra.gmra.mxu2 %vm846_vm9, %v9186_v56  ;;  %8286 = vmatmul.msk.f32.gmra.mxu3 %vm846_vm9, %v9215_v13  ;;  %v462_v56 = vmul.f32 %v454_v12, %v16551_v45 }
 0x266   :  { %v447_v50 = vpop.permute.xlu1 %446  ;;  %865 = vmatpush.msrb.mxu0 %v504_v18  ;;  %v16557_v18 = vld [vmem:[#allocation40_spill] sm:$0xff] }
 0x267   :  { %v455_v62 = vsel %vm73_vm7, %v9166_v36, %v447_v50  ;;  %v458_v36 = vsel %vm73_vm7, %v449_v27, %v9298_v2  ;;  %v667_v2 = vsel %vm202_vm2, %v9201_v60, %v16556_v44 }
 0x268   :  { %866 = vmatpush.msrb.mxu0 %v500_v31  ;;  %v466_v40 = vmul.f32 %v455_v62, %v16551_v45  ;;  %v460_v3 = vmul.f32 %v458_v36, %v16552_v1  ;;  %v16558_v31 = vld [vmem:[#allocation11_spill] sm:$0xff]  ;;  %v16559_v62 = vld [vmem:[#allocation48_spill] sm:$0xff]  ;;  %v16561_v36 = vld [vmem:[#allocation13_spill] sm:$0xff] }
 0x269   :  { %v675_v12 = vmul.f32 %v667_v2, %v16558_v31  ;;  %v627_v60 = vsel %vm177_vm3, %v9203_v34, %v16559_v62  ;;  %v573_v34 = vsel %vm148_vm4, %v9296_v0, %v9210_v14  ;;  %v532_v14 = vsel %vm123_vm5, %v16544_v22, %v16548_v26  ;;  %v16565_v0 = vld [vmem:[#allocation22_spill] sm:$0xff] }
 0x26a   :  { %959 = vmatpush.msra.mxu1 %v466_v40  ;;  %v543_v44 = vmul.f32 %v532_v14, %v16565_v0 }
 0x26c   :  { %960 = vmatpush.msra.mxu1 %v462_v56  ;;  %v16560_v56 = vld [vmem:[#allocation42_spill] sm:$0xff] }
 0x26d   :  { %961 = vmatmul.f32.vlgmr.msra.gmra.mxu1 %v9325_v21  ;;  %8288 = vmatmul.msk.f32.gmra.mxu2 %vm846_vm9, %v9215_v13  ;;  %v16554_v13 = vld [vmem:[#allocation41_spill] sm:$0xff] }
 0x26e   :  { %v451_v42 = vpop.permute.xlu1 %450  ;;  %v706_v58 = vsel %vm227_vm1, %v9061_v46, %v16554_v13  ;;  %v666_v46 = vsel %vm202_vm2, %v9005_v24, %v16557_v18 }
 0x26f   :  { %v459_v57 = vsel %vm73_vm7, %v451_v42, %v9131_v41  ;;  %v16555_v41 = vld [vmem:[#allocation7_spill] sm:$0xff]  ;;  %v671_v40 = vmul.f32 %v666_v46, %v16558_v31  ;;  %v453_v22 = vsel %vm73_vm7, %v447_v50, %v451_v42 }
 0x270   :  { %v464_v23 = vmul.f32 %v459_v57, %v16552_v1  ;;  %v715_v47 = vmul.f32 %v707_v11, %v16555_v41  ;;  %v711_v29 = vmul.f32 %v706_v58, %v16555_v41  ;;  %v626_v57 = vsel %vm177_vm3, %v9087_v10, %v16560_v56  ;;  %v16563_v11 = vld [vmem:[#allocation38_spill] sm:$0xff] }
 0x271   :  { %v631_v24 = vmul.f32 %v626_v57, %v16561_v36  ;;  %v572_v10 = vsel %vm148_vm4, %v9085_v39, %v9110_v33  ;;  %v533_v58 = vsel %vm123_vm5, %v9333_v38, %v9364_v63  ;;  %v493_v39 = vsel %vm98_vm6, %v9335_v30, %v9362_v48  ;;  %v16566_v63 = vld [vmem:[#allocation28_spill] sm:$0xff]  ;;  %v16567_v48 = vld [vmem:[#allocation31_spill] sm:$0xff] }
 0x272   :  { %867 = vmatpush.msrb.mxu0 %v464_v23  ;;  %v635_v23 = vmul.f32 %v627_v60, %v16561_v36  ;;  %v547_v33 = vmul.f32 %v533_v58, %v16565_v0  ;;  %v492_v38 = vsel %vm98_vm6, %v16546_v32, %v9377_v9  ;;  %v507_v2 = vmul.f32 %v493_v39, %v16566_v63  ;;  %v1054_v58 = vld [vmem:[%s16148_s6 + $0x8] sm:$0xff] }
 0x273   :  { %v503_v26 = vmul.f32 %v492_v38, %v16566_v63  ;;  %v452_v30 = vsel %vm73_vm7, %v9174_v16, %v449_v27 }
 0x274   :  { %868 = vmatpush.msrb.mxu0 %v460_v3  ;;  %v16564_v3 = vld [vmem:[#allocation21_spill] sm:$0xff]  ;;  %v463_v18 = vmul.f32 %v452_v30, %v16567_v48 }
 0x275   :  { %869 = vmatmul.f32.vlgmr.msrb.gmra.mxu0 %v9325_v21  ;;  %964 = vmatmul.f32.gmra.mxu1 %v9354_v15  ;;  %v587_v13 = vmul.f32 %v573_v34, %v16564_v3 }
 0x276   :  { %991 = vmatpush.msra.mxu0 %v715_v47  ;;  %v583_v47 = vmul.f32 %v572_v10, %v16564_v3 }
 0x278   :  { %992 = vmatpush.msra.mxu0 %v711_v29  ;;  %v467_v29 = vmul.f32 %v453_v22, %v16567_v48 }
 0x27a   :  { %993 = vmatpush.msra.mxu0 %v675_v12  ;;  %v844_v12 = vpop.permute.xlu0 %843 }
 0x27c   :  { %994 = vmatpush.msra.mxu0 %v671_v40 }
 0x27d   :  { %872 = vmatmul.f32.gmra.mxu0 %v9354_v15 }
 0x27e   :  { %995 = vmatpush.msra.mxu0 %v635_v23 }
 0x280   :  { %996 = vmatpush.msra.mxu0 %v631_v24 }
 0x282   :  { %997 = vmatpush.msra.mxu0 %v16562_v54 }
 0x284   :  { %998 = vmatpush.msra.mxu0 %v16563_v11 }
 0x286   :  { %999 = vmatpush.msra.mxu0 %v587_v13 }
 0x288   :  { %1000 = vmatpush.msra.mxu0 %v583_v47 }
 0x28a   :  { %1001 = vmatpush.msra.mxu0 %v547_v33 }
 0x28c   :  { %1002 = vmatpush.msra.mxu0 %v543_v44 }
 0x28e   :  { %1003 = vmatpush.msra.mxu0 %v507_v2 }
 0x290   :  { %1004 = vmatpush.msra.mxu0 %v503_v26 }
 0x292   :  { %1005 = vmatpush.msra.mxu0 %v467_v29 }
 0x294   :  { %1006 = vmatpush.msra.mxu0 %v463_v18 }
 0x295   :  { %1007 = vmatmul.f32.vlgmr.msra.gmra.mxu0 %v9325_v21  ;;  %v1053_v21 = vld [vmem:[%s16148_s6] sm:$0xff] }
 0x29d   :  { %1010 = vmatmul.f32.gmra.mxu0 %v9354_v15 }
 0x2ac   :  { %v893_v9 = vpop.f32.mrf.mxu1 }
 0x2b5   :  { %v839_v42 = vpop.permute.xlu1 %838 }
 0x2b8   :  { %v896_v27 = vpop.f32.mrf.mxu1 }
 0x2d0   :  { %v939_v32 = vpop.f32.mrf.mxu3 }
 0x2d8   :  { %v916_v50 = vpop.f32.mrf.mxu2  ;;  %v942_v62 = vpop.f32.mrf.mxu3 }
 0x2d9   :  { %v917_v46 = vadd.f32 %v916_v50, %v839_v42 }
 0x2db   :  { %v940_v60 = vadd.f32 %v939_v32, %v917_v46 }
 0x2dd   :  { %v1038_v57 = vmul.f32 0.2, %v940_v60 }
 0x2df   :  { %v1046_v34 = vmax.f32 %v940_v60, %v1038_v57 }
 0x2e0   :  { %v919_v16 = vpop.f32.mrf.mxu2  ;;  %v985_v54 = vpop.f32.mrf.mxu3 }
 0x2e1   :  { %v920_v40 = vadd.f32 %v919_v16, %v844_v12 }
 0x2e3   :  { %v943_v56 = vadd.f32 %v942_v62, %v920_v40 }
 0x2e5   :  { %v1042_v23 = vmul.f32 0.2, %v943_v56 }
 0x2e7   :  { %v1050_v24 = vmax.f32 %v943_v56, %v1042_v23 }
 0x2e8   :  { %v988_v13 = vpop.f32.mrf.mxu3  ;;  %v1031_v16 = vpop.f32.mrf.mxu2 }
 0x2e9   :  { %1110 = vmatpush.msrb.mxu1 %v1050_v24 }
 0x2ea   :  { %v962_v15 = vpop.f32.mrf.mxu1 }
 0x2eb   :  { %1111 = vmatpush.msrb.mxu1 %v1046_v34  ;;  %v963_v10 = vadd.f32 %v962_v15, %v839_v42 }
 0x2ec   :  { %8291 = vmatmul.msk.f32.vlgmr.msrb.gmra.mxu1 %vm846_vm9, %v1053_v21 }
 0x2ed   :  { %v986_v11 = vadd.f32 %v985_v54, %v963_v10 }
 0x2ef   :  { %v1039_v39 = vmul.f32 0.2, %v986_v11 }
 0x2f1   :  { %v1047_v22 = vmax.f32 %v986_v11, %v1039_v39  ;;  %v9503_v11 = vpop.permute.xlu0 %1059 }
 0x2f2   :  { %v870_v47 = vpop.f32.mrf.mxu0  ;;  %v965_v14 = vpop.f32.mrf.mxu1 }
 0x2f3   :  { %v966_v33 = vadd.f32 %v965_v14, %v844_v12  ;;  %v871_v38 = vadd.f32 %v870_v47, %v839_v42 }
 0x2f4   :  { %8292 = vmatmul.msk.f32.gmra.mxu1 %vm846_vm9, %v1054_v58 }
 0x2f5   :  { %v989_v44 = vadd.f32 %v988_v13, %v966_v33  ;;  %v894_v29 = vadd.f32 %v893_v9, %v871_v38 }
 0x2f7   :  { %v1043_v2 = vmul.f32 0.2, %v989_v44  ;;  %v1037_v50 = vmul.f32 0.2, %v894_v29 }
 0x2f9   :  { %v1051_v26 = vmax.f32 %v989_v44, %v1043_v2  ;;  %v1045_v60 = vmax.f32 %v894_v29, %v1037_v50 }
 0x2fa   :  { %v873_v30 = vpop.f32.mrf.mxu0 }
 0x2fb   :  { %v874_v18 = vadd.f32 %v873_v30, %v844_v12  ;;  %1133 = vmatpush.msrb.mxu2 %v1051_v26  ;;  %v1065_v26 = vpop.permute.xlu2 %1064 }
 0x2fd   :  { %v897_v32 = vadd.f32 %v896_v27, %v874_v18  ;;  %1134 = vmatpush.msrb.mxu2 %v1047_v22  ;;  %v1034_v27 = vpop.f32.mrf.mxu2 }
 0x2fe   :  { %8293 = vmatmul.msk.f32.vlgmr.msrb.gmra.mxu2 %vm846_vm9, %v1053_v21 }
 0x2ff   :  { %v1041_v46 = vmul.f32 0.2, %v897_v32 }
 0x301   :  { %v1049_v62 = vmax.f32 %v897_v32, %v1041_v46 }
 0x303   :  { %1087 = vmatpush.msrb.mxu3 %v1049_v62 }
 0x305   :  { %1088 = vmatpush.msrb.mxu3 %v1045_v60 }
 0x306   :  { %8289 = vmatmul.msk.f32.vlgmr.msrb.gmra.mxu3 %vm846_vm9, %v1053_v21  ;;  %8294 = vmatmul.msk.f32.gmra.mxu2 %vm846_vm9, %v1054_v58 }
 0x30e   :  { %8290 = vmatmul.msk.f32.gmra.mxu3 %vm846_vm9, %v1054_v58 }
 0x312   :  { %v1008_v9 = vpop.f32.mrf.mxu0 }
 0x313   :  { %v1009_v40 = vadd.f32 %v1008_v9, %v839_v42 }
 0x315   :  { %v1032_v57 = vadd.f32 %v1031_v16, %v1009_v40 }
 0x317   :  { %v1040_v34 = vmul.f32 0.2, %v1032_v57 }
 0x319   :  { %v1048_v10 = vmax.f32 %v1032_v57, %v1040_v34 }
 0x31a   :  { %v1011_v56 = vpop.f32.mrf.mxu0 }
 0x31b   :  { %v1012_v23 = vadd.f32 %v1011_v56, %v844_v12 }
 0x31d   :  { %v1035_v24 = vadd.f32 %v1034_v27, %v1012_v23 }
 0x31f   :  { %v1044_v54 = vmul.f32 0.2, %v1035_v24 }
 0x321   :  { %v1052_v15 = vmax.f32 %v1035_v24, %v1044_v54 }
 0x323   :  { %1156 = vmatpush.msra.mxu3 %v1052_v15 }
 0x325   :  { %1157 = vmatpush.msra.mxu3 %v1048_v10 }
 0x326   :  { %8295 = vmatmul.msk.f32.vlgmr.msra.gmra.mxu3 %vm846_vm9, %v1053_v21 }
 0x32e   :  { %8296 = vmatmul.msk.f32.gmra.mxu3 %vm846_vm9, %v1054_v58 }
 0x369   :  { %v1113_v21 = vpop.f32.mrf.mxu1 }
 0x36a   :  { %v1114_v33 = vadd.f32 %v1113_v21, %v9503_v11 }
 0x36c   :  { %v1166_v44 = vmul.f32 0.2, %v1114_v33 }
 0x36e   :  { %v9524_v2 = vmax.f32 %v1114_v33, %v1166_v44 }
 0x371   :  { %v1116_v29 = vpop.f32.mrf.mxu1 }
 0x372   :  { %v1117_v32 = vadd.f32 %v1116_v29, %v1065_v26 }
 0x374   :  { %v1170_v46 = vmul.f32 0.2, %v1117_v32 }
 0x376   :  { %v9558_v62 = vmax.f32 %v1117_v32, %v1170_v46 }
 0x381   :  { %v1136_v12 = vpop.f32.mrf.mxu2 }
 0x382   :  { %v1137_v58 = vadd.f32 %v1136_v12, %v9503_v11 }
 0x384   :  { %v1167_v39 = vmul.f32 0.2, %v1137_v58 }
 0x386   :  { %v9522_v38 = vmax.f32 %v1137_v58, %v1167_v39 }
 0x389   :  { %v1090_v13 = vpop.f32.mrf.mxu3  ;;  %v1139_v60 = vpop.f32.mrf.mxu2 }
 0x38a   :  { %v1091_v42 = vadd.f32 %v1090_v13, %v9503_v11  ;;  %v1140_v16 = vadd.f32 %v1139_v60, %v1065_v26 }
 0x38c   :  { %v1165_v47 = vmul.f32 0.2, %v1091_v42  ;;  %v1171_v9 = vmul.f32 0.2, %v1140_v16 }
 0x38e   :  { %v9506_v14 = vmax.f32 %v1091_v42, %v1165_v47  ;;  %v9578_v40 = vmax.f32 %v1140_v16, %v1171_v9 }
 0x390   :  { %1357 = vrot.lane.b32.xlu2 %v9506_v14, %s8467_s28  ;;  %1397 = vrot.lane.b32.xlu1 %v9506_v14, %s8466_s27 }
 0x391   :  { %1437 = vrot.lane.b32.xlu0 %v9506_v14, %s8465_s26  ;;  %v1093_v22 = vpop.f32.mrf.mxu3 }
 0x392   :  { %v1094_v30 = vadd.f32 %v1093_v22, %v1065_v26 }
 0x394   :  { %v1169_v18 = vmul.f32 0.2, %v1094_v30 }
 0x396   :  { %v9550_v50 = vmax.f32 %v1094_v30, %v1169_v18 }
 0x398   :  { %1269 = vrot.lane.b32.xlu2 %v9506_v14, %s8469_s12  ;;  %1229 = vrot.lane.b32.xlu1 %v9506_v14, %s8463_s19 }
 0x399   :  { %1309 = vrot.lane.b32.xlu0 %v9506_v14, %s8468_s11 }
 0x3a0   :  { %1189 = vrot.lane.b32.xlu2 %v9506_v14, %s8470_s13  ;;  %1445 = vrot.lane.b32.xlu1 %v9522_v38, %s8465_s26 }
 0x3a1   :  { %1441 = vrot.lane.b32.xlu0 %v9524_v2, %s8465_s26 }
 0x3a8   :  { %1477 = vrot.lane.b32.xlu2 %v9506_v14, %s8464_s25  ;;  %1401 = vrot.lane.b32.xlu1 %v9524_v2, %s8466_s27 }
 0x3a9   :  { %1273 = vrot.lane.b32.xlu0 %v9524_v2, %s8469_s12  ;;  %v1159_v27 = vpop.f32.mrf.mxu3 }
 0x3aa   :  { %v1160_v57 = vadd.f32 %v1159_v27, %v9503_v11 }
 0x3ac   :  { %v1168_v23 = vmul.f32 0.2, %v1160_v57 }
 0x3ae   :  { %v9603_v34 = vmax.f32 %v1160_v57, %v1168_v23 }
 0x3b0   :  { %1405 = vrot.lane.b32.xlu2 %v9522_v38, %s8466_s27  ;;  %1361 = vrot.lane.b32.xlu1 %v9524_v2, %s8467_s28  ;;  %16569 = vst [vmem:[#allocation44_spill] sm:$0xff] %v9603_v34 }
 0x3b1   :  { %1193 = vrot.lane.b32.xlu0 %v9524_v2, %s8470_s13  ;;  %v1162_v15 = vpop.f32.mrf.mxu3 }
 0x3b2   :  { %v1163_v10 = vadd.f32 %v1162_v15, %v1065_v26  ;;  %v8298_v15 = vld [vmem:[%s16147_s5 + $0x18] sm:$0xff] }
 0x3b4   :  { %v1172_v11 = vmul.f32 0.2, %v1163_v10 }
 0x3b6   :  { %v9625_v12 = vmax.f32 %v1163_v10, %v1172_v11  ;;  %v8297_v10 = vld [vmem:[%s16147_s5 + $0x10] sm:$0xff] }
 0x3b8   :  { %1365 = vrot.lane.b32.xlu2 %v9522_v38, %s8467_s28  ;;  %1313 = vrot.lane.b32.xlu1 %v9524_v2, %s8468_s11  ;;  %16572 = vst [vmem:[#allocation41_spill] sm:$0xff] %v9625_v12 }
 0x3b9   :  { %1481 = vrot.lane.b32.xlu0 %v9524_v2, %s8464_s25 }
 0x3c0   :  { %1233 = vrot.lane.b32.xlu2 %v9524_v2, %s8463_s19  ;;  %1485 = vrot.lane.b32.xlu1 %v9522_v38, %s8464_s25 }
 0x3c1   :  { %1439 = vrot.lane.b32.xlu0 %v9550_v50, %s8465_s26 }
 0x3c8   :  { %1359 = vrot.lane.b32.xlu2 %v9550_v50, %s8467_s28  ;;  %1443 = vrot.lane.b32.xlu1 %v9558_v62, %s8465_s26 }
 0x3c9   :  { %1399 = vrot.lane.b32.xlu0 %v9550_v50, %s8466_s27 }
 0x3d0   :  { %1271 = vrot.lane.b32.xlu2 %v9550_v50, %s8469_s12  ;;  %1363 = vrot.lane.b32.xlu1 %v9558_v62, %s8467_s28 }
 0x3d1   :  { %1311 = vrot.lane.b32.xlu0 %v9550_v50, %s8468_s11 }
 0x3d8   :  { %1191 = vrot.lane.b32.xlu2 %v9550_v50, %s8470_s13  ;;  %1315 = vrot.lane.b32.xlu1 %v9558_v62, %s8468_s11 }
 0x3d9   :  { %1231 = vrot.lane.b32.xlu0 %v9550_v50, %s8463_s19 }
 0x3e0   :  { %1447 = vrot.lane.b32.xlu2 %v9578_v40, %s8465_s26  ;;  %1235 = vrot.lane.b32.xlu1 %v9558_v62, %s8463_s19 }
 0x3e1   :  { %1479 = vrot.lane.b32.xlu0 %v9550_v50, %s8464_s25 }
 0x3e8   :  { %1403 = vrot.lane.b32.xlu2 %v9558_v62, %s8466_s27  ;;  %1487 = vrot.lane.b32.xlu1 %v9578_v40, %s8464_s25 }
 0x3e9   :  { %1407 = vrot.lane.b32.xlu0 %v9578_v40, %s8466_s27 }
 0x3ea   :  { %v9592_v56 = vpop.permute.xlu2 %1357 }
 0x3eb   :  { %16568 = vst [vmem:[#allocation43_spill] sm:$0xff] %v9592_v56 }
 0x3f0   :  { %1367 = vrot.lane.b32.xlu2 %v9578_v40, %s8467_s28  ;;  %1319 = vrot.lane.b32.xlu1 %v9578_v40, %s8468_s11 }
 0x3f1   :  { %1275 = vrot.lane.b32.xlu0 %v9558_v62, %s8469_s12 }
 0x3f2   :  { %v9601_v24 = vpop.permute.xlu2 %1269 }
 0x3f8   :  { %1449 = vrot.lane.b32.xlu2 %v9603_v34, %s8465_s26  ;;  %1409 = vrot.lane.b32.xlu1 %v9603_v34, %s8466_s27 }
 0x3f9   :  { %1195 = vrot.lane.b32.xlu0 %v9558_v62, %s8470_s13 }
 0x3fa   :  { %v9611_v54 = vpop.permute.xlu2 %1189 }
 0x400   :  { %1321 = vrot.lane.b32.xlu2 %v9603_v34, %s8468_s11  ;;  %1281 = vrot.lane.b32.xlu1 %v9603_v34, %s8469_s12 }
 0x401   :  { %1483 = vrot.lane.b32.xlu0 %v9558_v62, %s8464_s25 }
 0x402   :  { %v9619_v13 = vpop.permute.xlu2 %1477  ;;  %v9621_v42 = vpop.permute.xlu1 %1397 }
 0x403   :  { %16570 = vst [vmem:[#allocation46_spill] sm:$0xff] %v9621_v42  ;;  %v9623_v47 = vpop.permute.xlu0 %1437 }
 0x404   :  { %16571 = vst [vmem:[#allocation45_spill] sm:$0xff] %v9623_v47 }
 0x408   :  { %1369 = vrot.lane.b32.xlu2 %v9603_v34, %s8467_s28  ;;  %1451 = vrot.lane.b32.xlu1 %v9625_v12, %s8465_s26 }
 0x409   :  { %1201 = vrot.lane.b32.xlu0 %v9603_v34, %s8470_s13 }
 0x40a   :  { %v9633_v21 = vpop.permute.xlu2 %1405  ;;  %v9635_v58 = vpop.permute.xlu1 %1229 }
 0x40b   :  { %v9637_v33 = vpop.permute.xlu0 %1309 }
 0x410   :  { %1241 = vrot.lane.b32.xlu2 %v9603_v34, %s8463_s19  ;;  %1323 = vrot.lane.b32.xlu1 %v9625_v12, %s8468_s11 }
 0x411   :  { %1411 = vrot.lane.b32.xlu0 %v9625_v12, %s8466_s27 }
 0x412   :  { %v9645_v39 = vpop.permute.xlu2 %1365  ;;  %v9647_v44 = vpop.permute.xlu1 %1445 }
 0x413   :  { %v1442_v22 = vpop.permute.xlu0 %1441 }
 0x414   :  { %v1455_v63 = vsel %vm227_vm1, %v1442_v22, %v9647_v44  ;;  %v1457_v0 = vsel %vm227_vm1, %v9623_v47, %v1442_v22  ;;  %v9856_v47 = vld [vmem:[#allocation3 + $0x20] sm:$0xff] }
 0x415   :  { %v1462_v22 = vmul.f32 %v1455_v63, %v8712_v53 }
 0x418   :  { %1371 = vrot.lane.b32.xlu2 %v9625_v12, %s8467_s28  ;;  %1277 = vrot.lane.b32.xlu1 %v9522_v38, %s8469_s12 }
 0x419   :  { %1283 = vrot.lane.b32.xlu0 %v9625_v12, %s8469_s12 }
 0x41a   :  { %v9655_v26 = vpop.permute.xlu2 %1233  ;;  %v9657_v30 = vpop.permute.xlu1 %1401 }
 0x41b   :  { %16573 = vst [vmem:[#allocation47_spill] sm:$0xff] %v9655_v26  ;;  %v9659_v29 = vpop.permute.xlu0 %1273 }
 0x420   :  { %1317 = vrot.lane.b32.xlu2 %v9522_v38, %s8468_s11  ;;  %1243 = vrot.lane.b32.xlu1 %v9625_v12, %s8463_s19 }
 0x421   :  { %1279 = vrot.lane.b32.xlu0 %v9578_v40, %s8469_s12 }
 0x422   :  { %v9667_v18 = vpop.permute.xlu2 %1359  ;;  %v9669_v32 = vpop.permute.xlu1 %1361 }
 0x423   :  { %16574 = vst [vmem:[#allocation40_spill] sm:$0xff] %v9667_v18  ;;  %v9671_v46 = vpop.permute.xlu0 %1193  ;;  %v1377_v63 = vsel %vm177_vm3, %v9592_v56, %v9669_v32 }
 0x424   :  { %16575 = vst [vmem:[#allocation48_spill] sm:$0xff] %v9671_v46 }
 0x428   :  { %1239 = vrot.lane.b32.xlu2 %v9578_v40, %s8463_s19  ;;  %1203 = vrot.lane.b32.xlu1 %v9625_v12, %s8470_s13 }
 0x429   :  { %1491 = vrot.lane.b32.xlu0 %v9625_v12, %s8464_s25 }
 0x42a   :  { %v9679_v60 = vpop.permute.xlu2 %1271  ;;  %v9681_v16 = vpop.permute.xlu1 %1313 }
 0x42b   :  { %v9683_v9 = vpop.permute.xlu0 %1481 }
 0x430   :  { %1489 = vrot.lane.b32.xlu2 %v9603_v34, %s8464_s25  ;;  %1237 = vrot.lane.b32.xlu1 %v9522_v38, %s8463_s19  ;;  %v16578_v34 = vld [vmem:[#allocation16_spill] sm:$0xff] }
 0x431   :  { %1199 = vrot.lane.b32.xlu0 %v9578_v40, %s8470_s13  ;;  %v1461_v45 = vmul.f32 %v1457_v0, %v16578_v34 }
 0x432   :  { %v9691_v27 = vpop.permute.xlu2 %1191  ;;  %v9693_v57 = vpop.permute.xlu1 %1485 }
 0x433   :  { %v9695_v23 = vpop.permute.xlu0 %1439 }
 0x434   :  { %16576 = vst [vmem:[#allocation42_spill] sm:$0xff] %v9695_v23 }
 0x438   :  { %1596 = vperm.xlu2 %8428, %v8298_v15   ;;  %1197 = vrot.lane.b32.xlu1 %v9522_v38, %s8470_s13 }
 0x439   :  { %1591 = vperm.xlu0 %8429, %v8297_v10  }
 0x43a   :  { %v9705_v11 = vpop.permute.xlu2 %1447  ;;  %v1444_v48 = vpop.permute.xlu1 %1443 }
 0x43b   :  { %v1456_v3 = vsel %vm227_vm1, %v1444_v48, %v9705_v11  ;;  %v1458_v15 = vsel %vm227_vm1, %v9695_v23, %v1444_v48  ;;  %v9719_v10 = vpop.permute.xlu0 %1399  ;;  %v1417_v48 = vsel %vm202_vm2, %v9621_v42, %v9657_v30  ;;  %v9859_v23 = vld [vmem:[#allocation3 + $0x28] sm:$0xff] }
 0x43c   :  { %16577 = vst [vmem:[#allocation39_spill] sm:$0xff] %v9719_v10  ;;  %v1465_v12 = vmul.f32 %v1458_v15, %v16578_v34  ;;  %v1466_v36 = vmul.f32 %v1456_v3, %v8712_v53 }
 0x43e   :  { %1605 = vmatpush.msrb.mxu0 %v1465_v12  ;;  %1651 = vmatpush.msra.mxu2 %v1466_v36  ;;  %v16579_v36 = vld [vmem:[#allocation18_spill] sm:$0xff] }
 0x43f   :  { %v1421_v0 = vmul.f32 %v1417_v48, %v16579_v36 }
 0x440   :  { %1606 = vmatpush.msrb.mxu0 %v1461_v45  ;;  %1652 = vmatpush.msra.mxu2 %v1462_v22  ;;  %v16580_v22 = vld [vmem:[#allocation25_spill] sm:$0xff] }
 0x442   :  { %v1404_v31 = vpop.permute.xlu2 %1403  ;;  %v1364_v41 = vpop.permute.xlu1 %1363 }
 0x443   :  { %v1418_v15 = vsel %vm202_vm2, %v9719_v10, %v1404_v31  ;;  %v9732_v3 = vpop.permute.xlu0 %1311  ;;  %v1378_v45 = vsel %vm177_vm3, %v9667_v18, %v1364_v41 }
 0x444   :  { %v1425_v12 = vmul.f32 %v1418_v15, %v16579_v36  ;;  %v1385_v53 = vmul.f32 %v1378_v45, %v16580_v22  ;;  %v1381_v15 = vmul.f32 %v1377_v63, %v16580_v22 }
 0x446   :  { %1607 = vmatpush.msrb.mxu0 %v1425_v12 }
 0x448   :  { %1608 = vmatpush.msrb.mxu0 %v1421_v0 }
 0x44a   :  { %v9744_v34 = vpop.permute.xlu2 %1367  ;;  %v9746_v42 = vpop.permute.xlu1 %1315  ;;  %1609 = vmatpush.msrb.mxu0 %v1385_v53  ;;  %v1415_v53 = vsel %vm202_vm2, %v9657_v30, %v9633_v21  ;;  %v1375_v30 = vsel %vm177_vm3, %v9669_v32, %v9645_v39  ;;  %v1329_v32 = vsel %vm148_vm4, %v9637_v33, %v9681_v16 }
 0x44b   :  { %v9749_v10 = vpop.permute.xlu0 %1231  ;;  %v1422_v22 = vmul.f32 %v1415_v53, %v8729_v61 }
 0x44c   :  { %1610 = vmatpush.msrb.mxu0 %v1381_v15  ;;  %v1376_v15 = vsel %vm177_vm3, %v1364_v41, %v9744_v34  ;;  %v1330_v41 = vsel %vm148_vm4, %v9732_v3, %v9746_v42 }
 0x44d   :  { %v1386_v56 = vmul.f32 %v1376_v15, %v8780_v35 }
 0x44e   :  { %1611 = vmatpush.msrb.mxu0 %v9550_v50 }
 0x450   :  { %1612 = vmatpush.msrb.mxu0 %v9506_v14 }
 0x452   :  { %v9753_v48 = vpop.permute.xlu2 %1449  ;;  %v9755_v12 = vpop.permute.xlu1 %1235 }
 0x453   :  { %v9757_v0 = vpop.permute.xlu0 %1479 }
 0x45a   :  { %v9759_v45 = vpop.permute.xlu1 %1487  ;;  %v9767_v63 = vpop.permute.xlu2 %1321 }
 0x45b   :  { %v9761_v36 = vpop.permute.xlu0 %1407 }
 0x45c   :  { %v1416_v14 = vsel %vm202_vm2, %v1404_v31, %v9761_v36 }
 0x45d   :  { %v1426_v50 = vmul.f32 %v1416_v14, %v8729_v61  ;;  %v1382_v14 = vmul.f32 %v1375_v30, %v8780_v35  ;;  %v1289_v30 = vsel %vm123_vm5, %v9601_v24, %v9659_v29 }
 0x45f   :  { %1653 = vmatpush.msra.mxu2 %v1426_v50 }
 0x461   :  { %1654 = vmatpush.msra.mxu2 %v1422_v22 }
 0x462   :  { %v9782_v18 = vpop.permute.xlu1 %1319  ;;  %v9791_v53 = vpop.permute.xlu2 %1369 }
 0x463   :  { %1655 = vmatpush.msra.mxu2 %v1386_v56  ;;  %v9784_v31 = vpop.permute.xlu0 %1275  ;;  %v1338_v56 = vmul.f32 %v1330_v41, %v8825_v5  ;;  %v1294_v41 = vmul.f32 %v1289_v30, %v8834_v19 }
 0x464   :  { %v1290_v22 = vsel %vm123_vm5, %v9679_v60, %v9784_v31 }
 0x465   :  { %1656 = vmatpush.msra.mxu2 %v1382_v14  ;;  %v1250_v14 = vsel %vm98_vm6, %v9749_v10, %v9755_v12 }
 0x467   :  { %1657 = vmatpush.msra.mxu2 %v9558_v62  ;;  %v1334_v62 = vmul.f32 %v1329_v32, %v8825_v5  ;;  %v1249_v32 = vsel %vm98_vm6, %v9635_v58, %v9655_v26 }
 0x468   :  { %v1254_v30 = vmul.f32 %v1249_v32, %v8863_v43  ;;  %v1495_v32 = vsel %vm252_vm0, %v9683_v9, %v9693_v57 }
 0x469   :  { %1658 = vmatpush.msra.mxu2 %v9524_v2  ;;  %v1298_v2 = vmul.f32 %v1290_v22, %v8834_v19  ;;  %v1209_v19 = vsel %vm73_vm7, %v9611_v54, %v9671_v46 }
 0x46a   :  { %v9804_v50 = vpop.permute.xlu1 %1409  ;;  %v1214_v26 = vmul.f32 %v1209_v19, %v8869_v51  ;;  %v1453_v19 = vsel %vm227_vm1, %v9647_v44, %v9753_v48  ;;  %v9884_v44 = vld [vmem:[#allocation3 + $0x38] sm:$0xff] }
 0x46b   :  { %1659 = vmatpush.msra.mxu2 %v1338_v56  ;;  %v9806_v15 = vpop.permute.xlu0 %1195  ;;  %v9823_v56 = vpop.permute.xlu2 %1241 }
 0x46c   :  { %16581 = vst [vmem:[#allocation38_spill] sm:$0xff] %v9806_v15  ;;  %v1210_v22 = vsel %vm73_vm7, %v9691_v27, %v9806_v15 }
 0x46d   :  { %1660 = vmatpush.msra.mxu2 %v1334_v62  ;;  %v1258_v62 = vmul.f32 %v1250_v14, %v8863_v43  ;;  %v1497_v14 = vsel %vm252_vm0, %v9619_v13, %v9683_v9  ;;  %v16582_v43 = vld [vmem:[#allocation14_spill] sm:$0xff]  ;;  %v1218_v46 = vmul.f32 %v1210_v22, %v8869_v51  ;;  %v9882_v22 = vld [vmem:[#allocation3 + $0x30] sm:$0xff] }
 0x46e   :  { %v1501_v15 = vmul.f32 %v1497_v14, %v16582_v43 }
 0x46f   :  { %1661 = vmatpush.msra.mxu2 %v1298_v2 }
 0x471   :  { %1662 = vmatpush.msra.mxu2 %v1294_v41 }
 0x472   :  { %v9830_v5 = vpop.permute.xlu1 %1281 }
 0x473   :  { %1663 = vmatpush.msra.mxu2 %v1258_v62  ;;  %v1484_v2 = vpop.permute.xlu0 %1483  ;;  %v9861_v9 = vpop.permute.xlu2 %1371 }
 0x474   :  { %v1496_v41 = vsel %vm252_vm0, %v1484_v2, %v9759_v45  ;;  %v1498_v62 = vsel %vm252_vm0, %v9757_v0, %v1484_v2  ;;  %v1502_v2 = vmul.f32 %v1495_v32, %v8705_v49 }
 0x475   :  { %v1505_v35 = vmul.f32 %v1498_v62, %v16582_v43  ;;  %v1506_v61 = vmul.f32 %v1496_v41, %v8705_v49  ;;  %1664 = vmatpush.msra.mxu2 %v1254_v30  ;;  %v1331_v30 = vsel %vm148_vm4, %v9767_v63, %v9637_v33  ;;  %v1413_v62 = vsel %vm202_vm2, %v9633_v21, %v9804_v50 }
 0x476   :  { %v1333_v21 = vmul.f32 %v1331_v30, %v8822_v4  ;;  %v1291_v30 = vsel %vm123_vm5, %v9830_v5, %v9601_v24 }
 0x477   :  { %1642 = vmatpush.msra.mxu1 %v1505_v35  ;;  %1665 = vmatpush.msra.mxu2 %v1218_v46  ;;  %v1293_v24 = vmul.f32 %v1291_v30, %v16549_v59 }
 0x478   :  { %1688 = vmatpush.msrb.mxu3 %v1506_v61 }
 0x479   :  { %1643 = vmatpush.msra.mxu1 %v1501_v15  ;;  %1666 = vmatpush.msra.mxu2 %v1214_v26  ;;  %v1463_v15 = vmul.f32 %v1453_v19, %v8644_v20  ;;  %v1374_v19 = vsel %vm177_vm3, %v9744_v34, %v9861_v9 }
 0x47a   :  { %1689 = vmatpush.msrb.mxu3 %v1502_v2  ;;  %1667 = vmatmul.f32.vlgmr.msra.gmra.mxu2 %v9856_v47  ;;  %v9864_v35 = vpop.permute.xlu1 %1451 }
 0x47b   :  { %v1454_v61 = vsel %vm227_vm1, %v9705_v11, %v9864_v35  ;;  %v9874_v46 = vpop.permute.xlu0 %1201  ;;  %8301 = vmatmul.msk.f32.vlgmr.msrb.gmra.mxu3 %vm846_vm9, %v9859_v23  ;;  %8299 = vmatmul.msk.f32.vlgmr.msra.gmra.mxu1 %vm846_vm9, %v9859_v23  ;;  %v9905_v32 = vpop.permute.xlu2 %1317 }
 0x47c   :  { %v1467_v26 = vmul.f32 %v1454_v61, %v8644_v20  ;;  %v1423_v61 = vmul.f32 %v1413_v62, %v8657_v28 }
 0x47e   :  { %1697 = vmatpush.msrb.mxu1 %v1467_v26  ;;  %v1387_v26 = vmul.f32 %v1374_v19, %v8672_v37 }
 0x480   :  { %1698 = vmatpush.msrb.mxu1 %v1463_v15 }
 0x482   :  { %1670 = vmatmul.f32.gmra.mxu2 %v9882_v22  ;;  %v9887_v11 = vpop.permute.xlu1 %1323 }
 0x483   :  { %v1332_v14 = vsel %vm148_vm4, %v9887_v11, %v9732_v3  ;;  %v9897_v41 = vpop.permute.xlu0 %1411  ;;  %8302 = vmatmul.msk.f32.gmra.mxu3 %vm846_vm9, %v9884_v44  ;;  %8300 = vmatmul.msk.f32.gmra.mxu1 %vm846_vm9, %v9884_v44 }
 0x484   :  { %v1414_v33 = vsel %vm202_vm2, %v9761_v36, %v9897_v41  ;;  %v1337_v2 = vmul.f32 %v1332_v14, %v8822_v4  ;;  %v1373_v36 = vsel %vm177_vm3, %v9645_v39, %v9791_v53 }
 0x485   :  { %v1427_v3 = vmul.f32 %v1414_v33, %v8657_v28  ;;  %v1383_v34 = vmul.f32 %v1373_v36, %v8672_v37  ;;  %v1328_v33 = vsel %vm148_vm4, %v9746_v42, %v9782_v18  ;;  %v1251_v42 = vsel %vm98_vm6, %v9823_v56, %v9635_v58 }
 0x486   :  { %1613 = vmatpush.msrb.mxu0 %v1337_v2  ;;  %v9944_v2 = vpop.permute.xlu2 %1239 }
 0x487   :  { %1699 = vmatpush.msrb.mxu1 %v1427_v3  ;;  %v1339_v3 = vmul.f32 %v1328_v33, %v8741_v6  ;;  %v1248_v36 = vsel %vm98_vm6, %v9755_v12, %v9944_v2 }
 0x488   :  { %1614 = vmatpush.msrb.mxu0 %v1333_v21 }
 0x489   :  { %1700 = vmatpush.msrb.mxu1 %v1423_v61 }
 0x48a   :  { %v9926_v15 = vpop.permute.xlu1 %1277 }
 0x48b   :  { %1701 = vmatpush.msrb.mxu1 %v1387_v26  ;;  %v9928_v14 = vpop.permute.xlu0 %1283  ;;  %v1253_v26 = vmul.f32 %v1251_v42, %v16550_v55  ;;  %v16583_v42 = vld [vmem:[#allocation42_spill] sm:$0xff] }
 0x48c   :  { %v1292_v39 = vsel %vm123_vm5, %v9928_v14, %v9679_v60  ;;  %v1327_v60 = vsel %vm148_vm4, %v9681_v16, %v9905_v32 }
 0x48d   :  { %1702 = vmatpush.msrb.mxu1 %v1383_v34  ;;  %v1297_v62 = vmul.f32 %v1292_v39, %v16549_v59  ;;  %v1335_v16 = vmul.f32 %v1327_v60, %v8741_v6  ;;  %v1211_v39 = vsel %vm73_vm7, %v9874_v46, %v9611_v54 }
 0x48e   :  { %v1490_v34 = vpop.permute.xlu2 %1489 }
 0x48f   :  { %1615 = vmatpush.msrb.mxu0 %v1297_v62  ;;  %1703 = vmatpush.msrb.mxu1 %v9578_v40  ;;  %v1493_v12 = vsel %vm252_vm0, %v9693_v57, %v1490_v34 }
 0x491   :  { %1616 = vmatpush.msrb.mxu0 %v1293_v24  ;;  %1704 = vmatpush.msrb.mxu1 %v9522_v38  ;;  %v1287_v38 = vsel %vm123_vm5, %v9659_v29, %v9926_v15  ;;  %v1499_v24 = vsel %vm252_vm0, %v1490_v34, %v9619_v13  ;;  %v1213_v13 = vmul.f32 %v1211_v39, %v16552_v1  ;;  %v16589_v39 = vld [vmem:[#allocation38_spill] sm:$0xff] }
 0x492   :  { %v9954_v19 = vpop.permute.xlu1 %1243  ;;  %v1295_v29 = vmul.f32 %v1287_v38, %v16545_v25 }
 0x493   :  { %v1252_v40 = vsel %vm98_vm6, %v9954_v19, %v9749_v10  ;;  %1705 = vmatpush.msrb.mxu1 %v1339_v3  ;;  %v9964_v21 = vpop.permute.xlu0 %1279 }
 0x494   :  { %v1288_v58 = vsel %vm123_vm5, %v9784_v31, %v9964_v21  ;;  %v1257_v61 = vmul.f32 %v1252_v40, %v16550_v55  ;;  %v1259_v31 = vmul.f32 %v1248_v36, %v16547_v8  ;;  %v1460_v40 = vsel %vm227_vm1, %v9864_v35, %v16583_v42  ;;  %v16586_v35 = vld [vmem:[#allocation39_spill] sm:$0xff]  ;;  %v16594_v42 = vld [vmem:[#allocation13_spill] sm:$0xff] }
 0x495   :  { %1706 = vmatpush.msrb.mxu1 %v1335_v16  ;;  %v1299_v10 = vmul.f32 %v1288_v58, %v16545_v25  ;;  %v16584_v16 = vld [vmem:[#allocation45_spill] sm:$0xff]  ;;  %v16585_v58 = vld [vmem:[#allocation7_spill] sm:$0xff] }
 0x496   :  { %1617 = vmatpush.msrb.mxu0 %v1257_v61  ;;  %v1459_v38 = vsel %vm227_vm1, %v9753_v48, %v16584_v16  ;;  %v1468_v61 = vmul.f32 %v1460_v40, %v16585_v58  ;;  %v1326_v16 = vsel %vm148_vm4, %v9782_v18, %v9887_v11  ;;  %v1285_v11 = vsel %vm123_vm5, %v9926_v15, %v9830_v5 }
 0x497   :  { %1707 = vmatpush.msrb.mxu1 %v1299_v10  ;;  %v1420_v10 = vsel %vm202_vm2, %v9897_v41, %v16586_v35  ;;  %v1464_v34 = vmul.f32 %v1459_v38, %v16585_v58  ;;  %v16596_v38 = vld [vmem:[#allocation41_spill] sm:$0xff]  ;;  %v16597_v35 = vld [vmem:[#allocation44_spill] sm:$0xff] }
 0x498   :  { %1618 = vmatpush.msrb.mxu0 %v1253_v26  ;;  %v16587_v26 = vld [vmem:[#allocation47_spill] sm:$0xff] }
 0x499   :  { %1708 = vmatpush.msrb.mxu1 %v1295_v29 }
 0x49a   :  { %v9984_v30 = vpop.permute.xlu1 %1203 }
 0x49b   :  { %v1212_v62 = vsel %vm73_vm7, %v9984_v30, %v9691_v27  ;;  %1709 = vmatpush.msrb.mxu1 %v1259_v31  ;;  %v1492_v33 = vpop.permute.xlu0 %1491  ;;  %v16588_v31 = vld [vmem:[#allocation46_spill] sm:$0xff] }
 0x49c   :  { %v1494_v60 = vsel %vm252_vm0, %v9759_v45, %v1492_v33  ;;  %v1500_v54 = vsel %vm252_vm0, %v1492_v33, %v9757_v0  ;;  %v1217_v57 = vmul.f32 %v1212_v62, %v16552_v1  ;;  %v1503_v45 = vmul.f32 %v1493_v12, %v8640_v17  ;;  %v16590_v33 = vld [vmem:[#allocation11_spill] sm:$0xff] }
 0x49d   :  { %v1507_v3 = vmul.f32 %v1494_v60, %v8640_v17  ;;  %v1508_v27 = vmul.f32 %v1500_v54, %v16543_v52  ;;  %v1504_v0 = vmul.f32 %v1499_v24, %v16543_v52  ;;  %v1419_v41 = vsel %vm202_vm2, %v9804_v50, %v16588_v31  ;;  %v16591_v60 = vld [vmem:[#allocation40_spill] sm:$0xff] }
 0x49e   :  { %1619 = vmatpush.msrb.mxu0 %v1217_v57  ;;  %v1428_v24 = vmul.f32 %v1420_v10, %v16590_v33  ;;  %v1380_v54 = vsel %vm177_vm3, %v9861_v9, %v16591_v60  ;;  %v1424_v50 = vmul.f32 %v1419_v41, %v16590_v33  ;;  %v16595_v9 = vld [vmem:[#allocation48_spill] sm:$0xff] }
 0x49f   :  { %1734 = vmatpush.msra.mxu3 %v1507_v3  ;;  %1780 = vmatpush.msrb.mxu2 %v1508_v27  ;;  %v16593_v3 = vld [vmem:[#allocation43_spill] sm:$0xff]  ;;  %v1388_v40 = vmul.f32 %v1380_v54, %v16594_v42 }
 0x4a0   :  { %1620 = vmatpush.msrb.mxu0 %v1213_v13  ;;  %v1379_v27 = vsel %vm177_vm3, %v9791_v53, %v16593_v3  ;;  %v10127_v3 = vpop.permute.xlu2 %1596 }
 0x4a1   :  { %1735 = vmatpush.msra.mxu3 %v1503_v45  ;;  %1781 = vmatpush.msrb.mxu2 %v1504_v0  ;;  %v1384_v0 = vmul.f32 %v1379_v27, %v16594_v42 }
 0x4a2   :  { %1621 = vmatmul.f32.vlgmr.msrb.gmra.mxu0 %v9856_v47  ;;  %v1238_v36 = vpop.permute.xlu1 %1237  ;;  %8303 = vmatmul.msk.f32.vlgmr.msra.gmra.mxu3 %vm846_vm9, %v9859_v23 }
 0x4a3   :  { %1743 = vmatpush.msra.mxu0 %v1468_v61  ;;  %v1247_v48 = vsel %vm98_vm6, %v16587_v26, %v1238_v36  ;;  %v1200_v29 = vpop.permute.xlu0 %1199  ;;  %8305 = vmatmul.msk.f32.vlgmr.msrb.gmra.mxu2 %vm846_vm9, %v9859_v23  ;;  %v16592_v23 = vld [vmem:[#allocation27_spill] sm:$0xff]  ;;  %v1325_v61 = vsel %vm148_vm4, %v9905_v32, %v9767_v63  ;;  %v1286_v26 = vsel %vm123_vm5, %v9964_v21, %v9928_v14 }
 0x4a4   :  { %v1208_v12 = vsel %vm73_vm7, %v16589_v39, %v1200_v29  ;;  %v1255_v62 = vmul.f32 %v1247_v48, %v16547_v8  ;;  %v16599_v48 = vld [vmem:[#allocation22_spill] sm:$0xff]  ;;  %v1246_v32 = vsel %vm98_vm6, %v9944_v2, %v9954_v19  ;;  %v1245_v21 = vsel %vm98_vm6, %v1238_v36, %v9823_v56  ;;  %v16601_v19 = vld [vmem:[#allocation31_spill] sm:$0xff] }
 0x4a5   :  { %1744 = vmatpush.msra.mxu0 %v1464_v34  ;;  %v1219_v57 = vmul.f32 %v1208_v12, %v16592_v23  ;;  %v1300_v63 = vmul.f32 %v1286_v26, %v16599_v48  ;;  %v1296_v14 = vmul.f32 %v1285_v11, %v16599_v48  ;;  %v16600_v34 = vld [vmem:[#allocation28_spill] sm:$0xff]  ;;  %v1206_v15 = vsel %vm73_vm7, %v1200_v29, %v9984_v30 }
 0x4a6   :  { %1710 = vmatpush.msrb.mxu1 %v1255_v62  ;;  %v1260_v5 = vmul.f32 %v1246_v32, %v16600_v34  ;;  %v1256_v31 = vmul.f32 %v1245_v21, %v16600_v34  ;;  %v1220_v41 = vmul.f32 %v1206_v15, %v16601_v19 }
 0x4a7   :  { %1745 = vmatpush.msra.mxu0 %v1428_v24 }
 0x4a8   :  { %1711 = vmatpush.msrb.mxu1 %v1219_v57 }
 0x4a9   :  { %1746 = vmatpush.msra.mxu0 %v1424_v50 }
 0x4aa   :  { %1624 = vmatmul.f32.gmra.mxu0 %v9882_v22  ;;  %v1198_v13 = vpop.permute.xlu1 %1197  ;;  %8304 = vmatmul.msk.f32.gmra.mxu3 %vm846_vm9, %v9884_v44 }
 0x4ab   :  { %1747 = vmatpush.msra.mxu0 %v1388_v40  ;;  %v1207_v45 = vsel %vm73_vm7, %v16595_v9, %v1198_v13  ;;  %8306 = vmatmul.msk.f32.gmra.mxu2 %vm846_vm9, %v9884_v44  ;;  %v16598_v44 = vld [vmem:[#allocation21_spill] sm:$0xff]  ;;  %v1205_v2 = vsel %vm73_vm7, %v1198_v13, %v9874_v46  ;;  %v1592_v36 = vpop.permute.xlu0 %1591 }
 0x4ac   :  { %v1215_v53 = vmul.f32 %v1207_v45, %v16592_v23  ;;  %v1340_v10 = vmul.f32 %v1326_v16, %v16598_v44  ;;  %v1336_v18 = vmul.f32 %v1325_v61, %v16598_v44  ;;  %v1216_v56 = vmul.f32 %v1205_v2, %v16601_v19 }
 0x4ad   :  { %1748 = vmatpush.msra.mxu0 %v1384_v0 }
 0x4ae   :  { %1712 = vmatpush.msrb.mxu1 %v1215_v53 }
 0x4af   :  { %1749 = vmatpush.msra.mxu0 %v16596_v38  ;;  %1713 = vmatmul.f32.vlgmr.msrb.gmra.mxu1 %v9856_v47 }
 0x4b1   :  { %1750 = vmatpush.msra.mxu0 %v16597_v35 }
 0x4b3   :  { %1751 = vmatpush.msra.mxu0 %v1340_v10 }
 0x4b5   :  { %1752 = vmatpush.msra.mxu0 %v1336_v18 }
 0x4b7   :  { %1753 = vmatpush.msra.mxu0 %v1300_v63  ;;  %1716 = vmatmul.f32.gmra.mxu1 %v9882_v22 }
 0x4b9   :  { %1754 = vmatpush.msra.mxu0 %v1296_v14 }
 0x4bb   :  { %1755 = vmatpush.msra.mxu0 %v1260_v5 }
 0x4bd   :  { %1756 = vmatpush.msra.mxu0 %v1256_v31 }
 0x4bf   :  { %1757 = vmatpush.msra.mxu0 %v1220_v41 }
 0x4c1   :  { %1758 = vmatpush.msra.mxu0 %v1216_v56 }
 0x4c2   :  { %1759 = vmatmul.f32.vlgmr.msra.gmra.mxu0 %v9856_v47 }
 0x4ca   :  { %1762 = vmatmul.f32.gmra.mxu0 %v9882_v22 }
 0x4f8   :  { %v1645_v39 = vpop.f32.mrf.mxu1 }
 0x4fd   :  { %v1668_v46 = vpop.f32.mrf.mxu2 }
 0x4fe   :  { %v1669_v47 = vadd.f32 %v1668_v46, %v1592_v36  ;;  %v1691_v22 = vpop.f32.mrf.mxu3 }
 0x500   :  { %v1692_v60 = vadd.f32 %v1691_v22, %v1669_v47  ;;  %v1648_v40 = vpop.f32.mrf.mxu1 }
 0x502   :  { %v1790_v54 = vmul.f32 0.2, %v1692_v60 }
 0x504   :  { %v10121_v57 = vmax.f32 %v1692_v60, %v1790_v54 }
 0x505   :  { %v1671_v0 = vpop.f32.mrf.mxu2 }
 0x506   :  { %v1672_v53 = vadd.f32 %v1671_v0, %v10127_v3  ;;  %v1694_v16 = vpop.f32.mrf.mxu3 }
 0x508   :  { %v1695_v38 = vadd.f32 %v1694_v16, %v1672_v53 }
 0x50a   :  { %v1794_v61 = vmul.f32 0.2, %v1695_v38 }
 0x50c   :  { %v10153_v35 = vmax.f32 %v1695_v38, %v1794_v61 }
 0x51f   :  { %v1622_v30 = vpop.f32.mrf.mxu0 }
 0x520   :  { %v1623_v29 = vadd.f32 %v1622_v30, %v1592_v36 }
 0x522   :  { %v1646_v12 = vadd.f32 %v1645_v39, %v1623_v29 }
 0x524   :  { %v1789_v62 = vmul.f32 0.2, %v1646_v12 }
 0x525   :  { %v1737_v11 = vpop.f32.mrf.mxu3 }
 0x526   :  { %v10107_v24 = vmax.f32 %v1646_v12, %v1789_v62  ;;  %v1783_v32 = vpop.f32.mrf.mxu2 }
 0x527   :  { %v1625_v50 = vpop.f32.mrf.mxu0 }
 0x528   :  { %1981 = vrot.lane.b32.xlu2 %v10107_v24, %s8467_s28  ;;  %2021 = vrot.lane.b32.xlu1 %v10107_v24, %s8466_s27  ;;  %v1626_v27 = vadd.f32 %v1625_v50, %v10127_v3 }
 0x529   :  { %2061 = vrot.lane.b32.xlu0 %v10107_v24, %s8465_s26 }
 0x52a   :  { %v1649_v13 = vadd.f32 %v1648_v40, %v1626_v27 }
 0x52c   :  { %v1793_v9 = vmul.f32 0.2, %v1649_v13  ;;  %v1714_v10 = vpop.f32.mrf.mxu1 }
 0x52d   :  { %v1715_v18 = vadd.f32 %v1714_v10, %v1592_v36  ;;  %v1740_v29 = vpop.f32.mrf.mxu3 }
 0x52e   :  { %v10138_v45 = vmax.f32 %v1649_v13, %v1793_v9  ;;  %v1786_v22 = vpop.f32.mrf.mxu2 }
 0x52f   :  { %v1738_v14 = vadd.f32 %v1737_v11, %v1715_v18 }
 0x530   :  { %1933 = vrot.lane.b32.xlu2 %v10107_v24, %s8468_s11  ;;  %2101 = vrot.lane.b32.xlu1 %v10107_v24, %s8464_s25 }
 0x531   :  { %1893 = vrot.lane.b32.xlu0 %v10107_v24, %s8469_s12  ;;  %v1791_v5 = vmul.f32 0.2, %v1738_v14 }
 0x533   :  { %v10173_v31 = vmax.f32 %v1738_v14, %v1791_v5 }
 0x534   :  { %v1717_v56 = vpop.f32.mrf.mxu1 }
 0x538   :  { %1853 = vrot.lane.b32.xlu2 %v10107_v24, %s8463_s19  ;;  %2065 = vrot.lane.b32.xlu1 %v10121_v57, %s8465_s26 }
 0x539   :  { %1985 = vrot.lane.b32.xlu0 %v10121_v57, %s8467_s28 }
 0x53f   :  { %v1760_v26 = vpop.f32.mrf.mxu0 }
 0x540   :  { %1813 = vrot.lane.b32.xlu2 %v10107_v24, %s8470_s13  ;;  %1857 = vrot.lane.b32.xlu1 %v10121_v57, %s8463_s19  ;;  %v1761_v63 = vadd.f32 %v1760_v26, %v1592_v36  ;;  %v1718_v36 = vadd.f32 %v1717_v56, %v10127_v3 }
 0x541   :  { %1937 = vrot.lane.b32.xlu0 %v10121_v57, %s8468_s11 }
 0x542   :  { %v1784_v21 = vadd.f32 %v1783_v32, %v1761_v63  ;;  %v1741_v39 = vadd.f32 %v1740_v29, %v1718_v36  ;;  %v8308_v29 = vld [vmem:[%s16147_s5 + $0x28] sm:$0xff] }
 0x544   :  { %v1792_v15 = vmul.f32 0.2, %v1784_v21  ;;  %v1795_v62 = vmul.f32 0.2, %v1741_v39 }
 0x546   :  { %v10175_v2 = vmax.f32 %v1784_v21, %v1792_v15  ;;  %v10215_v60 = vmax.f32 %v1741_v39, %v1795_v62  ;;  %v8307_v39 = vld [vmem:[%s16147_s5 + $0x20] sm:$0xff] }
 0x547   :  { %v1763_v12 = vpop.f32.mrf.mxu0 }
 0x548   :  { %2025 = vrot.lane.b32.xlu2 %v10121_v57, %s8466_s27  ;;  %2063 = vrot.lane.b32.xlu1 %v10138_v45, %s8465_s26  ;;  %16602 = vst [vmem:[#allocation42_spill] sm:$0xff] %v10175_v2  ;;  %v1764_v46 = vadd.f32 %v1763_v12, %v10127_v3 }
 0x549   :  { %1897 = vrot.lane.b32.xlu0 %v10121_v57, %s8469_s12 }
 0x54a   :  { %v1787_v54 = vadd.f32 %v1786_v22, %v1764_v46 }
 0x54c   :  { %v1796_v50 = vmul.f32 0.2, %v1787_v54 }
 0x54e   :  { %v10229_v13 = vmax.f32 %v1787_v54, %v1796_v50 }
 0x550   :  { %2105 = vrot.lane.b32.xlu2 %v10121_v57, %s8464_s25  ;;  %1855 = vrot.lane.b32.xlu1 %v10138_v45, %s8463_s19  ;;  %16606 = vst [vmem:[#allocation46_spill] sm:$0xff] %v10229_v13 }
 0x551   :  { %1983 = vrot.lane.b32.xlu0 %v10138_v45, %s8467_s28 }
 0x558   :  { %1817 = vrot.lane.b32.xlu2 %v10121_v57, %s8470_s13  ;;  %2103 = vrot.lane.b32.xlu1 %v10138_v45, %s8464_s25 }
 0x559   :  { %2027 = vrot.lane.b32.xlu0 %v10153_v35, %s8466_s27 }
 0x560   :  { %2023 = vrot.lane.b32.xlu2 %v10138_v45, %s8466_s27  ;;  %1987 = vrot.lane.b32.xlu1 %v10153_v35, %s8467_s28 }
 0x561   :  { %1899 = vrot.lane.b32.xlu0 %v10153_v35, %s8469_s12 }
 0x568   :  { %1935 = vrot.lane.b32.xlu2 %v10138_v45, %s8468_s11  ;;  %1939 = vrot.lane.b32.xlu1 %v10153_v35, %s8468_s11 }
 0x569   :  { %1819 = vrot.lane.b32.xlu0 %v10153_v35, %s8470_s13 }
 0x570   :  { %1895 = vrot.lane.b32.xlu2 %v10138_v45, %s8469_s12  ;;  %2069 = vrot.lane.b32.xlu1 %v10173_v31, %s8465_s26 }
 0x571   :  { %1945 = vrot.lane.b32.xlu0 %v10175_v2, %s8468_s11 }
 0x578   :  { %1815 = vrot.lane.b32.xlu2 %v10138_v45, %s8470_s13  ;;  %2029 = vrot.lane.b32.xlu1 %v10173_v31, %s8466_s27 }
 0x579   :  { %2073 = vrot.lane.b32.xlu0 %v10175_v2, %s8465_s26 }
 0x580   :  { %2067 = vrot.lane.b32.xlu2 %v10153_v35, %s8465_s26  ;;  %1905 = vrot.lane.b32.xlu1 %v10175_v2, %s8469_s12 }
 0x581   :  { %1989 = vrot.lane.b32.xlu0 %v10173_v31, %s8467_s28 }
 0x582   :  { %v10195_v41 = vpop.permute.xlu2 %1981 }
 0x583   :  { %16603 = vst [vmem:[#allocation45_spill] sm:$0xff] %v10195_v41 }
 0x588   :  { %2107 = vrot.lane.b32.xlu2 %v10153_v35, %s8464_s25  ;;  %2033 = vrot.lane.b32.xlu1 %v10175_v2, %s8466_s27 }
 0x589   :  { %1865 = vrot.lane.b32.xlu0 %v10175_v2, %s8463_s19 }
 0x58a   :  { %v10204_v30 = vpop.permute.xlu2 %1933 }
 0x590   :  { %1859 = vrot.lane.b32.xlu2 %v10153_v35, %s8463_s19  ;;  %1901 = vrot.lane.b32.xlu1 %v10173_v31, %s8469_s12 }
 0x591   :  { %1825 = vrot.lane.b32.xlu0 %v10175_v2, %s8470_s13 }
 0x592   :  { %v10213_v47 = vpop.permute.xlu2 %1853 }
 0x598   :  { %1993 = vrot.lane.b32.xlu2 %v10175_v2, %s8467_s28  ;;  %2071 = vrot.lane.b32.xlu1 %v10215_v60, %s8465_s26 }
 0x599   :  { %1941 = vrot.lane.b32.xlu0 %v10173_v31, %s8468_s11 }
 0x59a   :  { %v10223_v27 = vpop.permute.xlu2 %1813  ;;  %v10225_v40 = vpop.permute.xlu1 %2021 }
 0x59b   :  { %16604 = vst [vmem:[#allocation39_spill] sm:$0xff] %v10225_v40  ;;  %v10227_v3 = vpop.permute.xlu0 %2061 }
 0x59c   :  { %16605 = vst [vmem:[#allocation47_spill] sm:$0xff] %v10227_v3 }
 0x5a0   :  { %2075 = vrot.lane.b32.xlu2 %v10229_v13, %s8465_s26  ;;  %2031 = vrot.lane.b32.xlu1 %v10215_v60, %s8466_s27 }
 0x5a1   :  { %1947 = vrot.lane.b32.xlu0 %v10229_v13, %s8468_s11 }
 0x5a2   :  { %v10237_v9 = vpop.permute.xlu2 %2025  ;;  %v10239_v0 = vpop.permute.xlu1 %2101 }
 0x5a3   :  { %v10241_v53 = vpop.permute.xlu0 %1893 }
 0x5a8   :  { %1991 = vrot.lane.b32.xlu2 %v10215_v60, %s8467_s28  ;;  %2035 = vrot.lane.b32.xlu1 %v10229_v13, %s8466_s27 }
 0x5a9   :  { %1907 = vrot.lane.b32.xlu0 %v10229_v13, %s8469_s12 }
 0x5aa   :  { %v10249_v16 = vpop.permute.xlu2 %2105  ;;  %v10251_v38 = vpop.permute.xlu1 %2065 }
 0x5ab   :  { %v10253_v61 = vpop.permute.xlu0 %1985  ;;  %v2081_v50 = vsel %vm227_vm1, %v10227_v3, %v10251_v38 }
 0x5b0   :  { %1867 = vrot.lane.b32.xlu2 %v10229_v13, %s8463_s19  ;;  %2109 = vrot.lane.b32.xlu1 %v10173_v31, %s8464_s25 }
 0x5b1   :  { %1827 = vrot.lane.b32.xlu0 %v10229_v13, %s8470_s13 }
 0x5b2   :  { %v10261_v10 = vpop.permute.xlu2 %1817  ;;  %v10263_v26 = vpop.permute.xlu1 %1857 }
 0x5b3   :  { %v10265_v18 = vpop.permute.xlu0 %1937 }
 0x5b8   :  { %1903 = vrot.lane.b32.xlu2 %v10215_v60, %s8469_s12  ;;  %1995 = vrot.lane.b32.xlu1 %v10229_v13, %s8467_s28 }
 0x5b9   :  { %1861 = vrot.lane.b32.xlu0 %v10173_v31, %s8463_s19 }
 0x5ba   :  { %v10273_v11 = vpop.permute.xlu2 %2023  ;;  %v10275_v63 = vpop.permute.xlu1 %2063 }
 0x5bb   :  { %16607 = vst [vmem:[#allocation38_spill] sm:$0xff] %v10273_v11  ;;  %v10277_v32 = vpop.permute.xlu0 %1897 }
 0x5bc   :  { %16608 = vst [vmem:[#allocation40_spill] sm:$0xff] %v10275_v63 }
 0x5c0   :  { %2115 = vrot.lane.b32.xlu2 %v10229_v13, %s8464_s25  ;;  %1943 = vrot.lane.b32.xlu1 %v10215_v60, %s8468_s11  ;;  %v16611_v13 = vld [vmem:[#allocation18_spill] sm:$0xff] }
 0x5c1   :  { %1863 = vrot.lane.b32.xlu0 %v10215_v60, %s8463_s19 }
 0x5c2   :  { %v10285_v14 = vpop.permute.xlu2 %1935  ;;  %v10287_v21 = vpop.permute.xlu1 %1855 }
 0x5c3   :  { %v10289_v5 = vpop.permute.xlu0 %1983 }
 0x5c4   :  { %16609 = vst [vmem:[#allocation43_spill] sm:$0xff] %v10289_v5 }
 0x5c8   :  { %2113 = vrot.lane.b32.xlu2 %v10175_v2, %s8464_s25  ;;  %2111 = vrot.lane.b32.xlu1 %v10215_v60, %s8464_s25  ;;  %v2041_v2 = vsel %vm202_vm2, %v10225_v40, %v10237_v9 }
 0x5c9   :  { %1823 = vrot.lane.b32.xlu0 %v10215_v60, %s8470_s13 }
 0x5ca   :  { %v10297_v15 = vpop.permute.xlu2 %1895  ;;  %v10299_v56 = vpop.permute.xlu1 %2103 }
 0x5cb   :  { %v10301_v36 = vpop.permute.xlu0 %2027 }
 0x5cc   :  { %v2042_v48 = vsel %vm202_vm2, %v10273_v11, %v10301_v36 }
 0x5cd   :  { %v2049_v42 = vmul.f32 %v2042_v48, %v16611_v13 }
 0x5d0   :  { %2220 = vperm.xlu2 %8428, %v8308_v29   ;;  %1821 = vrot.lane.b32.xlu1 %v10173_v31, %s8470_s13 }
 0x5d1   :  { %2215 = vperm.xlu0 %8429, %v8307_v39   ;;  %v16610_v39 = vld [vmem:[#allocation16_spill] sm:$0xff] }
 0x5d2   :  { %v10311_v12 = vpop.permute.xlu2 %1815  ;;  %v10313_v62 = vpop.permute.xlu1 %1987  ;;  %v2085_v44 = vmul.f32 %v2081_v50, %v16610_v39  ;;  %v2121_v50 = vsel %vm252_vm0, %v10239_v0, %v10249_v16 }
 0x5d3   :  { %v10315_v46 = vpop.permute.xlu0 %1899  ;;  %v2125_v40 = vmul.f32 %v2121_v50, %v16582_v43 }
 0x5da   :  { %v2068_v22 = vpop.permute.xlu2 %2067  ;;  %v10317_v54 = vpop.permute.xlu1 %1939 }
 0x5db   :  { %v2082_v29 = vsel %vm227_vm1, %v10275_v63, %v2068_v22  ;;  %v10326_v19 = vpop.permute.xlu0 %1819  ;;  %v16616_v63 = vld [vmem:[#allocation17_spill] sm:$0xff] }
 0x5dc   :  { %v2089_v34 = vmul.f32 %v2082_v29, %v16610_v39  ;;  %v2002_v29 = vsel %vm177_vm3, %v10289_v5, %v10313_v62 }
 0x5de   :  { %2229 = vmatpush.msrb.mxu3 %v2089_v34  ;;  %v2045_v34 = vmul.f32 %v2041_v2, %v16611_v13  ;;  %v16613_v2 = vld [vmem:[#allocation25_spill] sm:$0xff] }
 0x5df   :  { %v2009_v13 = vmul.f32 %v2002_v29, %v16613_v2 }
 0x5e0   :  { %2230 = vmatpush.msrb.mxu3 %v2085_v44  ;;  %v2001_v44 = vsel %vm177_vm3, %v10195_v41, %v10253_v61 }
 0x5e1   :  { %v2005_v5 = vmul.f32 %v2001_v44, %v16613_v2 }
 0x5e2   :  { %v10343_v33 = vpop.permute.xlu2 %2107  ;;  %v2070_v23 = vpop.permute.xlu1 %2069  ;;  %2231 = vmatpush.msrb.mxu3 %v2049_v42 }
 0x5e3   :  { %16612 = vst [vmem:[#allocation48_spill] sm:$0xff] %v10343_v33  ;;  %v2122_v48 = vsel %vm252_vm0, %v10299_v56, %v10343_v33  ;;  %v10358_v39 = vpop.permute.xlu0 %1945 }
 0x5e4   :  { %v2129_v42 = vmul.f32 %v2122_v48, %v16582_v43  ;;  %2232 = vmatpush.msrb.mxu3 %v2045_v34 }
 0x5e6   :  { %2233 = vmatpush.msrb.mxu3 %v2009_v13  ;;  %2266 = vmatpush.msra.mxu1 %v2129_v42 }
 0x5e8   :  { %2234 = vmatpush.msrb.mxu3 %v2005_v5  ;;  %2267 = vmatpush.msra.mxu1 %v2125_v40 }
 0x5ea   :  { %v10364_v41 = vpop.permute.xlu2 %1859  ;;  %v2030_v11 = vpop.permute.xlu1 %2029  ;;  %2235 = vmatpush.msrb.mxu3 %v10138_v45 }
 0x5eb   :  { %v10367_v58 = vpop.permute.xlu0 %2073 }
 0x5ec   :  { %16614 = vst [vmem:[#allocation41_spill] sm:$0xff] %v10367_v58  ;;  %2236 = vmatpush.msrb.mxu3 %v10107_v24  ;;  %v2079_v24 = vsel %vm227_vm1, %v10251_v38, %v2070_v23  ;;  %v2077_v43 = vsel %vm227_vm1, %v2070_v23, %v10367_v58  ;;  %v10407_v58 = vld [vmem:[#allocation3 + $0x48] sm:$0xff] }
 0x5ed   :  { %v2086_v38 = vmul.f32 %v2079_v24, %v16616_v63  ;;  %v2087_v23 = vmul.f32 %v2077_v43, %v8644_v20  ;;  %8309 = vmatmul.msk.f32.vlgmr.msra.gmra.mxu1 %vm846_vm9, %v10407_v58  ;;  %v1955_v43 = vsel %vm148_vm4, %v10358_v39, %v10204_v30 }
 0x5f2   :  { %v10370_v34 = vpop.permute.xlu2 %1993  ;;  %v10372_v29 = vpop.permute.xlu1 %1905 }
 0x5f3   :  { %v10374_v13 = vpop.permute.xlu0 %1989 }
 0x5fa   :  { %v10376_v44 = vpop.permute.xlu2 %2075  ;;  %v10378_v50 = vpop.permute.xlu1 %2033 }
 0x5fb   :  { %16615 = vst [vmem:[#allocation44_spill] sm:$0xff] %v10376_v44  ;;  %v10380_v40 = vpop.permute.xlu0 %1865 }
 0x602   :  { %v10382_v5 = vpop.permute.xlu1 %1901  ;;  %v10386_v45 = vpop.permute.xlu2 %1991 }
 0x603   :  { %v10384_v48 = vpop.permute.xlu0 %1825 }
 0x60a   :  { %v2072_v42 = vpop.permute.xlu1 %2071  ;;  %v10403_v33 = vpop.permute.xlu2 %1867 }
 0x60b   :  { %v2078_v2 = vsel %vm227_vm1, %v2072_v42, %v10376_v44  ;;  %v2080_v3 = vsel %vm227_vm1, %v2068_v22, %v2072_v42  ;;  %v10399_v8 = vpop.permute.xlu0 %1941 }
 0x60c   :  { %v2090_v17 = vmul.f32 %v2080_v3, %v16616_v63  ;;  %v2091_v49 = vmul.f32 %v2078_v2, %v8644_v20  ;;  %v2039_v3 = vsel %vm202_vm2, %v10237_v9, %v2030_v11  ;;  %v16617_v2 = vld [vmem:[#allocation19_spill] sm:$0xff]  ;;  %v2000_v9 = vsel %vm177_vm3, %v10313_v62, %v10386_v45  ;;  %v10442_v62 = vld [vmem:[#allocation3 + $0x58] sm:$0xff] }
 0x60d   :  { %v2046_v24 = vmul.f32 %v2039_v3, %v16617_v2  ;;  %8310 = vmatmul.msk.f32.gmra.mxu1 %vm846_vm9, %v10442_v62 }
 0x60e   :  { %2275 = vmatpush.msra.mxu2 %v2090_v17  ;;  %2321 = vmatpush.msrb.mxu1 %v2091_v49 }
 0x610   :  { %2276 = vmatpush.msra.mxu2 %v2086_v38  ;;  %2322 = vmatpush.msrb.mxu1 %v2087_v23  ;;  %v1999_v38 = vsel %vm177_vm3, %v10253_v61, %v10374_v13  ;;  %v1957_v23 = vmul.f32 %v1955_v43, %v8822_v4  ;;  %v2037_v61 = vsel %vm202_vm2, %v2030_v11, %v10378_v50 }
 0x611   :  { %v1954_v11 = vsel %vm148_vm4, %v10285_v14, %v10317_v54 }
 0x612   :  { %v2032_v44 = vpop.permute.xlu1 %2031  ;;  %v10439_v20 = vpop.permute.xlu2 %1903 }
 0x613   :  { %v2040_v17 = vsel %vm202_vm2, %v10301_v36, %v2032_v44  ;;  %v10417_v49 = vpop.permute.xlu0 %1947 }
 0x614   :  { %v1956_v22 = vsel %vm148_vm4, %v10417_v49, %v10285_v14  ;;  %v2050_v42 = vmul.f32 %v2040_v17, %v16617_v2  ;;  %v16618_v17 = vld [vmem:[#allocation26_spill] sm:$0xff] }
 0x615   :  { %v1961_v36 = vmul.f32 %v1956_v22, %v8822_v4  ;;  %v2010_v63 = vmul.f32 %v2000_v9, %v16618_v17  ;;  %v2006_v3 = vmul.f32 %v1999_v38, %v16618_v17  ;;  %v2047_v38 = vmul.f32 %v2037_v61, %v8657_v28 }
 0x616   :  { %2277 = vmatpush.msra.mxu2 %v2050_v42  ;;  %v1914_v61 = vsel %vm123_vm5, %v10297_v15, %v10315_v46 }
 0x617   :  { %2237 = vmatpush.msrb.mxu3 %v1961_v36 }
 0x618   :  { %2278 = vmatpush.msra.mxu2 %v2046_v24  ;;  %v1876_v24 = vsel %vm98_vm6, %v10403_v33, %v10287_v21 }
 0x619   :  { %2238 = vmatpush.msrb.mxu3 %v1957_v23  ;;  %v1953_v23 = vsel %vm148_vm4, %v10204_v30, %v10265_v18  ;;  %v1881_v30 = vmul.f32 %v1876_v24, %v16550_v55 }
 0x61a   :  { %v10444_v22 = vpop.permute.xlu1 %2035  ;;  %2279 = vmatpush.msra.mxu2 %v2010_v63  ;;  %v1915_v63 = vsel %vm123_vm5, %v10372_v29, %v10241_v53 }
 0x61b   :  { %v2038_v43 = vsel %vm202_vm2, %v2032_v44, %v10444_v22  ;;  %v10455_v42 = vpop.permute.xlu0 %1907  ;;  %v1917_v14 = vmul.f32 %v1915_v63, %v16549_v59 }
 0x61c   :  { %v1916_v9 = vsel %vm123_vm5, %v10455_v42, %v10297_v15  ;;  %2280 = vmatpush.msra.mxu2 %v2006_v3  ;;  %v2051_v36 = vmul.f32 %v2038_v43, %v8657_v28  ;;  %v1875_v3 = vsel %vm98_vm6, %v10380_v40, %v10213_v47 }
 0x61d   :  { %v1921_v44 = vmul.f32 %v1916_v9, %v16549_v59  ;;  %v10493_v9 = vpop.permute.xlu2 %2115  ;;  %v1877_v15 = vmul.f32 %v1875_v3, %v16550_v55 }
 0x61e   :  { %2281 = vmatpush.msra.mxu2 %v10153_v35  ;;  %2323 = vmatpush.msrb.mxu1 %v2051_v36  ;;  %v16619_v35 = vld [vmem:[#allocation30_spill] sm:$0xff] }
 0x61f   :  { %2239 = vmatpush.msrb.mxu3 %v1921_v44  ;;  %v1962_v43 = vmul.f32 %v1954_v11, %v16619_v35  ;;  %v1958_v36 = vmul.f32 %v1953_v23, %v16619_v35  ;;  %v1835_v44 = vsel %vm73_vm7, %v10384_v48, %v10223_v27 }
 0x620   :  { %2282 = vmatpush.msra.mxu2 %v10121_v57  ;;  %2324 = vmatpush.msrb.mxu1 %v2047_v38  ;;  %v1913_v57 = vsel %vm123_vm5, %v10241_v53, %v10277_v32  ;;  %v16620_v38 = vld [vmem:[#allocation33_spill] sm:$0xff]  ;;  %v1874_v53 = vsel %vm98_vm6, %v10287_v21, %v10364_v41  ;;  %v1834_v21 = vsel %vm73_vm7, %v10311_v12, %v10326_v19 }
 0x621   :  { %2240 = vmatpush.msrb.mxu3 %v1917_v14  ;;  %v1922_v23 = vmul.f32 %v1914_v61, %v16620_v38  ;;  %v1918_v3 = vmul.f32 %v1913_v57, %v16620_v38  ;;  %v10525_v61 = vld [vmem:[#allocation3 + $0x40] sm:$0xff] }
 0x622   :  { %v10495_v63 = vpop.permute.xlu1 %2109  ;;  %2283 = vmatpush.msra.mxu2 %v1962_v43  ;;  %v1873_v43 = vsel %vm98_vm6, %v10213_v47, %v10263_v26 }
 0x623   :  { %2241 = vmatpush.msrb.mxu3 %v1881_v30  ;;  %v10502_v11 = vpop.permute.xlu0 %1827  ;;  %v1837_v30 = vmul.f32 %v1835_v44, %v16552_v1  ;;  %v1997_v44 = vsel %vm177_vm3, %v10374_v13, %v10370_v34 }
 0x624   :  { %v1836_v24 = vsel %vm73_vm7, %v10502_v11, %v10311_v12  ;;  %2284 = vmatpush.msra.mxu2 %v1958_v36  ;;  %v16621_v36 = vld [vmem:[#allocation35_spill] sm:$0xff] }
 0x625   :  { %2242 = vmatpush.msrb.mxu3 %v1877_v15  ;;  %v1841_v14 = vmul.f32 %v1836_v24, %v16552_v1  ;;  %v1882_v28 = vmul.f32 %v1874_v53, %v16621_v36  ;;  %v1878_v47 = vmul.f32 %v1873_v43, %v16621_v36  ;;  %v1833_v15 = vsel %vm73_vm7, %v10223_v27, %v10261_v10 }
 0x626   :  { %2285 = vmatpush.msra.mxu2 %v1922_v23  ;;  %v1842_v23 = vmul.f32 %v1834_v21, %v8869_v51  ;;  %v2124_v27 = vsel %vm252_vm0, %v10493_v9, %v10299_v56  ;;  %v1838_v13 = vmul.f32 %v1833_v15, %v8869_v51 }
 0x627   :  { %2243 = vmatpush.msrb.mxu3 %v1841_v14  ;;  %v2007_v14 = vmul.f32 %v1997_v44, %v8672_v37  ;;  %v2132_v43 = vmul.f32 %v2124_v27, %v16543_v52  ;;  %v1912_v44 = vsel %vm123_vm5, %v10315_v46, %v10439_v20  ;;  %v16622_v27 = vld [vmem:[#allocation48_spill] sm:$0xff] }
 0x628   :  { %2286 = vmatpush.msra.mxu2 %v1918_v3  ;;  %v10561_v3 = vld [vmem:[#allocation3 + $0x50] sm:$0xff] }
 0x629   :  { %2244 = vmatpush.msrb.mxu3 %v1837_v30 }
 0x62a   :  { %2245 = vmatmul.f32.vlgmr.msrb.gmra.mxu3 %v10525_v61  ;;  %v10533_v57 = vpop.permute.xlu1 %1995  ;;  %2287 = vmatpush.msra.mxu2 %v1882_v28  ;;  %v2114_v28 = vpop.permute.xlu2 %2113 }
 0x62b   :  { %v1998_v12 = vsel %vm177_vm3, %v10386_v45, %v10533_v57  ;;  %v10548_v24 = vpop.permute.xlu0 %1861  ;;  %v2123_v45 = vsel %vm252_vm0, %v2114_v28, %v10239_v0 }
 0x62c   :  { %2288 = vmatpush.msra.mxu2 %v1878_v47  ;;  %v2011_v53 = vmul.f32 %v1998_v12, %v8672_v37  ;;  %v2128_v30 = vmul.f32 %v2123_v45, %v16543_v52  ;;  %v1951_v47 = vsel %vm148_vm4, %v10265_v18, %v10399_v8  ;;  %v1923_v18 = vmul.f32 %v1912_v44, %v16545_v25 }
 0x62e   :  { %2289 = vmatpush.msra.mxu2 %v1842_v23  ;;  %2325 = vmatpush.msrb.mxu1 %v2011_v53  ;;  %v2119_v23 = vsel %vm252_vm0, %v10249_v16, %v10495_v63 }
 0x630   :  { %2290 = vmatpush.msra.mxu2 %v1838_v13  ;;  %2326 = vmatpush.msrb.mxu1 %v2007_v14  ;;  %v16623_v14 = vld [vmem:[#allocation15_spill] sm:$0xff] }
 0x631   :  { %2291 = vmatmul.f32.vlgmr.msra.gmra.mxu2 %v10525_v61 }
 0x632   :  { %2248 = vmatmul.f32.gmra.mxu3 %v10561_v3  ;;  %2404 = vmatpush.msrb.mxu2 %v2132_v43  ;;  %v10566_v56 = vpop.permute.xlu1 %1943  ;;  %v16624_v43 = vld [vmem:[#allocation8_spill] sm:$0xff] }
 0x633   :  { %v1952_v0 = vsel %vm148_vm4, %v10317_v54, %v10566_v56  ;;  %2327 = vmatpush.msrb.mxu1 %v10215_v60  ;;  %v10574_v21 = vpop.permute.xlu0 %1863  ;;  %v1911_v60 = vsel %vm123_vm5, %v10277_v32, %v10382_v5  ;;  %v1959_v54 = vmul.f32 %v1951_v47, %v8741_v6  ;;  %v2117_v32 = vsel %vm252_vm0, %v10495_v63, %v2114_v28  ;;  %v16625_v63 = vld [vmem:[#allocation40_spill] sm:$0xff] }
 0x634   :  { %2405 = vmatpush.msrb.mxu2 %v2128_v30  ;;  %v1963_v15 = vmul.f32 %v1952_v0, %v8741_v6  ;;  %v1919_v46 = vmul.f32 %v1911_v60, %v16545_v25  ;;  %v1871_v28 = vsel %vm98_vm6, %v10263_v26, %v10548_v24  ;;  %v16626_v30 = vld [vmem:[#allocation44_spill] sm:$0xff]  ;;  %v2126_v26 = vmul.f32 %v2119_v23, %v16623_v14  ;;  %v16628_v60 = vld [vmem:[#allocation47_spill] sm:$0xff] }
 0x635   :  { %2328 = vmatpush.msrb.mxu1 %v10173_v31  ;;  %v1872_v31 = vsel %vm98_vm6, %v10364_v41, %v10574_v21  ;;  %v16627_v0 = vld [vmem:[#allocation24_spill] sm:$0xff]  ;;  %v2127_v44 = vmul.f32 %v2117_v32, %v16624_v43  ;;  %v16632_v32 = vld [vmem:[#allocation27_spill] sm:$0xff] }
 0x636   :  { %v1883_v47 = vmul.f32 %v1872_v31, %v16627_v0  ;;  %v16630_v31 = vld [vmem:[#allocation7_spill] sm:$0xff] }
 0x637   :  { %2329 = vmatpush.msrb.mxu1 %v1963_v15 }
 0x639   :  { %2330 = vmatpush.msrb.mxu1 %v1959_v54  ;;  %2294 = vmatmul.f32.gmra.mxu2 %v10561_v3  ;;  %v16629_v54 = vld [vmem:[#allocation41_spill] sm:$0xff] }
 0x63a   :  { %v2112_v12 = vpop.permute.xlu1 %2111 }
 0x63b   :  { %v2118_v53 = vsel %vm252_vm0, %v2112_v12, %v10493_v9  ;;  %v2120_v41 = vsel %vm252_vm0, %v16622_v27, %v2112_v12  ;;  %2331 = vmatpush.msrb.mxu1 %v1923_v18  ;;  %v10611_v13 = vpop.permute.xlu0 %1823  ;;  %v2084_v9 = vsel %vm227_vm1, %v16626_v30, %v16625_v63  ;;  %v2083_v18 = vsel %vm227_vm1, %v16629_v54, %v16628_v60  ;;  %v16639_v54 = vld [vmem:[#allocation42_spill] sm:$0xff] }
 0x63c   :  { %v2130_v45 = vmul.f32 %v2120_v41, %v16623_v14  ;;  %v2131_v16 = vmul.f32 %v2118_v53, %v16624_v43  ;;  %v1832_v15 = vsel %vm73_vm7, %v10326_v19, %v10611_v13  ;;  %v1879_v12 = vmul.f32 %v1871_v28, %v16627_v0  ;;  %v16631_v53 = vld [vmem:[#allocation38_spill] sm:$0xff]  ;;  %v16633_v28 = vld [vmem:[#allocation39_spill] sm:$0xff]  ;;  %v16648_v0 = vld [vmem:[#allocation25_spill] sm:$0xff] }
 0x63d   :  { %2332 = vmatpush.msrb.mxu1 %v1919_v46  ;;  %v2092_v46 = vmul.f32 %v2084_v9, %v16630_v31  ;;  %v2044_v19 = vsel %vm202_vm2, %v10444_v22, %v16631_v53  ;;  %v1843_v23 = vmul.f32 %v1832_v15, %v16632_v32  ;;  %v2088_v41 = vmul.f32 %v2083_v18, %v16630_v31  ;;  %v16635_v9 = vld [vmem:[#allocation43_spill] sm:$0xff]  ;;  %v16636_v15 = vld [vmem:[#allocation45_spill] sm:$0xff] }
 0x63e   :  { %2312 = vmatpush.msrb.mxu0 %v2130_v45  ;;  %2358 = vmatpush.msra.mxu3 %v2131_v16  ;;  %v2043_v45 = vsel %vm202_vm2, %v10378_v50, %v16633_v28  ;;  %v16634_v16 = vld [vmem:[#allocation11_spill] sm:$0xff]  ;;  %v1949_v60 = vsel %vm148_vm4, %v10399_v8, %v10358_v39  ;;  %v16640_v18 = vld [vmem:[#allocation21_spill] sm:$0xff]  ;;  %v16641_v8 = vld [vmem:[#allocation22_spill] sm:$0xff] }
 0x63f   :  { %2333 = vmatpush.msrb.mxu1 %v1883_v47  ;;  %v2052_v63 = vmul.f32 %v2044_v19, %v16634_v16  ;;  %v2004_v47 = vsel %vm177_vm3, %v10533_v57, %v16635_v9  ;;  %v2048_v50 = vmul.f32 %v2043_v45, %v16634_v16 }
 0x640   :  { %2313 = vmatpush.msrb.mxu0 %v2126_v26  ;;  %2359 = vmatpush.msra.mxu3 %v2127_v44  ;;  %v16638_v44 = vld [vmem:[#allocation46_spill] sm:$0xff] }
 0x641   :  { %2334 = vmatpush.msrb.mxu1 %v1879_v12  ;;  %8311 = vmatmul.msk.f32.vlgmr.msrb.gmra.mxu0 %vm846_vm9, %v10407_v58 }
 0x642   :  { %2367 = vmatpush.msra.mxu0 %v2092_v46  ;;  %v1822_v27 = vpop.permute.xlu1 %1821  ;;  %8313 = vmatmul.msk.f32.vlgmr.msra.gmra.mxu3 %vm846_vm9, %v10407_v58  ;;  %v1870_v46 = vsel %vm98_vm6, %v10574_v21, %v10403_v33  ;;  %v16643_v21 = vld [vmem:[#allocation31_spill] sm:$0xff] }
 0x643   :  { %v1831_v22 = vsel %vm73_vm7, %v10261_v10, %v1822_v27  ;;  %2335 = vmatpush.msrb.mxu1 %v1843_v23  ;;  %8315 = vmatmul.msk.f32.vlgmr.msrb.gmra.mxu2 %vm846_vm9, %v10407_v58  ;;  %v2003_v10 = vsel %vm177_vm3, %v10370_v34, %v16636_v15  ;;  %v16637_v58 = vld [vmem:[#allocation13_spill] sm:$0xff]  ;;  %v1950_v34 = vsel %vm148_vm4, %v10566_v56, %v10417_v49 }
 0x644   :  { %2368 = vmatpush.msra.mxu0 %v2088_v41  ;;  %v1839_v30 = vmul.f32 %v1831_v22, %v16632_v32  ;;  %v2012_v26 = vmul.f32 %v2004_v47, %v16637_v58  ;;  %v2008_v57 = vmul.f32 %v2003_v10, %v16637_v58  ;;  %v1964_v12 = vmul.f32 %v1950_v34, %v16640_v18 }
 0x645   :  { %v1960_v49 = vmul.f32 %v1949_v60, %v16640_v18  ;;  %v1909_v56 = vsel %vm123_vm5, %v10382_v5, %v10372_v29  ;;  %v1830_v29 = vsel %vm73_vm7, %v10611_v13, %v10502_v11  ;;  %v1829_v33 = vsel %vm73_vm7, %v1822_v27, %v10384_v48  ;;  %v10719_v11 = vpop.permute.xlu0 %2215  ;;  %v10722_v48 = vpop.permute.xlu2 %2220 }
 0x646   :  { %2369 = vmatpush.msra.mxu0 %v2052_v63  ;;  %2336 = vmatpush.msrb.mxu1 %v1839_v30  ;;  %v1920_v53 = vmul.f32 %v1909_v56, %v16641_v8  ;;  %v1844_v23 = vmul.f32 %v1830_v29, %v16643_v21 }
 0x647   :  { %2337 = vmatmul.f32.vlgmr.msrb.gmra.mxu1 %v10525_v61 }
 0x648   :  { %2370 = vmatpush.msra.mxu0 %v2048_v50 }
 0x649   :  { %8312 = vmatmul.msk.f32.gmra.mxu0 %vm846_vm9, %v10442_v62 }
 0x64a   :  { %2371 = vmatpush.msra.mxu0 %v2012_v26  ;;  %8314 = vmatmul.msk.f32.gmra.mxu3 %vm846_vm9, %v10442_v62 }
 0x64b   :  { %8316 = vmatmul.msk.f32.gmra.mxu2 %vm846_vm9, %v10442_v62  ;;  %v1910_v62 = vsel %vm123_vm5, %v10439_v20, %v10455_v42  ;;  %v1869_v20 = vsel %vm98_vm6, %v10548_v24, %v10380_v40  ;;  %v16642_v42 = vld [vmem:[#allocation28_spill] sm:$0xff]  ;;  %v1840_v40 = vmul.f32 %v1829_v33, %v16643_v21 }
 0x64c   :  { %2372 = vmatpush.msra.mxu0 %v2008_v57  ;;  %v1924_v39 = vmul.f32 %v1910_v62, %v16641_v8  ;;  %v1884_v19 = vmul.f32 %v1870_v46, %v16642_v42  ;;  %v1880_v5 = vmul.f32 %v1869_v20, %v16642_v42 }
 0x64e   :  { %2373 = vmatpush.msra.mxu0 %v16638_v44 }
 0x64f   :  { %2340 = vmatmul.f32.gmra.mxu1 %v10561_v3 }
 0x650   :  { %2374 = vmatpush.msra.mxu0 %v16639_v54 }
 0x652   :  { %2375 = vmatpush.msra.mxu0 %v1964_v12 }
 0x654   :  { %2376 = vmatpush.msra.mxu0 %v1960_v49 }
 0x656   :  { %2377 = vmatpush.msra.mxu0 %v1924_v39 }
 0x658   :  { %2378 = vmatpush.msra.mxu0 %v1920_v53 }
 0x65a   :  { %2379 = vmatpush.msra.mxu0 %v1884_v19 }
 0x65c   :  { %2380 = vmatpush.msra.mxu0 %v1880_v5 }
 0x65e   :  { %2381 = vmatpush.msra.mxu0 %v1844_v23 }
 0x660   :  { %2382 = vmatpush.msra.mxu0 %v1840_v40 }
 0x661   :  { %2383 = vmatmul.f32.vlgmr.msra.gmra.mxu0 %v10525_v61 }
 0x669   :  { %2386 = vmatmul.f32.gmra.mxu0 %v10561_v3 }
 0x66a   :  { %v2269_v24 = vpop.f32.mrf.mxu1 }
 0x68a   :  { %v2272_v63 = vpop.f32.mrf.mxu1 }
 0x6ad   :  { %v2246_v13 = vpop.f32.mrf.mxu3 }
 0x6ae   :  { %v2247_v41 = vadd.f32 %v2246_v13, %v10719_v11 }
 0x6b0   :  { %v2270_v28 = vadd.f32 %v2269_v24, %v2247_v41 }
 0x6b2   :  { %v2413_v45 = vmul.f32 0.2, %v2270_v28 }
 0x6b4   :  { %v10724_v27 = vmax.f32 %v2270_v28, %v2413_v45  ;;  %v2292_v3 = vpop.f32.mrf.mxu2 }
 0x6b5   :  { %v2249_v22 = vpop.f32.mrf.mxu3  ;;  %v2293_v50 = vadd.f32 %v2292_v3, %v10719_v11 }
 0x6b6   :  { %v2250_v30 = vadd.f32 %v2249_v22, %v10722_v48  ;;  %2437 = vrot.lane.b32.xlu0 %v10724_v27, %s8470_s13  ;;  %2517 = vrot.lane.b32.xlu2 %v10724_v27, %s8469_s12 }
 0x6b7   :  { %2685 = vrot.lane.b32.xlu1 %v10724_v27, %s8465_s26 }
 0x6b8   :  { %v2273_v61 = vadd.f32 %v2272_v63, %v2250_v30 }
 0x6ba   :  { %v2417_v9 = vmul.f32 0.2, %v2273_v61 }
 0x6bc   :  { %v10733_v47 = vmax.f32 %v2273_v61, %v2417_v9  ;;  %v2295_v56 = vpop.f32.mrf.mxu2 }
 0x6bd   :  { %v2296_v20 = vadd.f32 %v2295_v56, %v10722_v48 }
 0x6be   :  { %2725 = vrot.lane.b32.xlu0 %v10724_v27, %s8464_s25  ;;  %2439 = vrot.lane.b32.xlu2 %v10733_v47, %s8470_s13  ;;  %v2315_v15 = vpop.f32.mrf.mxu0 }
 0x6bf   :  { %2645 = vrot.lane.b32.xlu1 %v10724_v27, %s8466_s27  ;;  %v2316_v10 = vadd.f32 %v2315_v15, %v2293_v50 }
 0x6c1   :  { %v2414_v26 = vmul.f32 0.2, %v2316_v10 }
 0x6c3   :  { %v10742_v57 = vmax.f32 %v2316_v10, %v2414_v26 }
 0x6c4   :  { %v2338_v34 = vpop.f32.mrf.mxu1 }
 0x6c5   :  { %v2339_v44 = vadd.f32 %v2338_v34, %v10719_v11  ;;  %v2361_v60 = vpop.f32.mrf.mxu3 }
 0x6c6   :  { %2479 = vrot.lane.b32.xlu0 %v10733_v47, %s8463_s19  ;;  %2689 = vrot.lane.b32.xlu2 %v10742_v57, %s8465_s26  ;;  %v2318_v46 = vpop.f32.mrf.mxu0  ;;  %v2407_v41 = vpop.f32.mrf.mxu2 }
 0x6c7   :  { %2605 = vrot.lane.b32.xlu1 %v10724_v27, %s8467_s28  ;;  %v2362_v54 = vadd.f32 %v2361_v60, %v2339_v44  ;;  %v2319_v19 = vadd.f32 %v2318_v46, %v2296_v20 }
 0x6c9   :  { %v2415_v12 = vmul.f32 0.2, %v2362_v54  ;;  %v2418_v5 = vmul.f32 0.2, %v2319_v19 }
 0x6cb   :  { %v10751_v62 = vmax.f32 %v2362_v54, %v2415_v12  ;;  %v10779_v23 = vmax.f32 %v2319_v19, %v2418_v5 }
 0x6cc   :  { %v2341_v49 = vpop.f32.mrf.mxu1 }
 0x6cd   :  { %v2342_v39 = vadd.f32 %v2341_v49, %v10722_v48  ;;  %v2364_v53 = vpop.f32.mrf.mxu3 }
 0x6ce   :  { %2693 = vrot.lane.b32.xlu0 %v10751_v62, %s8465_s26  ;;  %2649 = vrot.lane.b32.xlu2 %v10742_v57, %s8466_s27  ;;  %v2410_v9 = vpop.f32.mrf.mxu2 }
 0x6cf   :  { %2557 = vrot.lane.b32.xlu1 %v10724_v27, %s8468_s11  ;;  %v2365_v29 = vadd.f32 %v2364_v53, %v2342_v39 }
 0x6d1   :  { %v2419_v33 = vmul.f32 0.2, %v2365_v29 }
 0x6d3   :  { %v10781_v40 = vmax.f32 %v2365_v29, %v2419_v33 }
 0x6d6   :  { %2653 = vrot.lane.b32.xlu0 %v10751_v62, %s8466_s27  ;;  %2609 = vrot.lane.b32.xlu2 %v10742_v57, %s8467_s28 }
 0x6d7   :  { %2477 = vrot.lane.b32.xlu1 %v10724_v27, %s8463_s19 }
 0x6de   :  { %2613 = vrot.lane.b32.xlu0 %v10751_v62, %s8467_s28  ;;  %2561 = vrot.lane.b32.xlu2 %v10742_v57, %s8468_s11  ;;  %v2384_v24 = vpop.f32.mrf.mxu0 }
 0x6df   :  { %2687 = vrot.lane.b32.xlu1 %v10733_v47, %s8465_s26  ;;  %v2385_v13 = vadd.f32 %v2384_v24, %v10719_v11 }
 0x6e1   :  { %v2408_v28 = vadd.f32 %v2407_v41, %v2385_v13 }
 0x6e3   :  { %v2416_v45 = vmul.f32 0.2, %v2408_v28 }
 0x6e5   :  { %v10816_v63 = vmax.f32 %v2408_v28, %v2416_v45  ;;  %v16645_v28 = vld [vmem:[#allocation16_spill] sm:$0xff] }
 0x6e6   :  { %2521 = vrot.lane.b32.xlu0 %v10742_v57, %s8469_s12  ;;  %2481 = vrot.lane.b32.xlu2 %v10742_v57, %s8463_s19  ;;  %v2387_v30 = vpop.f32.mrf.mxu0 }
 0x6e7   :  { %2647 = vrot.lane.b32.xlu1 %v10733_v47, %s8466_s27  ;;  %v2388_v61 = vadd.f32 %v2387_v30, %v10722_v48 }
 0x6e9   :  { %v2411_v50 = vadd.f32 %v2410_v9, %v2388_v61 }
 0x6eb   :  { %v2420_v15 = vmul.f32 0.2, %v2411_v50 }
 0x6ed   :  { %v10847_v48 = vmax.f32 %v2411_v50, %v2420_v15 }
 0x6ee   :  { %2695 = vrot.lane.b32.xlu0 %v10781_v40, %s8465_s26  ;;  %2691 = vrot.lane.b32.xlu2 %v10779_v23, %s8465_s26 }
 0x6ef   :  { %2607 = vrot.lane.b32.xlu1 %v10733_v47, %s8467_s28 }
 0x6f6   :  { %2655 = vrot.lane.b32.xlu0 %v10781_v40, %s8466_s27  ;;  %2651 = vrot.lane.b32.xlu2 %v10779_v23, %s8466_s27 }
 0x6f7   :  { %2559 = vrot.lane.b32.xlu1 %v10733_v47, %s8468_s11 }
 0x6fe   :  { %2615 = vrot.lane.b32.xlu0 %v10781_v40, %s8467_s28  ;;  %2611 = vrot.lane.b32.xlu2 %v10779_v23, %s8467_s28 }
 0x6ff   :  { %2519 = vrot.lane.b32.xlu1 %v10733_v47, %s8469_s12 }
 0x706   :  { %2443 = vrot.lane.b32.xlu0 %v10779_v23, %s8470_s13  ;;  %2563 = vrot.lane.b32.xlu2 %v10779_v23, %s8468_s11 }
 0x707   :  { %2727 = vrot.lane.b32.xlu1 %v10733_v47, %s8464_s25 }
 0x70e   :  { %2567 = vrot.lane.b32.xlu0 %v10781_v40, %s8468_s11  ;;  %2523 = vrot.lane.b32.xlu2 %v10779_v23, %s8469_s12 }
 0x70f   :  { %2441 = vrot.lane.b32.xlu1 %v10742_v57, %s8470_s13 }
 0x710   :  { %v10814_v22 = vpop.permute.xlu2 %2517 }
 0x716   :  { %2569 = vrot.lane.b32.xlu0 %v10816_v63, %s8468_s11  ;;  %2731 = vrot.lane.b32.xlu2 %v10779_v23, %s8464_s25 }
 0x717   :  { %2729 = vrot.lane.b32.xlu1 %v10742_v57, %s8464_s25 }
 0x718   :  { %v10824_v11 = vpop.permute.xlu2 %2439 }
 0x71e   :  { %2489 = vrot.lane.b32.xlu0 %v10816_v63, %s8463_s19  ;;  %2735 = vrot.lane.b32.xlu2 %v10781_v40, %s8464_s25 }
 0x71f   :  { %2733 = vrot.lane.b32.xlu1 %v10751_v62, %s8464_s25 }
 0x720   :  { %v10833_v3 = vpop.permute.xlu2 %2689 }
 0x726   :  { %2617 = vrot.lane.b32.xlu0 %v10816_v63, %s8467_s28  ;;  %2697 = vrot.lane.b32.xlu2 %v10816_v63, %s8465_s26 }
 0x727   :  { %2483 = vrot.lane.b32.xlu1 %v10779_v23, %s8463_s19 }
 0x728   :  { %v10841_v10 = vpop.permute.xlu0 %2437  ;;  %v10843_v26 = vpop.permute.xlu2 %2649 }
 0x729   :  { %v10845_v34 = vpop.permute.xlu1 %2685 }
 0x72a   :  { %v2705_v13 = vsel %vm227_vm1, %v10845_v34, %v10833_v3 }
 0x72b   :  { %v2709_v30 = vmul.f32 %v2705_v13, %v16645_v28 }
 0x72e   :  { %2571 = vrot.lane.b32.xlu0 %v10847_v48, %s8468_s11  ;;  %2449 = vrot.lane.b32.xlu2 %v10816_v63, %s8470_s13 }
 0x72f   :  { %2529 = vrot.lane.b32.xlu1 %v10816_v63, %s8469_s12 }
 0x730   :  { %v10855_v44 = vpop.permute.xlu0 %2725  ;;  %v10857_v60 = vpop.permute.xlu2 %2609 }
 0x731   :  { %v10859_v54 = vpop.permute.xlu1 %2645 }
 0x732   :  { %v2665_v15 = vsel %vm202_vm2, %v10859_v54, %v10843_v26 }
 0x736   :  { %2531 = vrot.lane.b32.xlu0 %v10847_v48, %s8469_s12  ;;  %2491 = vrot.lane.b32.xlu2 %v10847_v48, %s8463_s19 }
 0x737   :  { %2657 = vrot.lane.b32.xlu1 %v10816_v63, %s8466_s27 }
 0x738   :  { %v10867_v12 = vpop.permute.xlu0 %2479  ;;  %v10869_v49 = vpop.permute.xlu2 %2561 }
 0x739   :  { %v10871_v56 = vpop.permute.xlu1 %2605 }
 0x73e   :  { %2659 = vrot.lane.b32.xlu0 %v10847_v48, %s8466_s27  ;;  %2619 = vrot.lane.b32.xlu2 %v10847_v48, %s8467_s28 }
 0x73f   :  { %2699 = vrot.lane.b32.xlu1 %v10847_v48, %s8465_s26 }
 0x740   :  { %v10879_v39 = vpop.permute.xlu0 %2693  ;;  %v10881_v46 = vpop.permute.xlu2 %2481 }
 0x741   :  { %16644 = vst [vmem:[#allocation48_spill] sm:$0xff] %v10881_v46  ;;  %v10883_v53 = vpop.permute.xlu1 %2557  ;;  %v2703_v42 = vsel %vm227_vm1, %v10833_v3, %v10879_v39 }
 0x746   :  { %2527 = vrot.lane.b32.xlu0 %v10781_v40, %s8469_s12  ;;  %2565 = vrot.lane.b32.xlu2 %v10751_v62, %s8468_s11 }
 0x747   :  { %2451 = vrot.lane.b32.xlu1 %v10847_v48, %s8470_s13 }
 0x748   :  { %v10891_v20 = vpop.permute.xlu0 %2653  ;;  %v2692_v19 = vpop.permute.xlu2 %2691 }
 0x749   :  { %v10893_v29 = vpop.permute.xlu1 %2477 }
 0x74e   :  { %2739 = vrot.lane.b32.xlu0 %v10847_v48, %s8464_s25  ;;  %2487 = vrot.lane.b32.xlu2 %v10781_v40, %s8463_s19 }
 0x74f   :  { %2525 = vrot.lane.b32.xlu1 %v10751_v62, %s8469_s12 }
 0x750   :  { %v10901_v5 = vpop.permute.xlu0 %2613  ;;  %v2652_v33 = vpop.permute.xlu2 %2651 }
 0x751   :  { %v10903_v24 = vpop.permute.xlu1 %2687 }
 0x752   :  { %v2706_v41 = vsel %vm227_vm1, %v10903_v24, %v2692_v19 }
 0x753   :  { %v2713_v45 = vmul.f32 %v2706_v41, %v16645_v28  ;;  %v16646_v41 = vld [vmem:[#allocation18_spill] sm:$0xff]  ;;  %v8318_v28 = vld [vmem:[%s16147_s5 + $0x38] sm:$0xff] }
 0x754   :  { %v2669_v21 = vmul.f32 %v2665_v15, %v16646_v41 }
 0x755   :  { %2853 = vmatpush.msrb.mxu3 %v2713_v45 }
 0x756   :  { %2447 = vrot.lane.b32.xlu0 %v10781_v40, %s8470_s13  ;;  %2737 = vrot.lane.b32.xlu2 %v10816_v63, %s8464_s25 }
 0x757   :  { %2485 = vrot.lane.b32.xlu1 %v10751_v62, %s8463_s19  ;;  %2854 = vmatpush.msrb.mxu3 %v2709_v30  ;;  %v8317_v30 = vld [vmem:[%s16147_s5 + $0x30] sm:$0xff] }
 0x758   :  { %v10920_v61 = vpop.permute.xlu0 %2521  ;;  %v2612_v9 = vpop.permute.xlu2 %2611 }
 0x759   :  { %v10922_v50 = vpop.permute.xlu1 %2647 }
 0x75a   :  { %v2666_v13 = vsel %vm202_vm2, %v10922_v50, %v2652_v33 }
 0x75b   :  { %v2673_v45 = vmul.f32 %v2666_v13, %v16646_v41 }
 0x75d   :  { %2855 = vmatpush.msrb.mxu3 %v2673_v45 }
 0x75e   :  { %2839 = vperm.xlu0 %8429, %v8317_v30   ;;  %2844 = vperm.xlu2 %8428, %v8318_v28   ;;  %v16647_v28 = vld [vmem:[#allocation17_spill] sm:$0xff] }
 0x75f   :  { %2445 = vrot.lane.b32.xlu1 %v10751_v62, %s8470_s13  ;;  %2856 = vmatpush.msrb.mxu3 %v2669_v21  ;;  %v2625_v21 = vsel %vm177_vm3, %v10871_v56, %v10857_v60  ;;  %v2710_v3 = vmul.f32 %v2703_v42, %v16647_v28 }
 0x760   :  { %v10941_v32 = vpop.permute.xlu0 %2695  ;;  %v10943_v13 = vpop.permute.xlu2 %2563 }
 0x761   :  { %v2704_v45 = vsel %vm227_vm1, %v2692_v19, %v10941_v32  ;;  %v10952_v15 = vpop.permute.xlu1 %2607  ;;  %v2629_v19 = vmul.f32 %v2625_v21, %v16648_v0 }
 0x762   :  { %v2714_v30 = vmul.f32 %v2704_v45, %v16647_v28  ;;  %v2626_v41 = vsel %vm177_vm3, %v10952_v15, %v2612_v9  ;;  %v2663_v45 = vsel %vm202_vm2, %v10843_v26, %v10891_v20  ;;  %v2623_v26 = vsel %vm177_vm3, %v10857_v60, %v10901_v5 }
 0x763   :  { %v2633_v8 = vmul.f32 %v2626_v41, %v16648_v0  ;;  %v2670_v21 = vmul.f32 %v2663_v45, %v16617_v2 }
 0x764   :  { %2899 = vmatpush.msra.mxu2 %v2714_v30 }
 0x765   :  { %2857 = vmatpush.msrb.mxu3 %v2633_v8 }
 0x766   :  { %2900 = vmatpush.msra.mxu2 %v2710_v3 }
 0x767   :  { %2858 = vmatpush.msrb.mxu3 %v2629_v19  ;;  %v2630_v19 = vmul.f32 %v2623_v26, %v16618_v17 }
 0x768   :  { %v10965_v25 = vpop.permute.xlu0 %2655  ;;  %v10967_v18 = vpop.permute.xlu2 %2523 }
 0x769   :  { %v2664_v41 = vsel %vm202_vm2, %v2652_v33, %v10965_v25  ;;  %2859 = vmatpush.msrb.mxu3 %v10733_v47  ;;  %v10977_v8 = vpop.permute.xlu1 %2559 }
 0x76a   :  { %v2674_v42 = vmul.f32 %v2664_v41, %v16617_v2  ;;  %v2578_v45 = vsel %vm148_vm4, %v10977_v8, %v10943_v13 }
 0x76b   :  { %2860 = vmatpush.msrb.mxu3 %v10724_v27 }
 0x76c   :  { %2901 = vmatpush.msra.mxu2 %v2674_v42 }
 0x76e   :  { %2902 = vmatpush.msra.mxu2 %v2670_v21 }
 0x770   :  { %v10982_v30 = vpop.permute.xlu0 %2615  ;;  %v2732_v3 = vpop.permute.xlu2 %2731 }
 0x771   :  { %v2624_v47 = vsel %vm177_vm3, %v2612_v9, %v10982_v30  ;;  %v10991_v33 = vpop.permute.xlu1 %2519  ;;  %v2577_v9 = vsel %vm148_vm4, %v10883_v53, %v10869_v49 }
 0x772   :  { %v2634_v27 = vmul.f32 %v2624_v47, %v16618_v17  ;;  %v2582_v2 = vmul.f32 %v2577_v9, %v16619_v35 }
 0x774   :  { %2903 = vmatpush.msra.mxu2 %v2634_v27  ;;  %v2538_v27 = vsel %vm123_vm5, %v10991_v33, %v10967_v18 }
 0x776   :  { %2904 = vmatpush.msra.mxu2 %v2630_v19  ;;  %v16649_v19 = vld [vmem:[#allocation14_spill] sm:$0xff] }
 0x778   :  { %v10999_v41 = vpop.permute.xlu0 %2443  ;;  %2905 = vmatpush.msra.mxu2 %v10779_v23  ;;  %v11002_v60 = vpop.permute.xlu2 %2735  ;;  %v2586_v23 = vmul.f32 %v2578_v45, %v16619_v35 }
 0x779   :  { %v2744_v42 = vsel %vm252_vm0, %v2732_v3, %v11002_v60  ;;  %v11011_v21 = vpop.permute.xlu1 %2727 }
 0x77a   :  { %v2754_v26 = vmul.f32 %v2744_v42, %v16623_v14  ;;  %v2746_v47 = vsel %vm252_vm0, %v11011_v21, %v2732_v3  ;;  %2906 = vmatpush.msra.mxu2 %v10742_v57  ;;  %v2537_v3 = vsel %vm123_vm5, %v10814_v22, %v10920_v61  ;;  %v2546_v57 = vmul.f32 %v2538_v27, %v16620_v38  ;;  %v11045_v27 = vld [vmem:[#allocation3 + $0x68] sm:$0xff] }
 0x77b   :  { %v2753_v17 = vmul.f32 %v2746_v47, %v16649_v19  ;;  %v2542_v42 = vmul.f32 %v2537_v3, %v16620_v38  ;;  %16651 = vst [vmem:[#allocation44_spill] sm:$0xff] %v11045_v27 }
 0x77c   :  { %2907 = vmatpush.msra.mxu2 %v2586_v23  ;;  %2936 = vmatpush.msrb.mxu0 %v2754_v26 }
 0x77d   :  { %2890 = vmatpush.msra.mxu1 %v2753_v17 }
 0x77e   :  { %2908 = vmatpush.msra.mxu2 %v2582_v2 }
 0x780   :  { %v11030_v45 = vpop.permute.xlu0 %2567  ;;  %2909 = vmatpush.msra.mxu2 %v2546_v57  ;;  %v11035_v47 = vpop.permute.xlu2 %2697 }
 0x781   :  { %v11033_v28 = vpop.permute.xlu1 %2441 }
 0x782   :  { %16650 = vst [vmem:[#allocation40_spill] sm:$0xff] %v11033_v28  ;;  %2910 = vmatpush.msra.mxu2 %v2542_v42 }
 0x788   :  { %v11037_v9 = vpop.permute.xlu0 %2569  ;;  %v11043_v23 = vpop.permute.xlu2 %2449 }
 0x789   :  { %v2730_v26 = vpop.permute.xlu1 %2729 }
 0x78a   :  { %v2745_v17 = vsel %vm252_vm0, %v10855_v44, %v2730_v26 }
 0x78b   :  { %v2749_v2 = vmul.f32 %v2745_v17, %v16649_v19  ;;  %v11057_v17 = vld [vmem:[#allocation3 + $0x78] sm:$0xff] }
 0x78c   :  { %16652 = vst [vmem:[#allocation47_spill] sm:$0xff] %v11057_v17 }
 0x78d   :  { %2891 = vmatpush.msra.mxu1 %v2749_v2 }
 0x78e   :  { %8319 = vmatmul.msk.f32.vlgmr.msra.gmra.mxu1 %vm846_vm9, %v11045_v27 }
 0x790   :  { %v11049_v3 = vpop.permute.xlu0 %2489  ;;  %v11059_v35 = vpop.permute.xlu2 %2491 }
 0x791   :  { %v11051_v57 = vpop.permute.xlu1 %2733 }
 0x792   :  { %v2743_v42 = vsel %vm252_vm0, %v2730_v26, %v11051_v57  ;;  %v2497_v26 = vsel %vm98_vm6, %v10893_v29, %v10881_v46  ;;  %v2457_v46 = vsel %vm73_vm7, %v10841_v10, %v11033_v28  ;;  %v11103_v28 = vld [vmem:[#allocation3 + $0x60] sm:$0xff] }
 0x793   :  { %v2750_v38 = vmul.f32 %v2743_v42, %v16623_v14  ;;  %v2458_v14 = vsel %vm73_vm7, %v10824_v11, %v10999_v41  ;;  %v2502_v0 = vmul.f32 %v2497_v26, %v16621_v36 }
 0x795   :  { %2937 = vmatpush.msrb.mxu0 %v2750_v38 }
 0x796   :  { %8321 = vmatmul.msk.f32.vlgmr.msrb.gmra.mxu0 %vm846_vm9, %v11045_v27  ;;  %8320 = vmatmul.msk.f32.gmra.mxu1 %vm846_vm9, %v11057_v17  ;;  %v2466_v27 = vmul.f32 %v2458_v14, %v8869_v51 }
 0x798   :  { %v11065_v2 = vpop.permute.xlu0 %2617 }
 0x799   :  { %v11067_v19 = vpop.permute.xlu1 %2483 }
 0x79a   :  { %16653 = vst [vmem:[#allocation41_spill] sm:$0xff] %v11067_v19  ;;  %v2498_v38 = vsel %vm98_vm6, %v10867_v12, %v11067_v19 }
 0x79b   :  { %v2506_v42 = vmul.f32 %v2498_v38, %v16621_v36  ;;  %v2620_v38 = vpop.permute.xlu2 %2619 }
 0x79d   :  { %2911 = vmatpush.msra.mxu2 %v2506_v42  ;;  %v2579_v42 = vsel %vm148_vm4, %v11037_v9, %v10883_v53 }
 0x79e   :  { %8322 = vmatmul.msk.f32.gmra.mxu0 %vm846_vm9, %v11057_v17  ;;  %v2581_v53 = vmul.f32 %v2579_v42, %v8822_v4 }
 0x79f   :  { %2912 = vmatpush.msra.mxu2 %v2502_v0  ;;  %v2462_v0 = vmul.f32 %v2457_v46, %v8869_v51 }
 0x7a0   :  { %v11090_v19 = vpop.permute.xlu0 %2571 }
 0x7a1   :  { %v2580_v26 = vsel %vm148_vm4, %v11090_v19, %v10977_v8  ;;  %2913 = vmatpush.msra.mxu2 %v2466_v27  ;;  %v11100_v36 = vpop.permute.xlu1 %2529 }
 0x7a2   :  { %v2585_v14 = vmul.f32 %v2580_v26, %v8822_v4  ;;  %v2539_v8 = vsel %vm123_vm5, %v11100_v36, %v10814_v22  ;;  %v11118_v26 = vld [vmem:[#allocation3 + $0x70] sm:$0xff] }
 0x7a3   :  { %2914 = vmatpush.msra.mxu2 %v2462_v0  ;;  %v11120_v0 = vpop.permute.xlu2 %2565  ;;  %v2541_v22 = vmul.f32 %v2539_v8, %v16549_v59  ;;  %v2707_v8 = vsel %vm227_vm1, %v11035_v47, %v10845_v34 }
 0x7a4   :  { %2915 = vmatmul.f32.vlgmr.msra.gmra.mxu2 %v11103_v28  ;;  %2861 = vmatpush.msrb.mxu3 %v2585_v14  ;;  %v2500_v14 = vsel %vm98_vm6, %v11059_v35, %v10867_v12  ;;  %v2701_v12 = vsel %vm227_vm1, %v10879_v39, %v11035_v47 }
 0x7a6   :  { %2862 = vmatpush.msrb.mxu3 %v2581_v53  ;;  %v2505_v53 = vmul.f32 %v2500_v14, %v16550_v55  ;;  %v16654_v14 = vld [vmem:[#allocation9_spill] sm:$0xff] }
 0x7a8   :  { %v11108_v17 = vpop.permute.xlu0 %2531 }
 0x7a9   :  { %v2540_v46 = vsel %vm123_vm5, %v11108_v17, %v10991_v33  ;;  %v2658_v27 = vpop.permute.xlu1 %2657  ;;  %v2499_v33 = vsel %vm98_vm6, %v11049_v3, %v10893_v29 }
 0x7aa   :  { %v2545_v42 = vmul.f32 %v2540_v46, %v16549_v59  ;;  %v2501_v46 = vmul.f32 %v2499_v33, %v16550_v55  ;;  %v2667_v47 = vsel %vm202_vm2, %v2658_v27, %v10859_v54 }
 0x7ac   :  { %2918 = vmatmul.f32.gmra.mxu2 %v11118_v26  ;;  %2863 = vmatpush.msrb.mxu3 %v2545_v42 }
 0x7ae   :  { %2864 = vmatpush.msrb.mxu3 %v2541_v22 }
 0x7b0   :  { %v2660_v51 = vpop.permute.xlu0 %2659  ;;  %2865 = vmatpush.msrb.mxu3 %v2505_v53  ;;  %v11151_v53 = vpop.permute.xlu2 %2487 }
 0x7b1   :  { %v2700_v4 = vpop.permute.xlu1 %2699  ;;  %v2662_v39 = vsel %vm202_vm2, %v10965_v25, %v2660_v51  ;;  %v2668_v34 = vsel %vm202_vm2, %v2660_v51, %v10922_v50  ;;  %v16655_v25 = vld [vmem:[#allocation10_spill] sm:$0xff]  ;;  %v2622_v50 = vsel %vm177_vm3, %v10982_v30, %v2620_v38  ;;  %v2621_v30 = vsel %vm177_vm3, %v10901_v5, %v11065_v2 }
 0x7b2   :  { %v2702_v29 = vsel %vm227_vm1, %v10941_v32, %v2700_v4  ;;  %v2708_v42 = vsel %vm227_vm1, %v2700_v4, %v10903_v24  ;;  %2866 = vmatpush.msrb.mxu3 %v2501_v46  ;;  %v2711_v32 = vmul.f32 %v2701_v12, %v16654_v14  ;;  %v2712_v4 = vmul.f32 %v2707_v8, %v16630_v31 }
 0x7b3   :  { %v2715_v22 = vmul.f32 %v2702_v29, %v16654_v14  ;;  %v2716_v33 = vmul.f32 %v2708_v42, %v16630_v31  ;;  %v2661_v24 = vsel %vm202_vm2, %v10891_v20, %v2658_v27  ;;  %v2675_v46 = vmul.f32 %v2662_v39, %v16655_v25 }
 0x7b4   :  { %v2676_v51 = vmul.f32 %v2668_v34, %v16634_v16  ;;  %v2628_v8 = vsel %vm177_vm3, %v2620_v38, %v10952_v15  ;;  %v2671_v54 = vmul.f32 %v2661_v24, %v16655_v25  ;;  %v2672_v27 = vmul.f32 %v2667_v47, %v16634_v16 }
 0x7b5   :  { %2945 = vmatpush.msrb.mxu1 %v2715_v22  ;;  %2991 = vmatpush.msra.mxu0 %v2716_v33  ;;  %v2459_v29 = vsel %vm73_vm7, %v11043_v23, %v10841_v10  ;;  %v2627_v38 = vsel %vm177_vm3, %v11065_v2, %v10871_v56  ;;  %v2635_v10 = vmul.f32 %v2622_v50, %v8672_v37  ;;  %v16658_v50 = vld [vmem:[#allocation41_spill] sm:$0xff] }
 0x7b6   :  { %v2636_v22 = vmul.f32 %v2628_v8, %v16637_v58  ;;  %v2461_v5 = vmul.f32 %v2459_v29, %v16552_v1  ;;  %v2631_v33 = vmul.f32 %v2621_v30, %v8672_v37  ;;  %v2632_v39 = vmul.f32 %v2627_v38, %v16637_v58  ;;  %v16660_v30 = vld [vmem:[#allocation44_spill] sm:$0xff] }
 0x7b7   :  { %2946 = vmatpush.msrb.mxu1 %v2711_v32  ;;  %2992 = vmatpush.msra.mxu0 %v2712_v4  ;;  %v2576_v56 = vsel %vm148_vm4, %v10943_v13, %v11030_v45  ;;  %v2574_v34 = vsel %vm148_vm4, %v11030_v45, %v11090_v19  ;;  %v2575_v19 = vsel %vm148_vm4, %v10869_v49, %v11120_v0 }
 0x7b8   :  { %v2528_v12 = vpop.permute.xlu0 %2527 }
 0x7b9   :  { %2947 = vmatpush.msrb.mxu1 %v2675_v46  ;;  %2993 = vmatpush.msra.mxu0 %v2676_v51  ;;  %v11175_v20 = vpop.permute.xlu1 %2451  ;;  %v2536_v49 = vsel %vm123_vm5, %v10967_v18, %v2528_v12  ;;  %v2534_v46 = vsel %vm123_vm5, %v2528_v12, %v11108_v17  ;;  %v16657_v17 = vld [vmem:[#allocation23_spill] sm:$0xff]  ;;  %v2496_v12 = vsel %vm98_vm6, %v16658_v50, %v11151_v53 }
 0x7ba   :  { %v2460_v15 = vsel %vm73_vm7, %v11175_v20, %v10824_v11  ;;  %v2738_v11 = vpop.permute.xlu2 %2737  ;;  %v2547_v51 = vmul.f32 %v2536_v49, %v16657_v17 }
 0x7bb   :  { %2948 = vmatpush.msrb.mxu1 %v2671_v54  ;;  %2994 = vmatpush.msra.mxu0 %v2672_v27  ;;  %v2465_v42 = vmul.f32 %v2460_v15, %v16552_v1  ;;  %v2741_v32 = vsel %vm252_vm0, %v11051_v57, %v2738_v11  ;;  %v2747_v45 = vsel %vm252_vm0, %v2738_v11, %v10855_v44  ;;  %v16656_v44 = vld [vmem:[#allocation21_spill] sm:$0xff]  ;;  %v16661_v15 = vld [vmem:[#allocation48_spill] sm:$0xff] }
 0x7bc   :  { %v2588_v47 = vmul.f32 %v2574_v34, %v16656_v44  ;;  %v2494_v54 = vsel %vm98_vm6, %v11151_v53, %v11059_v35  ;;  %v16662_v35 = vld [vmem:[#allocation24_spill] sm:$0xff]  ;;  %v16665_v34 = vld [vmem:[#allocation31_spill] sm:$0xff] }
 0x7bd   :  { %2867 = vmatpush.msrb.mxu3 %v2465_v42  ;;  %2949 = vmatpush.msrb.mxu1 %v2635_v10  ;;  %v2507_v53 = vmul.f32 %v2496_v12, %v16662_v35 }
 0x7be   :  { %2995 = vmatpush.msra.mxu0 %v2636_v22 }
 0x7bf   :  { %2868 = vmatpush.msrb.mxu3 %v2461_v5  ;;  %2950 = vmatpush.msrb.mxu1 %v2631_v33  ;;  %v16663_v5 = vld [vmem:[#allocation28_spill] sm:$0xff] }
 0x7c0   :  { %2996 = vmatpush.msra.mxu0 %v2632_v39  ;;  %2869 = vmatmul.f32.vlgmr.msrb.gmra.mxu3 %v11103_v28  ;;  %v2740_v2 = vpop.permute.xlu0 %2739  ;;  %v2508_v33 = vmul.f32 %v2494_v54, %v16663_v5 }
 0x7c1   :  { %v2742_v4 = vsel %vm252_vm0, %v11002_v60, %v2740_v2  ;;  %v2748_v13 = vsel %vm252_vm0, %v2740_v2, %v11011_v21  ;;  %2951 = vmatpush.msrb.mxu1 %v10781_v40  ;;  %v2526_v24 = vpop.permute.xlu1 %2525  ;;  %v2573_v40 = vsel %vm148_vm4, %v11120_v0, %v11037_v9  ;;  %v2587_v21 = vmul.f32 %v2576_v56, %v8741_v6  ;;  %v16664_v56 = vld [vmem:[#allocation27_spill] sm:$0xff] }
 0x7c2   :  { %v2755_v57 = vmul.f32 %v2742_v4, %v16624_v43  ;;  %v2756_v60 = vmul.f32 %v2748_v13, %v16543_v52  ;;  %2997 = vmatpush.msra.mxu0 %v10847_v48  ;;  %v2751_v48 = vmul.f32 %v2741_v32, %v16624_v43  ;;  %v2752_v9 = vmul.f32 %v2747_v45, %v16543_v52  ;;  %v16666_v4 = vld [vmem:[#allocation47_spill] sm:$0xff]  ;;  %v16667_v13 = vld [vmem:[#allocation40_spill] sm:$0xff] }
 0x7c3   :  { %2952 = vmatpush.msrb.mxu1 %v10751_v62  ;;  %v2583_v62 = vmul.f32 %v2575_v19, %v8741_v6  ;;  %v2535_v18 = vsel %vm123_vm5, %v10920_v61, %v2526_v24  ;;  %v2533_v0 = vsel %vm123_vm5, %v2526_v24, %v11100_v36  ;;  %v16659_v61 = vld [vmem:[#allocation22_spill] sm:$0xff] }
 0x7c4   :  { %2998 = vmatpush.msra.mxu0 %v10816_v63  ;;  %2982 = vmatpush.msra.mxu3 %v2755_v57  ;;  %v2584_v63 = vmul.f32 %v2573_v40, %v16656_v44  ;;  %v2548_v8 = vmul.f32 %v2534_v46, %v16659_v61  ;;  %v2543_v29 = vmul.f32 %v2535_v18, %v16657_v17 }
 0x7c5   :  { %2953 = vmatpush.msrb.mxu1 %v2587_v21  ;;  %3028 = vmatpush.msrb.mxu2 %v2756_v60  ;;  %v2544_v42 = vmul.f32 %v2533_v0, %v16659_v61 }
 0x7c6   :  { %2999 = vmatpush.msra.mxu0 %v2588_v47  ;;  %2983 = vmatpush.msra.mxu3 %v2751_v48 }
 0x7c7   :  { %2954 = vmatpush.msrb.mxu1 %v2583_v62  ;;  %3029 = vmatpush.msrb.mxu2 %v2752_v9 }
 0x7c8   :  { %3000 = vmatpush.msra.mxu0 %v2584_v63  ;;  %2872 = vmatmul.f32.gmra.mxu3 %v11118_v26  ;;  %v2448_v36 = vpop.permute.xlu0 %2447  ;;  %v11323_v63 = vpop.permute.xlu2 %2844 }
 0x7c9   :  { %2955 = vmatpush.msrb.mxu1 %v2547_v51  ;;  %v2486_v27 = vpop.permute.xlu1 %2485  ;;  %8325 = vmatmul.msk.f32.vlgmr.msrb.gmra.mxu2 %vm846_vm9, %v16660_v30  ;;  %v2456_v22 = vsel %vm73_vm7, %v10999_v41, %v2448_v36  ;;  %v2454_v11 = vsel %vm73_vm7, %v2448_v36, %v11175_v20 }
 0x7ca   :  { %3001 = vmatpush.msra.mxu0 %v2548_v8  ;;  %v2495_v38 = vsel %vm98_vm6, %v16661_v15, %v2486_v27  ;;  %v2493_v10 = vsel %vm98_vm6, %v2486_v27, %v11049_v3  ;;  %v2467_v2 = vmul.f32 %v2456_v22, %v16664_v56  ;;  %v2468_v32 = vmul.f32 %v2454_v11, %v16665_v34 }
 0x7cb   :  { %2956 = vmatpush.msrb.mxu1 %v2543_v29  ;;  %v2503_v39 = vmul.f32 %v2495_v38, %v16662_v35  ;;  %v2504_v3 = vmul.f32 %v2493_v10, %v16663_v5 }
 0x7cc   :  { %3002 = vmatpush.msra.mxu0 %v2544_v42 }
 0x7cd   :  { %2957 = vmatpush.msrb.mxu1 %v2507_v53 }
 0x7ce   :  { %3003 = vmatpush.msra.mxu0 %v2508_v33 }
 0x7cf   :  { %2958 = vmatpush.msrb.mxu1 %v2503_v39 }
 0x7d0   :  { %3004 = vmatpush.msra.mxu0 %v2504_v3  ;;  %8323 = vmatmul.msk.f32.vlgmr.msra.gmra.mxu3 %vm846_vm9, %v16660_v30 }
 0x7d1   :  { %2959 = vmatpush.msrb.mxu1 %v2467_v2  ;;  %v2446_v41 = vpop.permute.xlu1 %2445  ;;  %8326 = vmatmul.msk.f32.gmra.mxu2 %vm846_vm9, %v16666_v4 }
 0x7d2   :  { %3005 = vmatpush.msra.mxu0 %v2468_v32  ;;  %v2453_v20 = vsel %vm73_vm7, %v2446_v41, %v11043_v23  ;;  %v2455_v24 = vsel %vm73_vm7, %v16667_v13, %v2446_v41  ;;  %v2840_v23 = vpop.permute.xlu0 %2839 }
 0x7d3   :  { %v2463_v19 = vmul.f32 %v2455_v24, %v16664_v56  ;;  %v2464_v45 = vmul.f32 %v2453_v20, %v16665_v34 }
 0x7d5   :  { %2960 = vmatpush.msrb.mxu1 %v2463_v19  ;;  %3006 = vmatpush.msra.mxu0 %v2464_v45 }
 0x7d6   :  { %2961 = vmatmul.f32.vlgmr.msrb.gmra.mxu1 %v11103_v28  ;;  %3007 = vmatmul.f32.vlgmr.msra.gmra.mxu0 %v11103_v28 }
 0x7d8   :  { %8324 = vmatmul.msk.f32.gmra.mxu3 %vm846_vm9, %v16666_v4 }
 0x7de   :  { %2964 = vmatmul.f32.gmra.mxu1 %v11118_v26  ;;  %3010 = vmatmul.f32.gmra.mxu0 %v11118_v26 }
 0x80b   :  { %v2893_v46 = vpop.f32.mrf.mxu1 }
 0x813   :  { %v2939_v60 = vpop.f32.mrf.mxu0  ;;  %v2896_v51 = vpop.f32.mrf.mxu1 }
 0x81b   :  { %v2942_v36 = vpop.f32.mrf.mxu0 }
 0x827   :  { %v2916_v57 = vpop.f32.mrf.mxu2 }
 0x828   :  { %v2917_v40 = vadd.f32 %v2916_v57, %v2840_v23 }
 0x82a   :  { %v2940_v21 = vadd.f32 %v2939_v60, %v2917_v40 }
 0x82c   :  { %v3038_v49 = vmul.f32 0.2, %v2940_v21 }
 0x82e   :  { %v11305_v47 = vmax.f32 %v2940_v21, %v3038_v49 }
 0x82f   :  { %v2919_v12 = vpop.f32.mrf.mxu2 }
 0x830   :  { %3273 = vrot.lane.b32.xlu2 %v11305_v47, %s8466_s27  ;;  %3313 = vrot.lane.b32.xlu1 %v11305_v47, %s8465_s26  ;;  %v2920_v8 = vadd.f32 %v2919_v12, %v11323_v63 }
 0x832   :  { %v2943_v27 = vadd.f32 %v2942_v36, %v2920_v8 }
 0x834   :  { %v3042_v30 = vmul.f32 0.2, %v2943_v27 }
 0x836   :  { %v11343_v15 = vmax.f32 %v2943_v27, %v3042_v30 }
 0x843   :  { %v2870_v28 = vpop.f32.mrf.mxu3 }
 0x844   :  { %v2871_v48 = vadd.f32 %v2870_v28, %v2840_v23 }
 0x846   :  { %v2894_v62 = vadd.f32 %v2893_v46, %v2871_v48 }
 0x848   :  { %v3037_v9 = vmul.f32 0.2, %v2894_v62 }
 0x84a   :  { %v11311_v26 = vmax.f32 %v2894_v62, %v3037_v9 }
 0x84b   :  { %v2873_v18 = vpop.f32.mrf.mxu3 }
 0x84c   :  { %3229 = vrot.lane.b32.xlu2 %v11311_v26, %s8467_s28  ;;  %3269 = vrot.lane.b32.xlu1 %v11311_v26, %s8466_s27  ;;  %v2874_v0 = vadd.f32 %v2873_v18, %v11323_v63  ;;  %v3031_v39 = vpop.f32.mrf.mxu2 }
 0x84d   :  { %3309 = vrot.lane.b32.xlu0 %v11311_v26, %s8465_s26 }
 0x84e   :  { %v2897_v50 = vadd.f32 %v2896_v51, %v2874_v0 }
 0x850   :  { %v3041_v54 = vmul.f32 0.2, %v2897_v50 }
 0x852   :  { %v11335_v29 = vmax.f32 %v2897_v50, %v3041_v54 }
 0x853   :  { %v2962_v38 = vpop.f32.mrf.mxu1  ;;  %v2985_v10 = vpop.f32.mrf.mxu3 }
 0x854   :  { %3181 = vrot.lane.b32.xlu2 %v11311_v26, %s8468_s11  ;;  %3349 = vrot.lane.b32.xlu1 %v11311_v26, %s8464_s25  ;;  %v2963_v42 = vadd.f32 %v2962_v38, %v2840_v23  ;;  %v3008_v22 = vpop.f32.mrf.mxu0  ;;  %v3034_v21 = vpop.f32.mrf.mxu2 }
 0x855   :  { %3233 = vrot.lane.b32.xlu0 %v11305_v47, %s8467_s28  ;;  %v3009_v11 = vadd.f32 %v3008_v22, %v2840_v23 }
 0x856   :  { %v2986_v53 = vadd.f32 %v2985_v10, %v2963_v42 }
 0x857   :  { %v3032_v2 = vadd.f32 %v3031_v39, %v3009_v11 }
 0x858   :  { %v3039_v33 = vmul.f32 0.2, %v2986_v53 }
 0x859   :  { %v3040_v32 = vmul.f32 0.2, %v3032_v2 }
 0x85a   :  { %v11369_v3 = vmax.f32 %v2986_v53, %v3039_v33  ;;  %v16673_v53 = vld [vmem:[#allocation16_spill] sm:$0xff] }
 0x85b   :  { %v11377_v41 = vmax.f32 %v3032_v2, %v3040_v32  ;;  %v2965_v20 = vpop.f32.mrf.mxu1  ;;  %v2988_v19 = vpop.f32.mrf.mxu3 }
 0x85c   :  { %3101 = vrot.lane.b32.xlu2 %v11311_v26, %s8463_s19  ;;  %3105 = vrot.lane.b32.xlu1 %v11305_v47, %s8463_s19  ;;  %v2966_v13 = vadd.f32 %v2965_v20, %v11323_v63  ;;  %v3011_v23 = vpop.f32.mrf.mxu0 }
 0x85d   :  { %3141 = vrot.lane.b32.xlu0 %v11311_v26, %s8469_s12  ;;  %16668 = vst [vmem:[#allocation38_spill] sm:$0xff] %v11377_v41  ;;  %v3012_v57 = vadd.f32 %v3011_v23, %v11323_v63  ;;  %v16675_v23 = vld [vmem:[#allocation18_spill] sm:$0xff] }
 0x85e   :  { %v2989_v45 = vadd.f32 %v2988_v19, %v2966_v13 }
 0x85f   :  { %v3035_v28 = vadd.f32 %v3034_v21, %v3012_v57 }
 0x860   :  { %v3043_v60 = vmul.f32 0.2, %v2989_v45 }
 0x861   :  { %v3044_v48 = vmul.f32 0.2, %v3035_v28 }
 0x862   :  { %v11411_v49 = vmax.f32 %v2989_v45, %v3043_v60  ;;  %v8328_v60 = vld [vmem:[%s16147_s5 + $0x48] sm:$0xff] }
 0x863   :  { %v11423_v9 = vmax.f32 %v3035_v28, %v3044_v48 }
 0x864   :  { %3061 = vrot.lane.b32.xlu2 %v11311_v26, %s8470_s13  ;;  %3311 = vrot.lane.b32.xlu1 %v11335_v29, %s8465_s26 }
 0x865   :  { %3185 = vrot.lane.b32.xlu0 %v11305_v47, %s8468_s11  ;;  %16670 = vst [vmem:[#allocation43_spill] sm:$0xff] %v11423_v9 }
 0x86c   :  { %3353 = vrot.lane.b32.xlu2 %v11305_v47, %s8464_s25  ;;  %3235 = vrot.lane.b32.xlu1 %v11343_v15, %s8467_s28 }
 0x86d   :  { %3145 = vrot.lane.b32.xlu0 %v11305_v47, %s8469_s12 }
 0x874   :  { %3065 = vrot.lane.b32.xlu2 %v11305_v47, %s8470_s13  ;;  %3103 = vrot.lane.b32.xlu1 %v11335_v29, %s8463_s19 }
 0x875   :  { %3275 = vrot.lane.b32.xlu0 %v11343_v15, %s8466_s27 }
 0x87c   :  { %3315 = vrot.lane.b32.xlu2 %v11343_v15, %s8465_s26  ;;  %3187 = vrot.lane.b32.xlu1 %v11343_v15, %s8468_s11 }
 0x87d   :  { %3231 = vrot.lane.b32.xlu0 %v11335_v29, %s8467_s28 }
 0x884   :  { %3271 = vrot.lane.b32.xlu2 %v11335_v29, %s8466_s27  ;;  %3351 = vrot.lane.b32.xlu1 %v11335_v29, %s8464_s25 }
 0x885   :  { %3147 = vrot.lane.b32.xlu0 %v11343_v15, %s8469_s12 }
 0x88a   :  { %v11391_v4 = vpop.permute.xlu2 %3273 }
 0x88c   :  { %3183 = vrot.lane.b32.xlu2 %v11335_v29, %s8468_s11  ;;  %3317 = vrot.lane.b32.xlu1 %v11369_v3, %s8465_s26 }
 0x88d   :  { %3067 = vrot.lane.b32.xlu0 %v11343_v15, %s8470_s13 }
 0x894   :  { %3143 = vrot.lane.b32.xlu2 %v11335_v29, %s8469_s12  ;;  %3277 = vrot.lane.b32.xlu1 %v11369_v3, %s8466_s27 }
 0x895   :  { %3193 = vrot.lane.b32.xlu0 %v11377_v41, %s8468_s11 }
 0x89c   :  { %3063 = vrot.lane.b32.xlu2 %v11335_v29, %s8470_s13  ;;  %3153 = vrot.lane.b32.xlu1 %v11377_v41, %s8469_s12 }
 0x89d   :  { %3321 = vrot.lane.b32.xlu0 %v11377_v41, %s8465_s26 }
 0x8a2   :  { %v11419_v46 = vpop.permute.xlu1 %3313 }
 0x8a4   :  { %3355 = vrot.lane.b32.xlu2 %v11343_v15, %s8464_s25  ;;  %3281 = vrot.lane.b32.xlu1 %v11377_v41, %s8466_s27 }
 0x8a5   :  { %3237 = vrot.lane.b32.xlu0 %v11369_v3, %s8467_s28 }
 0x8a6   :  { %v11400_v24 = vpop.permute.xlu2 %3229 }
 0x8a7   :  { %16669 = vst [vmem:[#allocation39_spill] sm:$0xff] %v11400_v24 }
 0x8ac   :  { %3107 = vrot.lane.b32.xlu2 %v11343_v15, %s8463_s19  ;;  %3149 = vrot.lane.b32.xlu1 %v11369_v3, %s8469_s12 }
 0x8ad   :  { %3113 = vrot.lane.b32.xlu0 %v11377_v41, %s8463_s19 }
 0x8ae   :  { %v11409_v40 = vpop.permute.xlu2 %3181 }
 0x8b4   :  { %3241 = vrot.lane.b32.xlu2 %v11377_v41, %s8467_s28  ;;  %3319 = vrot.lane.b32.xlu1 %v11411_v49, %s8465_s26 }
 0x8b5   :  { %3073 = vrot.lane.b32.xlu0 %v11377_v41, %s8470_s13 }
 0x8b6   :  { %v11421_v62 = vpop.permute.xlu2 %3101 }
 0x8bc   :  { %3323 = vrot.lane.b32.xlu2 %v11423_v9, %s8465_s26  ;;  %3279 = vrot.lane.b32.xlu1 %v11411_v49, %s8466_s27 }
 0x8bd   :  { %3189 = vrot.lane.b32.xlu0 %v11369_v3, %s8468_s11 }
 0x8be   :  { %v11431_v18 = vpop.permute.xlu2 %3061  ;;  %v11433_v63 = vpop.permute.xlu1 %3269 }
 0x8bf   :  { %16671 = vst [vmem:[#allocation45_spill] sm:$0xff] %v11433_v63  ;;  %v11435_v0 = vpop.permute.xlu0 %3309  ;;  %v3289_v19 = vsel %vm202_vm2, %v11433_v63, %v11391_v4 }
 0x8c0   :  { %16672 = vst [vmem:[#allocation46_spill] sm:$0xff] %v11435_v0  ;;  %v3329_v10 = vsel %vm227_vm1, %v11435_v0, %v11419_v46  ;;  %v3293_v21 = vmul.f32 %v3289_v19, %v16675_v23 }
 0x8c1   :  { %v3333_v33 = vmul.f32 %v3329_v10, %v16673_v53 }
 0x8c4   :  { %3239 = vrot.lane.b32.xlu2 %v11411_v49, %s8467_s28  ;;  %3283 = vrot.lane.b32.xlu1 %v11423_v9, %s8466_s27 }
 0x8c5   :  { %3195 = vrot.lane.b32.xlu0 %v11423_v9, %s8468_s11 }
 0x8c6   :  { %v11443_v51 = vpop.permute.xlu2 %3353  ;;  %v11445_v50 = vpop.permute.xlu1 %3349 }
 0x8c7   :  { %v11447_v12 = vpop.permute.xlu0 %3233 }
 0x8c8   :  { %v3249_v10 = vsel %vm177_vm3, %v11400_v24, %v11447_v12 }
 0x8cc   :  { %3115 = vrot.lane.b32.xlu2 %v11423_v9, %s8463_s19  ;;  %3357 = vrot.lane.b32.xlu1 %v11369_v3, %s8464_s25 }
 0x8cd   :  { %3155 = vrot.lane.b32.xlu0 %v11423_v9, %s8469_s12 }
 0x8ce   :  { %v11455_v8 = vpop.permute.xlu2 %3065  ;;  %v11457_v54 = vpop.permute.xlu1 %3105 }
 0x8cf   :  { %v11459_v36 = vpop.permute.xlu0 %3141 }
 0x8d4   :  { %3151 = vrot.lane.b32.xlu2 %v11411_v49, %s8469_s12  ;;  %3243 = vrot.lane.b32.xlu1 %v11423_v9, %s8467_s28 }
 0x8d5   :  { %3075 = vrot.lane.b32.xlu0 %v11423_v9, %s8470_s13 }
 0x8d6   :  { %v11467_v27 = vpop.permute.xlu2 %3315  ;;  %v11469_v30 = vpop.permute.xlu1 %3311 }
 0x8d7   :  { %v11471_v38 = vpop.permute.xlu0 %3185  ;;  %v3330_v42 = vsel %vm227_vm1, %v11469_v30, %v11467_v27 }
 0x8d8   :  { %v3337_v22 = vmul.f32 %v3330_v42, %v16673_v53 }
 0x8da   :  { %3477 = vmatpush.msrb.mxu3 %v3337_v22 }
 0x8dc   :  { %3363 = vrot.lane.b32.xlu2 %v11423_v9, %s8464_s25  ;;  %3191 = vrot.lane.b32.xlu1 %v11411_v49, %s8468_s11 }
 0x8dd   :  { %3109 = vrot.lane.b32.xlu0 %v11369_v3, %s8463_s19  ;;  %3478 = vmatpush.msrb.mxu3 %v3333_v33  ;;  %v16677_v33 = vld [vmem:[#allocation25_spill] sm:$0xff] }
 0x8de   :  { %v11489_v11 = vpop.permute.xlu2 %3271  ;;  %v11491_v39 = vpop.permute.xlu1 %3235 }
 0x8df   :  { %16674 = vst [vmem:[#allocation42_spill] sm:$0xff] %v11489_v11  ;;  %v11493_v2 = vpop.permute.xlu0 %3145 }
 0x8e4   :  { %3361 = vrot.lane.b32.xlu2 %v11377_v41, %s8464_s25  ;;  %3359 = vrot.lane.b32.xlu1 %v11411_v49, %s8464_s25 }
 0x8e5   :  { %3111 = vrot.lane.b32.xlu0 %v11411_v49, %s8463_s19 }
 0x8e6   :  { %v11501_v32 = vpop.permute.xlu2 %3183  ;;  %v11503_v20 = vpop.permute.xlu1 %3103 }
 0x8e7   :  { %v11505_v13 = vpop.permute.xlu0 %3275 }
 0x8e8   :  { %v3290_v45 = vsel %vm202_vm2, %v11489_v11, %v11505_v13  ;;  %v16681_v11 = vld [vmem:[#allocation17_spill] sm:$0xff] }
 0x8e9   :  { %v3297_v57 = vmul.f32 %v3290_v45, %v16675_v23  ;;  %v8327_v45 = vld [vmem:[%s16147_s5 + $0x40] sm:$0xff] }
 0x8eb   :  { %3479 = vmatpush.msrb.mxu3 %v3297_v57  ;;  %v3253_v57 = vmul.f32 %v3249_v10, %v16677_v33  ;;  %v3369_v10 = vsel %vm252_vm0, %v11445_v50, %v11443_v51 }
 0x8ec   :  { %3468 = vperm.xlu2 %8428, %v8328_v60   ;;  %3069 = vrot.lane.b32.xlu1 %v11369_v3, %s8470_s13 }
 0x8ed   :  { %3071 = vrot.lane.b32.xlu0 %v11411_v49, %s8470_s13  ;;  %3480 = vmatpush.msrb.mxu3 %v3293_v21 }
 0x8ee   :  { %v11524_v28 = vpop.permute.xlu2 %3143  ;;  %v11526_v48 = vpop.permute.xlu1 %3187 }
 0x8ef   :  { %v11528_v42 = vpop.permute.xlu0 %3231 }
 0x8f0   :  { %16676 = vst [vmem:[#allocation41_spill] sm:$0xff] %v11528_v42  ;;  %v3250_v22 = vsel %vm177_vm3, %v11528_v42, %v11491_v39 }
 0x8f1   :  { %v3257_v19 = vmul.f32 %v3250_v22, %v16677_v33 }
 0x8f3   :  { %3481 = vmatpush.msrb.mxu3 %v3257_v19 }
 0x8f5   :  { %3463 = vperm.xlu0 %8429, %v8327_v45   ;;  %3482 = vmatpush.msrb.mxu3 %v3253_v57  ;;  %v16678_v57 = vld [vmem:[#allocation14_spill] sm:$0xff] }
 0x8f6   :  { %v11543_v60 = vpop.permute.xlu2 %3063  ;;  %v11545_v21 = vpop.permute.xlu1 %3351 }
 0x8f7   :  { %v11547_v23 = vpop.permute.xlu0 %3147  ;;  %3483 = vmatpush.msrb.mxu3 %v11335_v29 }
 0x8f9   :  { %3484 = vmatpush.msrb.mxu3 %v11311_v26  ;;  %v3373_v26 = vmul.f32 %v3369_v10, %v16678_v57 }
 0x8fe   :  { %v11551_v22 = vpop.permute.xlu2 %3355  ;;  %v3318_v53 = vpop.permute.xlu1 %3317 }
 0x8ff   :  { %v3370_v19 = vsel %vm252_vm0, %v11545_v21, %v11551_v22  ;;  %v11561_v45 = vpop.permute.xlu0 %3067  ;;  %v3327_v24 = vsel %vm227_vm1, %v11419_v46, %v3318_v53 }
 0x900   :  { %v3377_v33 = vmul.f32 %v3370_v19, %v16678_v57  ;;  %v3334_v46 = vmul.f32 %v3327_v24, %v16681_v11 }
 0x902   :  { %3514 = vmatpush.msra.mxu1 %v3377_v33 }
 0x904   :  { %3515 = vmatpush.msra.mxu1 %v3373_v26 }
 0x906   :  { %v11565_v29 = vpop.permute.xlu2 %3107  ;;  %v3278_v34 = vpop.permute.xlu1 %3277 }
 0x907   :  { %v11567_v5 = vpop.permute.xlu0 %3193 }
 0x90e   :  { %v11569_v61 = vpop.permute.xlu2 %3241  ;;  %v11571_v44 = vpop.permute.xlu1 %3153 }
 0x90f   :  { %v11573_v41 = vpop.permute.xlu0 %3321 }
 0x910   :  { %16679 = vst [vmem:[#allocation44_spill] sm:$0xff] %v11573_v41  ;;  %v3325_v56 = vsel %vm227_vm1, %v3318_v53, %v11573_v41 }
 0x911   :  { %v3335_v53 = vmul.f32 %v3325_v56, %v16654_v14 }
 0x916   :  { %v11575_v9 = vpop.permute.xlu2 %3323  ;;  %v11577_v58 = vpop.permute.xlu1 %3281 }
 0x917   :  { %16680 = vst [vmem:[#allocation48_spill] sm:$0xff] %v11575_v9  ;;  %v11579_v19 = vpop.permute.xlu0 %3237 }
 0x91e   :  { %v11581_v33 = vpop.permute.xlu1 %3149  ;;  %v11585_v26 = vpop.permute.xlu2 %3239 }
 0x91f   :  { %v11583_v10 = vpop.permute.xlu0 %3113  ;;  %v3248_v56 = vsel %vm177_vm3, %v11491_v39, %v11585_v26 }
 0x926   :  { %v3320_v57 = vpop.permute.xlu1 %3319  ;;  %v11603_v35 = vpop.permute.xlu2 %3115 }
 0x927   :  { %v11593_v42 = vpop.permute.xlu0 %3073  ;;  %v3326_v16 = vsel %vm227_vm1, %v3320_v57, %v11575_v9  ;;  %v3328_v63 = vsel %vm227_vm1, %v11467_v27, %v3320_v57  ;;  %v3287_v9 = vsel %vm202_vm2, %v11391_v4, %v3278_v34  ;;  %v3247_v4 = vsel %vm177_vm3, %v11447_v12, %v11579_v19  ;;  %v16683_v57 = vld [vmem:[#allocation26_spill] sm:$0xff] }
 0x928   :  { %v3338_v31 = vmul.f32 %v3328_v63, %v16681_v11  ;;  %v3339_v0 = vmul.f32 %v3326_v16, %v16654_v14  ;;  %v16682_v63 = vld [vmem:[#allocation19_spill] sm:$0xff]  ;;  %v3254_v39 = vmul.f32 %v3247_v4, %v16683_v57  ;;  %v16684_v4 = vld [vmem:[#allocation29_spill] sm:$0xff]  ;;  %v3201_v14 = vsel %vm148_vm4, %v11409_v40, %v11471_v38 }
 0x929   :  { %v3294_v24 = vmul.f32 %v3287_v9, %v16682_v63  ;;  %v3285_v9 = vsel %vm202_vm2, %v3278_v34, %v11577_v58  ;;  %v3202_v34 = vsel %vm148_vm4, %v11501_v32, %v11526_v48 }
 0x92a   :  { %3523 = vmatpush.msra.mxu2 %v3338_v31  ;;  %3569 = vmatpush.msrb.mxu1 %v3339_v0 }
 0x92c   :  { %3524 = vmatpush.msra.mxu2 %v3334_v46  ;;  %3570 = vmatpush.msrb.mxu1 %v3335_v53  ;;  %v11628_v46 = vld [vmem:[#allocation3 + $0x88] sm:$0xff] }
 0x92d   :  { %8329 = vmatmul.msk.f32.vlgmr.msra.gmra.mxu1 %vm846_vm9, %v11628_v46 }
 0x92e   :  { %v3280_v41 = vpop.permute.xlu1 %3279  ;;  %v11625_v0 = vpop.permute.xlu2 %3151 }
 0x92f   :  { %v11610_v27 = vpop.permute.xlu0 %3189  ;;  %v3288_v16 = vsel %vm202_vm2, %v11505_v13, %v3280_v41  ;;  %v3258_v13 = vmul.f32 %v3248_v56, %v16683_v57 }
 0x930   :  { %v3298_v31 = vmul.f32 %v3288_v16, %v16682_v63 }
 0x932   :  { %3525 = vmatpush.msra.mxu2 %v3298_v31  ;;  %v3203_v31 = vsel %vm148_vm4, %v11567_v5, %v11409_v40 }
 0x934   :  { %3526 = vmatpush.msra.mxu2 %v3294_v24 }
 0x936   :  { %3527 = vmatpush.msra.mxu2 %v3258_v13  ;;  %v11630_v53 = vpop.permute.xlu1 %3283  ;;  %v3295_v13 = vmul.f32 %v3285_v9, %v16655_v25  ;;  %v11670_v9 = vld [vmem:[#allocation3 + $0x98] sm:$0xff] }
 0x937   :  { %v11638_v12 = vpop.permute.xlu0 %3195  ;;  %v3286_v16 = vsel %vm202_vm2, %v3280_v41, %v11630_v53  ;;  %8330 = vmatmul.msk.f32.gmra.mxu1 %vm846_vm9, %v11670_v9 }
 0x938   :  { %v3204_v56 = vsel %vm148_vm4, %v11638_v12, %v11501_v32  ;;  %3528 = vmatpush.msra.mxu2 %v3254_v39  ;;  %v3299_v24 = vmul.f32 %v3286_v16, %v16655_v25  ;;  %v3205_v39 = vmul.f32 %v3203_v31, %v16684_v4  ;;  %v16685_v16 = vld [vmem:[#allocation30_spill] sm:$0xff] }
 0x939   :  { %v3209_v41 = vmul.f32 %v3204_v56, %v16684_v4  ;;  %v3210_v32 = vmul.f32 %v3202_v34, %v16685_v16  ;;  %v11672_v56 = vpop.permute.xlu2 %3363  ;;  %v3206_v31 = vmul.f32 %v3201_v14, %v16685_v16  ;;  %v3163_v34 = vsel %vm123_vm5, %v11571_v44, %v11459_v36 }
 0x93a   :  { %3529 = vmatpush.msra.mxu2 %v11343_v15  ;;  %3571 = vmatpush.msrb.mxu1 %v3299_v24  ;;  %v3162_v15 = vsel %vm123_vm5, %v11524_v28, %v11547_v23 }
 0x93b   :  { %3485 = vmatpush.msrb.mxu3 %v3209_v41  ;;  %v16686_v41 = vld [vmem:[#allocation33_spill] sm:$0xff] }
 0x93c   :  { %3530 = vmatpush.msra.mxu2 %v11305_v47  ;;  %3572 = vmatpush.msrb.mxu1 %v3295_v13  ;;  %v3161_v47 = vsel %vm123_vm5, %v11459_v36, %v11493_v2  ;;  %v3170_v13 = vmul.f32 %v3162_v15, %v16686_v41  ;;  %v3124_v36 = vsel %vm98_vm6, %v11603_v35, %v11503_v20 }
 0x93d   :  { %3486 = vmatpush.msrb.mxu3 %v3205_v39  ;;  %v3122_v39 = vsel %vm98_vm6, %v11503_v20, %v11565_v29  ;;  %v3166_v25 = vmul.f32 %v3161_v47, %v16686_v41  ;;  %v3165_v15 = vmul.f32 %v3163_v34, %v16549_v59  ;;  %v3082_v20 = vsel %vm73_vm7, %v11543_v60, %v11561_v45 }
 0x93e   :  { %3531 = vmatpush.msra.mxu2 %v3210_v32  ;;  %v11674_v40 = vpop.permute.xlu1 %3357  ;;  %v3129_v47 = vmul.f32 %v3124_v36, %v16550_v55  ;;  %v3083_v36 = vsel %vm73_vm7, %v11593_v42, %v11431_v18 }
 0x93f   :  { %v11683_v24 = vpop.permute.xlu0 %3155 }
 0x940   :  { %v3164_v14 = vsel %vm123_vm5, %v11683_v24, %v11524_v28  ;;  %3532 = vmatpush.msra.mxu2 %v3206_v31  ;;  %v3121_v28 = vsel %vm98_vm6, %v11421_v62, %v11457_v54  ;;  %v3123_v31 = vsel %vm98_vm6, %v11583_v10, %v11421_v62  ;;  %v3245_v62 = vsel %vm177_vm3, %v11579_v19, %v11569_v61 }
 0x941   :  { %v3169_v32 = vmul.f32 %v3164_v14, %v16549_v59  ;;  %v16687_v14 = vld [vmem:[#allocation35_spill] sm:$0xff] }
 0x942   :  { %3533 = vmatpush.msra.mxu2 %v3170_v13  ;;  %v3130_v4 = vmul.f32 %v3122_v39, %v16687_v14  ;;  %v3126_v34 = vmul.f32 %v3121_v28, %v16687_v14  ;;  %v3362_v28 = vpop.permute.xlu2 %3361 }
 0x943   :  { %3487 = vmatpush.msrb.mxu3 %v3169_v32  ;;  %v3125_v32 = vmul.f32 %v3123_v31, %v16550_v55  ;;  %v3255_v55 = vmul.f32 %v3245_v62, %v8672_v37 }
 0x944   :  { %3534 = vmatpush.msra.mxu2 %v3166_v25  ;;  %v3081_v25 = vsel %vm73_vm7, %v11431_v18, %v11455_v8 }
 0x945   :  { %3488 = vmatpush.msrb.mxu3 %v3165_v15  ;;  %v16688_v15 = vld [vmem:[#allocation37_spill] sm:$0xff] }
 0x946   :  { %3535 = vmatpush.msra.mxu2 %v3130_v4  ;;  %v11719_v13 = vpop.permute.xlu1 %3243  ;;  %v3086_v18 = vmul.f32 %v3081_v25, %v16688_v15 }
 0x947   :  { %v11730_v39 = vpop.permute.xlu0 %3075  ;;  %3489 = vmatpush.msrb.mxu3 %v3129_v47  ;;  %v3246_v4 = vsel %vm177_vm3, %v11585_v26, %v11719_v13  ;;  %v3090_v47 = vmul.f32 %v3082_v20, %v16688_v15  ;;  %v3372_v26 = vsel %vm252_vm0, %v11672_v56, %v11545_v21  ;;  %v3371_v20 = vsel %vm252_vm0, %v3362_v28, %v11445_v50 }
 0x948   :  { %v3084_v19 = vsel %vm73_vm7, %v11730_v39, %v11543_v60  ;;  %3536 = vmatpush.msra.mxu2 %v3126_v34  ;;  %v3259_v59 = vmul.f32 %v3246_v4, %v8672_v37  ;;  %v11754_v60 = vld [vmem:[#allocation3 + $0x80] sm:$0xff]  ;;  %v3085_v34 = vmul.f32 %v3083_v36, %v16552_v1  ;;  %v3380_v21 = vmul.f32 %v3372_v26, %v16543_v52 }
 0x949   :  { %3490 = vmatpush.msrb.mxu3 %v3125_v32  ;;  %v3089_v31 = vmul.f32 %v3084_v19, %v16552_v1  ;;  %v3376_v25 = vmul.f32 %v3371_v20, %v16543_v52  ;;  %v11783_v32 = vld [vmem:[#allocation3 + $0x90] sm:$0xff]  ;;  %v3365_v19 = vsel %vm252_vm0, %v11674_v40, %v3362_v28 }
 0x94a   :  { %3537 = vmatpush.msra.mxu2 %v3090_v47  ;;  %3573 = vmatpush.msrb.mxu1 %v3259_v59 }
 0x94b   :  { %3491 = vmatpush.msrb.mxu3 %v3089_v31 }
 0x94c   :  { %3538 = vmatpush.msra.mxu2 %v3086_v18  ;;  %3574 = vmatpush.msrb.mxu1 %v3255_v55  ;;  %v3199_v55 = vsel %vm148_vm4, %v11471_v38, %v11610_v27 }
 0x94d   :  { %3492 = vmatpush.msrb.mxu3 %v3085_v34  ;;  %3539 = vmatmul.f32.vlgmr.msra.gmra.mxu2 %v11754_v60  ;;  %v3207_v38 = vmul.f32 %v3199_v55, %v8741_v6 }
 0x94e   :  { %3493 = vmatmul.f32.vlgmr.msrb.gmra.mxu3 %v11754_v60  ;;  %3652 = vmatpush.msrb.mxu2 %v3380_v21  ;;  %v11763_v59 = vpop.permute.xlu1 %3191 }
 0x94f   :  { %v11766_v62 = vpop.permute.xlu0 %3109  ;;  %3575 = vmatpush.msrb.mxu1 %v11411_v49  ;;  %v3200_v50 = vsel %vm148_vm4, %v11526_v48, %v11763_v59  ;;  %v3160_v49 = vsel %vm123_vm5, %v11547_v23, %v11625_v0  ;;  %v3159_v48 = vsel %vm123_vm5, %v11493_v2, %v11581_v33  ;;  %v3367_v2 = vsel %vm252_vm0, %v11443_v51, %v11674_v40  ;;  %v16689_v40 = vld [vmem:[#allocation15_spill] sm:$0xff] }
 0x950   :  { %3653 = vmatpush.msrb.mxu2 %v3376_v25  ;;  %v3211_v4 = vmul.f32 %v3200_v50, %v8741_v6  ;;  %v3167_v23 = vmul.f32 %v3159_v48, %v16657_v17  ;;  %v3119_v28 = vsel %vm98_vm6, %v11457_v54, %v11766_v62  ;;  %v3374_v54 = vmul.f32 %v3367_v2, %v16689_v40  ;;  %v16692_v50 = vld [vmem:[#allocation46_spill] sm:$0xff] }
 0x951   :  { %3576 = vmatpush.msrb.mxu1 %v11369_v3  ;;  %v3171_v3 = vmul.f32 %v3160_v49, %v16657_v17  ;;  %v3375_v25 = vmul.f32 %v3365_v19, %v16624_v43  ;;  %v16694_v49 = vld [vmem:[#allocation7_spill] sm:$0xff] }
 0x953   :  { %3577 = vmatpush.msrb.mxu1 %v3211_v4 }
 0x955   :  { %3578 = vmatpush.msrb.mxu1 %v3207_v38  ;;  %3542 = vmatmul.f32.gmra.mxu2 %v11783_v32 }
 0x956   :  { %3496 = vmatmul.f32.gmra.mxu3 %v11783_v32  ;;  %v3360_v36 = vpop.permute.xlu1 %3359 }
 0x957   :  { %v11801_v47 = vpop.permute.xlu0 %3111  ;;  %3579 = vmatpush.msrb.mxu1 %v3171_v3  ;;  %v3366_v26 = vsel %vm252_vm0, %v3360_v36, %v11672_v56  ;;  %v3368_v31 = vsel %vm252_vm0, %v11551_v22, %v3360_v36  ;;  %v16690_v56 = vld [vmem:[#allocation48_spill] sm:$0xff] }
 0x958   :  { %v3120_v51 = vsel %vm98_vm6, %v11565_v29, %v11801_v47  ;;  %v3378_v18 = vmul.f32 %v3368_v31, %v16689_v40  ;;  %v3379_v20 = vmul.f32 %v3366_v26, %v16624_v43  ;;  %v3332_v34 = vsel %vm227_vm1, %v16690_v56, %v11469_v30  ;;  %v16691_v22 = vld [vmem:[#allocation24_spill] sm:$0xff]  ;;  %v16695_v30 = vld [vmem:[#allocation42_spill] sm:$0xff]  ;;  %v16697_v31 = vld [vmem:[#allocation11_spill] sm:$0xff] }
 0x959   :  { %3580 = vmatpush.msrb.mxu1 %v3167_v23  ;;  %v3131_v21 = vmul.f32 %v3120_v51, %v16691_v22  ;;  %v16693_v29 = vld [vmem:[#allocation44_spill] sm:$0xff]  ;;  %v3127_v4 = vmul.f32 %v3119_v28, %v16691_v22  ;;  %v3340_v48 = vmul.f32 %v3332_v34, %v16694_v49  ;;  %v3292_v38 = vsel %vm202_vm2, %v11630_v53, %v16695_v30  ;;  %v16696_v23 = vld [vmem:[#allocation45_spill] sm:$0xff]  ;;  %v16700_v56 = vld [vmem:[#allocation39_spill] sm:$0xff] }
 0x95a   :  { %3560 = vmatpush.msrb.mxu0 %v3378_v18  ;;  %3606 = vmatpush.msra.mxu3 %v3379_v20  ;;  %v3331_v55 = vsel %vm227_vm1, %v16693_v29, %v16692_v50  ;;  %v3291_v19 = vsel %vm202_vm2, %v11577_v58, %v16696_v23  ;;  %v3300_v28 = vmul.f32 %v3292_v38, %v16697_v31  ;;  %v16698_v51 = vld [vmem:[#allocation41_spill] sm:$0xff]  ;;  %v16699_v18 = vld [vmem:[#allocation27_spill] sm:$0xff]  ;;  %v16703_v50 = vld [vmem:[#allocation38_spill] sm:$0xff] }
 0x95b   :  { %3581 = vmatpush.msrb.mxu1 %v3131_v21  ;;  %v3336_v36 = vmul.f32 %v3331_v55, %v16694_v49  ;;  %v3252_v58 = vsel %vm177_vm3, %v11719_v13, %v16698_v51  ;;  %v16701_v34 = vld [vmem:[#allocation13_spill] sm:$0xff]  ;;  %v8337_v22 = vld [vmem:[%s16147_s5 + $0x50] sm:$0xff] }
 0x95c   :  { %3561 = vmatpush.msrb.mxu0 %v3374_v54  ;;  %3607 = vmatpush.msra.mxu3 %v3375_v25  ;;  %v3260_v21 = vmul.f32 %v3252_v58, %v16701_v34  ;;  %v16702_v54 = vld [vmem:[#allocation43_spill] sm:$0xff]  ;;  %v3197_v25 = vsel %vm148_vm4, %v11610_v27, %v11567_v5  ;;  %v16704_v29 = vld [vmem:[#allocation21_spill] sm:$0xff]  ;;  %v16705_v5 = vld [vmem:[#allocation22_spill] sm:$0xff] }
 0x95d   :  { %3582 = vmatpush.msrb.mxu1 %v3127_v4  ;;  %8331 = vmatmul.msk.f32.vlgmr.msrb.gmra.mxu0 %vm846_vm9, %v11628_v46  ;;  %v3118_v4 = vsel %vm98_vm6, %v11801_v47, %v11603_v35  ;;  %v16707_v47 = vld [vmem:[#allocation31_spill] sm:$0xff] }
 0x95e   :  { %3615 = vmatpush.msra.mxu0 %v3340_v48  ;;  %v3070_v3 = vpop.permute.xlu1 %3069  ;;  %8333 = vmatmul.msk.f32.vlgmr.msra.gmra.mxu3 %vm846_vm9, %v11628_v46  ;;  %v16706_v48 = vld [vmem:[#allocation28_spill] sm:$0xff] }
 0x95f   :  { %v3072_v2 = vpop.permute.xlu0 %3071  ;;  %8335 = vmatmul.msk.f32.vlgmr.msrb.gmra.mxu2 %vm846_vm9, %v11628_v46  ;;  %v3079_v26 = vsel %vm73_vm7, %v11455_v8, %v3070_v3  ;;  %v3296_v46 = vmul.f32 %v3291_v19, %v16697_v31  ;;  %v3132_v30 = vmul.f32 %v3118_v4, %v16706_v48  ;;  %v3077_v35 = vsel %vm73_vm7, %v3070_v3, %v11593_v42  ;;  %v11920_v42 = vpop.permute.xlu2 %3468 }
 0x960   :  { %v3080_v53 = vsel %vm73_vm7, %v11561_v45, %v3072_v2  ;;  %3616 = vmatpush.msra.mxu0 %v3336_v36  ;;  %v3251_v45 = vsel %vm177_vm3, %v11569_v61, %v16700_v56  ;;  %v3087_v8 = vmul.f32 %v3079_v26, %v16699_v18  ;;  %v3198_v61 = vsel %vm148_vm4, %v11763_v59, %v11638_v12 }
 0x961   :  { %v3091_v20 = vmul.f32 %v3080_v53, %v16699_v18  ;;  %v3256_v13 = vmul.f32 %v3251_v45, %v16701_v34  ;;  %v3212_v55 = vmul.f32 %v3198_v61, %v16704_v29  ;;  %v3208_v12 = vmul.f32 %v3197_v25, %v16704_v29 }
 0x962   :  { %3617 = vmatpush.msra.mxu0 %v3300_v28  ;;  %v3157_v59 = vsel %vm123_vm5, %v11581_v33, %v11571_v44  ;;  %v3078_v44 = vsel %vm73_vm7, %v3072_v2, %v11730_v39 }
 0x963   :  { %3583 = vmatpush.msrb.mxu1 %v3091_v20  ;;  %v3092_v38 = vmul.f32 %v3078_v44, %v16707_v47 }
 0x964   :  { %3618 = vmatpush.msra.mxu0 %v3296_v46 }
 0x965   :  { %3584 = vmatpush.msrb.mxu1 %v3087_v8  ;;  %8332 = vmatmul.msk.f32.gmra.mxu0 %vm846_vm9, %v11670_v9 }
 0x966   :  { %3585 = vmatmul.f32.vlgmr.msrb.gmra.mxu1 %v11754_v60  ;;  %3619 = vmatpush.msra.mxu0 %v3260_v21 }
 0x967   :  { %8334 = vmatmul.msk.f32.gmra.mxu3 %vm846_vm9, %v11670_v9  ;;  %8336 = vmatmul.msk.f32.gmra.mxu2 %vm846_vm9, %v11670_v9  ;;  %v3158_v9 = vsel %vm123_vm5, %v11625_v0, %v11683_v24  ;;  %v3168_v0 = vmul.f32 %v3157_v59, %v16705_v5  ;;  %v3117_v24 = vsel %vm98_vm6, %v11766_v62, %v11583_v10  ;;  %v11917_v39 = vpop.permute.xlu0 %3463 }
 0x968   :  { %3620 = vmatpush.msra.mxu0 %v3256_v13  ;;  %v3172_v27 = vmul.f32 %v3158_v9, %v16705_v5  ;;  %v3128_v33 = vmul.f32 %v3117_v24, %v16706_v48  ;;  %v3088_v10 = vmul.f32 %v3077_v35, %v16707_v47 }
 0x96a   :  { %3621 = vmatpush.msra.mxu0 %v16702_v54 }
 0x96c   :  { %3622 = vmatpush.msra.mxu0 %v16703_v50 }
 0x96e   :  { %3588 = vmatmul.f32.gmra.mxu1 %v11783_v32  ;;  %3623 = vmatpush.msra.mxu0 %v3212_v55 }
 0x970   :  { %3624 = vmatpush.msra.mxu0 %v3208_v12 }
 0x972   :  { %3625 = vmatpush.msra.mxu0 %v3172_v27 }
 0x974   :  { %3626 = vmatpush.msra.mxu0 %v3168_v0 }
 0x976   :  { %3627 = vmatpush.msra.mxu0 %v3132_v30 }
 0x978   :  { %3628 = vmatpush.msra.mxu0 %v3128_v33 }
 0x97a   :  { %3629 = vmatpush.msra.mxu0 %v3092_v38 }
 0x97c   :  { %3630 = vmatpush.msra.mxu0 %v3088_v10 }
 0x97d   :  { %3631 = vmatmul.f32.vlgmr.msra.gmra.mxu0 %v11754_v60 }
 0x985   :  { %3634 = vmatmul.f32.gmra.mxu0 %v11783_v32 }
 0x9aa   :  { %v3517_v62 = vpop.f32.mrf.mxu1 }
 0x9b4   :  { %v3520_v26 = vpop.f32.mrf.mxu1 }
 0x9d0   :  { %v3540_v60 = vpop.f32.mrf.mxu2 }
 0x9d1   :  { %v3494_v36 = vpop.f32.mrf.mxu3  ;;  %v3541_v58 = vadd.f32 %v3540_v60, %v11917_v39 }
 0x9d2   :  { %v3495_v23 = vadd.f32 %v3494_v36, %v11917_v39 }
 0x9d4   :  { %v3518_v19 = vadd.f32 %v3517_v62, %v3495_v23 }
 0x9d6   :  { %v3661_v2 = vmul.f32 0.2, %v3518_v19 }
 0x9d8   :  { %v11922_v3 = vmax.f32 %v3518_v19, %v3661_v2  ;;  %v3543_v0 = vpop.f32.mrf.mxu2 }
 0x9d9   :  { %v3497_v53 = vpop.f32.mrf.mxu3  ;;  %v3544_v30 = vadd.f32 %v3543_v0, %v11920_v42 }
 0x9da   :  { %v3498_v28 = vadd.f32 %v3497_v53, %v11920_v42  ;;  %3685 = vrot.lane.b32.xlu2 %v11922_v3, %s8470_s13  ;;  %3725 = vrot.lane.b32.xlu0 %v11922_v3, %s8463_s19  ;;  %v3563_v51 = vpop.f32.mrf.mxu0 }
 0x9db   :  { %3933 = vrot.lane.b32.xlu1 %v11922_v3, %s8465_s26  ;;  %v3564_v56 = vadd.f32 %v3563_v51, %v3541_v58 }
 0x9dc   :  { %v3521_v32 = vadd.f32 %v3520_v26, %v3498_v28 }
 0x9dd   :  { %v3662_v21 = vmul.f32 0.2, %v3564_v56 }
 0x9de   :  { %v3665_v20 = vmul.f32 0.2, %v3521_v32 }
 0x9df   :  { %v11941_v54 = vmax.f32 %v3564_v56, %v3662_v21 }
 0x9e0   :  { %v11932_v46 = vmax.f32 %v3521_v32, %v3665_v20 }
 0x9e1   :  { %v3609_v8 = vpop.f32.mrf.mxu3 }
 0x9e2   :  { %3727 = vrot.lane.b32.xlu2 %v11932_v46, %s8463_s19  ;;  %3975 = vrot.lane.b32.xlu0 %v11932_v46, %s8464_s25  ;;  %v3566_v24 = vpop.f32.mrf.mxu0  ;;  %v3655_v62 = vpop.f32.mrf.mxu2 }
 0x9e3   :  { %3893 = vrot.lane.b32.xlu1 %v11922_v3, %s8466_s27  ;;  %v3586_v45 = vpop.f32.mrf.mxu1  ;;  %v3567_v44 = vadd.f32 %v3566_v24, %v3544_v30 }
 0x9e4   :  { %v3587_v13 = vadd.f32 %v3586_v45, %v11917_v39 }
 0x9e5   :  { %v3666_v33 = vmul.f32 0.2, %v3567_v44 }
 0x9e6   :  { %v3610_v61 = vadd.f32 %v3609_v8, %v3587_v13 }
 0x9e7   :  { %v11985_v35 = vmax.f32 %v3567_v44, %v3666_v33 }
 0x9e8   :  { %v3663_v25 = vmul.f32 0.2, %v3610_v61 }
 0x9ea   :  { %v11943_v50 = vmax.f32 %v3610_v61, %v3663_v25  ;;  %3937 = vrot.lane.b32.xlu2 %v11941_v54, %s8465_s26  ;;  %v3612_v12 = vpop.f32.mrf.mxu3  ;;  %v3658_v28 = vpop.f32.mrf.mxu2 }
 0x9eb   :  { %3853 = vrot.lane.b32.xlu1 %v11922_v3, %s8467_s28  ;;  %v3589_v55 = vpop.f32.mrf.mxu1 }
 0x9ec   :  { %3941 = vrot.lane.b32.xlu0 %v11943_v50, %s8465_s26  ;;  %v3590_v9 = vadd.f32 %v3589_v55, %v11920_v42 }
 0x9ee   :  { %v3613_v59 = vadd.f32 %v3612_v12, %v3590_v9 }
 0x9f0   :  { %v3667_v27 = vmul.f32 0.2, %v3613_v59 }
 0x9f2   :  { %3897 = vrot.lane.b32.xlu2 %v11941_v54, %s8466_s27  ;;  %v11970_v4 = vmax.f32 %v3613_v59, %v3667_v27 }
 0x9f3   :  { %3805 = vrot.lane.b32.xlu1 %v11922_v3, %s8468_s11 }
 0x9f4   :  { %3901 = vrot.lane.b32.xlu0 %v11943_v50, %s8466_s27 }
 0x9fa   :  { %3857 = vrot.lane.b32.xlu2 %v11941_v54, %s8467_s28  ;;  %v3632_v38 = vpop.f32.mrf.mxu0 }
 0x9fb   :  { %3765 = vrot.lane.b32.xlu1 %v11922_v3, %s8469_s12  ;;  %v3633_v10 = vadd.f32 %v3632_v38, %v11917_v39 }
 0x9fc   :  { %3861 = vrot.lane.b32.xlu0 %v11943_v50, %s8467_s28 }
 0x9fd   :  { %v3656_v36 = vadd.f32 %v3655_v62, %v3633_v10  ;;  %v16710_v10 = vld [vmem:[#allocation16_spill] sm:$0xff] }
 0x9ff   :  { %v3664_v23 = vmul.f32 0.2, %v3656_v36 }
 0xa01   :  { %v12006_v19 = vmax.f32 %v3656_v36, %v3664_v23 }
 0xa02   :  { %3809 = vrot.lane.b32.xlu2 %v11941_v54, %s8468_s11  ;;  %v3635_v2 = vpop.f32.mrf.mxu0 }
 0xa03   :  { %3935 = vrot.lane.b32.xlu1 %v11932_v46, %s8465_s26  ;;  %v3636_v26 = vadd.f32 %v3635_v2, %v11920_v42 }
 0xa04   :  { %3689 = vrot.lane.b32.xlu0 %v11941_v54, %s8470_s13 }
 0xa05   :  { %v3659_v60 = vadd.f32 %v3658_v28, %v3636_v26 }
 0xa07   :  { %v3668_v51 = vmul.f32 0.2, %v3659_v60 }
 0xa09   :  { %v12031_v58 = vmax.f32 %v3659_v60, %v3668_v51 }
 0xa0a   :  { %3769 = vrot.lane.b32.xlu2 %v11941_v54, %s8469_s12 }
 0xa0b   :  { %3895 = vrot.lane.b32.xlu1 %v11932_v46, %s8466_s27 }
 0xa0c   :  { %3943 = vrot.lane.b32.xlu0 %v11970_v4, %s8465_s26 }
 0xa12   :  { %3981 = vrot.lane.b32.xlu2 %v11943_v50, %s8464_s25 }
 0xa13   :  { %3855 = vrot.lane.b32.xlu1 %v11932_v46, %s8467_s28 }
 0xa14   :  { %3903 = vrot.lane.b32.xlu0 %v11970_v4, %s8466_s27 }
 0xa1a   :  { %3939 = vrot.lane.b32.xlu2 %v11985_v35, %s8465_s26 }
 0xa1b   :  { %3807 = vrot.lane.b32.xlu1 %v11932_v46, %s8468_s11 }
 0xa1c   :  { %3863 = vrot.lane.b32.xlu0 %v11970_v4, %s8467_s28 }
 0xa22   :  { %3899 = vrot.lane.b32.xlu2 %v11985_v35, %s8466_s27 }
 0xa23   :  { %3767 = vrot.lane.b32.xlu1 %v11932_v46, %s8469_s12 }
 0xa24   :  { %3731 = vrot.lane.b32.xlu0 %v11985_v35, %s8463_s19 }
 0xa2a   :  { %3859 = vrot.lane.b32.xlu2 %v11985_v35, %s8467_s28 }
 0xa2b   :  { %3687 = vrot.lane.b32.xlu1 %v11932_v46, %s8470_s13 }
 0xa2c   :  { %3815 = vrot.lane.b32.xlu0 %v11970_v4, %s8468_s11 }
 0xa32   :  { %3811 = vrot.lane.b32.xlu2 %v11985_v35, %s8468_s11 }
 0xa33   :  { %3729 = vrot.lane.b32.xlu1 %v11941_v54, %s8463_s19 }
 0xa34   :  { %v12012_v39 = vpop.permute.xlu2 %3685  ;;  %3817 = vrot.lane.b32.xlu0 %v12006_v19, %s8468_s11 }
 0xa3a   :  { %3771 = vrot.lane.b32.xlu2 %v11985_v35, %s8469_s12 }
 0xa3b   :  { %3977 = vrot.lane.b32.xlu1 %v11941_v54, %s8464_s25 }
 0xa3c   :  { %v12020_v53 = vpop.permute.xlu2 %3727  ;;  %3777 = vrot.lane.b32.xlu0 %v12006_v19, %s8469_s12 }
 0xa42   :  { %3691 = vrot.lane.b32.xlu2 %v11985_v35, %s8470_s13 }
 0xa43   :  { %3979 = vrot.lane.b32.xlu1 %v11985_v35, %s8464_s25 }
 0xa44   :  { %v3938_v32 = vpop.permute.xlu2 %3937  ;;  %3865 = vrot.lane.b32.xlu0 %v12006_v19, %s8467_s28 }
 0xa4a   :  { %3983 = vrot.lane.b32.xlu2 %v11970_v4, %s8464_s25 }
 0xa4b   :  { %3905 = vrot.lane.b32.xlu1 %v12006_v19, %s8466_s27 }
 0xa4c   :  { %v12037_v42 = vpop.permute.xlu0 %3725  ;;  %v12039_v20 = vpop.permute.xlu2 %3897  ;;  %3819 = vrot.lane.b32.xlu0 %v12031_v58, %s8468_s11 }
 0xa4d   :  { %v12043_v56 = vpop.permute.xlu1 %3933 }
 0xa4e   :  { %v3953_v44 = vsel %vm227_vm1, %v12043_v56, %v3938_v32 }
 0xa4f   :  { %v3957_v36 = vmul.f32 %v3953_v44, %v16710_v10 }
 0xa52   :  { %3945 = vrot.lane.b32.xlu2 %v12006_v19, %s8465_s26 }
 0xa53   :  { %3697 = vrot.lane.b32.xlu1 %v12006_v19, %s8470_s13 }
 0xa54   :  { %v12049_v45 = vpop.permute.xlu2 %3857  ;;  %3779 = vrot.lane.b32.xlu0 %v12031_v58, %s8469_s12  ;;  %v12055_v21 = vpop.permute.xlu0 %3975 }
 0xa55   :  { %v12053_v8 = vpop.permute.xlu1 %3893 }
 0xa56   :  { %v3913_v26 = vsel %vm202_vm2, %v12053_v8, %v12039_v20 }
 0xa5a   :  { %3737 = vrot.lane.b32.xlu2 %v12006_v19, %s8463_s19 }
 0xa5b   :  { %3947 = vrot.lane.b32.xlu1 %v12031_v58, %s8465_s26 }
 0xa5c   :  { %v12061_v13 = vpop.permute.xlu2 %3809  ;;  %3907 = vrot.lane.b32.xlu0 %v12031_v58, %s8466_s27 }
 0xa5d   :  { %v12065_v61 = vpop.permute.xlu1 %3853 }
 0xa5e   :  { %v12067_v25 = vpop.permute.xlu0 %3941 }
 0xa5f   :  { %v3951_v51 = vsel %vm227_vm1, %v3938_v32, %v12067_v25 }
 0xa60   :  { %v3958_v32 = vmul.f32 %v3951_v51, %v16681_v11  ;;  %v16712_v51 = vld [vmem:[#allocation25_spill] sm:$0xff] }
 0xa62   :  { %3867 = vrot.lane.b32.xlu2 %v12031_v58, %s8467_s28 }
 0xa63   :  { %3739 = vrot.lane.b32.xlu1 %v12031_v58, %s8463_s19 }
 0xa64   :  { %v12073_v55 = vpop.permute.xlu2 %3769  ;;  %3699 = vrot.lane.b32.xlu0 %v12031_v58, %s8470_s13 }
 0xa65   :  { %16708 = vst [vmem:[#allocation47_spill] sm:$0xff] %v12073_v55  ;;  %v12077_v9 = vpop.permute.xlu1 %3805 }
 0xa66   :  { %v12079_v12 = vpop.permute.xlu0 %3901 }
 0xa6a   :  { %3813 = vrot.lane.b32.xlu2 %v11943_v50, %s8468_s11 }
 0xa6b   :  { %3973 = vrot.lane.b32.xlu1 %v11922_v3, %s8464_s25 }
 0xa6c   :  { %v12085_v59 = vpop.permute.xlu2 %3981  ;;  %3775 = vrot.lane.b32.xlu0 %v11970_v4, %s8469_s12 }
 0xa6d   :  { %v12089_v27 = vpop.permute.xlu1 %3765 }
 0xa6e   :  { %v12091_v0 = vpop.permute.xlu0 %3861 }
 0xa72   :  { %3735 = vrot.lane.b32.xlu2 %v11970_v4, %s8463_s19 }
 0xa73   :  { %3773 = vrot.lane.b32.xlu1 %v11943_v50, %s8469_s12 }
 0xa74   :  { %v3940_v24 = vpop.permute.xlu2 %3939  ;;  %3987 = vrot.lane.b32.xlu0 %v12031_v58, %s8464_s25 }
 0xa75   :  { %v12099_v30 = vpop.permute.xlu1 %3935 }
 0xa76   :  { %v3954_v33 = vsel %vm227_vm1, %v12099_v30, %v3940_v24  ;;  %v12107_v38 = vpop.permute.xlu0 %3689 }
 0xa77   :  { %16709 = vst [vmem:[#allocation40_spill] sm:$0xff] %v12107_v38  ;;  %v3961_v62 = vmul.f32 %v3954_v33, %v16710_v10  ;;  %v16711_v33 = vld [vmem:[#allocation18_spill] sm:$0xff] }
 0xa78   :  { %v3917_v18 = vmul.f32 %v3913_v26, %v16711_v33  ;;  %v3873_v26 = vsel %vm177_vm3, %v12065_v61, %v12049_v45 }
 0xa79   :  { %4101 = vmatpush.msrb.mxu3 %v3961_v62 }
 0xa7a   :  { %3985 = vrot.lane.b32.xlu2 %v12006_v19, %s8464_s25 }
 0xa7b   :  { %3733 = vrot.lane.b32.xlu1 %v11943_v50, %s8463_s19  ;;  %4102 = vmatpush.msrb.mxu3 %v3957_v36  ;;  %v8338_v36 = vld [vmem:[%s16147_s5 + $0x58] sm:$0xff] }
 0xa7c   :  { %v3900_v23 = vpop.permute.xlu2 %3899  ;;  %3695 = vrot.lane.b32.xlu0 %v11970_v4, %s8470_s13 }
 0xa7d   :  { %v12117_v2 = vpop.permute.xlu1 %3895 }
 0xa7e   :  { %v3914_v28 = vsel %vm202_vm2, %v12117_v2, %v3900_v23  ;;  %v12126_v60 = vpop.permute.xlu0 %3943 }
 0xa7f   :  { %v3952_v44 = vsel %vm227_vm1, %v3940_v24, %v12126_v60  ;;  %v3921_v62 = vmul.f32 %v3914_v28, %v16711_v33 }
 0xa80   :  { %v3962_v10 = vmul.f32 %v3952_v44, %v16681_v11 }
 0xa81   :  { %4103 = vmatpush.msrb.mxu3 %v3921_v62 }
 0xa82   :  { %4147 = vmatpush.msra.mxu2 %v3962_v10  ;;  %4092 = vperm.xlu2 %8428, %v8338_v36  }
 0xa83   :  { %3693 = vrot.lane.b32.xlu1 %v11943_v50, %s8470_s13  ;;  %4104 = vmatpush.msrb.mxu3 %v3917_v18  ;;  %v3911_v18 = vsel %vm202_vm2, %v12039_v20, %v12079_v12 }
 0xa84   :  { %v3860_v24 = vpop.permute.xlu2 %3859  ;;  %4148 = vmatpush.msra.mxu2 %v3958_v32  ;;  %4087 = vperm.xlu0 %8429, %v8337_v22   ;;  %v3877_v32 = vmul.f32 %v3873_v26, %v16712_v51  ;;  %v3918_v11 = vmul.f32 %v3911_v18, %v16682_v63 }
 0xa85   :  { %v12146_v28 = vpop.permute.xlu1 %3855 }
 0xa86   :  { %v3874_v10 = vsel %vm177_vm3, %v12146_v28, %v3860_v24  ;;  %v12155_v44 = vpop.permute.xlu0 %3903 }
 0xa87   :  { %v3912_v22 = vsel %vm202_vm2, %v3900_v23, %v12155_v44  ;;  %v3881_v62 = vmul.f32 %v3874_v10, %v16712_v51  ;;  %v3871_v23 = vsel %vm177_vm3, %v12049_v45, %v12091_v0 }
 0xa88   :  { %v3922_v36 = vmul.f32 %v3912_v22, %v16682_v63 }
 0xa89   :  { %4105 = vmatpush.msrb.mxu3 %v3881_v62 }
 0xa8a   :  { %4149 = vmatpush.msra.mxu2 %v3922_v36 }
 0xa8b   :  { %4106 = vmatpush.msrb.mxu3 %v3877_v32 }
 0xa8c   :  { %v12168_v33 = vpop.permute.xlu2 %3811  ;;  %4150 = vmatpush.msra.mxu2 %v3918_v11  ;;  %v3878_v11 = vmul.f32 %v3871_v23, %v16683_v57 }
 0xa8d   :  { %4107 = vmatpush.msrb.mxu3 %v11932_v46  ;;  %v12171_v20 = vpop.permute.xlu1 %3807 }
 0xa8e   :  { %v12173_v17 = vpop.permute.xlu0 %3863  ;;  %v3826_v18 = vsel %vm148_vm4, %v12171_v20, %v12168_v33 }
 0xa8f   :  { %v3872_v26 = vsel %vm177_vm3, %v3860_v24, %v12173_v17  ;;  %4108 = vmatpush.msrb.mxu3 %v11922_v3  ;;  %v3825_v3 = vsel %vm148_vm4, %v12077_v9, %v12061_v13  ;;  %v3834_v22 = vmul.f32 %v3826_v18, %v16685_v16 }
 0xa90   :  { %v3882_v10 = vmul.f32 %v3872_v26, %v16683_v57  ;;  %v3830_v36 = vmul.f32 %v3825_v3, %v16685_v16  ;;  %v12254_v57 = vld [vmem:[#allocation3 + $0xb0] sm:$0xff] }
 0xa92   :  { %4151 = vmatpush.msra.mxu2 %v3882_v10 }
 0xa94   :  { %v12185_v46 = vpop.permute.xlu2 %3771  ;;  %4152 = vmatpush.msra.mxu2 %v3878_v11 }
 0xa95   :  { %16713 = vst [vmem:[#allocation48_spill] sm:$0xff] %v12185_v46  ;;  %v12191_v45 = vpop.permute.xlu1 %3767 }
 0xa96   :  { %4153 = vmatpush.msra.mxu2 %v11985_v35  ;;  %v12194_v24 = vpop.permute.xlu0 %3731  ;;  %v3786_v62 = vsel %vm123_vm5, %v12191_v45, %v12185_v46  ;;  %v3785_v35 = vsel %vm123_vm5, %v12089_v27, %v12073_v55 }
 0xa97   :  { %16714 = vst [vmem:[#allocation46_spill] sm:$0xff] %v12194_v24  ;;  %v3794_v32 = vmul.f32 %v3786_v62, %v16686_v41  ;;  %v3790_v11 = vmul.f32 %v3785_v35, %v16686_v41  ;;  %v12245_v41 = vld [vmem:[#allocation3 + $0xa0] sm:$0xff] }
 0xa98   :  { %4154 = vmatpush.msra.mxu2 %v11941_v54  ;;  %v3746_v54 = vsel %vm98_vm6, %v12020_v53, %v12194_v24 }
 0xa99   :  { %v3754_v18 = vmul.f32 %v3746_v54, %v16687_v14 }
 0xa9a   :  { %4155 = vmatpush.msra.mxu2 %v3834_v22 }
 0xa9c   :  { %4156 = vmatpush.msra.mxu2 %v3830_v36  ;;  %v12218_v26 = vpop.permute.xlu2 %3691 }
 0xa9d   :  { %v12216_v23 = vpop.permute.xlu1 %3687  ;;  %16715 = vst [vmem:[#allocation44_spill] sm:$0xff] %v12218_v26 }
 0xa9e   :  { %v12220_v10 = vpop.permute.xlu0 %3815  ;;  %4157 = vmatpush.msra.mxu2 %v3794_v32  ;;  %v3706_v22 = vsel %vm73_vm7, %v12216_v23, %v12218_v26  ;;  %v3705_v32 = vsel %vm73_vm7, %v12012_v39, %v12107_v38  ;;  %v12272_v26 = vld [vmem:[#allocation3 + $0xa8] sm:$0xff] }
 0xaa0   :  { %4158 = vmatpush.msra.mxu2 %v3790_v11  ;;  %v3714_v11 = vmul.f32 %v3706_v22, %v16688_v15 }
 0xaa2   :  { %4159 = vmatpush.msra.mxu2 %v3754_v18  ;;  %v3710_v18 = vmul.f32 %v3705_v32, %v16688_v15 }
 0xaa4   :  { %v12241_v54 = vpop.permute.xlu2 %3983 }
 0xaa5   :  { %v12224_v3 = vpop.permute.xlu1 %3729 }
 0xaa6   :  { %16716 = vst [vmem:[#allocation42_spill] sm:$0xff] %v12224_v3  ;;  %v3745_v62 = vsel %vm98_vm6, %v12037_v42, %v12224_v3  ;;  %v12234_v36 = vpop.permute.xlu0 %3817 }
 0xaa7   :  { %v3750_v35 = vmul.f32 %v3745_v62, %v16687_v14 }
 0xaa9   :  { %4160 = vmatpush.msra.mxu2 %v3750_v35 }
 0xaab   :  { %4161 = vmatpush.msra.mxu2 %v3714_v11 }
 0xaac   :  { %v12252_v14 = vpop.permute.xlu2 %3945 }
 0xaad   :  { %4162 = vmatpush.msra.mxu2 %v3710_v18  ;;  %v12247_v16 = vpop.permute.xlu1 %3977  ;;  %v16717_v18 = vld [vmem:[#allocation14_spill] sm:$0xff]  ;;  %v3955_v46 = vsel %vm227_vm1, %v12252_v14, %v12043_v56 }
 0xaae   :  { %4163 = vmatmul.f32.vlgmr.msra.gmra.mxu2 %v12245_v41  ;;  %v12250_v62 = vpop.permute.xlu0 %3777  ;;  %v3991_v22 = vsel %vm252_vm0, %v12247_v16, %v12085_v59 }
 0xaaf   :  { %v3998_v38 = vmul.f32 %v3991_v22, %v16689_v40 }
 0xab4   :  { %v12274_v3 = vpop.permute.xlu2 %3737 }
 0xab5   :  { %v3980_v63 = vpop.permute.xlu1 %3979 }
 0xab6   :  { %v3992_v35 = vsel %vm252_vm0, %v3980_v63, %v12241_v54  ;;  %v3994_v32 = vsel %vm252_vm0, %v12055_v21, %v3980_v63  ;;  %4166 = vmatmul.f32.gmra.mxu2 %v12254_v57  ;;  %v12267_v11 = vpop.permute.xlu0 %3865 }
 0xab7   :  { %v4001_v15 = vmul.f32 %v3994_v32, %v16717_v18  ;;  %v4002_v51 = vmul.f32 %v3992_v35, %v16689_v40  ;;  %v3827_v35 = vsel %vm148_vm4, %v12234_v36, %v12077_v9 }
 0xab9   :  { %4138 = vmatpush.msra.mxu1 %v4001_v15  ;;  %4184 = vmatpush.msrb.mxu0 %v4002_v51  ;;  %v16718_v51 = vld [vmem:[#allocation29_spill] sm:$0xff] }
 0xaba   :  { %v3829_v32 = vmul.f32 %v3827_v35, %v16718_v51 }
 0xabb   :  { %4185 = vmatpush.msrb.mxu0 %v3998_v38  ;;  %v12288_v38 = vld [vmem:[#allocation3 + $0xb8] sm:$0xff] }
 0xabc   :  { %8341 = vmatmul.msk.f32.vlgmr.msrb.gmra.mxu0 %vm846_vm9, %v12272_v26  ;;  %v12295_v55 = vpop.permute.xlu2 %3867 }
 0xabd   :  { %v12278_v63 = vpop.permute.xlu1 %3905 }
 0xabe   :  { %v3820_v24 = vpop.permute.xlu0 %3819  ;;  %v3915_v56 = vsel %vm202_vm2, %v12278_v63, %v12053_v8  ;;  %v3875_v8 = vsel %vm177_vm3, %v12267_v11, %v12065_v61 }
 0xabf   :  { %v3828_v15 = vsel %vm148_vm4, %v3820_v24, %v12171_v20  ;;  %v3787_v20 = vsel %vm123_vm5, %v12250_v62, %v12089_v27 }
 0xac0   :  { %v3833_v22 = vmul.f32 %v3828_v15, %v16718_v51 }
 0xac2   :  { %4109 = vmatpush.msrb.mxu3 %v3833_v22  ;;  %v16719_v22 = vld [vmem:[#allocation32_spill] sm:$0xff] }
 0xac3   :  { %v3789_v51 = vmul.f32 %v3787_v20, %v16719_v22 }
 0xac4   :  { %8342 = vmatmul.msk.f32.gmra.mxu0 %vm846_vm9, %v12288_v38  ;;  %4110 = vmatpush.msrb.mxu3 %v3829_v32 }
 0xac5   :  { %v12293_v40 = vpop.permute.xlu1 %3697 }
 0xac6   :  { %v3780_v9 = vpop.permute.xlu0 %3779 }
 0xac7   :  { %v3788_v15 = vsel %vm123_vm5, %v3780_v9, %v12191_v45  ;;  %v12314_v45 = vpop.permute.xlu2 %3813 }
 0xac8   :  { %v3793_v35 = vmul.f32 %v3788_v15, %v16719_v22  ;;  %v3876_v15 = vsel %vm177_vm3, %v12295_v55, %v12146_v28  ;;  %v16720_v28 = vld [vmem:[#allocation34_spill] sm:$0xff] }
 0xaca   :  { %4111 = vmatpush.msrb.mxu3 %v3793_v35 }
 0xacc   :  { %4112 = vmatpush.msrb.mxu3 %v3789_v51  ;;  %v3960_v51 = vmul.f32 %v3955_v46, %v16694_v49 }
 0xacd   :  { %v3948_v32 = vpop.permute.xlu1 %3947 }
 0xace   :  { %v3956_v27 = vsel %vm227_vm1, %v3948_v32, %v12099_v30  ;;  %v3908_v47 = vpop.permute.xlu0 %3907 }
 0xacf   :  { %v3964_v6 = vmul.f32 %v3956_v27, %v16694_v49  ;;  %v3916_v20 = vsel %vm202_vm2, %v3908_v47, %v12117_v2  ;;  %v3920_v2 = vmul.f32 %v3915_v56, %v16697_v31  ;;  %v3880_v56 = vmul.f32 %v3875_v8, %v16701_v34  ;;  %v12823_v49 = vld [vmem:[#allocation3 + $0x18] sm:$0xff] }
 0xad0   :  { %v3924_v30 = vmul.f32 %v3916_v20, %v16697_v31  ;;  %v3821_v8 = vsel %vm148_vm4, %v12314_v45, %v12234_v36 }
 0xad1   :  { %4239 = vmatpush.msra.mxu0 %v3964_v6  ;;  %v3747_v6 = vsel %vm98_vm6, %v12274_v3, %v12037_v42 }
 0xad2   :  { %v3749_v61 = vmul.f32 %v3747_v6, %v16720_v28 }
 0xad3   :  { %4240 = vmatpush.msra.mxu0 %v3960_v51  ;;  %v3884_v51 = vmul.f32 %v3876_v15, %v16701_v34 }
 0xad5   :  { %4241 = vmatpush.msra.mxu0 %v3924_v30  ;;  %v3740_v35 = vpop.permute.xlu1 %3739  ;;  %v12355_v30 = vpop.permute.xlu2 %3735 }
 0xad6   :  { %v3748_v46 = vsel %vm98_vm6, %v3740_v35, %v12020_v53  ;;  %v12341_v27 = vpop.permute.xlu0 %3699  ;;  %v3707_v53 = vsel %vm73_vm7, %v12293_v40, %v12012_v39 }
 0xad7   :  { %4242 = vmatpush.msra.mxu0 %v3920_v2  ;;  %v3753_v20 = vmul.f32 %v3748_v46, %v16720_v28  ;;  %v3708_v42 = vsel %vm73_vm7, %v12341_v27, %v12216_v23  ;;  %v3822_v23 = vsel %vm148_vm4, %v12220_v10, %v3820_v24  ;;  %v3950_v2 = vsel %vm227_vm1, %v12126_v60, %v3948_v32 }
 0xad8   :  { %v3713_v15 = vmul.f32 %v3708_v42, %v16552_v1  ;;  %v3709_v39 = vmul.f32 %v3707_v53, %v16552_v1  ;;  %v3949_v60 = vsel %vm227_vm1, %v12067_v25, %v12252_v14  ;;  %v3836_v32 = vmul.f32 %v3822_v23, %v16704_v29  ;;  %v16722_v42 = vld [vmem:[#allocation10_spill] sm:$0xff] }
 0xad9   :  { %4113 = vmatpush.msrb.mxu3 %v3753_v20  ;;  %4243 = vmatpush.msra.mxu0 %v3884_v51  ;;  %v16721_v20 = vld [vmem:[#allocation9_spill] sm:$0xff]  ;;  %v3910_v51 = vsel %vm202_vm2, %v12155_v44, %v3908_v47  ;;  %v3832_v14 = vmul.f32 %v3821_v8, %v16704_v29  ;;  %v3870_v25 = vsel %vm177_vm3, %v12173_v17, %v12295_v55 }
 0xada   :  { %v3963_v36 = vmul.f32 %v3950_v2, %v16721_v20  ;;  %v3869_v17 = vsel %vm177_vm3, %v12091_v0, %v12267_v11  ;;  %v3824_v8 = vsel %vm148_vm4, %v12168_v33, %v12220_v10  ;;  %v3823_v33 = vsel %vm148_vm4, %v12061_v13, %v12314_v45 }
 0xadb   :  { %4114 = vmatpush.msrb.mxu3 %v3749_v61  ;;  %4244 = vmatpush.msra.mxu0 %v3880_v56  ;;  %v3923_v61 = vmul.f32 %v3910_v51, %v16722_v42  ;;  %v16725_v51 = vld [vmem:[#allocation48_spill] sm:$0xff] }
 0xadd   :  { %4115 = vmatpush.msrb.mxu3 %v3713_v15  ;;  %4245 = vmatpush.msra.mxu0 %v12031_v58  ;;  %v3974_v6 = vpop.permute.xlu1 %3973  ;;  %v3986_v44 = vpop.permute.xlu2 %3985  ;;  %v3883_v15 = vmul.f32 %v3870_v25, %v8672_v37  ;;  %v16728_v25 = vld [vmem:[#allocation46_spill] sm:$0xff] }
 0xade   :  { %v3993_v46 = vsel %vm252_vm0, %v3974_v6, %v12247_v16  ;;  %v12373_v24 = vpop.permute.xlu0 %3775  ;;  %v3989_v0 = vsel %vm252_vm0, %v12085_v59, %v3986_v44  ;;  %v3995_v23 = vsel %vm252_vm0, %v3986_v44, %v3974_v6  ;;  %v16729_v44 = vld [vmem:[#allocation42_spill] sm:$0xff] }
 0xadf   :  { %4116 = vmatpush.msrb.mxu3 %v3709_v39  ;;  %4246 = vmatpush.msra.mxu0 %v12006_v19  ;;  %v3997_v58 = vmul.f32 %v3993_v46, %v16717_v18  ;;  %v3782_v16 = vsel %vm123_vm5, %v12373_v24, %v3780_v9  ;;  %v3959_v19 = vmul.f32 %v3949_v60, %v16721_v20 }
 0xae0   :  { %4117 = vmatmul.f32.vlgmr.msrb.gmra.mxu3 %v12245_v41  ;;  %v3909_v9 = vsel %vm202_vm2, %v12079_v12, %v12278_v63  ;;  %v3796_v47 = vmul.f32 %v3782_v16, %v16705_v5  ;;  %v3742_v12 = vsel %vm98_vm6, %v12355_v30, %v3740_v35  ;;  %v4000_v6 = vmul.f32 %v3995_v23, %v16543_v52 }
 0xae1   :  { %4139 = vmatpush.msra.mxu1 %v3997_v58  ;;  %4247 = vmatpush.msra.mxu0 %v3836_v32  ;;  %v3919_v53 = vmul.f32 %v3909_v9, %v16722_v42  ;;  %v3756_v59 = vmul.f32 %v3742_v12, %v16706_v48  ;;  %v3784_v13 = vsel %vm123_vm5, %v16725_v51, %v12373_v24  ;;  %v16731_v12 = vld [vmem:[#allocation44_spill] sm:$0xff] }
 0xae2   :  { %8339 = vmatmul.msk.f32.vlgmr.msra.gmra.mxu1 %vm846_vm9, %v12272_v26 }
 0xae3   :  { %4193 = vmatpush.msrb.mxu1 %v3963_v36  ;;  %4248 = vmatpush.msra.mxu0 %v3832_v14  ;;  %v16727_v14 = vld [vmem:[#allocation23_spill] sm:$0xff] }
 0xae5   :  { %4194 = vmatpush.msrb.mxu1 %v3959_v19  ;;  %4249 = vmatpush.msra.mxu0 %v3796_v47  ;;  %v3774_v55 = vpop.permute.xlu1 %3773  ;;  %v3795_v19 = vmul.f32 %v3784_v13, %v16727_v14 }
 0xae6   :  { %v3781_v63 = vsel %vm123_vm5, %v3774_v55, %v12250_v62  ;;  %v3988_v56 = vpop.permute.xlu0 %3987 }
 0xae7   :  { %4195 = vmatpush.msrb.mxu1 %v3923_v61  ;;  %v3990_v11 = vsel %vm252_vm0, %v12241_v54, %v3988_v56  ;;  %v3996_v35 = vsel %vm252_vm0, %v3988_v56, %v12055_v21  ;;  %v3792_v62 = vmul.f32 %v3781_v63, %v16705_v5  ;;  %v3879_v54 = vmul.f32 %v3869_v17, %v8672_v37  ;;  %v16732_v56 = vld [vmem:[#allocation40_spill] sm:$0xff] }
 0xae8   :  { %v4003_v2 = vmul.f32 %v3990_v11, %v16624_v43  ;;  %v4004_v39 = vmul.f32 %v3996_v35, %v16543_v52  ;;  %4120 = vmatmul.f32.gmra.mxu3 %v12254_v57  ;;  %v3999_v21 = vmul.f32 %v3989_v0, %v16624_v43 }
 0xae9   :  { %4196 = vmatpush.msrb.mxu1 %v3919_v53  ;;  %4250 = vmatpush.msra.mxu0 %v3792_v62 }
 0xaea   :  { %4230 = vmatpush.msra.mxu3 %v4003_v2  ;;  %4276 = vmatpush.msrb.mxu2 %v4004_v39 }
 0xaeb   :  { %4197 = vmatpush.msrb.mxu1 %v3883_v15  ;;  %4251 = vmatpush.msra.mxu0 %v3756_v59  ;;  %v16733_v15 = vld [vmem:[#allocation27_spill] sm:$0xff] }
 0xaec   :  { %4231 = vmatpush.msra.mxu3 %v3999_v21  ;;  %4277 = vmatpush.msrb.mxu2 %v4000_v6 }
 0xaed   :  { %4198 = vmatpush.msrb.mxu1 %v3879_v54  ;;  %v3734_v46 = vpop.permute.xlu1 %3733  ;;  %8345 = vmatmul.msk.f32.vlgmr.msrb.gmra.mxu2 %vm846_vm9, %v12272_v26 }
 0xaee   :  { %8340 = vmatmul.msk.f32.gmra.mxu1 %vm846_vm9, %v12288_v38  ;;  %v3741_v60 = vsel %vm98_vm6, %v3734_v46, %v12274_v3  ;;  %v3696_v58 = vpop.permute.xlu0 %3695  ;;  %v16723_v3 = vld [vmem:[#allocation20_spill] sm:$0xff]  ;;  %v3743_v61 = vsel %vm98_vm6, %v16729_v44, %v3734_v46 }
 0xaef   :  { %4199 = vmatpush.msrb.mxu1 %v11970_v4  ;;  %v3702_v10 = vsel %vm73_vm7, %v3696_v58, %v12341_v27  ;;  %v3752_v32 = vmul.f32 %v3741_v60, %v16706_v48  ;;  %v3835_v36 = vmul.f32 %v3824_v8, %v16723_v3  ;;  %v16724_v4 = vld [vmem:[#allocation31_spill] sm:$0xff]  ;;  %v3831_v45 = vmul.f32 %v3823_v33, %v16723_v3  ;;  %v12517_v60 = vpop.permute.xlu2 %4092 }
 0xaf0   :  { %v3716_v16 = vmul.f32 %v3702_v10, %v16724_v4  ;;  %8343 = vmatmul.msk.f32.vlgmr.msra.gmra.mxu3 %vm846_vm9, %v12272_v26  ;;  %v16726_v27 = vld [vmem:[#allocation47_spill] sm:$0xff]  ;;  %v3744_v26 = vsel %vm98_vm6, %v16728_v25, %v12355_v30 }
 0xaf1   :  { %4200 = vmatpush.msrb.mxu1 %v11943_v50  ;;  %4252 = vmatpush.msra.mxu0 %v3752_v32  ;;  %v3783_v50 = vsel %vm123_vm5, %v16726_v27, %v3774_v55  ;;  %v16730_v55 = vld [vmem:[#allocation24_spill] sm:$0xff] }
 0xaf2   :  { %v3791_v47 = vmul.f32 %v3783_v50, %v16727_v14  ;;  %v3755_v30 = vmul.f32 %v3744_v26, %v16730_v55  ;;  %v3751_v63 = vmul.f32 %v3743_v61, %v16730_v55 }
 0xaf3   :  { %4201 = vmatpush.msrb.mxu1 %v3835_v36  ;;  %4253 = vmatpush.msra.mxu0 %v3716_v16 }
 0xaf5   :  { %4202 = vmatpush.msrb.mxu1 %v3831_v45  ;;  %v3694_v9 = vpop.permute.xlu1 %3693  ;;  %8346 = vmatmul.msk.f32.gmra.mxu2 %vm846_vm9, %v12288_v38 }
 0xaf6   :  { %v3701_v24 = vsel %vm73_vm7, %v3694_v9, %v12293_v40  ;;  %v3704_v40 = vsel %vm73_vm7, %v16731_v12, %v3696_v58  ;;  %v3703_v53 = vsel %vm73_vm7, %v16732_v56, %v3694_v9  ;;  %v4088_v35 = vpop.permute.xlu0 %4087 }
 0xaf7   :  { %4203 = vmatpush.msrb.mxu1 %v3795_v19  ;;  %v3712_v17 = vmul.f32 %v3701_v24, %v16724_v4  ;;  %v3715_v0 = vmul.f32 %v3704_v40, %v16733_v15 }
 0xaf8   :  { %8344 = vmatmul.msk.f32.gmra.mxu3 %vm846_vm9, %v12288_v38  ;;  %v3711_v38 = vmul.f32 %v3703_v53, %v16733_v15 }
 0xaf9   :  { %4204 = vmatpush.msrb.mxu1 %v3791_v47  ;;  %4254 = vmatpush.msra.mxu0 %v3712_v17 }
 0xafa   :  { %4255 = vmatmul.f32.vlgmr.msra.gmra.mxu0 %v12245_v41 }
 0xafb   :  { %4205 = vmatpush.msrb.mxu1 %v3755_v30 }
 0xafd   :  { %4206 = vmatpush.msrb.mxu1 %v3751_v63 }
 0xaff   :  { %4207 = vmatpush.msrb.mxu1 %v3715_v0 }
 0xb01   :  { %4208 = vmatpush.msrb.mxu1 %v3711_v38 }
 0xb02   :  { %4209 = vmatmul.f32.vlgmr.msrb.gmra.mxu1 %v12245_v41  ;;  %4258 = vmatmul.f32.gmra.mxu0 %v12254_v57 }
 0xb0a   :  { %4212 = vmatmul.f32.gmra.mxu1 %v12254_v57 }
 0xb31   :  { %v4164_v11 = vpop.f32.mrf.mxu2 }
 0xb32   :  { %v4165_v62 = vadd.f32 %v4164_v11, %v4088_v35 }
 0xb39   :  { %v4187_v23 = vpop.f32.mrf.mxu0  ;;  %v4167_v32 = vpop.f32.mrf.mxu2 }
 0xb3a   :  { %v4188_v2 = vadd.f32 %v4187_v23, %v4165_v62  ;;  %v4168_v51 = vadd.f32 %v4167_v32, %v12517_v60 }
 0xb3c   :  { %v4286_v39 = vmul.f32 0.2, %v4188_v2 }
 0xb3e   :  { %v12499_v59 = vmax.f32 %v4188_v2, %v4286_v39 }
 0xb40   :  { %4519 = vrot.lane.b32.xlu2 %v12499_v59, %s8466_s27  ;;  %4559 = vrot.lane.b32.xlu1 %v12499_v59, %s8465_s26 }
 0xb41   :  { %v4190_v16 = vpop.f32.mrf.mxu0 }
 0xb42   :  { %v4191_v13 = vadd.f32 %v4190_v16, %v4168_v51 }
 0xb44   :  { %v4290_v27 = vmul.f32 0.2, %v4191_v13 }
 0xb46   :  { %v12537_v50 = vmax.f32 %v4191_v13, %v4290_v27 }
 0xb5f   :  { %v4141_v41 = vpop.f32.mrf.mxu1 }
 0xb63   :  { %v4118_v54 = vpop.f32.mrf.mxu3 }
 0xb64   :  { %v4119_v21 = vadd.f32 %v4118_v54, %v4088_v35 }
 0xb66   :  { %v4142_v6 = vadd.f32 %v4141_v41, %v4119_v21 }
 0xb68   :  { %v4285_v8 = vmul.f32 0.2, %v4142_v6 }
 0xb6a   :  { %v12505_v57 = vmax.f32 %v4142_v6, %v4285_v8 }
 0xb6b   :  { %v4121_v46 = vpop.f32.mrf.mxu3  ;;  %v4144_v33 = vpop.f32.mrf.mxu1 }
 0xb6c   :  { %4475 = vrot.lane.b32.xlu2 %v12505_v57, %s8467_s28  ;;  %4515 = vrot.lane.b32.xlu1 %v12505_v57, %s8466_s27  ;;  %v4122_v58 = vadd.f32 %v4121_v46, %v12517_v60 }
 0xb6d   :  { %4555 = vrot.lane.b32.xlu0 %v12505_v57, %s8465_s26 }
 0xb6e   :  { %v4145_v10 = vadd.f32 %v4144_v33, %v4122_v58 }
 0xb70   :  { %v4289_v36 = vmul.f32 0.2, %v4145_v10  ;;  %v4279_v26 = vpop.f32.mrf.mxu2 }
 0xb72   :  { %v12529_v45 = vmax.f32 %v4145_v10, %v4289_v36 }
 0xb73   :  { %v4233_v61 = vpop.f32.mrf.mxu3 }
 0xb74   :  { %4347 = vrot.lane.b32.xlu2 %v12505_v57, %s8463_s19  ;;  %4307 = vrot.lane.b32.xlu1 %v12505_v57, %s8470_s13 }
 0xb75   :  { %4479 = vrot.lane.b32.xlu0 %v12499_v59, %s8467_s28 }
 0xb77   :  { %v4256_v19 = vpop.f32.mrf.mxu0 }
 0xb78   :  { %v4257_v25 = vadd.f32 %v4256_v19, %v4088_v35  ;;  %v4282_v38 = vpop.f32.mrf.mxu2 }
 0xb7a   :  { %v4280_v9 = vadd.f32 %v4279_v26, %v4257_v25 }
 0xb7b   :  { %v4236_v39 = vpop.f32.mrf.mxu3 }
 0xb7c   :  { %4599 = vrot.lane.b32.xlu2 %v12499_v59, %s8464_s25  ;;  %4595 = vrot.lane.b32.xlu1 %v12505_v57, %s8464_s25  ;;  %v4288_v47 = vmul.f32 0.2, %v4280_v9 }
 0xb7d   :  { %4427 = vrot.lane.b32.xlu0 %v12505_v57, %s8468_s11 }
 0xb7e   :  { %v12563_v17 = vmax.f32 %v4280_v9, %v4288_v47 }
 0xb7f   :  { %v4210_v24 = vpop.f32.mrf.mxu1  ;;  %v4259_v56 = vpop.f32.mrf.mxu0 }
 0xb80   :  { %v4211_v44 = vadd.f32 %v4210_v24, %v4088_v35  ;;  %16734 = vst [vmem:[#allocation45_spill] sm:$0xff] %v12563_v17  ;;  %v4260_v53 = vadd.f32 %v4259_v56, %v12517_v60  ;;  %v16740_v24 = vld [vmem:[#allocation16_spill] sm:$0xff] }
 0xb82   :  { %v4234_v30 = vadd.f32 %v4233_v61, %v4211_v44  ;;  %v4283_v11 = vadd.f32 %v4282_v38, %v4260_v53 }
 0xb84   :  { %4431 = vrot.lane.b32.xlu2 %v12499_v59, %s8468_s11  ;;  %4557 = vrot.lane.b32.xlu1 %v12529_v45, %s8465_s26  ;;  %v4287_v12 = vmul.f32 0.2, %v4234_v30  ;;  %v4292_v62 = vmul.f32 0.2, %v4283_v11 }
 0xb85   :  { %4387 = vrot.lane.b32.xlu0 %v12505_v57, %s8469_s12 }
 0xb86   :  { %v12571_v40 = vmax.f32 %v4234_v30, %v4287_v12  ;;  %v12605_v54 = vmax.f32 %v4283_v11, %v4292_v62  ;;  %v4306_v11 = vld [vmem:[%s16147_s5 + $0x8] sm:$0xff] }
 0xb87   :  { %v4213_v35 = vpop.f32.mrf.mxu1 }
 0xb88   :  { %v4214_v23 = vadd.f32 %v4213_v35, %v12517_v60  ;;  %16736 = vst [vmem:[#allocation39_spill] sm:$0xff] %v12605_v54 }
 0xb8a   :  { %v4237_v41 = vadd.f32 %v4236_v39, %v4214_v23 }
 0xb8c   :  { %4561 = vrot.lane.b32.xlu2 %v12537_v50, %s8465_s26  ;;  %4481 = vrot.lane.b32.xlu1 %v12537_v50, %s8467_s28  ;;  %v4291_v21 = vmul.f32 0.2, %v4237_v41 }
 0xb8d   :  { %4391 = vrot.lane.b32.xlu0 %v12499_v59, %s8469_s12 }
 0xb8e   :  { %v12617_v46 = vmax.f32 %v4237_v41, %v4291_v21  ;;  %v16742_v21 = vld [vmem:[#allocation18_spill] sm:$0xff] }
 0xb94   :  { %4517 = vrot.lane.b32.xlu2 %v12529_v45, %s8466_s27  ;;  %4429 = vrot.lane.b32.xlu1 %v12529_v45, %s8468_s11 }
 0xb95   :  { %4351 = vrot.lane.b32.xlu0 %v12499_v59, %s8463_s19 }
 0xb9a   :  { %v12585_v63 = vpop.permute.xlu2 %4519 }
 0xb9c   :  { %4389 = vrot.lane.b32.xlu2 %v12529_v45, %s8469_s12  ;;  %4349 = vrot.lane.b32.xlu1 %v12529_v45, %s8463_s19 }
 0xb9d   :  { %4521 = vrot.lane.b32.xlu0 %v12537_v50, %s8466_s27 }
 0xba4   :  { %4597 = vrot.lane.b32.xlu2 %v12529_v45, %s8464_s25  ;;  %4393 = vrot.lane.b32.xlu1 %v12537_v50, %s8469_s12 }
 0xba5   :  { %4477 = vrot.lane.b32.xlu0 %v12529_v45, %s8467_s28 }
 0xbac   :  { %4353 = vrot.lane.b32.xlu2 %v12537_v50, %s8463_s19  ;;  %4439 = vrot.lane.b32.xlu1 %v12563_v17, %s8468_s11 }
 0xbad   :  { %4309 = vrot.lane.b32.xlu0 %v12529_v45, %s8470_s13 }
 0xbb2   :  { %v12613_v6 = vpop.permute.xlu1 %4559 }
 0xbb4   :  { %4563 = vrot.lane.b32.xlu2 %v12571_v40, %s8465_s26  ;;  %4399 = vrot.lane.b32.xlu1 %v12563_v17, %s8469_s12 }
 0xbb5   :  { %4601 = vrot.lane.b32.xlu0 %v12537_v50, %s8464_s25 }
 0xbbc   :  { %4527 = vrot.lane.b32.xlu2 %v12563_v17, %s8466_s27  ;;  %4523 = vrot.lane.b32.xlu1 %v12571_v40, %s8466_s27 }
 0xbbd   :  { %4433 = vrot.lane.b32.xlu0 %v12537_v50, %s8468_s11 }
 0xbc4   :  { %4319 = vrot.lane.b32.xlu2 %v12563_v17, %s8470_s13  ;;  %4487 = vrot.lane.b32.xlu1 %v12563_v17, %s8467_s28 }
 0xbc5   :  { %4567 = vrot.lane.b32.xlu0 %v12563_v17, %s8465_s26 }
 0xbc6   :  { %v12594_v0 = vpop.permute.xlu2 %4475 }
 0xbc7   :  { %16735 = vst [vmem:[#allocation41_spill] sm:$0xff] %v12594_v0 }
 0xbcc   :  { %4603 = vrot.lane.b32.xlu2 %v12571_v40, %s8464_s25  ;;  %4395 = vrot.lane.b32.xlu1 %v12571_v40, %s8469_s12 }
 0xbcd   :  { %4359 = vrot.lane.b32.xlu0 %v12563_v17, %s8463_s19 }
 0xbce   :  { %v12603_v2 = vpop.permute.xlu2 %4347 }
 0xbd4   :  { %4441 = vrot.lane.b32.xlu2 %v12605_v54, %s8468_s11  ;;  %4355 = vrot.lane.b32.xlu1 %v12571_v40, %s8463_s19 }
 0xbd5   :  { %4483 = vrot.lane.b32.xlu0 %v12571_v40, %s8467_s28 }
 0xbd6   :  { %v12615_v8 = vpop.permute.xlu2 %4599 }
 0xbdc   :  { %4569 = vrot.lane.b32.xlu2 %v12605_v54, %s8465_s26  ;;  %4565 = vrot.lane.b32.xlu1 %v12617_v46, %s8465_s26 }
 0xbdd   :  { %4435 = vrot.lane.b32.xlu0 %v12571_v40, %s8468_s11 }
 0xbde   :  { %v12625_v60 = vpop.permute.xlu2 %4431  ;;  %v12627_v58 = vpop.permute.xlu1 %4515 }
 0xbdf   :  { %16737 = vst [vmem:[#allocation43_spill] sm:$0xff] %v12627_v58  ;;  %v12629_v33 = vpop.permute.xlu0 %4555  ;;  %v4535_v39 = vsel %vm202_vm2, %v12627_v58, %v12585_v63  ;;  %v16750_v58 = vld [vmem:[#allocation17_spill] sm:$0xff] }
 0xbe0   :  { %v4575_v9 = vsel %vm227_vm1, %v12629_v33, %v12613_v6 }
 0xbe1   :  { %v4579_v44 = vmul.f32 %v4575_v9, %v16740_v24  ;;  %v4925_v9 = vld [vmem:[%s16149_s7] sm:$0xff] }
 0xbe4   :  { %4361 = vrot.lane.b32.xlu2 %v12605_v54, %s8463_s19  ;;  %4529 = vrot.lane.b32.xlu1 %v12605_v54, %s8466_s27 }
 0xbe5   :  { %4401 = vrot.lane.b32.xlu0 %v12605_v54, %s8469_s12 }
 0xbe6   :  { %v12637_v10 = vpop.permute.xlu2 %4561  ;;  %v12639_v32 = vpop.permute.xlu1 %4307 }
 0xbe7   :  { %v12641_v36 = vpop.permute.xlu0 %4479 }
 0xbe8   :  { %v4495_v48 = vsel %vm177_vm3, %v12594_v0, %v12641_v36 }
 0xbec   :  { %4485 = vrot.lane.b32.xlu2 %v12617_v46, %s8467_s28  ;;  %4321 = vrot.lane.b32.xlu1 %v12605_v54, %s8470_s13 }
 0xbed   :  { %4525 = vrot.lane.b32.xlu0 %v12617_v46, %s8466_s27 }
 0xbee   :  { %v12649_v16 = vpop.permute.xlu2 %4517  ;;  %v12651_v51 = vpop.permute.xlu1 %4595 }
 0xbef   :  { %16738 = vst [vmem:[#allocation38_spill] sm:$0xff] %v12649_v16  ;;  %v12653_v13 = vpop.permute.xlu0 %4427 }
 0xbf0   :  { %16739 = vst [vmem:[#allocation48_spill] sm:$0xff] %v12651_v51 }
 0xbf4   :  { %4397 = vrot.lane.b32.xlu2 %v12617_v46, %s8469_s12  ;;  %4313 = vrot.lane.b32.xlu1 %v12537_v50, %s8470_s13 }
 0xbf5   :  { %4489 = vrot.lane.b32.xlu0 %v12605_v54, %s8467_s28 }
 0xbf6   :  { %v12661_v27 = vpop.permute.xlu2 %4389  ;;  %v12663_v19 = vpop.permute.xlu1 %4557 }
 0xbf7   :  { %v12665_v25 = vpop.permute.xlu0 %4387  ;;  %v4576_v26 = vsel %vm227_vm1, %v12663_v19, %v12637_v10 }
 0xbf8   :  { %v4583_v47 = vmul.f32 %v4576_v26, %v16740_v24 }
 0xbfa   :  { %4723 = vmatpush.msrb.mxu3 %v4583_v47  ;;  %v4926_v47 = vld [vmem:[%s16149_s7 + $0x8] sm:$0xff] }
 0xbfc   :  { %4609 = vrot.lane.b32.xlu2 %v12605_v54, %s8464_s25  ;;  %4437 = vrot.lane.b32.xlu1 %v12617_v46, %s8468_s11 }
 0xbfd   :  { %4607 = vrot.lane.b32.xlu0 %v12563_v17, %s8464_s25  ;;  %4724 = vmatpush.msrb.mxu3 %v4579_v44  ;;  %v4305_v44 = vld [vmem:[%s16147_s5] sm:$0xff] }
 0xbfe   :  { %v12683_v61 = vpop.permute.xlu2 %4597  ;;  %v12685_v30 = vpop.permute.xlu1 %4481 }
 0xbff   :  { %16741 = vst [vmem:[#allocation47_spill] sm:$0xff] %v12683_v61  ;;  %v12687_v12 = vpop.permute.xlu0 %4391 }
 0xc04   :  { %4317 = vrot.lane.b32.xlu2 %v12617_v46, %s8470_s13  ;;  %4605 = vrot.lane.b32.xlu1 %v12617_v46, %s8464_s25 }
 0xc05   :  { %4357 = vrot.lane.b32.xlu0 %v12617_v46, %s8463_s19 }
 0xc06   :  { %v12695_v56 = vpop.permute.xlu2 %4353  ;;  %v12697_v53 = vpop.permute.xlu1 %4429 }
 0xc07   :  { %v12699_v38 = vpop.permute.xlu0 %4351 }
 0xc0c   :  { %4714 = vperm.xlu2 %8428, %v4306_v11   ;;  %4315 = vrot.lane.b32.xlu1 %v12571_v40, %s8470_s13  ;;  %v4539_v11 = vmul.f32 %v4535_v39, %v16742_v21 }
 0xc0d   :  { %4311 = vrot.lane.b32.xlu0 %v12499_v59, %s8470_s13 }
 0xc0e   :  { %v4564_v35 = vpop.permute.xlu2 %4563  ;;  %v12708_v62 = vpop.permute.xlu1 %4349 }
 0xc0f   :  { %v12710_v23 = vpop.permute.xlu0 %4521 }
 0xc10   :  { %v4536_v41 = vsel %vm202_vm2, %v12649_v16, %v12710_v23 }
 0xc11   :  { %v4543_v26 = vmul.f32 %v4536_v41, %v16742_v21 }
 0xc13   :  { %4725 = vmatpush.msrb.mxu3 %v4543_v26  ;;  %v16744_v26 = vld [vmem:[#allocation25_spill] sm:$0xff] }
 0xc14   :  { %4929 = vperm.xlu2 %8428, %v4925_v9   ;;  %4934 = vperm.xlu1 %8430, %v4926_v47   ;;  %v4499_v47 = vmul.f32 %v4495_v48, %v16744_v26  ;;  %v4615_v48 = vsel %vm252_vm0, %v12651_v51, %v12615_v8 }
 0xc15   :  { %4709 = vperm.xlu0 %8429, %v4305_v44   ;;  %4726 = vmatpush.msrb.mxu3 %v4539_v11 }
 0xc16   :  { %v12731_v41 = vpop.permute.xlu2 %4527  ;;  %v12733_v24 = vpop.permute.xlu1 %4393 }
 0xc17   :  { %v12735_v4 = vpop.permute.xlu0 %4477 }
 0xc18   :  { %16743 = vst [vmem:[#allocation46_spill] sm:$0xff] %v12735_v4  ;;  %v4496_v39 = vsel %vm177_vm3, %v12735_v4, %v12685_v30 }
 0xc19   :  { %v4503_v9 = vmul.f32 %v4496_v39, %v16744_v26 }
 0xc1b   :  { %4727 = vmatpush.msrb.mxu3 %v4503_v9 }
 0xc1d   :  { %4728 = vmatpush.msrb.mxu3 %v4499_v47 }
 0xc1e   :  { %v12747_v44 = vpop.permute.xlu2 %4319  ;;  %v12749_v11 = vpop.permute.xlu1 %4439 }
 0xc1f   :  { %16745 = vst [vmem:[#allocation42_spill] sm:$0xff] %v12747_v44  ;;  %v12751_v21 = vpop.permute.xlu0 %4309  ;;  %4729 = vmatpush.msrb.mxu3 %v12529_v45  ;;  %v4449_v26 = vsel %vm148_vm4, %v12749_v11, %v12653_v13 }
 0xc20   :  { %16746 = vst [vmem:[#allocation44_spill] sm:$0xff] %v12749_v11 }
 0xc21   :  { %4730 = vmatpush.msrb.mxu3 %v12505_v57  ;;  %v4619_v57 = vmul.f32 %v4615_v48, %v16717_v18 }
 0xc26   :  { %v12755_v5 = vpop.permute.xlu2 %4603  ;;  %v12757_v29 = vpop.permute.xlu1 %4399 }
 0xc27   :  { %v12759_v17 = vpop.permute.xlu0 %4601 }
 0xc28   :  { %v4616_v39 = vsel %vm252_vm0, %v12683_v61, %v12759_v17 }
 0xc29   :  { %v4623_v45 = vmul.f32 %v4616_v39, %v16717_v18  ;;  %v16748_v39 = vld [vmem:[#allocation29_spill] sm:$0xff] }
 0xc2a   :  { %v4451_v48 = vmul.f32 %v4449_v26, %v16748_v39  ;;  %v4573_v26 = vsel %vm227_vm1, %v12613_v6, %v4564_v35 }
 0xc2b   :  { %4760 = vmatpush.msra.mxu1 %v4623_v45 }
 0xc2d   :  { %4761 = vmatpush.msra.mxu1 %v4619_v57 }
 0xc2e   :  { %v12771_v9 = vpop.permute.xlu2 %4441  ;;  %v4524_v47 = vpop.permute.xlu1 %4523 }
 0xc2f   :  { %16747 = vst [vmem:[#allocation40_spill] sm:$0xff] %v12771_v9  ;;  %v12777_v54 = vpop.permute.xlu0 %4433  ;;  %v4450_v34 = vsel %vm148_vm4, %v12771_v9, %v12697_v53 }
 0xc30   :  { %v4455_v45 = vmul.f32 %v4450_v34, %v16748_v39  ;;  %v12799_v34 = vld [vmem:[#allocation3 + $0x8] sm:$0xff] }
 0xc31   :  { %8347 = vmatmul.msk.f32.vlgmr.msra.gmra.mxu1 %vm846_vm9, %v12799_v34 }
 0xc32   :  { %4731 = vmatpush.msrb.mxu3 %v4455_v45 }
 0xc34   :  { %4732 = vmatpush.msrb.mxu3 %v4451_v48 }
 0xc36   :  { %v12785_v57 = vpop.permute.xlu1 %4487  ;;  %v12795_v51 = vpop.permute.xlu2 %4569 }
 0xc37   :  { %v12787_v18 = vpop.permute.xlu0 %4567 }
 0xc38   :  { %v4571_v45 = vsel %vm227_vm1, %v4564_v35, %v12787_v18  ;;  %v4580_v35 = vmul.f32 %v4573_v26, %v16750_v58 }
 0xc39   :  { %v4581_v16 = vmul.f32 %v4571_v45, %v16721_v20  ;;  %8348 = vmatmul.msk.f32.gmra.mxu1 %vm846_vm9, %v12823_v49 }
 0xc3e   :  { %v12789_v0 = vpop.permute.xlu1 %4395  ;;  %v12819_v15 = vpop.permute.xlu2 %4361 }
 0xc3f   :  { %v12791_v11 = vpop.permute.xlu0 %4359 }
 0xc40   :  { %16749 = vst [vmem:[#allocation49_spill] sm:$0xff] %v12791_v11 }
 0xc46   :  { %v12793_v52 = vpop.permute.xlu1 %4355  ;;  %v4486_v26 = vpop.permute.xlu2 %4485 }
 0xc47   :  { %v12797_v4 = vpop.permute.xlu0 %4483 }
 0xc4e   :  { %v4566_v9 = vpop.permute.xlu1 %4565 }
 0xc4f   :  { %v12807_v48 = vpop.permute.xlu0 %4435  ;;  %v4572_v39 = vsel %vm227_vm1, %v4566_v9, %v12795_v51  ;;  %v4574_v61 = vsel %vm227_vm1, %v12637_v10, %v4566_v9 }
 0xc50   :  { %v4584_v31 = vmul.f32 %v4574_v61, %v16750_v58  ;;  %v4585_v6 = vmul.f32 %v4572_v39, %v16721_v20  ;;  %v4370_v39 = vsel %vm98_vm6, %v12819_v15, %v12708_v62 }
 0xc52   :  { %4769 = vmatpush.msra.mxu2 %v4584_v31  ;;  %4815 = vmatpush.msrb.mxu1 %v4585_v6  ;;  %v4409_v31 = vsel %vm123_vm5, %v12757_v29, %v12665_v25  ;;  %v4369_v6 = vsel %vm98_vm6, %v12791_v11, %v12603_v2 }
 0xc53   :  { %v4411_v45 = vmul.f32 %v4409_v31, %v16719_v22 }
 0xc54   :  { %4770 = vmatpush.msra.mxu2 %v4580_v35  ;;  %4816 = vmatpush.msrb.mxu1 %v4581_v16  ;;  %v4375_v35 = vmul.f32 %v4370_v39, %v16720_v28  ;;  %v4533_v39 = vsel %vm202_vm2, %v12585_v63, %v4524_v47  ;;  %v4494_v63 = vsel %vm177_vm3, %v12685_v30, %v4486_v26  ;;  %v16753_v30 = vld [vmem:[#allocation26_spill] sm:$0xff] }
 0xc56   :  { %v12825_v10 = vpop.permute.xlu1 %4529 }
 0xc57   :  { %v12827_v9 = vpop.permute.xlu0 %4401 }
 0xc58   :  { %v4410_v61 = vsel %vm123_vm5, %v12827_v9, %v12661_v27 }
 0xc59   :  { %v4415_v16 = vmul.f32 %v4410_v61, %v16719_v22  ;;  %v4329_v61 = vsel %vm73_vm7, %v12747_v44, %v12639_v32  ;;  %v4531_v44 = vsel %vm202_vm2, %v4524_v47, %v12731_v41  ;;  %v4493_v47 = vsel %vm177_vm3, %v12641_v36, %v12797_v4 }
 0xc5a   :  { %v4331_v11 = vmul.f32 %v4329_v61, %v16552_v1 }
 0xc5b   :  { %4733 = vmatpush.msrb.mxu3 %v4415_v16  ;;  %v4371_v16 = vmul.f32 %v4369_v6, %v16720_v28  ;;  %v16752_v6 = vld [vmem:[#allocation19_spill] sm:$0xff] }
 0xc5d   :  { %4734 = vmatpush.msrb.mxu3 %v4411_v45 }
 0xc5e   :  { %v12850_v20 = vpop.permute.xlu1 %4321 }
 0xc5f   :  { %16751 = vst [vmem:[#allocation50_spill] sm:$0xff] %v12850_v20  ;;  %v4526_v58 = vpop.permute.xlu0 %4525  ;;  %4735 = vmatpush.msrb.mxu3 %v4375_v35  ;;  %v4330_v31 = vsel %vm73_vm7, %v12850_v20, %v12751_v21 }
 0xc60   :  { %v4532_v45 = vsel %vm202_vm2, %v4526_v58, %v12825_v10  ;;  %v4534_v22 = vsel %vm202_vm2, %v12710_v23, %v4526_v58  ;;  %v4335_v35 = vmul.f32 %v4330_v31, %v16552_v1  ;;  %v4540_v58 = vmul.f32 %v4533_v39, %v16752_v6  ;;  %v12881_v23 = vld [vmem:[#allocation3] sm:$0xff]  ;;  %v12888_v31 = vpop.permute.xlu2 %4397 }
 0xc61   :  { %4736 = vmatpush.msrb.mxu3 %v4371_v16  ;;  %v4544_v28 = vmul.f32 %v4534_v22, %v16752_v6  ;;  %v4545_v20 = vmul.f32 %v4532_v45, %v16722_v42  ;;  %v4541_v22 = vmul.f32 %v4531_v44, %v16722_v42  ;;  %v4500_v39 = vmul.f32 %v4493_v47, %v16753_v30 }
 0xc63   :  { %4737 = vmatpush.msrb.mxu3 %v4335_v35  ;;  %4771 = vmatpush.msra.mxu2 %v4544_v28  ;;  %v4504_v28 = vmul.f32 %v4494_v63, %v16753_v30  ;;  %v12911_v35 = vld [vmem:[#allocation3 + $0x10] sm:$0xff] }
 0xc64   :  { %4817 = vmatpush.msrb.mxu1 %v4545_v20  ;;  %v4491_v20 = vsel %vm177_vm3, %v12797_v4, %v12785_v57  ;;  %v4447_v4 = vsel %vm148_vm4, %v12653_v13, %v12625_v60 }
 0xc65   :  { %4738 = vmatpush.msrb.mxu3 %v4331_v11  ;;  %4772 = vmatpush.msra.mxu2 %v4540_v58  ;;  %v4448_v11 = vsel %vm148_vm4, %v12697_v53, %v12777_v54  ;;  %v4501_v45 = vmul.f32 %v4491_v20, %v8672_v37 }
 0xc66   :  { %4818 = vmatpush.msrb.mxu1 %v4541_v22  ;;  %4739 = vmatmul.f32.vlgmr.msrb.gmra.mxu3 %v12881_v23  ;;  %v12892_v61 = vpop.permute.xlu1 %4313  ;;  %v4445_v22 = vsel %vm148_vm4, %v12625_v60, %v12807_v48  ;;  %v4406_v60 = vsel %vm123_vm5, %v12733_v24, %v12888_v31 }
 0xc67   :  { %v12894_v16 = vpop.permute.xlu0 %4489  ;;  %4773 = vmatpush.msra.mxu2 %v4504_v28 }
 0xc68   :  { %v4492_v36 = vsel %vm177_vm3, %v4486_v26, %v12894_v16  ;;  %v16754_v26 = vld [vmem:[#allocation30_spill] sm:$0xff]  ;;  %v12926_v58 = vpop.permute.xlu2 %4609 }
 0xc69   :  { %4774 = vmatpush.msra.mxu2 %v4500_v39  ;;  %v4505_v44 = vmul.f32 %v4492_v36, %v8672_v37  ;;  %v4456_v63 = vmul.f32 %v4448_v11, %v16754_v26  ;;  %v4452_v13 = vmul.f32 %v4447_v4, %v16754_v26  ;;  %v16756_v36 = vld [vmem:[#allocation35_spill] sm:$0xff] }
 0xc6b   :  { %4775 = vmatpush.msra.mxu2 %v12537_v50  ;;  %4819 = vmatpush.msrb.mxu1 %v4505_v44  ;;  %v4408_v50 = vsel %vm123_vm5, %v12661_v27, %v12733_v24  ;;  %v4407_v27 = vsel %vm123_vm5, %v12665_v25, %v12687_v12  ;;  %v4368_v25 = vsel %vm98_vm6, %v12708_v62, %v12695_v56 }
 0xc6c   :  { %v4376_v62 = vmul.f32 %v4368_v25, %v16756_v36  ;;  %v4417_v44 = vmul.f32 %v4406_v60, %v16727_v14  ;;  %v4613_v24 = vsel %vm252_vm0, %v12615_v8, %v12755_v5  ;;  %v16759_v60 = vld [vmem:[#allocation7_spill] sm:$0xff] }
 0xc6d   :  { %4776 = vmatpush.msra.mxu2 %v12499_v59  ;;  %4820 = vmatpush.msrb.mxu1 %v4501_v45  ;;  %v4328_v45 = vsel %vm73_vm7, %v12751_v21, %v12892_v61  ;;  %v16757_v21 = vld [vmem:[#allocation15_spill] sm:$0xff] }
 0xc6e   :  { %4742 = vmatmul.f32.gmra.mxu3 %v12911_v35  ;;  %v12924_v53 = vpop.permute.xlu1 %4437 }
 0xc6f   :  { %v12928_v47 = vpop.permute.xlu0 %4607  ;;  %4777 = vmatpush.msra.mxu2 %v4456_v63  ;;  %4821 = vmatpush.msrb.mxu1 %v12617_v46  ;;  %v4446_v59 = vsel %vm148_vm4, %v12777_v54, %v12924_v53  ;;  %v16755_v46 = vld [vmem:[#allocation33_spill] sm:$0xff]  ;;  %v4367_v54 = vsel %vm98_vm6, %v12603_v2, %v12699_v38  ;;  %v4453_v2 = vmul.f32 %v4445_v22, %v16723_v3 }
 0xc70   :  { %v4457_v28 = vmul.f32 %v4446_v59, %v16723_v3  ;;  %v4416_v39 = vmul.f32 %v4408_v50, %v16755_v46  ;;  %v4412_v20 = vmul.f32 %v4407_v27, %v16755_v46  ;;  %v4372_v11 = vmul.f32 %v4367_v54, %v16756_v36  ;;  %v13003_v22 = vpop.permute.xlu2 %4317 }
 0xc71   :  { %4778 = vmatpush.msra.mxu2 %v4452_v13  ;;  %4822 = vmatpush.msrb.mxu1 %v12571_v40  ;;  %v4405_v40 = vsel %vm123_vm5, %v12687_v12, %v12789_v0  ;;  %v4578_v12 = vsel %vm227_vm1, %v12795_v51, %v12663_v19  ;;  %v4611_v50 = vsel %vm252_vm0, %v12755_v5, %v12928_v47 }
 0xc72   :  { %v4413_v63 = vmul.f32 %v4405_v40, %v16727_v14  ;;  %v4365_v19 = vsel %vm98_vm6, %v12699_v38, %v12793_v52  ;;  %v4620_v54 = vmul.f32 %v4613_v24, %v16757_v21  ;;  %v4577_v38 = vsel %vm227_vm1, %v12787_v18, %v12629_v33  ;;  %v16761_v33 = vld [vmem:[#allocation27_spill] sm:$0xff] }
 0xc73   :  { %4779 = vmatpush.msra.mxu2 %v4416_v39  ;;  %4823 = vmatpush.msrb.mxu1 %v4457_v28  ;;  %v16758_v28 = vld [vmem:[#allocation37_spill] sm:$0xff]  ;;  %v4621_v25 = vmul.f32 %v4611_v50, %v16624_v43  ;;  %v4586_v40 = vmul.f32 %v4578_v12, %v16759_v60  ;;  %v16762_v24 = vld [vmem:[#allocation11_spill] sm:$0xff] }
 0xc74   :  { %v16763_v12 = vld [vmem:[#allocation43_spill] sm:$0xff] }
 0xc75   :  { %4780 = vmatpush.msra.mxu2 %v4412_v20  ;;  %4824 = vmatpush.msrb.mxu1 %v4453_v2  ;;  %v4373_v20 = vmul.f32 %v4365_v19, %v16730_v55  ;;  %v16760_v2 = vld [vmem:[#allocation38_spill] sm:$0xff] }
 0xc76   :  { %v4606_v4 = vpop.permute.xlu1 %4605  ;;  %v4538_v18 = vsel %vm202_vm2, %v12825_v10, %v16760_v2 }
 0xc77   :  { %v12985_v59 = vpop.permute.xlu0 %4357  ;;  %4781 = vmatpush.msra.mxu2 %v4376_v62  ;;  %4825 = vmatpush.msrb.mxu1 %v4417_v44  ;;  %v4612_v8 = vsel %vm252_vm0, %v4606_v4, %v12926_v58  ;;  %v4614_v51 = vsel %vm252_vm0, %v12759_v17, %v4606_v4  ;;  %v4336_v17 = vmul.f32 %v4328_v45, %v16758_v28  ;;  %v16764_v4 = vld [vmem:[#allocation47_spill] sm:$0xff] }
 0xc78   :  { %v4366_v5 = vsel %vm98_vm6, %v12695_v56, %v12985_v59  ;;  %v4624_v13 = vmul.f32 %v4614_v51, %v16757_v21  ;;  %v4625_v27 = vmul.f32 %v4612_v8, %v16624_v43  ;;  %v4326_v56 = vsel %vm73_vm7, %v12892_v61, %v13003_v22 }
 0xc79   :  { %4782 = vmatpush.msra.mxu2 %v4372_v11  ;;  %4826 = vmatpush.msrb.mxu1 %v4413_v63  ;;  %v4377_v39 = vmul.f32 %v4366_v5, %v16730_v55  ;;  %v4337_v61 = vmul.f32 %v4326_v56, %v16761_v33  ;;  %v4582_v62 = vmul.f32 %v4577_v38, %v16759_v60  ;;  %v16765_v5 = vld [vmem:[#allocation46_spill] sm:$0xff]  ;;  %v16770_v56 = vld [vmem:[#allocation40_spill] sm:$0xff] }
 0xc7a   :  { %4806 = vmatpush.msrb.mxu0 %v4624_v13  ;;  %4852 = vmatpush.msra.mxu3 %v4625_v27  ;;  %v4546_v10 = vmul.f32 %v4538_v18, %v16762_v24  ;;  %v4537_v45 = vsel %vm202_vm2, %v12731_v41, %v16763_v12  ;;  %v4618_v63 = vsel %vm252_vm0, %v12926_v58, %v16764_v4  ;;  %v16766_v13 = vld [vmem:[#allocation48_spill] sm:$0xff]  ;;  %v16767_v27 = vld [vmem:[#allocation6_spill] sm:$0xff]  ;;  %v16773_v18 = vld [vmem:[#allocation45_spill] sm:$0xff] }
 0xc7b   :  { %4783 = vmatpush.msra.mxu2 %v4336_v17  ;;  %4827 = vmatpush.msrb.mxu1 %v4377_v39  ;;  %v4498_v41 = vsel %vm177_vm3, %v12894_v16, %v16765_v5  ;;  %v4617_v58 = vsel %vm252_vm0, %v12928_v47, %v16766_v13  ;;  %v4542_v17 = vmul.f32 %v4537_v45, %v16762_v24  ;;  %v16768_v39 = vld [vmem:[#allocation41_spill] sm:$0xff]  ;;  %v4715_v13 = vpop.permute.xlu2 %4714 }
 0xc7c   :  { %4807 = vmatpush.msrb.mxu0 %v4620_v54  ;;  %4853 = vmatpush.msra.mxu3 %v4621_v25  ;;  %v4497_v54 = vsel %vm177_vm3, %v12785_v57, %v16768_v39  ;;  %v16769_v16 = vld [vmem:[#allocation13_spill] sm:$0xff]  ;;  %v4622_v47 = vmul.f32 %v4617_v58, %v16767_v27  ;;  %v4444_v25 = vsel %vm148_vm4, %v12924_v53, %v16770_v56  ;;  %v4924_v56 = vld [vmem:[%s16148_s6 + $0x8] sm:$0xff] }
 0xc7d   :  { %4828 = vmatpush.msrb.mxu1 %v4373_v20  ;;  %8351 = vmatmul.msk.f32.vlgmr.msra.gmra.mxu3 %vm846_vm9, %v12799_v34  ;;  %v4506_v38 = vmul.f32 %v4498_v41, %v16769_v16  ;;  %v4502_v57 = vmul.f32 %v4497_v54, %v16769_v16  ;;  %v16772_v20 = vld [vmem:[#allocation44_spill] sm:$0xff]  ;;  %v4404_v53 = vsel %vm123_vm5, %v12888_v31, %v12827_v9  ;;  %v16776_v9 = vld [vmem:[#allocation49_spill] sm:$0xff] }
 0xc7e   :  { %4861 = vmatpush.msra.mxu0 %v4586_v40  ;;  %v4316_v44 = vpop.permute.xlu1 %4315  ;;  %v16771_v40 = vld [vmem:[#allocation39_spill] sm:$0xff]  ;;  %v4443_v2 = vsel %vm148_vm4, %v12807_v48, %v16772_v20  ;;  %v4403_v48 = vsel %vm123_vm5, %v12789_v0, %v12757_v29  ;;  %v4364_v45 = vsel %vm98_vm6, %v12985_v59, %v12819_v15  ;;  %v4363_v31 = vsel %vm98_vm6, %v12793_v52, %v16776_v9  ;;  %v16777_v29 = vld [vmem:[#allocation28_spill] sm:$0xff]  ;;  %v16779_v59 = vld [vmem:[#allocation42_spill] sm:$0xff] }
 0xc7f   :  { %8349 = vmatmul.msk.f32.vlgmr.msrb.gmra.mxu0 %vm846_vm9, %v12799_v34  ;;  %v4312_v11 = vpop.permute.xlu0 %4311  ;;  %4829 = vmatpush.msrb.mxu1 %v4337_v61  ;;  %v16774_v61 = vld [vmem:[#allocation21_spill] sm:$0xff]  ;;  %v4378_v0 = vmul.f32 %v4364_v45, %v16777_v29  ;;  %v4374_v15 = vmul.f32 %v4363_v31, %v16777_v29  ;;  %v16780_v52 = vld [vmem:[#allocation31_spill] sm:$0xff] }
 0xc80   :  { %4862 = vmatpush.msra.mxu0 %v4582_v62  ;;  %v4327_v50 = vsel %vm73_vm7, %v12639_v32, %v4312_v11  ;;  %v4325_v8 = vsel %vm73_vm7, %v4312_v11, %v4316_v44  ;;  %v4626_v32 = vmul.f32 %v4618_v63, %v16767_v27  ;;  %v4458_v62 = vmul.f32 %v4444_v25, %v16774_v61  ;;  %v16778_v63 = vld [vmem:[#allocation50_spill] sm:$0xff] }
 0xc81   :  { %v4332_v51 = vmul.f32 %v4327_v50, %v16758_v28  ;;  %v4333_v19 = vmul.f32 %v4325_v8, %v16761_v33  ;;  %v4454_v11 = vmul.f32 %v4443_v2, %v16774_v61  ;;  %v4324_v50 = vsel %vm73_vm7, %v13003_v22, %v16778_v63 }
 0xc82   :  { %4863 = vmatpush.msra.mxu0 %v4546_v10  ;;  %v16775_v10 = vld [vmem:[#allocation22_spill] sm:$0xff]  ;;  %v4323_v8 = vsel %vm73_vm7, %v4316_v44, %v16779_v59 }
 0xc83   :  { %4784 = vmatpush.msra.mxu2 %v4332_v51  ;;  %4830 = vmatpush.msrb.mxu1 %v4333_v19  ;;  %v4418_v12 = vmul.f32 %v4404_v53, %v16775_v10  ;;  %v4414_v4 = vmul.f32 %v4403_v48, %v16775_v10  ;;  %v4338_v51 = vmul.f32 %v4324_v50, %v16780_v52 }
 0xc84   :  { %4785 = vmatmul.f32.vlgmr.msra.gmra.mxu2 %v12881_v23  ;;  %4831 = vmatmul.f32.vlgmr.msrb.gmra.mxu1 %v12881_v23 }
 0xc85   :  { %4864 = vmatpush.msra.mxu0 %v4542_v17  ;;  %4898 = vmatpush.msrb.mxu2 %v4626_v32 }
 0xc86   :  { %8352 = vmatmul.msk.f32.gmra.mxu3 %vm846_vm9, %v12823_v49 }
 0xc87   :  { %8350 = vmatmul.msk.f32.gmra.mxu0 %vm846_vm9, %v12823_v49  ;;  %4899 = vmatpush.msrb.mxu2 %v4622_v47  ;;  %v4710_v5 = vpop.permute.xlu0 %4709 }
 0xc88   :  { %4865 = vmatpush.msra.mxu0 %v4506_v38 }
 0xc8a   :  { %4866 = vmatpush.msra.mxu0 %v4502_v57 }
 0xc8c   :  { %4867 = vmatpush.msra.mxu0 %v16771_v40  ;;  %4788 = vmatmul.f32.gmra.mxu2 %v12911_v35 }
 0xc8d   :  { %4834 = vmatmul.f32.gmra.mxu1 %v12911_v35 }
 0xc8e   :  { %4868 = vmatpush.msra.mxu0 %v16773_v18 }
 0xc90   :  { %4869 = vmatpush.msra.mxu0 %v4458_v62 }
 0xc92   :  { %4870 = vmatpush.msra.mxu0 %v4454_v11 }
 0xc94   :  { %4871 = vmatpush.msra.mxu0 %v4418_v12  ;;  %8353 = vmatmul.msk.f32.vlgmr.msrb.gmra.mxu2 %vm846_vm9, %v12799_v34  ;;  %v4334_v34 = vmul.f32 %v4323_v8, %v16780_v52 }
 0xc96   :  { %4872 = vmatpush.msra.mxu0 %v4414_v4 }
 0xc98   :  { %4873 = vmatpush.msra.mxu0 %v4378_v0 }
 0xc9a   :  { %4874 = vmatpush.msra.mxu0 %v4374_v15 }
 0xc9c   :  { %4875 = vmatpush.msra.mxu0 %v4338_v51  ;;  %8354 = vmatmul.msk.f32.gmra.mxu2 %vm846_vm9, %v12823_v49  ;;  %v4923_v49 = vld [vmem:[%s16148_s6] sm:$0xff] }
 0xc9e   :  { %4876 = vmatpush.msra.mxu0 %v4334_v34 }
 0xc9f   :  { %4877 = vmatmul.f32.vlgmr.msra.gmra.mxu0 %v12881_v23 }
 0xca7   :  { %4880 = vmatmul.f32.gmra.mxu0 %v12911_v35 }
 0xcae   :  { %v4763_v22 = vpop.f32.mrf.mxu1 }
 0xcb6   :  { %v4766_v58 = vpop.f32.mrf.mxu1 }
 0xce9   :  { %v4740_v19 = vpop.f32.mrf.mxu3 }
 0xcea   :  { %v4741_v41 = vadd.f32 %v4740_v19, %v4710_v5 }
 0xcec   :  { %v4764_v32 = vadd.f32 %v4763_v22, %v4741_v41 }
 0xcee   :  { %v4907_v54 = vmul.f32 0.2, %v4764_v32 }
 0xcf0   :  { %v4915_v57 = vmax.f32 %v4764_v32, %v4907_v54 }
 0xcf1   :  { %v4743_v44 = vpop.f32.mrf.mxu3 }
 0xcf2   :  { %v4744_v17 = vadd.f32 %v4743_v44, %v4715_v13 }
 0xcf4   :  { %v4767_v39 = vadd.f32 %v4766_v58, %v4744_v17 }
 0xcf6   :  { %v4911_v38 = vmul.f32 0.2, %v4767_v39 }
 0xcf8   :  { %v4919_v47 = vmax.f32 %v4767_v39, %v4911_v38 }
 0xcfa   :  { %4957 = vmatpush.msrb.mxu3 %v4919_v47 }
 0xcfc   :  { %4958 = vmatpush.msrb.mxu3 %v4915_v57  ;;  %v4809_v25 = vpop.f32.mrf.mxu0 }
 0xcfd   :  { %8355 = vmatmul.msk.f32.vlgmr.msrb.gmra.mxu3 %vm846_vm9, %v4923_v49 }
 0xd00   :  { %v4855_v35 = vpop.f32.mrf.mxu3 }
 0xd01   :  { %v4832_v23 = vpop.f32.mrf.mxu1 }
 0xd02   :  { %v4833_v40 = vadd.f32 %v4832_v23, %v4710_v5  ;;  %v4930_v23 = vpop.permute.xlu2 %4929 }
 0xd04   :  { %v4856_v62 = vadd.f32 %v4855_v35, %v4833_v40  ;;  %v4812_v9 = vpop.f32.mrf.mxu0 }
 0xd05   :  { %8356 = vmatmul.msk.f32.gmra.mxu3 %vm846_vm9, %v4924_v56 }
 0xd06   :  { %v4909_v12 = vmul.f32 0.2, %v4856_v62 }
 0xd07   :  { %v4786_v20 = vpop.f32.mrf.mxu2 }
 0xd08   :  { %v4787_v11 = vadd.f32 %v4786_v20, %v4710_v5  ;;  %v4917_v50 = vmax.f32 %v4856_v62, %v4909_v12 }
 0xd09   :  { %v4858_v18 = vpop.f32.mrf.mxu3 }
 0xd0a   :  { %v4835_v2 = vpop.f32.mrf.mxu1  ;;  %v4810_v31 = vadd.f32 %v4809_v25, %v4787_v11 }
 0xd0b   :  { %v4836_v53 = vadd.f32 %v4835_v2, %v4715_v13  ;;  %v4935_v2 = vpop.permute.xlu1 %4934 }
 0xd0c   :  { %v4908_v59 = vmul.f32 0.2, %v4810_v31 }
 0xd0d   :  { %v4859_v48 = vadd.f32 %v4858_v18, %v4836_v53 }
 0xd0e   :  { %v4916_v34 = vmax.f32 %v4810_v31, %v4908_v59 }
 0xd0f   :  { %v4913_v45 = vmul.f32 0.2, %v4859_v48  ;;  %v4789_v4 = vpop.f32.mrf.mxu2 }
 0xd10   :  { %v4790_v63 = vadd.f32 %v4789_v4, %v4715_v13 }
 0xd11   :  { %v4921_v0 = vmax.f32 %v4859_v48, %v4913_v45 }
 0xd12   :  { %v4813_v15 = vadd.f32 %v4812_v9, %v4790_v63 }
 0xd13   :  { %5003 = vmatpush.msra.mxu2 %v4921_v0 }
 0xd14   :  { %v4912_v8 = vmul.f32 0.2, %v4813_v15 }
 0xd15   :  { %5004 = vmatpush.msra.mxu2 %v4917_v50 }
 0xd16   :  { %8359 = vmatmul.msk.f32.vlgmr.msra.gmra.mxu2 %vm846_vm9, %v4923_v49  ;;  %v4920_v51 = vmax.f32 %v4813_v15, %v4912_v8 }
 0xd17   :  { %v4901_v22 = vpop.f32.mrf.mxu2 }
 0xd18   :  { %4980 = vmatpush.msra.mxu1 %v4920_v51 }
 0xd1a   :  { %4981 = vmatpush.msra.mxu1 %v4916_v34 }
 0xd1b   :  { %8357 = vmatmul.msk.f32.vlgmr.msra.gmra.mxu1 %vm846_vm9, %v4923_v49 }
 0xd1c   :  { %v4878_v19 = vpop.f32.mrf.mxu0 }
 0xd1d   :  { %v4879_v41 = vadd.f32 %v4878_v19, %v4710_v5 }
 0xd1e   :  { %8360 = vmatmul.msk.f32.gmra.mxu2 %vm846_vm9, %v4924_v56 }
 0xd1f   :  { %v4904_v58 = vpop.f32.mrf.mxu2  ;;  %v4902_v32 = vadd.f32 %v4901_v22, %v4879_v41 }
 0xd21   :  { %v4910_v54 = vmul.f32 0.2, %v4902_v32 }
 0xd23   :  { %8358 = vmatmul.msk.f32.gmra.mxu1 %vm846_vm9, %v4924_v56  ;;  %v4918_v57 = vmax.f32 %v4902_v32, %v4910_v54 }
 0xd24   :  { %v4881_v44 = vpop.f32.mrf.mxu0 }
 0xd25   :  { %v4882_v17 = vadd.f32 %v4881_v44, %v4715_v13 }
 0xd27   :  { %v4905_v39 = vadd.f32 %v4904_v58, %v4882_v17 }
 0xd29   :  { %v4914_v38 = vmul.f32 0.2, %v4905_v39 }
 0xd2b   :  { %v4922_v47 = vmax.f32 %v4905_v39, %v4914_v38 }
 0xd2d   :  { %5026 = vmatpush.msra.mxu3 %v4922_v47 }
 0xd2f   :  { %5027 = vmatpush.msra.mxu3 %v4918_v57 }
 0xd30   :  { %8361 = vmatmul.msk.f32.vlgmr.msra.gmra.mxu3 %vm846_vm9, %v4923_v49 }
 0xd38   :  { %8362 = vmatmul.msk.f32.gmra.mxu3 %vm846_vm9, %v4924_v56 }
 0xd80   :  { %v4960_v35 = vpop.f32.mrf.mxu3 }
 0xd81   :  { %v4961_v5 = vadd.f32 %v4960_v35, %v4930_v23 }
 0xd83   :  { %v5035_v25 = vmul.f32 0.2, %v4961_v5 }
 0xd85   :  { %v13131_v40 = vmax.f32 %v4961_v5, %v5035_v25 }
 0xd87   :  { %5225 = vrot.lane.b32.xlu1 %v13131_v40, %s8467_s28  ;;  %5265 = vrot.lane.b32.xlu0 %v13131_v40, %s8466_s27 }
 0xd88   :  { %5305 = vrot.lane.b32.xlu2 %v13131_v40, %s8465_s26  ;;  %v4963_v56 = vpop.f32.mrf.mxu3 }
 0xd89   :  { %v4964_v18 = vadd.f32 %v4963_v56, %v4935_v2 }
 0xd8b   :  { %v5039_v53 = vmul.f32 0.2, %v4964_v18 }
 0xd8d   :  { %v13155_v11 = vmax.f32 %v4964_v18, %v5039_v53 }
 0xd8f   :  { %5137 = vrot.lane.b32.xlu1 %v13131_v40, %s8469_s12  ;;  %5097 = vrot.lane.b32.xlu0 %v13131_v40, %s8463_s19 }
 0xd90   :  { %5177 = vrot.lane.b32.xlu2 %v13131_v40, %s8468_s11 }
 0xd97   :  { %5057 = vrot.lane.b32.xlu1 %v13131_v40, %s8470_s13 }
 0xd98   :  { %v4983_v13 = vpop.f32.mrf.mxu1 }
 0xd99   :  { %v4984_v49 = vadd.f32 %v4983_v13, %v4930_v23  ;;  %v5006_v48 = vpop.f32.mrf.mxu2 }
 0xd9a   :  { %v5007_v12 = vadd.f32 %v5006_v48, %v4930_v23 }
 0xd9b   :  { %v5036_v20 = vmul.f32 0.2, %v4984_v49 }
 0xd9c   :  { %v5037_v45 = vmul.f32 0.2, %v5007_v12 }
 0xd9d   :  { %v13147_v62 = vmax.f32 %v4984_v49, %v5036_v20 }
 0xd9e   :  { %v13169_v4 = vmax.f32 %v5007_v12, %v5037_v45 }
 0xd9f   :  { %5345 = vrot.lane.b32.xlu1 %v13131_v40, %s8464_s25  ;;  %5269 = vrot.lane.b32.xlu0 %v13147_v62, %s8466_s27 }
 0xda0   :  { %5309 = vrot.lane.b32.xlu2 %v13147_v62, %s8465_s26  ;;  %v4986_v9 = vpop.f32.mrf.mxu1 }
 0xda1   :  { %v4987_v31 = vadd.f32 %v4986_v9, %v4935_v2  ;;  %v5009_v50 = vpop.f32.mrf.mxu2 }
 0xda2   :  { %v5010_v15 = vadd.f32 %v5009_v50, %v4935_v2 }
 0xda3   :  { %v5040_v0 = vmul.f32 0.2, %v4987_v31 }
 0xda4   :  { %v5041_v59 = vmul.f32 0.2, %v5010_v15 }
 0xda5   :  { %v13183_v63 = vmax.f32 %v4987_v31, %v5040_v0  ;;  %v8364_v0 = vld [vmem:[%s16147_s5 + $0x18] sm:$0xff] }
 0xda6   :  { %v13203_v8 = vmax.f32 %v5010_v15, %v5041_v59 }
 0xda7   :  { %5229 = vrot.lane.b32.xlu0 %v13147_v62, %s8467_s28  ;;  %5227 = vrot.lane.b32.xlu1 %v13155_v11, %s8467_s28 }
 0xda8   :  { %5307 = vrot.lane.b32.xlu2 %v13155_v11, %s8465_s26 }
 0xdaf   :  { %5181 = vrot.lane.b32.xlu0 %v13147_v62, %s8468_s11  ;;  %5139 = vrot.lane.b32.xlu1 %v13155_v11, %s8469_s12 }
 0xdb0   :  { %5267 = vrot.lane.b32.xlu2 %v13155_v11, %s8466_s27 }
 0xdb3   :  { %v5029_v51 = vpop.f32.mrf.mxu3 }
 0xdb4   :  { %v5030_v34 = vadd.f32 %v5029_v51, %v4930_v23  ;;  %v8363_v51 = vld [vmem:[%s16147_s5 + $0x10] sm:$0xff] }
 0xdb6   :  { %v5038_v19 = vmul.f32 0.2, %v5030_v34 }
 0xdb7   :  { %5313 = vrot.lane.b32.xlu0 %v13169_v4, %s8465_s26  ;;  %5101 = vrot.lane.b32.xlu1 %v13147_v62, %s8463_s19 }
 0xdb8   :  { %5179 = vrot.lane.b32.xlu2 %v13155_v11, %s8468_s11  ;;  %v13219_v41 = vmax.f32 %v5030_v34, %v5038_v19 }
 0xdba   :  { %16782 = vst [vmem:[#allocation43_spill] sm:$0xff] %v13219_v41 }
 0xdbb   :  { %v5032_v32 = vpop.f32.mrf.mxu3 }
 0xdbc   :  { %v5033_v39 = vadd.f32 %v5032_v32, %v4935_v2 }
 0xdbe   :  { %v5042_v38 = vmul.f32 0.2, %v5033_v39 }
 0xdbf   :  { %5353 = vrot.lane.b32.xlu0 %v13169_v4, %s8464_s25  ;;  %5059 = vrot.lane.b32.xlu1 %v13155_v11, %s8470_s13 }
 0xdc0   :  { %5141 = vrot.lane.b32.xlu2 %v13147_v62, %s8469_s12  ;;  %v13251_v23 = vmax.f32 %v5033_v39, %v5042_v38 }
 0xdc2   :  { %16786 = vst [vmem:[#allocation6_spill] sm:$0xff] %v13251_v23 }
 0xdc7   :  { %5311 = vrot.lane.b32.xlu0 %v13183_v63, %s8465_s26  ;;  %5273 = vrot.lane.b32.xlu1 %v13169_v4, %s8466_s27 }
 0xdc8   :  { %5099 = vrot.lane.b32.xlu2 %v13155_v11, %s8463_s19 }
 0xdcf   :  { %5231 = vrot.lane.b32.xlu0 %v13183_v63, %s8467_s28  ;;  %5233 = vrot.lane.b32.xlu1 %v13169_v4, %s8467_s28 }
 0xdd0   :  { %5061 = vrot.lane.b32.xlu2 %v13147_v62, %s8470_s13 }
 0xdd7   :  { %5183 = vrot.lane.b32.xlu0 %v13183_v63, %s8468_s11  ;;  %5271 = vrot.lane.b32.xlu1 %v13183_v63, %s8466_s27 }
 0xdd8   :  { %5349 = vrot.lane.b32.xlu2 %v13147_v62, %s8464_s25 }
 0xddf   :  { %5103 = vrot.lane.b32.xlu0 %v13183_v63, %s8463_s19  ;;  %5315 = vrot.lane.b32.xlu1 %v13203_v8, %s8465_s26 }
 0xde0   :  { %5347 = vrot.lane.b32.xlu2 %v13155_v11, %s8464_s25 }
 0xde2   :  { %v13215_v22 = vpop.permute.xlu2 %5305 }
 0xde3   :  { %16781 = vst [vmem:[#allocation38_spill] sm:$0xff] %v13215_v22 }
 0xde7   :  { %5355 = vrot.lane.b32.xlu0 %v13203_v8, %s8464_s25  ;;  %5235 = vrot.lane.b32.xlu1 %v13203_v8, %s8467_s28 }
 0xde8   :  { %5143 = vrot.lane.b32.xlu2 %v13183_v63, %s8469_s12 }
 0xdea   :  { %v13227_v44 = vpop.permute.xlu2 %5177 }
 0xdef   :  { %5187 = vrot.lane.b32.xlu0 %v13203_v8, %s8468_s11  ;;  %5317 = vrot.lane.b32.xlu1 %v13219_v41, %s8465_s26 }
 0xdf0   :  { %5063 = vrot.lane.b32.xlu2 %v13183_v63, %s8470_s13 }
 0xdf7   :  { %5277 = vrot.lane.b32.xlu0 %v13219_v41, %s8466_s27  ;;  %5189 = vrot.lane.b32.xlu1 %v13219_v41, %s8468_s11 }
 0xdf8   :  { %5351 = vrot.lane.b32.xlu2 %v13183_v63, %s8464_s25 }
 0xdf9   :  { %v13235_v58 = vpop.permute.xlu1 %5225  ;;  %v13239_v54 = vpop.permute.xlu0 %5265 }
 0xdfa   :  { %16783 = vst [vmem:[#allocation47_spill] sm:$0xff] %v13235_v58  ;;  %v13237_v17 = vpop.permute.xlu2 %5309 }
 0xdfb   :  { %16784 = vst [vmem:[#allocation46_spill] sm:$0xff] %v13239_v54  ;;  %v5325_v32 = vsel %vm227_vm1, %v13215_v22, %v13237_v17 }
 0xdff   :  { %5149 = vrot.lane.b32.xlu0 %v13219_v41, %s8469_s12  ;;  %5237 = vrot.lane.b32.xlu1 %v13219_v41, %s8467_s28 }
 0xe00   :  { %5275 = vrot.lane.b32.xlu2 %v13203_v8, %s8466_s27 }
 0xe01   :  { %v13247_v47 = vpop.permute.xlu1 %5137  ;;  %v13259_v35 = vpop.permute.xlu0 %5097 }
 0xe02   :  { %v13249_v57 = vpop.permute.xlu2 %5307 }
 0xe03   :  { %16785 = vst [vmem:[#allocation48_spill] sm:$0xff] %v13249_v57 }
 0xe07   :  { %5319 = vrot.lane.b32.xlu0 %v13251_v23, %s8465_s26  ;;  %5109 = vrot.lane.b32.xlu1 %v13219_v41, %s8463_s19 }
 0xe08   :  { %5069 = vrot.lane.b32.xlu2 %v13219_v41, %s8470_s13 }
 0xe09   :  { %v13261_v5 = vpop.permute.xlu1 %5057 }
 0xe0a   :  { %v13263_v25 = vpop.permute.xlu2 %5267 }
 0xe0b   :  { %16787 = vst [vmem:[#allocation41_spill] sm:$0xff] %v13263_v25 }
 0xe0f   :  { %5191 = vrot.lane.b32.xlu0 %v13251_v23, %s8468_s11  ;;  %5239 = vrot.lane.b32.xlu1 %v13251_v23, %s8467_s28 }
 0xe10   :  { %5279 = vrot.lane.b32.xlu2 %v13251_v23, %s8466_s27 }
 0xe11   :  { %v13271_v13 = vpop.permute.xlu0 %5269  ;;  %v13273_v49 = vpop.permute.xlu1 %5345 }
 0xe12   :  { %v13275_v56 = vpop.permute.xlu2 %5179  ;;  %v5285_v16 = vsel %vm202_vm2, %v13239_v54, %v13271_v13  ;;  %v16791_v54 = vld [vmem:[#allocation25_spill] sm:$0xff] }
 0xe17   :  { %5145 = vrot.lane.b32.xlu0 %v13169_v4, %s8469_s12  ;;  %5185 = vrot.lane.b32.xlu1 %v13169_v4, %s8468_s11 }
 0xe18   :  { %5151 = vrot.lane.b32.xlu2 %v13251_v23, %s8469_s12 }
 0xe19   :  { %v13283_v20 = vpop.permute.xlu0 %5229  ;;  %v13285_v2 = vpop.permute.xlu1 %5227 }
 0xe1a   :  { %16788 = vst [vmem:[#allocation40_spill] sm:$0xff] %v13285_v2  ;;  %v13287_v18 = vpop.permute.xlu2 %5141  ;;  %v5245_v24 = vsel %vm177_vm3, %v13235_v58, %v13283_v20 }
 0xe1f   :  { %5111 = vrot.lane.b32.xlu0 %v13251_v23, %s8463_s19  ;;  %5107 = vrot.lane.b32.xlu1 %v13203_v8, %s8463_s19 }
 0xe20   :  { %5147 = vrot.lane.b32.xlu2 %v13203_v8, %s8469_s12 }
 0xe21   :  { %v13295_v53 = vpop.permute.xlu0 %5181  ;;  %v13297_v48 = vpop.permute.xlu1 %5139 }
 0xe22   :  { %v13299_v12 = vpop.permute.xlu2 %5099 }
 0xe27   :  { %5071 = vrot.lane.b32.xlu0 %v13251_v23, %s8470_s13  ;;  %5357 = vrot.lane.b32.xlu1 %v13219_v41, %s8464_s25 }
 0xe28   :  { %5359 = vrot.lane.b32.xlu2 %v13251_v23, %s8464_s25 }
 0xe29   :  { %v13307_v45 = vpop.permute.xlu0 %5313  ;;  %v13309_v9 = vpop.permute.xlu1 %5101 }
 0xe2a   :  { %v13311_v31 = vpop.permute.xlu2 %5061 }
 0xe2f   :  { %5105 = vrot.lane.b32.xlu0 %v13169_v4, %s8463_s19  ;;  %5464 = vperm.xlu1 %8430, %v8364_v0   ;;  %v16789_v0 = vld [vmem:[#allocation16_spill] sm:$0xff] }
 0xe30   :  { %5067 = vrot.lane.b32.xlu2 %v13203_v8, %s8470_s13  ;;  %v5329_v29 = vmul.f32 %v5325_v32, %v16789_v0 }
 0xe31   :  { %v13320_v50 = vpop.permute.xlu0 %5353  ;;  %v13322_v15 = vpop.permute.xlu1 %5059 }
 0xe32   :  { %v5350_v59 = vpop.permute.xlu2 %5349 }
 0xe37   :  { %5065 = vrot.lane.b32.xlu0 %v13169_v4, %s8470_s13 }
 0xe38   :  { %5459 = vperm.xlu2 %8428, %v8363_v51  }
 0xe39   :  { %v5312_v34 = vpop.permute.xlu0 %5311  ;;  %v13329_v19 = vpop.permute.xlu1 %5273 }
 0xe3a   :  { %v5326_v39 = vsel %vm227_vm1, %v13249_v57, %v5312_v34  ;;  %v13338_v38 = vpop.permute.xlu2 %5347 }
 0xe3b   :  { %v5333_v52 = vmul.f32 %v5326_v39, %v16789_v0 }
 0xe3d   :  { %5473 = vmatpush.msrb.mxu0 %v5333_v52 }
 0xe3f   :  { %5474 = vmatpush.msrb.mxu0 %v5329_v29  ;;  %v16790_v29 = vld [vmem:[#allocation18_spill] sm:$0xff] }
 0xe40   :  { %v5289_v0 = vmul.f32 %v5285_v16, %v16790_v29  ;;  %v5323_v16 = vsel %vm227_vm1, %v13237_v17, %v13307_v45 }
 0xe41   :  { %v5232_v51 = vpop.permute.xlu0 %5231  ;;  %v13342_v10 = vpop.permute.xlu1 %5233 }
 0xe42   :  { %v13344_v61 = vpop.permute.xlu2 %5143  ;;  %v5246_v39 = vsel %vm177_vm3, %v13285_v2, %v5232_v51 }
 0xe43   :  { %v5253_v60 = vmul.f32 %v5246_v39, %v16791_v54  ;;  %v16792_v39 = vld [vmem:[#allocation17_spill] sm:$0xff] }
 0xe44   :  { %v5330_v17 = vmul.f32 %v5323_v16, %v16792_v39 }
 0xe49   :  { %v13346_v41 = vpop.permute.xlu0 %5183  ;;  %v5272_v23 = vpop.permute.xlu1 %5271 }
 0xe4a   :  { %v13352_v33 = vpop.permute.xlu2 %5063  ;;  %v5286_v52 = vsel %vm202_vm2, %v13263_v25, %v5272_v23 }
 0xe4b   :  { %v5293_v32 = vmul.f32 %v5286_v52, %v16790_v29  ;;  %v5249_v52 = vmul.f32 %v5245_v24, %v16791_v54  ;;  %v16793_v54 = vld [vmem:[#allocation14_spill] sm:$0xff] }
 0xe4d   :  { %5475 = vmatpush.msrb.mxu0 %v5293_v32 }
 0xe4f   :  { %5476 = vmatpush.msrb.mxu0 %v5289_v0  ;;  %v5365_v0 = vsel %vm252_vm0, %v13273_v49, %v5350_v59 }
 0xe51   :  { %v13367_v22 = vpop.permute.xlu0 %5103  ;;  %5477 = vmatpush.msrb.mxu0 %v5253_v60  ;;  %v13369_v25 = vpop.permute.xlu1 %5315 }
 0xe52   :  { %v5352_v32 = vpop.permute.xlu2 %5351  ;;  %v5324_v29 = vsel %vm227_vm1, %v5312_v34, %v13369_v25  ;;  %v5369_v34 = vmul.f32 %v5365_v0, %v16793_v54 }
 0xe53   :  { %v5366_v60 = vsel %vm252_vm0, %v13338_v38, %v5352_v32  ;;  %v5334_v24 = vmul.f32 %v5324_v29, %v16792_v39  ;;  %5478 = vmatpush.msrb.mxu0 %v5249_v52  ;;  %v5363_v29 = vsel %vm252_vm0, %v5350_v59, %v13320_v50 }
 0xe54   :  { %v5373_v58 = vmul.f32 %v5366_v60, %v16793_v54  ;;  %v5370_v60 = vmul.f32 %v5363_v29, %v16757_v21 }
 0xe55   :  { %5479 = vmatpush.msrb.mxu0 %v13155_v11  ;;  %5519 = vmatpush.msrb.mxu2 %v5334_v24 }
 0xe56   :  { %5510 = vmatpush.msrb.mxu1 %v5373_v58  ;;  %v13403_v58 = vld [vmem:[#allocation3 + $0x28] sm:$0xff] }
 0xe57   :  { %5480 = vmatpush.msrb.mxu0 %v13131_v40  ;;  %5520 = vmatpush.msrb.mxu2 %v5330_v17  ;;  %v5283_v40 = vsel %vm202_vm2, %v13271_v13, %v13329_v19 }
 0xe58   :  { %5511 = vmatpush.msrb.mxu1 %v5369_v34  ;;  %v5290_v13 = vmul.f32 %v5283_v40, %v16752_v6  ;;  %v5197_v40 = vsel %vm148_vm4, %v13227_v44, %v13295_v53 }
 0xe59   :  { %v13391_v2 = vpop.permute.xlu0 %5355  ;;  %v13393_v57 = vpop.permute.xlu1 %5235  ;;  %8365 = vmatmul.msk.f32.vlgmr.msrb.gmra.mxu1 %vm846_vm9, %v13403_v58 }
 0xe5a   :  { %v5364_v11 = vsel %vm252_vm0, %v5352_v32, %v13391_v2  ;;  %v13401_v52 = vpop.permute.xlu2 %5275  ;;  %v5244_v32 = vsel %vm177_vm3, %v5232_v51, %v13393_v57 }
 0xe5b   :  { %v5374_v16 = vmul.f32 %v5364_v11, %v16757_v21  ;;  %v5284_v0 = vsel %vm202_vm2, %v5272_v23, %v13401_v52  ;;  %v5243_v23 = vsel %vm177_vm3, %v13283_v20, %v13342_v10  ;;  %v5254_v24 = vmul.f32 %v5244_v32, %v16753_v30  ;;  %v13435_v11 = vld [vmem:[#allocation3 + $0x38] sm:$0xff]  ;;  %v13495_v21 = vld [vmem:[#allocation3 + $0x20] sm:$0xff] }
 0xe5c   :  { %v5294_v59 = vmul.f32 %v5284_v0, %v16752_v6  ;;  %v5250_v29 = vmul.f32 %v5243_v23, %v16753_v30  ;;  %v5198_v20 = vsel %vm148_vm4, %v13275_v56, %v13346_v41  ;;  %v5158_v0 = vsel %vm123_vm5, %v13297_v48, %v13344_v61 }
 0xe5d   :  { %5556 = vmatpush.msrb.mxu3 %v5374_v16  ;;  %v5206_v16 = vmul.f32 %v5198_v20, %v16754_v26  ;;  %v5118_v23 = vsel %vm98_vm6, %v13299_v12, %v13367_v22 }
 0xe5e   :  { %5521 = vmatpush.msrb.mxu2 %v5294_v59  ;;  %v5126_v20 = vmul.f32 %v5118_v23, %v16756_v36 }
 0xe5f   :  { %5557 = vmatpush.msrb.mxu3 %v5370_v60  ;;  %v5202_v60 = vmul.f32 %v5197_v40, %v16754_v26  ;;  %v5078_v40 = vsel %vm73_vm7, %v13322_v15, %v13352_v33 }
 0xe60   :  { %5522 = vmatpush.msrb.mxu2 %v5290_v13  ;;  %8367 = vmatmul.msk.f32.vlgmr.msrb.gmra.mxu3 %vm846_vm9, %v13403_v58  ;;  %v5166_v13 = vmul.f32 %v5158_v0, %v16755_v46  ;;  %v5086_v23 = vmul.f32 %v5078_v40, %v16758_v28 }
 0xe61   :  { %v13428_v17 = vpop.permute.xlu0 %5187  ;;  %v13430_v51 = vpop.permute.xlu1 %5317  ;;  %8366 = vmatmul.msk.f32.gmra.mxu1 %vm846_vm9, %v13435_v11 }
 0xe62   :  { %v13432_v34 = vpop.permute.xlu2 %5069  ;;  %5523 = vmatpush.msrb.mxu2 %v5254_v24 }
 0xe64   :  { %5524 = vmatpush.msrb.mxu2 %v5250_v29  ;;  %v5117_v29 = vsel %vm98_vm6, %v13259_v35, %v13309_v9 }
 0xe66   :  { %5525 = vmatpush.msrb.mxu2 %v13183_v63 }
 0xe68   :  { %5526 = vmatpush.msrb.mxu2 %v13147_v62  ;;  %8368 = vmatmul.msk.f32.gmra.mxu3 %vm846_vm9, %v13435_v11  ;;  %v5157_v62 = vsel %vm123_vm5, %v13247_v47, %v13287_v18 }
 0xe69   :  { %v13456_v59 = vpop.permute.xlu0 %5277  ;;  %v13458_v63 = vpop.permute.xlu1 %5189  ;;  %v5162_v24 = vmul.f32 %v5157_v62, %v16755_v46  ;;  %v5122_v62 = vmul.f32 %v5117_v29, %v16756_v36  ;;  %v5321_v29 = vsel %vm227_vm1, %v13307_v45, %v13430_v51  ;;  %v13522_v36 = vld [vmem:[#allocation3 + $0x30] sm:$0xff] }
 0xe6a   :  { %v13460_v32 = vpop.permute.xlu2 %5279  ;;  %5527 = vmatpush.msrb.mxu2 %v5206_v16  ;;  %v5281_v45 = vsel %vm202_vm2, %v13329_v19, %v13456_v59 }
 0xe6c   :  { %5528 = vmatpush.msrb.mxu2 %v5202_v60 }
 0xe6e   :  { %5529 = vmatpush.msrb.mxu2 %v5166_v13  ;;  %v5077_v13 = vsel %vm73_vm7, %v13261_v5, %v13311_v31 }
 0xe70   :  { %5530 = vmatpush.msrb.mxu2 %v5162_v24  ;;  %v5082_v24 = vmul.f32 %v5077_v13, %v16758_v28  ;;  %v16794_v13 = vld [vmem:[#allocation9_spill] sm:$0xff] }
 0xe71   :  { %v13482_v16 = vpop.permute.xlu0 %5149  ;;  %v13484_v0 = vpop.permute.xlu1 %5237  ;;  %v5331_v28 = vmul.f32 %v5321_v29, %v16794_v13  ;;  %v5199_v29 = vsel %vm148_vm4, %v13458_v63, %v13227_v44 }
 0xe72   :  { %v13486_v60 = vpop.permute.xlu2 %5151  ;;  %5531 = vmatpush.msrb.mxu2 %v5126_v20 }
 0xe74   :  { %5532 = vmatpush.msrb.mxu2 %v5122_v62 }
 0xe76   :  { %5533 = vmatpush.msrb.mxu2 %v5086_v23 }
 0xe78   :  { %5534 = vmatpush.msrb.mxu2 %v5082_v24  ;;  %v5282_v24 = vsel %vm202_vm2, %v13401_v52, %v13460_v32  ;;  %v5291_v52 = vmul.f32 %v5281_v45, %v16722_v42 }
 0xe79   :  { %5535 = vmatmul.f32.vlgmr.msrb.gmra.mxu2 %v13495_v21  ;;  %v13498_v46 = vpop.permute.xlu0 %5319  ;;  %v13500_v20 = vpop.permute.xlu1 %5109 }
 0xe7a   :  { %v5322_v40 = vsel %vm227_vm1, %v13369_v25, %v13498_v46  ;;  %v13510_v62 = vpop.permute.xlu2 %5147  ;;  %v5295_v25 = vmul.f32 %v5282_v24, %v16722_v42 }
 0xe7b   :  { %v5335_v23 = vmul.f32 %v5322_v40, %v16794_v13 }
 0xe7d   :  { %5565 = vmatpush.msra.mxu1 %v5335_v23 }
 0xe7f   :  { %5566 = vmatpush.msra.mxu1 %v5331_v28  ;;  %v5241_v28 = vsel %vm177_vm3, %v13342_v10, %v13484_v0  ;;  %v16795_v10 = vld [vmem:[#allocation29_spill] sm:$0xff] }
 0xe81   :  { %5538 = vmatmul.f32.gmra.mxu2 %v13522_v36  ;;  %v13526_v40 = vpop.permute.xlu0 %5191  ;;  %5567 = vmatpush.msra.mxu1 %v5295_v25  ;;  %v13528_v26 = vpop.permute.xlu1 %5239 }
 0xe82   :  { %v5200_v19 = vsel %vm148_vm4, %v13526_v40, %v13275_v56  ;;  %v5360_v23 = vpop.permute.xlu2 %5359  ;;  %v5242_v24 = vsel %vm177_vm3, %v13393_v57, %v13528_v26  ;;  %v5160_v56 = vsel %vm123_vm5, %v13486_v60, %v13297_v48  ;;  %v16796_v48 = vld [vmem:[#allocation32_spill] sm:$0xff] }
 0xe83   :  { %v5362_v44 = vsel %vm252_vm0, %v13391_v2, %v5360_v23  ;;  %v5368_v45 = vsel %vm252_vm0, %v5360_v23, %v13338_v38  ;;  %5568 = vmatpush.msra.mxu1 %v5291_v52  ;;  %v5205_v25 = vmul.f32 %v5200_v19, %v16795_v10  ;;  %v5255_v42 = vmul.f32 %v5242_v24, %v8672_v37 }
 0xe84   :  { %v5375_v57 = vmul.f32 %v5362_v44, %v16624_v43  ;;  %v5376_v13 = vmul.f32 %v5368_v45, %v16767_v27  ;;  %v5201_v2 = vmul.f32 %v5199_v29, %v16795_v10  ;;  %v5251_v38 = vmul.f32 %v5241_v28, %v8672_v37 }
 0xe85   :  { %5481 = vmatpush.msrb.mxu0 %v5205_v25  ;;  %5569 = vmatpush.msra.mxu1 %v5255_v42  ;;  %v5159_v52 = vsel %vm123_vm5, %v13482_v16, %v13247_v47  ;;  %v5165_v19 = vmul.f32 %v5160_v56, %v16796_v48  ;;  %v5196_v42 = vsel %vm148_vm4, %v13346_v41, %v13428_v17  ;;  %v16797_v56 = vld [vmem:[#allocation34_spill] sm:$0xff] }
 0xe86   :  { %5602 = vmatpush.msra.mxu3 %v5375_v57  ;;  %5648 = vmatpush.msra.mxu2 %v5376_v13  ;;  %v5161_v47 = vmul.f32 %v5159_v52, %v16796_v48  ;;  %v5207_v28 = vmul.f32 %v5196_v42, %v16723_v3  ;;  %v5156_v41 = vsel %vm123_vm5, %v13344_v61, %v13510_v62 }
 0xe87   :  { %5482 = vmatpush.msrb.mxu0 %v5201_v2  ;;  %5570 = vmatpush.msra.mxu1 %v5251_v38  ;;  %v5119_v61 = vsel %vm98_vm6, %v13500_v20, %v13259_v35 }
 0xe88   :  { %v5121_v38 = vmul.f32 %v5119_v61, %v16797_v56 }
 0xe89   :  { %v13572_v23 = vpop.permute.xlu0 %5145  ;;  %5483 = vmatpush.msrb.mxu0 %v5165_v19  ;;  %5571 = vmatpush.msra.mxu1 %v13203_v8  ;;  %v13575_v29 = vpop.permute.xlu1 %5185 }
 0xe8a   :  { %v5195_v13 = vsel %vm148_vm4, %v13295_v53, %v13575_v29  ;;  %v5155_v24 = vsel %vm123_vm5, %v13287_v18, %v13572_v23  ;;  %v5167_v53 = vmul.f32 %v5156_v41, %v16727_v14 }
 0xe8b   :  { %5484 = vmatpush.msrb.mxu0 %v5161_v47  ;;  %5572 = vmatpush.msra.mxu1 %v13169_v4  ;;  %v5203_v8 = vmul.f32 %v5195_v13, %v16723_v3  ;;  %v5163_v45 = vmul.f32 %v5155_v24, %v16727_v14 }
 0xe8d   :  { %5573 = vmatpush.msra.mxu1 %v5207_v28 }
 0xe8f   :  { %5574 = vmatpush.msra.mxu1 %v5203_v8  ;;  %v16800_v8 = vld [vmem:[#allocation7_spill] sm:$0xff] }
 0xe91   :  { %v13594_v44 = vpop.permute.xlu0 %5111  ;;  %5575 = vmatpush.msra.mxu1 %v5167_v53  ;;  %v13596_v4 = vpop.permute.xlu1 %5107 }
 0xe92   :  { %v5120_v18 = vsel %vm98_vm6, %v13594_v44, %v13299_v12  ;;  %v5116_v25 = vsel %vm98_vm6, %v13367_v22, %v13596_v4  ;;  %v5079_v12 = vsel %vm73_vm7, %v13432_v34, %v13261_v5  ;;  %v16798_v5 = vld [vmem:[#allocation48_spill] sm:$0xff]  ;;  %v5068_v53 = vpop.permute.xlu2 %5067 }
 0xe93   :  { %5576 = vmatpush.msra.mxu1 %v5163_v45  ;;  %v5125_v57 = vmul.f32 %v5120_v18, %v16797_v56  ;;  %v5127_v2 = vmul.f32 %v5116_v25, %v16730_v55  ;;  %v5328_v41 = vsel %vm227_vm1, %v13498_v46, %v16798_v5  ;;  %v16801_v46 = vld [vmem:[#allocation41_spill] sm:$0xff]  ;;  %v16802_v18 = vld [vmem:[#allocation46_spill] sm:$0xff]  ;;  %v5194_v5 = vsel %vm148_vm4, %v13428_v17, %v13526_v40 }
 0xe94   :  { %v5336_v24 = vmul.f32 %v5328_v41, %v16800_v8  ;;  %v5288_v45 = vsel %vm202_vm2, %v13460_v32, %v16801_v46  ;;  %v5287_v25 = vsel %vm202_vm2, %v13456_v59, %v16802_v18  ;;  %v16803_v32 = vld [vmem:[#allocation11_spill] sm:$0xff]  ;;  %v16808_v41 = vld [vmem:[#allocation6_spill] sm:$0xff]  ;;  %v5153_v40 = vsel %vm123_vm5, %v13572_v23, %v13482_v16 }
 0xe95   :  { %5485 = vmatpush.msrb.mxu0 %v5125_v57  ;;  %5577 = vmatpush.msra.mxu1 %v5127_v2  ;;  %v5296_v2 = vmul.f32 %v5288_v45, %v16803_v32  ;;  %v5292_v59 = vmul.f32 %v5287_v25, %v16803_v32 }
 0xe97   :  { %5486 = vmatpush.msrb.mxu0 %v5121_v38 }
 0xe99   :  { %v13614_v35 = vpop.permute.xlu0 %5071  ;;  %v5358_v52 = vpop.permute.xlu1 %5357 }
 0xe9a   :  { %v5080_v22 = vsel %vm73_vm7, %v13614_v35, %v13322_v15  ;;  %v5361_v19 = vsel %vm252_vm0, %v13320_v50, %v5358_v52  ;;  %v5367_v42 = vsel %vm252_vm0, %v5358_v52, %v13273_v49  ;;  %v5081_v15 = vmul.f32 %v5079_v12, %v16552_v1  ;;  %v16799_v50 = vld [vmem:[#allocation38_spill] sm:$0xff]  ;;  %v16804_v52 = vld [vmem:[#allocation40_spill] sm:$0xff] }
 0xe9b   :  { %v5085_v47 = vmul.f32 %v5080_v22, %v16552_v1  ;;  %v5371_v13 = vmul.f32 %v5361_v19, %v16624_v43  ;;  %v5372_v28 = vmul.f32 %v5367_v42, %v16767_v27  ;;  %v5327_v49 = vsel %vm227_vm1, %v13430_v51, %v16799_v50  ;;  %v16805_v22 = vld [vmem:[#allocation27_spill] sm:$0xff]  ;;  %v16807_v42 = vld [vmem:[#allocation13_spill] sm:$0xff] }
 0xe9c   :  { %v5332_v61 = vmul.f32 %v5327_v49, %v16800_v8  ;;  %v5248_v12 = vsel %vm177_vm3, %v13528_v26, %v16804_v52  ;;  %v16806_v19 = vld [vmem:[#allocation47_spill] sm:$0xff]  ;;  %v5154_v49 = vsel %vm123_vm5, %v13510_v62, %v13486_v60  ;;  %v16812_v62 = vld [vmem:[#allocation28_spill] sm:$0xff]  ;;  %v5074_v23 = vsel %vm73_vm7, %v5068_v53, %v13614_v35 }
 0xe9d   :  { %5487 = vmatpush.msrb.mxu0 %v5085_v47  ;;  %5603 = vmatpush.msra.mxu3 %v5371_v13  ;;  %v5256_v47 = vmul.f32 %v5248_v12, %v16807_v42 }
 0xe9e   :  { %5649 = vmatpush.msra.mxu2 %v5372_v28  ;;  %8369 = vmatmul.msk.f32.vlgmr.msra.gmra.mxu3 %vm846_vm9, %v13403_v58 }
 0xe9f   :  { %5488 = vmatpush.msrb.mxu0 %v5081_v15  ;;  %8371 = vmatmul.msk.f32.vlgmr.msra.gmra.mxu2 %vm846_vm9, %v13403_v58  ;;  %v5076_v58 = vsel %vm73_vm7, %v13352_v33, %v5068_v53  ;;  %v16809_v15 = vld [vmem:[#allocation43_spill] sm:$0xff] }
 0xea0   :  { %5489 = vmatmul.f32.vlgmr.msrb.gmra.mxu0 %v13495_v21  ;;  %v5087_v33 = vmul.f32 %v5076_v58, %v16805_v22 }
 0xea1   :  { %5611 = vmatpush.msra.mxu0 %v5336_v24  ;;  %v5106_v51 = vpop.permute.xlu0 %5105  ;;  %v5114_v24 = vsel %vm98_vm6, %v13596_v4, %v13594_v44  ;;  %v16813_v4 = vld [vmem:[#allocation31_spill] sm:$0xff] }
 0xea2   :  { %v5115_v57 = vsel %vm98_vm6, %v13309_v9, %v5106_v51  ;;  %v5247_v9 = vsel %vm177_vm3, %v13484_v0, %v16806_v19  ;;  %v5113_v60 = vsel %vm98_vm6, %v5106_v51, %v13500_v20  ;;  %v5128_v16 = vmul.f32 %v5114_v24, %v16812_v62  ;;  %v13729_v51 = vpop.permute.xlu2 %5459 }
 0xea3   :  { %5612 = vmatpush.msra.mxu0 %v5332_v61  ;;  %v5123_v38 = vmul.f32 %v5115_v57, %v16730_v55  ;;  %v5252_v13 = vmul.f32 %v5247_v9, %v16807_v42  ;;  %v5124_v45 = vmul.f32 %v5113_v60, %v16812_v62  ;;  %v5088_v61 = vmul.f32 %v5074_v23, %v16813_v4 }
 0xea5   :  { %5613 = vmatpush.msra.mxu0 %v5296_v2  ;;  %5578 = vmatpush.msra.mxu1 %v5123_v38 }
 0xea6   :  { %8370 = vmatmul.msk.f32.gmra.mxu3 %vm846_vm9, %v13435_v11 }
 0xea7   :  { %5614 = vmatpush.msra.mxu0 %v5292_v59  ;;  %5579 = vmatpush.msra.mxu1 %v5087_v33 }
 0xea8   :  { %5492 = vmatmul.f32.gmra.mxu0 %v13522_v36  ;;  %8372 = vmatmul.msk.f32.gmra.mxu2 %vm846_vm9, %v13435_v11  ;;  %v5193_v11 = vsel %vm148_vm4, %v13575_v29, %v13458_v63  ;;  %v16811_v63 = vld [vmem:[#allocation22_spill] sm:$0xff] }
 0xea9   :  { %5615 = vmatpush.msra.mxu0 %v5256_v47  ;;  %v5066_v26 = vpop.permute.xlu0 %5065  ;;  %v5168_v29 = vmul.f32 %v5154_v49, %v16811_v63  ;;  %v5164_v46 = vmul.f32 %v5153_v40, %v16811_v63 }
 0xeaa   :  { %v5075_v0 = vsel %vm73_vm7, %v13311_v31, %v5066_v26  ;;  %v16810_v31 = vld [vmem:[#allocation21_spill] sm:$0xff]  ;;  %v5073_v44 = vsel %vm73_vm7, %v5066_v26, %v13432_v34 }
 0xeab   :  { %5616 = vmatpush.msra.mxu0 %v5252_v13  ;;  %v5083_v28 = vmul.f32 %v5075_v0, %v16805_v22  ;;  %v5208_v50 = vmul.f32 %v5194_v5, %v16810_v31  ;;  %v5204_v17 = vmul.f32 %v5193_v11, %v16810_v31  ;;  %v5084_v20 = vmul.f32 %v5073_v44, %v16813_v4 }
 0xead   :  { %5617 = vmatpush.msra.mxu0 %v16808_v41  ;;  %5580 = vmatpush.msra.mxu1 %v5083_v28 }
 0xeae   :  { %5581 = vmatmul.f32.vlgmr.msra.gmra.mxu1 %v13495_v21 }
 0xeaf   :  { %5618 = vmatpush.msra.mxu0 %v16809_v15 }
 0xeb1   :  { %5619 = vmatpush.msra.mxu0 %v5208_v50 }
 0xeb3   :  { %5620 = vmatpush.msra.mxu0 %v5204_v17 }
 0xeb5   :  { %5621 = vmatpush.msra.mxu0 %v5168_v29 }
 0xeb6   :  { %5584 = vmatmul.f32.gmra.mxu1 %v13522_v36 }
 0xeb7   :  { %5622 = vmatpush.msra.mxu0 %v5164_v46 }
 0xeb9   :  { %5623 = vmatpush.msra.mxu0 %v5128_v16 }
 0xebb   :  { %5624 = vmatpush.msra.mxu0 %v5124_v45 }
 0xebd   :  { %5625 = vmatpush.msra.mxu0 %v5088_v61 }
 0xebf   :  { %5626 = vmatpush.msra.mxu0 %v5084_v20 }
 0xec0   :  { %5627 = vmatmul.f32.vlgmr.msra.gmra.mxu0 %v13495_v21  ;;  %v13738_v21 = vpop.permute.xlu1 %5464 }
 0xec8   :  { %5630 = vmatmul.f32.gmra.mxu0 %v13522_v36 }
 0xed6   :  { %v5513_v18 = vpop.f32.mrf.mxu1 }
 0xede   :  { %v5516_v2 = vpop.f32.mrf.mxu1 }
 0xee3   :  { %v5559_v33 = vpop.f32.mrf.mxu3 }
 0xeeb   :  { %v5562_v28 = vpop.f32.mrf.mxu3 }
 0xefc   :  { %v5536_v52 = vpop.f32.mrf.mxu2 }
 0xefd   :  { %v5537_v12 = vadd.f32 %v5536_v52, %v13729_v51 }
 0xeff   :  { %v5560_v19 = vadd.f32 %v5559_v33, %v5537_v12 }
 0xf01   :  { %v5658_v47 = vmul.f32 0.2, %v5560_v19 }
 0xf03   :  { %v13758_v26 = vmax.f32 %v5560_v19, %v5658_v47 }
 0xf04   :  { %v5539_v13 = vpop.f32.mrf.mxu2 }
 0xf05   :  { %v5540_v0 = vadd.f32 %v5539_v13, %v13738_v21 }
 0xf07   :  { %v5563_v5 = vadd.f32 %v5562_v28, %v5540_v0 }
 0xf09   :  { %v5662_v11 = vmul.f32 0.2, %v5563_v5 }
 0xf0b   :  { %v13780_v49 = vmax.f32 %v5563_v5, %v5662_v11 }
 0xf1d   :  { %v5490_v35 = vpop.f32.mrf.mxu0 }
 0xf1e   :  { %v5491_v53 = vadd.f32 %v5490_v35, %v13729_v51 }
 0xf20   :  { %v5514_v25 = vadd.f32 %v5513_v18, %v5491_v53 }
 0xf21   :  { %v5605_v50 = vpop.f32.mrf.mxu3 }
 0xf22   :  { %v5657_v58 = vmul.f32 0.2, %v5514_v25  ;;  %v5651_v60 = vpop.f32.mrf.mxu2 }
 0xf24   :  { %v13732_v34 = vmax.f32 %v5514_v25, %v5657_v58 }
 0xf25   :  { %v5493_v57 = vpop.f32.mrf.mxu0 }
 0xf26   :  { %5847 = vrot.lane.b32.xlu1 %v13732_v34, %s8467_s28  ;;  %5887 = vrot.lane.b32.xlu0 %v13732_v34, %s8466_s27  ;;  %v5494_v36 = vadd.f32 %v5493_v57, %v13738_v21 }
 0xf27   :  { %5927 = vrot.lane.b32.xlu2 %v13732_v34, %s8465_s26 }
 0xf28   :  { %v5517_v38 = vadd.f32 %v5516_v2, %v5494_v36 }
 0xf2a   :  { %v5661_v59 = vmul.f32 0.2, %v5517_v38 }
 0xf2b   :  { %v5582_v41 = vpop.f32.mrf.mxu1  ;;  %v5654_v36 = vpop.f32.mrf.mxu2 }
 0xf2c   :  { %v13750_v9 = vmax.f32 %v5517_v38, %v5661_v59  ;;  %v5583_v15 = vadd.f32 %v5582_v41, %v13729_v51 }
 0xf2e   :  { %5799 = vrot.lane.b32.xlu1 %v13732_v34, %s8468_s11  ;;  %5967 = vrot.lane.b32.xlu0 %v13732_v34, %s8464_s25  ;;  %v5606_v17 = vadd.f32 %v5605_v50, %v5583_v15 }
 0xf2f   :  { %5759 = vrot.lane.b32.xlu2 %v13732_v34, %s8469_s12 }
 0xf30   :  { %v5659_v40 = vmul.f32 0.2, %v5606_v17 }
 0xf32   :  { %v13788_v29 = vmax.f32 %v5606_v17, %v5659_v40 }
 0xf33   :  { %v5585_v61 = vpop.f32.mrf.mxu1 }
 0xf34   :  { %v5586_v20 = vadd.f32 %v5585_v61, %v13738_v21 }
 0xf36   :  { %5719 = vrot.lane.b32.xlu1 %v13732_v34, %s8463_s19  ;;  %5929 = vrot.lane.b32.xlu0 %v13750_v9, %s8465_s26 }
 0xf37   :  { %5849 = vrot.lane.b32.xlu2 %v13750_v9, %s8467_s28 }
 0xf3d   :  { %v5628_v24 = vpop.f32.mrf.mxu0 }
 0xf3e   :  { %5679 = vrot.lane.b32.xlu1 %v13732_v34, %s8470_s13  ;;  %5931 = vrot.lane.b32.xlu0 %v13758_v26, %s8465_s26  ;;  %v5629_v46 = vadd.f32 %v5628_v24, %v13729_v51  ;;  %v5608_v51 = vpop.f32.mrf.mxu3 }
 0xf3f   :  { %5851 = vrot.lane.b32.xlu2 %v13758_v26, %s8467_s28  ;;  %v5609_v53 = vadd.f32 %v5608_v51, %v5586_v20  ;;  %v8374_v20 = vld [vmem:[%s16147_s5 + $0x28] sm:$0xff]  ;;  %v8373_v51 = vld [vmem:[%s16147_s5 + $0x20] sm:$0xff] }
 0xf40   :  { %v5652_v16 = vadd.f32 %v5651_v60, %v5629_v46 }
 0xf41   :  { %v5663_v25 = vmul.f32 0.2, %v5609_v53 }
 0xf42   :  { %v5660_v23 = vmul.f32 0.2, %v5652_v16 }
 0xf43   :  { %v13843_v2 = vmax.f32 %v5609_v53, %v5663_v25 }
 0xf44   :  { %v13815_v45 = vmax.f32 %v5652_v16, %v5660_v23 }
 0xf45   :  { %v5631_v18 = vpop.f32.mrf.mxu0 }
 0xf46   :  { %5889 = vrot.lane.b32.xlu1 %v13750_v9, %s8466_s27  ;;  %5721 = vrot.lane.b32.xlu0 %v13750_v9, %s8463_s19  ;;  %16814 = vst [vmem:[#allocation39_spill] sm:$0xff] %v13815_v45  ;;  %v5632_v58 = vadd.f32 %v5631_v18, %v13738_v21 }
 0xf47   :  { %5803 = vrot.lane.b32.xlu2 %v13758_v26, %s8468_s11 }
 0xf48   :  { %v5655_v38 = vadd.f32 %v5654_v36, %v5632_v58 }
 0xf4a   :  { %v5664_v21 = vmul.f32 0.2, %v5655_v38 }
 0xf4c   :  { %v13857_v33 = vmax.f32 %v5655_v38, %v5664_v21 }
 0xf4e   :  { %5891 = vrot.lane.b32.xlu1 %v13758_v26, %s8466_s27  ;;  %5969 = vrot.lane.b32.xlu0 %v13750_v9, %s8464_s25  ;;  %16819 = vst [vmem:[#allocation42_spill] sm:$0xff] %v13857_v33 }
 0xf4f   :  { %5763 = vrot.lane.b32.xlu2 %v13758_v26, %s8469_s12 }
 0xf56   :  { %5801 = vrot.lane.b32.xlu1 %v13750_v9, %s8468_s11  ;;  %5723 = vrot.lane.b32.xlu0 %v13758_v26, %s8463_s19 }
 0xf57   :  { %5893 = vrot.lane.b32.xlu2 %v13780_v49, %s8466_s27 }
 0xf5e   :  { %5761 = vrot.lane.b32.xlu1 %v13750_v9, %s8469_s12  ;;  %5853 = vrot.lane.b32.xlu0 %v13780_v49, %s8467_s28 }
 0xf5f   :  { %5855 = vrot.lane.b32.xlu2 %v13788_v29, %s8467_s28 }
 0xf66   :  { %5681 = vrot.lane.b32.xlu1 %v13750_v9, %s8470_s13  ;;  %5935 = vrot.lane.b32.xlu0 %v13788_v29, %s8465_s26 }
 0xf67   :  { %5765 = vrot.lane.b32.xlu2 %v13780_v49, %s8469_s12 }
 0xf6e   :  { %5971 = vrot.lane.b32.xlu1 %v13758_v26, %s8464_s25  ;;  %5895 = vrot.lane.b32.xlu0 %v13788_v29, %s8466_s27 }
 0xf6f   :  { %5807 = vrot.lane.b32.xlu2 %v13788_v29, %s8468_s11 }
 0xf76   :  { %5933 = vrot.lane.b32.xlu1 %v13780_v49, %s8465_s26  ;;  %5805 = vrot.lane.b32.xlu0 %v13780_v49, %s8468_s11 }
 0xf77   :  { %5685 = vrot.lane.b32.xlu2 %v13780_v49, %s8470_s13 }
 0xf7e   :  { %5973 = vrot.lane.b32.xlu1 %v13780_v49, %s8464_s25  ;;  %5767 = vrot.lane.b32.xlu0 %v13788_v29, %s8469_s12 }
 0xf7f   :  { %5811 = vrot.lane.b32.xlu2 %v13815_v45, %s8468_s11 }
 0xf81   :  { %v13823_v44 = vpop.permute.xlu2 %5927 }
 0xf82   :  { %16815 = vst [vmem:[#allocation44_spill] sm:$0xff] %v13823_v44 }
 0xf86   :  { %5725 = vrot.lane.b32.xlu1 %v13780_v49, %s8463_s19  ;;  %5771 = vrot.lane.b32.xlu0 %v13815_v45, %s8469_s12 }
 0xf87   :  { %5939 = vrot.lane.b32.xlu2 %v13815_v45, %s8465_s26 }
 0xf89   :  { %v13832_v35 = vpop.permute.xlu2 %5759 }
 0xf8e   :  { %5859 = vrot.lane.b32.xlu1 %v13815_v45, %s8467_s28  ;;  %5899 = vrot.lane.b32.xlu0 %v13815_v45, %s8466_s27 }
 0xf8f   :  { %5731 = vrot.lane.b32.xlu2 %v13815_v45, %s8463_s19 }
 0xf91   :  { %v13841_v57 = vpop.permute.xlu2 %5849 }
 0xf92   :  { %16816 = vst [vmem:[#allocation45_spill] sm:$0xff] %v13841_v57 }
 0xf96   :  { %5857 = vrot.lane.b32.xlu1 %v13843_v2, %s8467_s28  ;;  %5937 = vrot.lane.b32.xlu0 %v13843_v2, %s8465_s26 }
 0xf97   :  { %5691 = vrot.lane.b32.xlu2 %v13815_v45, %s8470_s13 }
 0xf98   :  { %v13851_v52 = vpop.permute.xlu0 %5887  ;;  %v13853_v12 = vpop.permute.xlu1 %5847 }
 0xf99   :  { %16817 = vst [vmem:[#allocation49_spill] sm:$0xff] %v13851_v52  ;;  %v13855_v59 = vpop.permute.xlu2 %5851 }
 0xf9a   :  { %16818 = vst [vmem:[#allocation50_spill] sm:$0xff] %v13853_v12 }
 0xf9e   :  { %5769 = vrot.lane.b32.xlu1 %v13843_v2, %s8469_s12  ;;  %5897 = vrot.lane.b32.xlu0 %v13843_v2, %s8466_s27 }
 0xf9f   :  { %5813 = vrot.lane.b32.xlu2 %v13857_v33, %s8468_s11 }
 0xfa0   :  { %v13865_v19 = vpop.permute.xlu0 %5967  ;;  %v13867_v47 = vpop.permute.xlu1 %5799 }
 0xfa1   :  { %16820 = vst [vmem:[#allocation48_spill] sm:$0xff] %v13865_v19  ;;  %v13869_v13 = vpop.permute.xlu2 %5803 }
 0xfa6   :  { %5941 = vrot.lane.b32.xlu1 %v13857_v33, %s8465_s26  ;;  %5809 = vrot.lane.b32.xlu0 %v13843_v2, %s8468_s11 }
 0xfa7   :  { %5773 = vrot.lane.b32.xlu2 %v13857_v33, %s8469_s12 }
 0xfa8   :  { %v13877_v0 = vpop.permute.xlu0 %5929  ;;  %v13879_v28 = vpop.permute.xlu1 %5719 }
 0xfa9   :  { %16821 = vst [vmem:[#allocation38_spill] sm:$0xff] %v13877_v0  ;;  %v13881_v5 = vpop.permute.xlu2 %5763 }
 0xfae   :  { %5733 = vrot.lane.b32.xlu1 %v13857_v33, %s8463_s19  ;;  %5901 = vrot.lane.b32.xlu0 %v13857_v33, %s8466_s27 }
 0xfaf   :  { %5693 = vrot.lane.b32.xlu2 %v13857_v33, %s8470_s13 }
 0xfb0   :  { %v13889_v41 = vpop.permute.xlu0 %5931  ;;  %v13891_v11 = vpop.permute.xlu1 %5679 }
 0xfb1   :  { %v13893_v15 = vpop.permute.xlu2 %5893  ;;  %v5947_v63 = vsel %vm227_vm1, %v13823_v44, %v13889_v41  ;;  %v16825_v44 = vld [vmem:[#allocation18_spill] sm:$0xff] }
 0xfb6   :  { %5683 = vrot.lane.b32.xlu1 %v13758_v26, %s8470_s13  ;;  %5861 = vrot.lane.b32.xlu0 %v13857_v33, %s8467_s28 }
 0xfb7   :  { %5729 = vrot.lane.b32.xlu2 %v13843_v2, %s8463_s19 }
 0xfb8   :  { %v13901_v50 = vpop.permute.xlu0 %5721  ;;  %v13903_v17 = vpop.permute.xlu1 %5889 }
 0xfb9   :  { %16822 = vst [vmem:[#allocation41_spill] sm:$0xff] %v13903_v17  ;;  %v13905_v40 = vpop.permute.xlu2 %5855  ;;  %v5908_v32 = vsel %vm202_vm2, %v13903_v17, %v13893_v15 }
 0xfba   :  { %v5915_v55 = vmul.f32 %v5908_v32, %v16825_v44 }
 0xfbe   :  { %5981 = vrot.lane.b32.xlu1 %v13857_v33, %s8464_s25  ;;  %5977 = vrot.lane.b32.xlu0 %v13843_v2, %s8464_s25  ;;  %v16824_v33 = vld [vmem:[#allocation16_spill] sm:$0xff] }
 0xfbf   :  { %5727 = vrot.lane.b32.xlu2 %v13788_v29, %s8463_s19  ;;  %v5951_v22 = vmul.f32 %v5947_v63, %v16824_v33  ;;  %v5867_v63 = vsel %vm177_vm3, %v13853_v12, %v13855_v59 }
 0xfc0   :  { %v13913_v24 = vpop.permute.xlu0 %5969  ;;  %v13915_v46 = vpop.permute.xlu1 %5891 }
 0xfc1   :  { %v13917_v60 = vpop.permute.xlu2 %5765  ;;  %v5907_v8 = vsel %vm202_vm2, %v13851_v52, %v13915_v46 }
 0xfc6   :  { %5979 = vrot.lane.b32.xlu1 %v13815_v45, %s8464_s25  ;;  %5975 = vrot.lane.b32.xlu0 %v13788_v29, %s8464_s25 }
 0xfc7   :  { %5689 = vrot.lane.b32.xlu2 %v13843_v2, %s8470_s13 }
 0xfc8   :  { %v13925_v16 = vpop.permute.xlu0 %5723  ;;  %v13927_v23 = vpop.permute.xlu1 %5801 }
 0xfc9   :  { %v13929_v61 = vpop.permute.xlu2 %5807 }
 0xfce   :  { %6086 = vperm.xlu1 %8430, %v8374_v20   ;;  %5687 = vrot.lane.b32.xlu0 %v13788_v29, %s8470_s13 }
 0xfcf   :  { %6081 = vperm.xlu2 %8428, %v8373_v51  }
 0xfd0   :  { %v13939_v53 = vpop.permute.xlu0 %5853  ;;  %v13941_v18 = vpop.permute.xlu1 %5761 }
 0xfd1   :  { %v13943_v25 = vpop.permute.xlu2 %5685 }
 0xfd8   :  { %v13945_v58 = vpop.permute.xlu0 %5935  ;;  %v13947_v36 = vpop.permute.xlu1 %5681 }
 0xfd9   :  { %v13949_v38 = vpop.permute.xlu2 %5811 }
 0xfe0   :  { %v13951_v21 = vpop.permute.xlu0 %5895  ;;  %v13953_v4 = vpop.permute.xlu1 %5971 }
 0xfe1   :  { %16823 = vst [vmem:[#allocation46_spill] sm:$0xff] %v13953_v4  ;;  %v13955_v20 = vpop.permute.xlu2 %5939  ;;  %v5987_v32 = vsel %vm252_vm0, %v13865_v19, %v13953_v4 }
 0xfe8   :  { %v13957_v62 = vpop.permute.xlu0 %5805  ;;  %v5934_v51 = vpop.permute.xlu1 %5933 }
 0xfe9   :  { %v13963_v31 = vpop.permute.xlu2 %5731  ;;  %v5948_v45 = vsel %vm227_vm1, %v13877_v0, %v5934_v51 }
 0xfea   :  { %v5955_v42 = vmul.f32 %v5948_v45, %v16824_v33  ;;  %v5868_v45 = vsel %vm177_vm3, %v13841_v57, %v13939_v53  ;;  %v5991_v57 = vmul.f32 %v5987_v32, %v16793_v54 }
 0xfec   :  { %6095 = vmatpush.msrb.mxu3 %v5955_v42  ;;  %v5911_v42 = vmul.f32 %v5907_v8, %v16825_v44  ;;  %v16826_v8 = vld [vmem:[#allocation25_spill] sm:$0xff] }
 0xfed   :  { %v5875_v44 = vmul.f32 %v5868_v45, %v16826_v8  ;;  %v5871_v12 = vmul.f32 %v5867_v63, %v16826_v8 }
 0xfee   :  { %6096 = vmatpush.msrb.mxu3 %v5951_v22 }
 0xff0   :  { %v13983_v0 = vpop.permute.xlu0 %5767  ;;  %6097 = vmatpush.msrb.mxu3 %v5915_v55  ;;  %v13985_v17 = vpop.permute.xlu1 %5973 }
 0xff1   :  { %v13996_v22 = vpop.permute.xlu2 %5691  ;;  %v5988_v55 = vsel %vm252_vm0, %v13913_v24, %v13985_v17 }
 0xff2   :  { %v5995_v33 = vmul.f32 %v5988_v55, %v16793_v54  ;;  %6098 = vmatpush.msrb.mxu3 %v5911_v42 }
 0xff4   :  { %6099 = vmatpush.msrb.mxu3 %v5875_v44  ;;  %6132 = vmatpush.msrb.mxu1 %v5995_v33  ;;  %v5821_v44 = vsel %vm148_vm4, %v13949_v38, %v13867_v47 }
 0xff6   :  { %6100 = vmatpush.msrb.mxu3 %v5871_v12  ;;  %6133 = vmatpush.msrb.mxu1 %v5991_v57 }
 0xff8   :  { %v14006_v52 = vpop.permute.xlu0 %5771  ;;  %6101 = vmatpush.msrb.mxu3 %v13750_v9  ;;  %v14009_v19 = vpop.permute.xlu1 %5725  ;;  %v5823_v9 = vmul.f32 %v5821_v44, %v16795_v10 }
 0xff9   :  { %v14011_v4 = vpop.permute.xlu2 %5813  ;;  %v5781_v63 = vsel %vm123_vm5, %v14006_v52, %v13832_v35 }
 0xffa   :  { %v5822_v33 = vsel %vm148_vm4, %v14011_v4, %v13927_v23  ;;  %6102 = vmatpush.msrb.mxu3 %v13732_v34  ;;  %v5783_v55 = vmul.f32 %v5781_v63, %v16796_v48 }
 0xffb   :  { %v5827_v57 = vmul.f32 %v5822_v33, %v16795_v10 }
 0xffd   :  { %6103 = vmatpush.msrb.mxu3 %v5827_v57  ;;  %v5945_v57 = vsel %vm227_vm1, %v13889_v41, %v13945_v58 }
 0xfff   :  { %6104 = vmatpush.msrb.mxu3 %v5823_v9 }
0x1000   :  { %v14024_v12 = vpop.permute.xlu0 %5899  ;;  %v14026_v45 = vpop.permute.xlu1 %5859 }
0x1001   :  { %v14028_v42 = vpop.permute.xlu2 %5773 }
0x1002   :  { %v5782_v34 = vsel %vm123_vm5, %v14028_v42, %v13941_v18 }
0x1003   :  { %v5787_v32 = vmul.f32 %v5782_v34, %v16796_v48  ;;  %v5952_v34 = vmul.f32 %v5945_v57, %v16792_v39  ;;  %v14064_v57 = vld [vmem:[#allocation3 + $0x48] sm:$0xff]  ;;  %v14089_v48 = vld [vmem:[#allocation3 + $0x58] sm:$0xff] }
0x1004   :  { %8375 = vmatmul.msk.f32.vlgmr.msrb.gmra.mxu1 %vm846_vm9, %v14064_v57 }
0x1005   :  { %6105 = vmatpush.msrb.mxu3 %v5787_v32 }
0x1007   :  { %6106 = vmatpush.msrb.mxu3 %v5783_v55  ;;  %v5905_v55 = vsel %vm202_vm2, %v13915_v46, %v13951_v21 }
0x1008   :  { %v5938_v44 = vpop.permute.xlu0 %5937  ;;  %v14040_v33 = vpop.permute.xlu1 %5857 }
0x1009   :  { %v5946_v9 = vsel %vm227_vm1, %v5934_v51, %v5938_v44 }
0x100a   :  { %v5956_v54 = vmul.f32 %v5946_v9, %v16792_v39  ;;  %v5912_v9 = vmul.f32 %v5905_v55, %v16752_v6  ;;  %v5943_v55 = vsel %vm227_vm1, %v13945_v58, %v13955_v20 }
0x100c   :  { %6141 = vmatpush.msrb.mxu2 %v5956_v54  ;;  %v5866_v54 = vsel %vm177_vm3, %v13939_v53, %v14040_v33  ;;  %8376 = vmatmul.msk.f32.gmra.mxu1 %vm846_vm9, %v14089_v48 }
0x100d   :  { %v5876_v46 = vmul.f32 %v5866_v54, %v16753_v30 }
0x100e   :  { %6142 = vmatpush.msrb.mxu2 %v5952_v34 }
0x1010   :  { %v5898_v32 = vpop.permute.xlu0 %5897  ;;  %v14050_v63 = vpop.permute.xlu1 %5769 }
0x1011   :  { %v5906_v41 = vsel %vm202_vm2, %v13893_v15, %v5898_v32  ;;  %v5865_v15 = vsel %vm177_vm3, %v13855_v59, %v13905_v40 }
0x1012   :  { %v5916_v51 = vmul.f32 %v5906_v41, %v16752_v6  ;;  %v5872_v41 = vmul.f32 %v5865_v15, %v16753_v30  ;;  %v5820_v15 = vsel %vm148_vm4, %v13927_v23, %v13957_v62 }
0x1014   :  { %6143 = vmatpush.msrb.mxu2 %v5916_v51  ;;  %v14083_v51 = vpop.permute.xlu2 %5693 }
0x1015   :  { %v5702_v10 = vsel %vm73_vm7, %v14083_v51, %v13947_v36 }
0x1016   :  { %6144 = vmatpush.msrb.mxu2 %v5912_v9  ;;  %v16827_v9 = vld [vmem:[#allocation9_spill] sm:$0xff] }
0x1017   :  { %v5953_v58 = vmul.f32 %v5943_v55, %v16827_v9 }
0x1018   :  { %v14074_v34 = vpop.permute.xlu0 %5809  ;;  %6145 = vmatpush.msrb.mxu2 %v5876_v46  ;;  %v14076_v53 = vpop.permute.xlu1 %5941  ;;  %v16828_v46 = vld [vmem:[#allocation30_spill] sm:$0xff] }
0x1019   :  { %v5944_v59 = vsel %vm227_vm1, %v5938_v44, %v14076_v53  ;;  %v5819_v44 = vsel %vm148_vm4, %v13867_v47, %v13869_v13 }
0x101a   :  { %v5957_v54 = vmul.f32 %v5944_v59, %v16827_v9  ;;  %6146 = vmatpush.msrb.mxu2 %v5872_v41  ;;  %v5828_v41 = vmul.f32 %v5820_v15, %v16828_v46  ;;  %v5824_v47 = vmul.f32 %v5819_v44, %v16828_v46  ;;  %v5741_v59 = vsel %vm98_vm6, %v13963_v31, %v13879_v28 }
0x101b   :  { %v5903_v15 = vsel %vm202_vm2, %v13951_v21, %v14024_v12  ;;  %v5743_v21 = vmul.f32 %v5741_v59, %v16797_v56  ;;  %v16831_v59 = vld [vmem:[#allocation35_spill] sm:$0xff] }
0x101c   :  { %6147 = vmatpush.msrb.mxu2 %v13780_v49  ;;  %6187 = vmatpush.msra.mxu1 %v5957_v54  ;;  %v5780_v49 = vsel %vm123_vm5, %v13941_v18, %v13917_v60  ;;  %v14144_v46 = vpop.permute.xlu2 %5729 }
0x101e   :  { %6148 = vmatpush.msrb.mxu2 %v13758_v26  ;;  %6188 = vmatpush.msra.mxu1 %v5953_v58  ;;  %v5779_v26 = vsel %vm123_vm5, %v13832_v35, %v13881_v5  ;;  %v16829_v58 = vld [vmem:[#allocation33_spill] sm:$0xff] }
0x101f   :  { %v5788_v44 = vmul.f32 %v5780_v49, %v16829_v58  ;;  %v5784_v49 = vmul.f32 %v5779_v26, %v16829_v58  ;;  %v5700_v26 = vsel %vm73_vm7, %v13947_v36, %v13943_v25 }
0x1020   :  { %v14109_v23 = vpop.permute.xlu0 %5901  ;;  %6149 = vmatpush.msrb.mxu2 %v5828_v41  ;;  %v14111_v55 = vpop.permute.xlu1 %5733  ;;  %v16830_v41 = vld [vmem:[#allocation10_spill] sm:$0xff] }
0x1021   :  { %v5904_v18 = vsel %vm202_vm2, %v5898_v32, %v14109_v23  ;;  %v5742_v54 = vsel %vm98_vm6, %v14111_v55, %v13901_v50  ;;  %v5740_v32 = vsel %vm98_vm6, %v13901_v50, %v14009_v19  ;;  %v5701_v50 = vsel %vm73_vm7, %v13996_v22, %v13891_v11 }
0x1022   :  { %6150 = vmatpush.msrb.mxu2 %v5824_v47  ;;  %v5747_v35 = vmul.f32 %v5742_v54, %v16797_v56  ;;  %v5917_v9 = vmul.f32 %v5904_v18, %v16830_v41  ;;  %v5739_v47 = vsel %vm98_vm6, %v13879_v28, %v13925_v16  ;;  %v5913_v18 = vmul.f32 %v5903_v15, %v16830_v41 }
0x1023   :  { %v5707_v54 = vmul.f32 %v5702_v10, %v16552_v1  ;;  %v5744_v15 = vmul.f32 %v5739_v47, %v16831_v59  ;;  %v5863_v10 = vsel %vm177_vm3, %v13905_v40, %v14026_v45 }
0x1024   :  { %6107 = vmatpush.msrb.mxu3 %v5747_v35  ;;  %6151 = vmatpush.msrb.mxu2 %v5788_v44  ;;  %v5748_v35 = vmul.f32 %v5740_v32, %v16831_v59 }
0x1025   :  { %6189 = vmatpush.msra.mxu1 %v5917_v9  ;;  %v5703_v9 = vmul.f32 %v5701_v50, %v16552_v1 }
0x1026   :  { %6108 = vmatpush.msrb.mxu3 %v5743_v21  ;;  %6152 = vmatpush.msrb.mxu2 %v5784_v49  ;;  %v14169_v21 = vld [vmem:[#allocation3 + $0x40] sm:$0xff]  ;;  %v16832_v49 = vld [vmem:[#allocation37_spill] sm:$0xff] }
0x1027   :  { %6190 = vmatpush.msra.mxu1 %v5913_v18  ;;  %v5708_v47 = vmul.f32 %v5700_v26, %v16832_v49  ;;  %v5873_v18 = vmul.f32 %v5863_v10, %v8672_v37  ;;  %v14196_v26 = vld [vmem:[#allocation3 + $0x50] sm:$0xff] }
0x1028   :  { %v14163_v28 = vpop.permute.xlu0 %5861  ;;  %6109 = vmatpush.msrb.mxu3 %v5707_v54  ;;  %6153 = vmatpush.msrb.mxu2 %v5748_v35  ;;  %v14165_v44 = vpop.permute.xlu1 %5683 }
0x1029   :  { %v5864_v36 = vsel %vm177_vm3, %v14040_v33, %v14163_v28  ;;  %v5699_v32 = vsel %vm73_vm7, %v13891_v11, %v14165_v44  ;;  %v14188_v33 = vpop.permute.xlu2 %5727  ;;  %v5818_v11 = vsel %vm148_vm4, %v13957_v62, %v14074_v34 }
0x102a   :  { %6110 = vmatpush.msrb.mxu3 %v5703_v9  ;;  %6154 = vmatpush.msrb.mxu2 %v5744_v15  ;;  %v5877_v50 = vmul.f32 %v5864_v36, %v8672_v37  ;;  %v5704_v40 = vmul.f32 %v5699_v32, %v16832_v49  ;;  %v5817_v9 = vsel %vm148_vm4, %v13869_v13, %v13929_v61 }
0x102b   :  { %6111 = vmatmul.f32.vlgmr.msrb.gmra.mxu3 %v14169_v21  ;;  %v5829_v13 = vmul.f32 %v5818_v11, %v16723_v3 }
0x102c   :  { %6155 = vmatpush.msrb.mxu2 %v5708_v47  ;;  %6191 = vmatpush.msra.mxu1 %v5877_v50  ;;  %v5777_v50 = vsel %vm123_vm5, %v13881_v5, %v13983_v0  ;;  %v16834_v5 = vld [vmem:[#allocation24_spill] sm:$0xff] }
0x102e   :  { %6156 = vmatpush.msrb.mxu2 %v5704_v40  ;;  %6192 = vmatpush.msra.mxu1 %v5873_v18 }
0x102f   :  { %6157 = vmatmul.f32.vlgmr.msrb.gmra.mxu2 %v14169_v21 }
0x1030   :  { %v5978_v54 = vpop.permute.xlu0 %5977  ;;  %6193 = vmatpush.msra.mxu1 %v13843_v2  ;;  %v5982_v35 = vpop.permute.xlu1 %5981  ;;  %v16833_v2 = vld [vmem:[#allocation15_spill] sm:$0xff] }
0x1031   :  { %v5986_v15 = vsel %vm252_vm0, %v13985_v17, %v5978_v54  ;;  %v5984_v62 = vsel %vm252_vm0, %v5978_v54, %v5982_v35  ;;  %v5990_v10 = vsel %vm252_vm0, %v5982_v35, %v13913_v24  ;;  %v5778_v17 = vsel %vm123_vm5, %v13917_v60, %v14050_v63  ;;  %v14230_v40 = vpop.permute.xlu2 %5689 }
0x1032   :  { %v5996_v36 = vmul.f32 %v5986_v15, %v16833_v2  ;;  %v5997_v32 = vmul.f32 %v5984_v62, %v16624_v43  ;;  %v5998_v47 = vmul.f32 %v5990_v10, %v16767_v27  ;;  %6194 = vmatpush.msra.mxu1 %v13788_v29  ;;  %v5825_v24 = vmul.f32 %v5817_v9, %v16723_v3  ;;  %v16835_v9 = vld [vmem:[#allocation46_spill] sm:$0xff]  ;;  %v16836_v10 = vld [vmem:[#allocation48_spill] sm:$0xff] }
0x1033   :  { %6114 = vmatmul.f32.gmra.mxu3 %v14196_v26  ;;  %v5738_v29 = vsel %vm98_vm6, %v14009_v19, %v14144_v46  ;;  %v5789_v60 = vmul.f32 %v5778_v17, %v16727_v14  ;;  %v5785_v54 = vmul.f32 %v5777_v50, %v16727_v14  ;;  %v5737_v19 = vsel %vm98_vm6, %v13925_v16, %v14188_v33  ;;  %v16838_v50 = vld [vmem:[#allocation44_spill] sm:$0xff] }
0x1034   :  { %6178 = vmatpush.msrb.mxu0 %v5996_v36  ;;  %6195 = vmatpush.msra.mxu1 %v5829_v13  ;;  %v5749_v35 = vmul.f32 %v5738_v29, %v16834_v5  ;;  %v5949_v29 = vsel %vm227_vm1, %v13955_v20, %v16838_v50  ;;  %v16848_v50 = vld [vmem:[#allocation39_spill] sm:$0xff] }
0x1035   :  { %6224 = vmatpush.msra.mxu3 %v5997_v32  ;;  %6270 = vmatpush.msra.mxu2 %v5998_v47  ;;  %v16837_v32 = vld [vmem:[#allocation38_spill] sm:$0xff] }
0x1036   :  { %6196 = vmatpush.msra.mxu1 %v5825_v24  ;;  %v5950_v47 = vsel %vm227_vm1, %v14076_v53, %v16837_v32  ;;  %v5698_v24 = vsel %vm73_vm7, %v13943_v25, %v14230_v40  ;;  %v5745_v53 = vmul.f32 %v5737_v19, %v16834_v5  ;;  %v16841_v25 = vld [vmem:[#allocation27_spill] sm:$0xff] }
0x1037   :  { %6160 = vmatmul.f32.gmra.mxu2 %v14196_v26 }
0x1038   :  { %v5976_v18 = vpop.permute.xlu0 %5975  ;;  %6197 = vmatpush.msra.mxu1 %v5789_v60  ;;  %v5980_v11 = vpop.permute.xlu1 %5979  ;;  %v16839_v60 = vld [vmem:[#allocation7_spill] sm:$0xff] }
0x1039   :  { %v5985_v15 = vsel %vm252_vm0, %v16835_v9, %v5976_v18  ;;  %v5983_v62 = vsel %vm252_vm0, %v5976_v18, %v5980_v11  ;;  %v5989_v36 = vsel %vm252_vm0, %v5980_v11, %v16836_v10  ;;  %v5958_v18 = vmul.f32 %v5950_v47, %v16839_v60  ;;  %v16840_v11 = vld [vmem:[#allocation41_spill] sm:$0xff] }
0x103a   :  { %6198 = vmatpush.msra.mxu1 %v5785_v54  ;;  %v5992_v13 = vmul.f32 %v5985_v15, %v16833_v2  ;;  %v5993_v16 = vmul.f32 %v5983_v62, %v16624_v43  ;;  %v5994_v17 = vmul.f32 %v5989_v36, %v16767_v27  ;;  %v5910_v54 = vsel %vm202_vm2, %v14109_v23, %v16840_v11  ;;  %v16843_v62 = vld [vmem:[#allocation11_spill] sm:$0xff]  ;;  %v16844_v36 = vld [vmem:[#allocation45_spill] sm:$0xff] }
0x103b   :  { %v5709_v9 = vmul.f32 %v5698_v24, %v16841_v25  ;;  %v5954_v20 = vmul.f32 %v5949_v29, %v16839_v60  ;;  %v5918_v10 = vmul.f32 %v5910_v54, %v16843_v62  ;;  %v5870_v32 = vsel %vm177_vm3, %v14163_v28, %v16844_v36  ;;  %v16849_v29 = vld [vmem:[#allocation21_spill] sm:$0xff] }
0x103c   :  { %6179 = vmatpush.msrb.mxu0 %v5992_v13  ;;  %6199 = vmatpush.msra.mxu1 %v5749_v35  ;;  %v16842_v35 = vld [vmem:[#allocation49_spill] sm:$0xff]  ;;  %v16845_v13 = vld [vmem:[#allocation50_spill] sm:$0xff]  ;;  %v5815_v24 = vsel %vm148_vm4, %v13929_v61, %v13949_v38 }
0x103d   :  { %6225 = vmatpush.msra.mxu3 %v5993_v16  ;;  %6271 = vmatpush.msra.mxu2 %v5994_v17  ;;  %v5909_v19 = vsel %vm202_vm2, %v14024_v12, %v16842_v35  ;;  %v16847_v17 = vld [vmem:[#allocation42_spill] sm:$0xff] }
0x103e   :  { %8377 = vmatmul.msk.f32.vlgmr.msrb.gmra.mxu0 %vm846_vm9, %v14064_v57  ;;  %6200 = vmatpush.msra.mxu1 %v5745_v53  ;;  %v5914_v12 = vmul.f32 %v5909_v19, %v16843_v62  ;;  %v16850_v61 = vld [vmem:[#allocation22_spill] sm:$0xff] }
0x103f   :  { %6233 = vmatpush.msra.mxu0 %v5958_v18  ;;  %8379 = vmatmul.msk.f32.vlgmr.msra.gmra.mxu3 %vm846_vm9, %v14064_v57  ;;  %v5736_v18 = vsel %vm98_vm6, %v14144_v46, %v14111_v55  ;;  %v16852_v55 = vld [vmem:[#allocation31_spill] sm:$0xff] }
0x1040   :  { %v5688_v15 = vpop.permute.xlu0 %5687  ;;  %6201 = vmatpush.msra.mxu1 %v5709_v9  ;;  %8381 = vmatmul.msk.f32.vlgmr.msra.gmra.mxu2 %vm846_vm9, %v14064_v57  ;;  %v5869_v57 = vsel %vm177_vm3, %v14026_v45, %v16845_v13  ;;  %v5816_v45 = vsel %vm148_vm4, %v14074_v34, %v14011_v4  ;;  %v5826_v4 = vmul.f32 %v5815_v24, %v16849_v29 }
0x1041   :  { %6234 = vmatpush.msra.mxu0 %v5954_v20  ;;  %v5697_v23 = vsel %vm73_vm7, %v14165_v44, %v5688_v15  ;;  %v16846_v44 = vld [vmem:[#allocation13_spill] sm:$0xff]  ;;  %v5830_v53 = vmul.f32 %v5816_v45, %v16849_v29  ;;  %v5775_v34 = vsel %vm123_vm5, %v13983_v0, %v14006_v52  ;;  %v5696_v52 = vsel %vm73_vm7, %v14230_v40, %v14083_v51 }
0x1042   :  { %v5705_v47 = vmul.f32 %v5697_v23, %v16841_v25  ;;  %v5878_v16 = vmul.f32 %v5870_v32, %v16846_v44  ;;  %v5874_v28 = vmul.f32 %v5869_v57, %v16846_v44  ;;  %v5786_v11 = vmul.f32 %v5775_v34, %v16850_v61 }
0x1043   :  { %6235 = vmatpush.msra.mxu0 %v5918_v10  ;;  %v5695_v46 = vsel %vm73_vm7, %v5688_v15, %v13996_v22  ;;  %v5710_v9 = vmul.f32 %v5696_v52, %v16852_v55 }
0x1044   :  { %6202 = vmatpush.msra.mxu1 %v5705_v47  ;;  %v14361_v47 = vpop.permute.xlu1 %6086 }
0x1045   :  { %6236 = vmatpush.msra.mxu0 %v5914_v12  ;;  %6203 = vmatmul.f32.vlgmr.msra.gmra.mxu1 %v14169_v21 }
0x1046   :  { %8378 = vmatmul.msk.f32.gmra.mxu0 %vm846_vm9, %v14089_v48 }
0x1047   :  { %6237 = vmatpush.msra.mxu0 %v5878_v16  ;;  %8380 = vmatmul.msk.f32.gmra.mxu3 %vm846_vm9, %v14089_v48 }
0x1048   :  { %8382 = vmatmul.msk.f32.gmra.mxu2 %vm846_vm9, %v14089_v48  ;;  %v5776_v48 = vsel %vm123_vm5, %v14050_v63, %v14028_v42  ;;  %v5735_v42 = vsel %vm98_vm6, %v14188_v33, %v13963_v31  ;;  %v16851_v63 = vld [vmem:[#allocation28_spill] sm:$0xff]  ;;  %v5706_v31 = vmul.f32 %v5695_v46, %v16852_v55  ;;  %v14347_v33 = vpop.permute.xlu2 %6081 }
0x1049   :  { %6238 = vmatpush.msra.mxu0 %v5874_v28  ;;  %v5790_v38 = vmul.f32 %v5776_v48, %v16850_v61  ;;  %v5750_v54 = vmul.f32 %v5736_v18, %v16851_v63  ;;  %v5746_v0 = vmul.f32 %v5735_v42, %v16851_v63 }
0x104b   :  { %6239 = vmatpush.msra.mxu0 %v16847_v17 }
0x104d   :  { %6240 = vmatpush.msra.mxu0 %v16848_v50  ;;  %6206 = vmatmul.f32.gmra.mxu1 %v14196_v26 }
0x104f   :  { %6241 = vmatpush.msra.mxu0 %v5830_v53 }
0x1051   :  { %6242 = vmatpush.msra.mxu0 %v5826_v4 }
0x1053   :  { %6243 = vmatpush.msra.mxu0 %v5790_v38 }
0x1055   :  { %6244 = vmatpush.msra.mxu0 %v5786_v11 }
0x1057   :  { %6245 = vmatpush.msra.mxu0 %v5750_v54 }
0x1059   :  { %6246 = vmatpush.msra.mxu0 %v5746_v0 }
0x105b   :  { %6247 = vmatpush.msra.mxu0 %v5710_v9 }
0x105d   :  { %6248 = vmatpush.msra.mxu0 %v5706_v31 }
0x105e   :  { %6249 = vmatmul.f32.vlgmr.msra.gmra.mxu0 %v14169_v21 }
0x1066   :  { %6252 = vmatmul.f32.gmra.mxu0 %v14196_v26 }
0x1081   :  { %v6135_v40 = vpop.f32.mrf.mxu1 }
0x1089   :  { %v6138_v36 = vpop.f32.mrf.mxu1 }
0x10ae   :  { %v6112_v51 = vpop.f32.mrf.mxu3 }
0x10af   :  { %v6113_v20 = vadd.f32 %v6112_v51, %v14347_v33 }
0x10b1   :  { %v6136_v35 = vadd.f32 %v6135_v40, %v6113_v20 }
0x10b2   :  { %v6158_v15 = vpop.f32.mrf.mxu2 }
0x10b3   :  { %v6279_v19 = vmul.f32 0.2, %v6136_v35  ;;  %v6159_v21 = vadd.f32 %v6158_v15, %v14347_v33 }
0x10b5   :  { %v14350_v22 = vmax.f32 %v6136_v35, %v6279_v19 }
0x10b6   :  { %v6115_v10 = vpop.f32.mrf.mxu3 }
0x10b7   :  { %6301 = vrot.lane.b32.xlu2 %v14350_v22, %s8470_s13  ;;  %6381 = vrot.lane.b32.xlu1 %v14350_v22, %s8469_s12  ;;  %v6116_v13 = vadd.f32 %v6115_v10, %v14361_v47 }
0x10b8   :  { %6549 = vrot.lane.b32.xlu0 %v14350_v22, %s8465_s26 }
0x10b9   :  { %v6139_v57 = vadd.f32 %v6138_v36, %v6116_v13 }
0x10ba   :  { %v6161_v4 = vpop.f32.mrf.mxu2 }
0x10bb   :  { %v6181_v26 = vpop.f32.mrf.mxu0  ;;  %v6283_v28 = vmul.f32 0.2, %v6139_v57  ;;  %v6162_v38 = vadd.f32 %v6161_v4, %v14361_v47 }
0x10bc   :  { %v6182_v23 = vadd.f32 %v6181_v26, %v6159_v21 }
0x10bd   :  { %v14377_v24 = vmax.f32 %v6139_v57, %v6283_v28 }
0x10be   :  { %v6280_v32 = vmul.f32 0.2, %v6182_v23 }
0x10bf   :  { %6589 = vrot.lane.b32.xlu2 %v14350_v22, %s8464_s25 }
0x10c0   :  { %v14363_v12 = vmax.f32 %v6182_v23, %v6280_v32  ;;  %6509 = vrot.lane.b32.xlu0 %v14350_v22, %s8466_s27 }
0x10c2   :  { %6553 = vrot.lane.b32.xlu1 %v14363_v12, %s8465_s26  ;;  %v6204_v16 = vpop.f32.mrf.mxu1  ;;  %v6227_v17 = vpop.f32.mrf.mxu3 }
0x10c3   :  { %v6205_v45 = vadd.f32 %v6204_v16, %v14347_v33  ;;  %v6184_v34 = vpop.f32.mrf.mxu0  ;;  %v6273_v20 = vpop.f32.mrf.mxu2 }
0x10c4   :  { %v6185_v18 = vadd.f32 %v6184_v34, %v6162_v38 }
0x10c5   :  { %v6228_v50 = vadd.f32 %v6227_v17, %v6205_v45 }
0x10c6   :  { %v6284_v42 = vmul.f32 0.2, %v6185_v18 }
0x10c7   :  { %6385 = vrot.lane.b32.xlu2 %v14363_v12, %s8469_s12  ;;  %v6281_v53 = vmul.f32 0.2, %v6228_v50 }
0x10c8   :  { %6469 = vrot.lane.b32.xlu0 %v14350_v22, %s8467_s28  ;;  %v14407_v0 = vmax.f32 %v6185_v18, %v6284_v42 }
0x10c9   :  { %v14385_v48 = vmax.f32 %v6228_v50, %v6281_v53 }
0x10ca   :  { %6513 = vrot.lane.b32.xlu1 %v14363_v12, %s8466_s27  ;;  %v6207_v11 = vpop.f32.mrf.mxu1  ;;  %v6230_v52 = vpop.f32.mrf.mxu3 }
0x10cb   :  { %v6208_v54 = vadd.f32 %v6207_v11, %v14361_v47  ;;  %v6276_v36 = vpop.f32.mrf.mxu2 }
0x10cd   :  { %v6231_v46 = vadd.f32 %v6230_v52, %v6208_v54 }
0x10cf   :  { %6343 = vrot.lane.b32.xlu2 %v14377_v24, %s8463_s19  ;;  %v6285_v9 = vmul.f32 0.2, %v6231_v46 }
0x10d0   :  { %6421 = vrot.lane.b32.xlu0 %v14350_v22, %s8468_s11 }
0x10d1   :  { %v14415_v31 = vmax.f32 %v6231_v46, %v6285_v9 }
0x10d2   :  { %6473 = vrot.lane.b32.xlu1 %v14363_v12, %s8467_s28 }
0x10d7   :  { %6557 = vrot.lane.b32.xlu2 %v14385_v48, %s8465_s26 }
0x10d8   :  { %6341 = vrot.lane.b32.xlu0 %v14350_v22, %s8463_s19 }
0x10da   :  { %6425 = vrot.lane.b32.xlu1 %v14363_v12, %s8468_s11 }
0x10db   :  { %v6250_v51 = vpop.f32.mrf.mxu0 }
0x10dc   :  { %v6251_v40 = vadd.f32 %v6250_v51, %v14347_v33 }
0x10de   :  { %v6274_v35 = vadd.f32 %v6273_v20, %v6251_v40 }
0x10df   :  { %6517 = vrot.lane.b32.xlu2 %v14385_v48, %s8466_s27 }
0x10e0   :  { %6551 = vrot.lane.b32.xlu0 %v14377_v24, %s8465_s26  ;;  %v6282_v19 = vmul.f32 0.2, %v6274_v35 }
0x10e2   :  { %6345 = vrot.lane.b32.xlu1 %v14363_v12, %s8463_s19  ;;  %v14436_v15 = vmax.f32 %v6274_v35, %v6282_v19  ;;  %v8383_v19 = vld [vmem:[%s16147_s5 + $0x30] sm:$0xff] }
0x10e3   :  { %v6253_v26 = vpop.f32.mrf.mxu0 }
0x10e4   :  { %16853 = vst [vmem:[#allocation40_spill] sm:$0xff] %v14436_v15  ;;  %v6254_v23 = vadd.f32 %v6253_v26, %v14361_v47  ;;  %v8384_v26 = vld [vmem:[%s16147_s5 + $0x38] sm:$0xff] }
0x10e6   :  { %v6277_v32 = vadd.f32 %v6276_v36, %v6254_v23 }
0x10e7   :  { %6477 = vrot.lane.b32.xlu2 %v14385_v48, %s8467_s28 }
0x10e8   :  { %6511 = vrot.lane.b32.xlu0 %v14377_v24, %s8466_s27  ;;  %v6286_v13 = vmul.f32 0.2, %v6277_v32 }
0x10ea   :  { %6303 = vrot.lane.b32.xlu1 %v14377_v24, %s8470_s13  ;;  %v14475_v28 = vmax.f32 %v6277_v32, %v6286_v13 }
0x10ef   :  { %6307 = vrot.lane.b32.xlu2 %v14407_v0, %s8470_s13 }
0x10f0   :  { %6471 = vrot.lane.b32.xlu0 %v14377_v24, %s8467_s28 }
0x10f2   :  { %6555 = vrot.lane.b32.xlu1 %v14407_v0, %s8465_s26 }
0x10f7   :  { %6559 = vrot.lane.b32.xlu2 %v14415_v31, %s8465_s26 }
0x10f8   :  { %6423 = vrot.lane.b32.xlu0 %v14377_v24, %s8468_s11 }
0x10fa   :  { %6515 = vrot.lane.b32.xlu1 %v14407_v0, %s8466_s27 }
0x10ff   :  { %6519 = vrot.lane.b32.xlu2 %v14415_v31, %s8466_s27 }
0x1100   :  { %6383 = vrot.lane.b32.xlu0 %v14377_v24, %s8469_s12 }
0x1102   :  { %6475 = vrot.lane.b32.xlu1 %v14407_v0, %s8467_s28 }
0x1107   :  { %6479 = vrot.lane.b32.xlu2 %v14415_v31, %s8467_s28 }
0x1108   :  { %6305 = vrot.lane.b32.xlu0 %v14363_v12, %s8470_s13 }
0x110a   :  { %6427 = vrot.lane.b32.xlu1 %v14407_v0, %s8468_s11 }
0x110f   :  { %6433 = vrot.lane.b32.xlu2 %v14436_v15, %s8468_s11 }
0x1110   :  { %6591 = vrot.lane.b32.xlu0 %v14377_v24, %s8464_s25 }
0x1111   :  { %v14442_v33 = vpop.permute.xlu2 %6301 }
0x1112   :  { %6387 = vrot.lane.b32.xlu1 %v14407_v0, %s8469_s12 }
0x1117   :  { %6353 = vrot.lane.b32.xlu2 %v14436_v15, %s8463_s19 }
0x1118   :  { %6593 = vrot.lane.b32.xlu0 %v14363_v12, %s8464_s25 }
0x1119   :  { %v14450_v21 = vpop.permute.xlu2 %6589 }
0x111a   :  { %16854 = vst [vmem:[#allocation47_spill] sm:$0xff] %v14450_v21  ;;  %6595 = vrot.lane.b32.xlu1 %v14407_v0, %s8464_s25 }
0x111f   :  { %6481 = vrot.lane.b32.xlu2 %v14436_v15, %s8467_s28 }
0x1120   :  { %6597 = vrot.lane.b32.xlu0 %v14385_v48, %s8464_s25 }
0x1121   :  { %v14459_v10 = vpop.permute.xlu2 %6385 }
0x1122   :  { %16855 = vst [vmem:[#allocation6_spill] sm:$0xff] %v14459_v10  ;;  %6561 = vrot.lane.b32.xlu1 %v14436_v15, %s8465_s26 }
0x1127   :  { %6431 = vrot.lane.b32.xlu2 %v14415_v31, %s8468_s11 }
0x1128   :  { %6347 = vrot.lane.b32.xlu0 %v14407_v0, %s8463_s19 }
0x1129   :  { %v14467_v57 = vpop.permute.xlu2 %6343  ;;  %v14473_v47 = vpop.permute.xlu1 %6381 }
0x112a   :  { %v14469_v16 = vpop.permute.xlu0 %6549  ;;  %6313 = vrot.lane.b32.xlu1 %v14436_v15, %s8470_s13 }
0x112f   :  { %6435 = vrot.lane.b32.xlu2 %v14475_v28, %s8468_s11 }
0x1130   :  { %6393 = vrot.lane.b32.xlu0 %v14436_v15, %s8469_s12 }
0x1131   :  { %v14481_v45 = vpop.permute.xlu2 %6557 }
0x1132   :  { %v14483_v17 = vpop.permute.xlu0 %6509  ;;  %6599 = vrot.lane.b32.xlu1 %v14415_v31, %s8464_s25 }
0x1134   :  { %v6554_v50 = vpop.permute.xlu1 %6553 }
0x1135   :  { %v6567_v13 = vsel %vm227_vm1, %v6554_v50, %v14481_v45 }
0x1136   :  { %v6574_v14 = vmul.f32 %v6567_v13, %v16792_v39 }
0x1137   :  { %6395 = vrot.lane.b32.xlu2 %v14475_v28, %s8469_s12 }
0x1138   :  { %6521 = vrot.lane.b32.xlu0 %v14436_v15, %s8466_s27 }
0x1139   :  { %v14491_v53 = vpop.permute.xlu2 %6517 }
0x113a   :  { %v14493_v4 = vpop.permute.xlu0 %6469  ;;  %6355 = vrot.lane.b32.xlu1 %v14475_v28, %s8463_s19 }
0x113c   :  { %v6514_v34 = vpop.permute.xlu1 %6513 }
0x113f   :  { %6523 = vrot.lane.b32.xlu2 %v14475_v28, %s8466_s27 }
0x1140   :  { %6563 = vrot.lane.b32.xlu0 %v14475_v28, %s8465_s26 }
0x1141   :  { %v14501_v38 = vpop.permute.xlu2 %6477 }
0x1142   :  { %v14503_v18 = vpop.permute.xlu0 %6421  ;;  %6483 = vrot.lane.b32.xlu1 %v14475_v28, %s8467_s28 }
0x1144   :  { %v6474_v11 = vpop.permute.xlu1 %6473 }
0x1147   :  { %6391 = vrot.lane.b32.xlu2 %v14415_v31, %s8469_s12 }
0x1148   :  { %6315 = vrot.lane.b32.xlu0 %v14475_v28, %s8470_s13 }
0x1149   :  { %v14511_v42 = vpop.permute.xlu2 %6307 }
0x114a   :  { %v14513_v54 = vpop.permute.xlu0 %6341  ;;  %6429 = vrot.lane.b32.xlu1 %v14385_v48, %s8468_s11 }
0x114c   :  { %v14517_v52 = vpop.permute.xlu1 %6425 }
0x114f   :  { %6603 = vrot.lane.b32.xlu2 %v14475_v28, %s8464_s25 }
0x1150   :  { %6389 = vrot.lane.b32.xlu0 %v14385_v48, %s8469_s12 }
0x1151   :  { %v14523_v46 = vpop.permute.xlu2 %6559 }
0x1152   :  { %6351 = vrot.lane.b32.xlu1 %v14415_v31, %s8463_s19  ;;  %v14527_v9 = vpop.permute.xlu0 %6551 }
0x1154   :  { %v14529_v51 = vpop.permute.xlu1 %6345 }
0x1155   :  { %16856 = vst [vmem:[#allocation43_spill] sm:$0xff] %v14529_v51 }
0x1157   :  { %6311 = vrot.lane.b32.xlu2 %v14415_v31, %s8470_s13 }
0x1158   :  { %6349 = vrot.lane.b32.xlu0 %v14385_v48, %s8463_s19 }
0x1159   :  { %v14535_v40 = vpop.permute.xlu2 %6519 }
0x115a   :  { %6601 = vrot.lane.b32.xlu1 %v14436_v15, %s8464_s25  ;;  %v14539_v20 = vpop.permute.xlu0 %6511 }
0x115c   :  { %v14541_v35 = vpop.permute.xlu1 %6303 }
0x115f   :  { %6703 = vperm.xlu2 %8428, %v8383_v19   ;;  %v6569_v19 = vsel %vm227_vm1, %v14469_v16, %v6554_v50 }
0x1160   :  { %6309 = vrot.lane.b32.xlu0 %v14385_v48, %s8470_s13 }
0x1161   :  { %v14551_v23 = vpop.permute.xlu2 %6479 }
0x1162   :  { %6708 = vperm.xlu1 %8430, %v8384_v26   ;;  %v14553_v36 = vpop.permute.xlu0 %6471  ;;  %v16857_v26 = vld [vmem:[#allocation16_spill] sm:$0xff] }
0x1163   :  { %v6573_v61 = vmul.f32 %v6569_v19, %v16857_v26 }
0x1164   :  { %v6556_v32 = vpop.permute.xlu1 %6555 }
0x1165   :  { %v6568_v55 = vsel %vm227_vm1, %v6556_v32, %v14523_v46  ;;  %v6570_v25 = vsel %vm227_vm1, %v14527_v9, %v6556_v32  ;;  %v6527_v32 = vsel %vm202_vm2, %v6514_v34, %v14491_v53 }
0x1166   :  { %v6577_v63 = vmul.f32 %v6570_v25, %v16857_v26  ;;  %v6578_v5 = vmul.f32 %v6568_v55, %v16792_v39  ;;  %v6529_v25 = vsel %vm202_vm2, %v14483_v17, %v6514_v34  ;;  %v16858_v55 = vld [vmem:[#allocation18_spill] sm:$0xff]  ;;  %v6534_v19 = vmul.f32 %v6527_v32, %v16752_v6 }
0x1167   :  { %v6533_v13 = vmul.f32 %v6529_v25, %v16858_v55 }
0x1168   :  { %6717 = vmatpush.msrb.mxu3 %v6577_v63  ;;  %6763 = vmatpush.msrb.mxu2 %v6578_v5 }
0x1169   :  { %v14571_v29 = vpop.permute.xlu2 %6433 }
0x116a   :  { %v6424_v50 = vpop.permute.xlu0 %6423  ;;  %6718 = vmatpush.msrb.mxu3 %v6573_v61  ;;  %6764 = vmatpush.msrb.mxu2 %v6574_v14 }
0x116c   :  { %v6516_v15 = vpop.permute.xlu1 %6515 }
0x116d   :  { %v6528_v5 = vsel %vm202_vm2, %v6516_v15, %v14535_v40  ;;  %v6530_v63 = vsel %vm202_vm2, %v14539_v20, %v6516_v15  ;;  %v6487_v15 = vsel %vm177_vm3, %v6474_v11, %v14501_v38 }
0x116e   :  { %v6537_v61 = vmul.f32 %v6530_v63, %v16858_v55  ;;  %v6538_v14 = vmul.f32 %v6528_v5, %v16752_v6  ;;  %v6489_v5 = vsel %vm177_vm3, %v14493_v4, %v6474_v11  ;;  %v14667_v55 = vld [vmem:[#allocation3 + $0x68] sm:$0xff] }
0x1170   :  { %6719 = vmatpush.msrb.mxu3 %v6537_v61  ;;  %6765 = vmatpush.msrb.mxu2 %v6538_v14  ;;  %v6493_v14 = vmul.f32 %v6489_v5, %v16826_v8  ;;  %v16859_v5 = vld [vmem:[#allocation30_spill] sm:$0xff] }
0x1171   :  { %v14589_v39 = vpop.permute.xlu2 %6353 }
0x1172   :  { %v6384_v34 = vpop.permute.xlu0 %6383  ;;  %6720 = vmatpush.msrb.mxu3 %v6533_v13  ;;  %6766 = vmatpush.msrb.mxu2 %v6534_v19  ;;  %v6494_v13 = vmul.f32 %v6487_v15, %v16753_v30 }
0x1174   :  { %v6476_v26 = vpop.permute.xlu1 %6475 }
0x1175   :  { %v6488_v25 = vsel %vm177_vm3, %v6476_v26, %v14551_v23  ;;  %v6490_v32 = vsel %vm177_vm3, %v14553_v36, %v6476_v26 }
0x1176   :  { %v6497_v63 = vmul.f32 %v6490_v32, %v16826_v8  ;;  %v6498_v61 = vmul.f32 %v6488_v25, %v16753_v30  ;;  %v6441_v25 = vsel %vm148_vm4, %v14503_v18, %v14517_v52 }
0x1178   :  { %6721 = vmatpush.msrb.mxu3 %v6497_v63  ;;  %6767 = vmatpush.msrb.mxu2 %v6498_v61 }
0x1179   :  { %v14607_v19 = vpop.permute.xlu2 %6481 }
0x117a   :  { %v14609_v11 = vpop.permute.xlu0 %6305  ;;  %6722 = vmatpush.msrb.mxu3 %v6493_v14  ;;  %6768 = vmatpush.msrb.mxu2 %v6494_v13  ;;  %v6401_v14 = vsel %vm123_vm5, %v14473_v47, %v14459_v10 }
0x117b   :  { %v6406_v13 = vmul.f32 %v6401_v14, %v16829_v58 }
0x117c   :  { %6723 = vmatpush.msrb.mxu3 %v14377_v24  ;;  %6769 = vmatpush.msrb.mxu2 %v14407_v0  ;;  %v14613_v26 = vpop.permute.xlu1 %6427  ;;  %v6446_v24 = vmul.f32 %v6441_v25, %v16859_v5 }
0x117d   :  { %v6442_v15 = vsel %vm148_vm4, %v6424_v50, %v14613_v26 }
0x117e   :  { %6724 = vmatpush.msrb.mxu3 %v14350_v22  ;;  %6770 = vmatpush.msrb.mxu2 %v14363_v12  ;;  %v6450_v32 = vmul.f32 %v6442_v15, %v16859_v5  ;;  %v6443_v15 = vsel %vm148_vm4, %v14571_v29, %v14503_v18  ;;  %v16860_v5 = vld [vmem:[#allocation29_spill] sm:$0xff] }
0x117f   :  { %v6445_v18 = vmul.f32 %v6443_v15, %v16860_v5 }
0x1180   :  { %6771 = vmatpush.msrb.mxu2 %v6450_v32 }
0x1181   :  { %v14626_v0 = vpop.permute.xlu2 %6431 }
0x1182   :  { %v14628_v63 = vpop.permute.xlu0 %6591  ;;  %6772 = vmatpush.msrb.mxu2 %v6446_v24 }
0x1184   :  { %v14630_v61 = vpop.permute.xlu1 %6387 }
0x1185   :  { %v6402_v22 = vsel %vm123_vm5, %v6384_v34, %v14630_v61 }
0x1186   :  { %v6410_v12 = vmul.f32 %v6402_v22, %v16829_v58 }
0x1188   :  { %6773 = vmatpush.msrb.mxu2 %v6410_v12  ;;  %v16861_v12 = vld [vmem:[#allocation14_spill] sm:$0xff] }
0x1189   :  { %v14641_v25 = vpop.permute.xlu2 %6435 }
0x118a   :  { %v6444_v32 = vsel %vm148_vm4, %v14641_v25, %v6424_v50  ;;  %v6594_v24 = vpop.permute.xlu0 %6593  ;;  %6774 = vmatpush.msrb.mxu2 %v6406_v13 }
0x118b   :  { %v6449_v30 = vmul.f32 %v6444_v32, %v16860_v5  ;;  %v6609_v14 = vsel %vm252_vm0, %v14450_v21, %v6594_v24 }
0x118c   :  { %v6596_v6 = vpop.permute.xlu1 %6595  ;;  %v6613_v50 = vmul.f32 %v6609_v14, %v16861_v12 }
0x118d   :  { %v6610_v22 = vsel %vm252_vm0, %v14628_v63, %v6596_v6  ;;  %6725 = vmatpush.msrb.mxu3 %v6449_v30  ;;  %v16863_v30 = vld [vmem:[#allocation32_spill] sm:$0xff] }
0x118e   :  { %v6617_v58 = vmul.f32 %v6610_v22, %v16861_v12  ;;  %v14674_v22 = vld [vmem:[#allocation3 + $0x78] sm:$0xff]  ;;  %v6321_v12 = vsel %vm73_vm7, %v14442_v33, %v14609_v11 }
0x118f   :  { %6726 = vmatpush.msrb.mxu3 %v6445_v18 }
0x1190   :  { %6754 = vmatpush.msrb.mxu1 %v6617_v58 }
0x1191   :  { %v14660_v13 = vpop.permute.xlu2 %6395 }
0x1192   :  { %16862 = vst [vmem:[#allocation15_spill] sm:$0xff] %v14660_v13  ;;  %v6404_v32 = vsel %vm123_vm5, %v14660_v13, %v6384_v34  ;;  %v14665_v8 = vpop.permute.xlu0 %6597  ;;  %6755 = vmatpush.msrb.mxu1 %v6613_v50  ;;  %v6361_v34 = vsel %vm98_vm6, %v14513_v54, %v14529_v51  ;;  %v14704_v13 = vld [vmem:[#allocation3 + $0x60] sm:$0xff] }
0x1193   :  { %v6409_v21 = vmul.f32 %v6404_v32, %v16863_v30  ;;  %8385 = vmatmul.msk.f32.vlgmr.msrb.gmra.mxu1 %vm846_vm9, %v14667_v55  ;;  %v6322_v32 = vsel %vm73_vm7, %v14541_v35, %v14511_v42  ;;  %v6366_v5 = vmul.f32 %v6361_v34, %v16831_v59 }
0x1194   :  { %v6562_v15 = vpop.permute.xlu1 %6561  ;;  %v6330_v51 = vmul.f32 %v6322_v32, %v16832_v49  ;;  %v6607_v32 = vsel %vm252_vm0, %v6594_v24, %v14665_v8  ;;  %v14725_v24 = vld [vmem:[#allocation3 + $0x70] sm:$0xff] }
0x1195   :  { %6727 = vmatpush.msrb.mxu3 %v6409_v21 }
0x1199   :  { %v6524_v58 = vpop.permute.xlu2 %6523 }
0x119a   :  { %v14672_v14 = vpop.permute.xlu0 %6347 }
0x119b   :  { %16864 = vst [vmem:[#allocation46_spill] sm:$0xff] %v14672_v14  ;;  %v6362_v18 = vsel %vm98_vm6, %v14467_v57, %v14672_v14  ;;  %8386 = vmatmul.msk.f32.gmra.mxu1 %vm846_vm9, %v14674_v22 }
0x119c   :  { %v14686_v50 = vpop.permute.xlu1 %6313  ;;  %v6370_v21 = vmul.f32 %v6362_v18, %v16831_v59  ;;  %v6326_v18 = vmul.f32 %v6321_v12, %v16832_v49 }
0x119e   :  { %6775 = vmatpush.msrb.mxu2 %v6370_v21 }
0x11a0   :  { %6776 = vmatpush.msrb.mxu2 %v6366_v5 }
0x11a1   :  { %v14699_v14 = vpop.permute.xlu2 %6391 }
0x11a2   :  { %v14701_v10 = vpop.permute.xlu0 %6393  ;;  %6777 = vmatpush.msrb.mxu2 %v6330_v51 }
0x11a3   :  { %v6403_v34 = vsel %vm123_vm5, %v14701_v10, %v14473_v47  ;;  %v6614_v47 = vmul.f32 %v6607_v32, %v16833_v2 }
0x11a4   :  { %6778 = vmatpush.msrb.mxu2 %v6326_v18  ;;  %v14710_v21 = vpop.permute.xlu1 %6599  ;;  %v6405_v5 = vmul.f32 %v6403_v34, %v16863_v30 }
0x11a5   :  { %v6608_v51 = vsel %vm252_vm0, %v6596_v6, %v14710_v21  ;;  %6779 = vmatmul.f32.vlgmr.msrb.gmra.mxu2 %v14704_v13 }
0x11a6   :  { %v6618_v12 = vmul.f32 %v6608_v51, %v16833_v2  ;;  %6728 = vmatpush.msrb.mxu3 %v6405_v5  ;;  %v6363_v5 = vsel %vm98_vm6, %v14589_v39, %v14513_v54  ;;  %v6571_v54 = vsel %vm227_vm1, %v6562_v15, %v14469_v16  ;;  %v6526_v16 = vsel %vm202_vm2, %v14535_v40, %v6524_v58 }
0x11a7   :  { %v6365_v51 = vmul.f32 %v6363_v5, %v16797_v56  ;;  %v6539_v40 = vmul.f32 %v6526_v16, %v16830_v41 }
0x11a8   :  { %6800 = vmatpush.msrb.mxu0 %v6618_v12 }
0x11a9   :  { %v6604_v18 = vpop.permute.xlu2 %6603 }
0x11aa   :  { %v6612_v34 = vsel %vm252_vm0, %v6604_v18, %v14628_v63  ;;  %v6522_v49 = vpop.permute.xlu0 %6521  ;;  %6801 = vmatpush.msrb.mxu0 %v6614_v47  ;;  %v6565_v47 = vsel %vm227_vm1, %v14481_v45, %v6562_v15  ;;  %v6576_v15 = vmul.f32 %v6571_v54, %v16839_v60  ;;  %v6491_v54 = vsel %vm177_vm3, %v14607_v19, %v14493_v4 }
0x11ab   :  { %v6620_v59 = vmul.f32 %v6612_v34, %v16767_v27  ;;  %8387 = vmatmul.msk.f32.vlgmr.msrb.gmra.mxu0 %vm846_vm9, %v14667_v55  ;;  %v16865_v34 = vld [vmem:[#allocation9_spill] sm:$0xff]  ;;  %v6496_v4 = vmul.f32 %v6491_v54, %v16846_v44  ;;  %v16873_v54 = vld [vmem:[#allocation43_spill] sm:$0xff] }
0x11ac   :  { %v14730_v6 = vpop.permute.xlu1 %6355 }
0x11ad   :  { %v6364_v63 = vsel %vm98_vm6, %v14730_v6, %v14467_v57  ;;  %6782 = vmatmul.f32.gmra.mxu2 %v14725_v24 }
0x11ae   :  { %6892 = vmatpush.msra.mxu2 %v6620_v59  ;;  %v6369_v32 = vmul.f32 %v6364_v63, %v16797_v56 }
0x11b0   :  { %6729 = vmatpush.msrb.mxu3 %v6369_v32  ;;  %v6525_v32 = vsel %vm202_vm2, %v14491_v53, %v6522_v49  ;;  %v6485_v53 = vsel %vm177_vm3, %v14501_v38, %v14607_v19 }
0x11b2   :  { %v6564_v12 = vpop.permute.xlu0 %6563  ;;  %6730 = vmatpush.msrb.mxu3 %v6365_v51  ;;  %v6531_v51 = vsel %vm202_vm2, %v6522_v49, %v14483_v17  ;;  %v6535_v49 = vmul.f32 %v6525_v32, %v16830_v41  ;;  %v16869_v32 = vld [vmem:[#allocation6_spill] sm:$0xff] }
0x11b3   :  { %v6566_v57 = vsel %vm227_vm1, %v14523_v46, %v6564_v12  ;;  %v6572_v59 = vsel %vm227_vm1, %v6564_v12, %v14527_v9  ;;  %8388 = vmatmul.msk.f32.gmra.mxu0 %vm846_vm9, %v14674_v22  ;;  %v6532_v46 = vsel %vm202_vm2, %v6524_v58, %v14539_v20  ;;  %v6575_v9 = vmul.f32 %v6565_v47, %v16865_v34 }
0x11b4   :  { %v6579_v5 = vmul.f32 %v6566_v57, %v16865_v34  ;;  %v6580_v63 = vmul.f32 %v6572_v59, %v16839_v60  ;;  %v6484_v45 = vpop.permute.xlu1 %6483  ;;  %v6540_v12 = vmul.f32 %v6532_v46, %v16843_v62  ;;  %v6536_v17 = vmul.f32 %v6531_v51, %v16843_v62 }
0x11b5   :  { %v6486_v20 = vsel %vm177_vm3, %v14551_v23, %v6484_v45  ;;  %v6492_v58 = vsel %vm177_vm3, %v6484_v45, %v14553_v36  ;;  %v6323_v23 = vsel %vm73_vm7, %v14686_v50, %v14442_v33  ;;  %v6606_v33 = vsel %vm252_vm0, %v14710_v21, %v6604_v18 }
0x11b6   :  { %6809 = vmatpush.msra.mxu1 %v6579_v5  ;;  %6855 = vmatpush.msra.mxu0 %v6580_v63  ;;  %v6499_v57 = vmul.f32 %v6486_v20, %v8672_v37  ;;  %v6500_v5 = vmul.f32 %v6492_v58, %v16846_v44  ;;  %v6495_v63 = vmul.f32 %v6485_v53, %v8672_v37  ;;  %v16871_v20 = vld [vmem:[#allocation22_spill] sm:$0xff] }
0x11b7   :  { %v6619_v19 = vmul.f32 %v6606_v33, %v16624_v43  ;;  %v6440_v21 = vsel %vm148_vm4, %v14613_v26, %v14626_v0  ;;  %v6438_v18 = vsel %vm148_vm4, %v14626_v0, %v14641_v25  ;;  %v16866_v0 = vld [vmem:[#allocation40_spill] sm:$0xff]  ;;  %v16867_v25 = vld [vmem:[#allocation21_spill] sm:$0xff] }
0x11b8   :  { %6810 = vmatpush.msra.mxu1 %v6575_v9  ;;  %6856 = vmatpush.msra.mxu0 %v6576_v15  ;;  %v6451_v9 = vmul.f32 %v6440_v21, %v16723_v3  ;;  %v16868_v15 = vld [vmem:[#allocation15_spill] sm:$0xff] }
0x11ba   :  { %v14781_v47 = vpop.permute.xlu0 %6315  ;;  %6811 = vmatpush.msra.mxu1 %v6539_v40  ;;  %6857 = vmatpush.msra.mxu0 %v6540_v12 }
0x11bb   :  { %v6324_v36 = vsel %vm73_vm7, %v14781_v47, %v14541_v35  ;;  %v6325_v35 = vmul.f32 %v6323_v23, %v16552_v1 }
0x11bc   :  { %v6329_v59 = vmul.f32 %v6324_v36, %v16552_v1  ;;  %6812 = vmatpush.msra.mxu1 %v6535_v49  ;;  %6858 = vmatpush.msra.mxu0 %v6536_v17  ;;  %v6430_v38 = vpop.permute.xlu1 %6429  ;;  %v6312_v17 = vpop.permute.xlu2 %6311 }
0x11bd   :  { %v6439_v16 = vsel %vm148_vm4, %v14517_v52, %v6430_v38  ;;  %v6437_v26 = vsel %vm148_vm4, %v6430_v38, %v14571_v29  ;;  %v6452_v52 = vmul.f32 %v6438_v18, %v16867_v25 }
0x11be   :  { %6731 = vmatpush.msrb.mxu3 %v6329_v59  ;;  %6813 = vmatpush.msra.mxu1 %v6499_v57  ;;  %v6447_v29 = vmul.f32 %v6439_v16, %v16723_v3  ;;  %v16874_v59 = vld [vmem:[#allocation24_spill] sm:$0xff] }
0x11bf   :  { %6859 = vmatpush.msra.mxu0 %v6500_v5 }
0x11c0   :  { %6732 = vmatpush.msrb.mxu3 %v6325_v35  ;;  %6814 = vmatpush.msra.mxu1 %v6495_v63  ;;  %v16875_v35 = vld [vmem:[#allocation28_spill] sm:$0xff] }
0x11c1   :  { %6860 = vmatpush.msra.mxu0 %v6496_v4  ;;  %6733 = vmatmul.f32.vlgmr.msrb.gmra.mxu3 %v14704_v13 }
0x11c2   :  { %6846 = vmatpush.msra.mxu3 %v6619_v19  ;;  %v6390_v45 = vpop.permute.xlu0 %6389  ;;  %6815 = vmatpush.msra.mxu1 %v14415_v31  ;;  %v6400_v31 = vsel %vm123_vm5, %v14630_v61, %v14699_v14  ;;  %v16870_v61 = vld [vmem:[#allocation23_spill] sm:$0xff] }
0x11c3   :  { %6861 = vmatpush.msra.mxu0 %v14475_v28  ;;  %v6398_v28 = vsel %vm123_vm5, %v14699_v14, %v16868_v15  ;;  %v6399_v51 = vsel %vm123_vm5, %v16869_v32, %v6390_v45  ;;  %v6411_v40 = vmul.f32 %v6400_v31, %v16870_v61  ;;  %v6397_v12 = vsel %vm123_vm5, %v6390_v45, %v14701_v10  ;;  %v16872_v14 = vld [vmem:[#allocation46_spill] sm:$0xff]  ;;  %v16876_v19 = vld [vmem:[#allocation47_spill] sm:$0xff] }
0x11c4   :  { %6816 = vmatpush.msra.mxu1 %v14385_v48  ;;  %v6352_v46 = vpop.permute.xlu1 %6351  ;;  %v6448_v48 = vmul.f32 %v6437_v26, %v16867_v25  ;;  %v6412_v58 = vmul.f32 %v6398_v28, %v16871_v20  ;;  %v6407_v53 = vmul.f32 %v6399_v51, %v16870_v61  ;;  %v6408_v10 = vmul.f32 %v6397_v12, %v16871_v20  ;;  %v16877_v26 = vld [vmem:[#allocation27_spill] sm:$0xff] }
0x11c5   :  { %6862 = vmatpush.msra.mxu0 %v16866_v0  ;;  %v6360_v49 = vsel %vm98_vm6, %v16872_v14, %v6352_v46  ;;  %v6358_v23 = vsel %vm98_vm6, %v6352_v46, %v14730_v6  ;;  %v6320_v6 = vsel %vm73_vm7, %v14511_v42, %v6312_v17  ;;  %v16878_v46 = vld [vmem:[#allocation31_spill] sm:$0xff] }
0x11c6   :  { %6817 = vmatpush.msra.mxu1 %v6451_v9  ;;  %v6371_v38 = vmul.f32 %v6360_v49, %v16874_v59  ;;  %v6372_v63 = vmul.f32 %v6358_v23, %v16875_v35 }
0x11c7   :  { %6863 = vmatpush.msra.mxu0 %v6452_v52 }
0x11c8   :  { %6818 = vmatpush.msra.mxu1 %v6447_v29 }
0x11c9   :  { %6864 = vmatpush.msra.mxu0 %v6448_v48  ;;  %6736 = vmatmul.f32.gmra.mxu3 %v14725_v24 }
0x11ca   :  { %v6350_v36 = vpop.permute.xlu0 %6349  ;;  %6819 = vmatpush.msra.mxu1 %v6411_v40 }
0x11cb   :  { %v6359_v57 = vsel %vm98_vm6, %v16873_v54, %v6350_v36  ;;  %6865 = vmatpush.msra.mxu0 %v6412_v58  ;;  %v6357_v33 = vsel %vm98_vm6, %v6350_v36, %v14589_v39  ;;  %v6318_v39 = vsel %vm73_vm7, %v6312_v17, %v14781_v47 }
0x11cc   :  { %6820 = vmatpush.msra.mxu1 %v6407_v53  ;;  %v6602_v5 = vpop.permute.xlu1 %6601  ;;  %v6367_v18 = vmul.f32 %v6359_v57, %v16874_v59  ;;  %v6368_v16 = vmul.f32 %v6357_v33, %v16875_v35  ;;  %v6332_v9 = vmul.f32 %v6318_v39, %v16878_v46 }
0x11cd   :  { %6866 = vmatpush.msra.mxu0 %v6408_v10  ;;  %v6605_v4 = vsel %vm252_vm0, %v14665_v8, %v6602_v5  ;;  %v6611_v21 = vsel %vm252_vm0, %v6602_v5, %v16876_v19  ;;  %v6331_v8 = vmul.f32 %v6320_v6, %v16877_v26 }
0x11ce   :  { %v6615_v45 = vmul.f32 %v6605_v4, %v16624_v43  ;;  %v6616_v42 = vmul.f32 %v6611_v21, %v16767_v27  ;;  %6821 = vmatpush.msra.mxu1 %v6371_v38 }
0x11cf   :  { %6867 = vmatpush.msra.mxu0 %v6372_v63 }
0x11d0   :  { %6822 = vmatpush.msra.mxu1 %v6367_v18  ;;  %6847 = vmatpush.msra.mxu3 %v6615_v45 }
0x11d1   :  { %6868 = vmatpush.msra.mxu0 %v6368_v16  ;;  %6893 = vmatpush.msra.mxu2 %v6616_v42 }
0x11d2   :  { %v6310_v31 = vpop.permute.xlu0 %6309  ;;  %6823 = vmatpush.msra.mxu1 %v6331_v8  ;;  %8389 = vmatmul.msk.f32.vlgmr.msra.gmra.mxu3 %vm846_vm9, %v14667_v55 }
0x11d3   :  { %v6317_v47 = vsel %vm73_vm7, %v6310_v31, %v14686_v50  ;;  %v6319_v0 = vsel %vm73_vm7, %v14609_v11, %v6310_v31  ;;  %6869 = vmatpush.msra.mxu0 %v6332_v9  ;;  %8391 = vmatmul.msk.f32.vlgmr.msra.gmra.mxu2 %vm846_vm9, %v14667_v55  ;;  %v14905_v55 = vpop.permute.xlu2 %6703 }
0x11d4   :  { %v6327_v52 = vmul.f32 %v6319_v0, %v16877_v26  ;;  %v6328_v15 = vmul.f32 %v6317_v47, %v16878_v46  ;;  %v14929_v14 = vpop.permute.xlu1 %6708  ;;  %v16890_v26 = vld [vmem:[#allocation18_spill] sm:$0xff] }
0x11d6   :  { %6824 = vmatpush.msra.mxu1 %v6327_v52  ;;  %6870 = vmatpush.msra.mxu0 %v6328_v15 }
0x11d7   :  { %6825 = vmatmul.f32.vlgmr.msra.gmra.mxu1 %v14704_v13  ;;  %6871 = vmatmul.f32.vlgmr.msra.gmra.mxu0 %v14704_v13 }
0x11da   :  { %8390 = vmatmul.msk.f32.gmra.mxu3 %vm846_vm9, %v14674_v22 }
0x11db   :  { %8392 = vmatmul.msk.f32.gmra.mxu2 %vm846_vm9, %v14674_v22 }
0x11df   :  { %6828 = vmatmul.f32.gmra.mxu1 %v14725_v24  ;;  %6874 = vmatmul.f32.gmra.mxu0 %v14725_v24 }
0x1210   :  { %v6757_v28 = vpop.f32.mrf.mxu1 }
0x1218   :  { %v6760_v17 = vpop.f32.mrf.mxu1 }
0x1228   :  { %v6780_v13 = vpop.f32.mrf.mxu2  ;;  %v6803_v24 = vpop.f32.mrf.mxu0 }
0x1229   :  { %v6781_v22 = vadd.f32 %v6780_v13, %v14905_v55 }
0x122b   :  { %v6804_v51 = vadd.f32 %v6803_v24, %v6781_v22 }
0x122d   :  { %v6902_v40 = vmul.f32 0.2, %v6804_v51 }
0x122f   :  { %v14923_v12 = vmax.f32 %v6804_v51, %v6902_v40 }
0x1230   :  { %v6783_v10 = vpop.f32.mrf.mxu2  ;;  %v6806_v57 = vpop.f32.mrf.mxu0 }
0x1231   :  { %v6784_v54 = vadd.f32 %v6783_v10, %v14929_v14 }
0x1233   :  { %v6807_v38 = vadd.f32 %v6806_v57, %v6784_v54 }
0x1235   :  { %v6906_v5 = vmul.f32 0.2, %v6807_v38 }
0x1237   :  { %v14956_v4 = vmax.f32 %v6807_v38, %v6906_v5 }
0x1244   :  { %v6734_v11 = vpop.f32.mrf.mxu3 }
0x1245   :  { %v6735_v50 = vadd.f32 %v6734_v11, %v14905_v55 }
0x1247   :  { %v6758_v29 = vadd.f32 %v6757_v28, %v6735_v50 }
0x1249   :  { %v6901_v48 = vmul.f32 0.2, %v6758_v29 }
0x124b   :  { %v14908_v32 = vmax.f32 %v6758_v29, %v6901_v48 }
0x124c   :  { %v6737_v58 = vpop.f32.mrf.mxu3 }
0x124d   :  { %7091 = vrot.lane.b32.xlu1 %v14908_v32, %s8467_s28  ;;  %7131 = vrot.lane.b32.xlu0 %v14908_v32, %s8466_s27  ;;  %v6738_v49 = vadd.f32 %v6737_v58, %v14929_v14 }
0x124e   :  { %7171 = vrot.lane.b32.xlu2 %v14908_v32, %s8465_s26 }
0x124f   :  { %v6761_v53 = vadd.f32 %v6760_v17, %v6738_v49 }
0x1251   :  { %v6905_v23 = vmul.f32 0.2, %v6761_v53 }
0x1253   :  { %v14940_v36 = vmax.f32 %v6761_v53, %v6905_v23 }
0x1254   :  { %v6826_v33 = vpop.f32.mrf.mxu1  ;;  %v6872_v18 = vpop.f32.mrf.mxu0 }
0x1255   :  { %7043 = vrot.lane.b32.xlu1 %v14908_v32, %s8468_s11  ;;  %7211 = vrot.lane.b32.xlu0 %v14908_v32, %s8464_s25  ;;  %v6827_v6 = vadd.f32 %v6826_v33, %v14905_v55  ;;  %v6849_v63 = vpop.f32.mrf.mxu3  ;;  %v6873_v45 = vadd.f32 %v6872_v18, %v14905_v55 }
0x1256   :  { %7003 = vrot.lane.b32.xlu2 %v14908_v32, %s8469_s12  ;;  %v6895_v42 = vpop.f32.mrf.mxu2 }
0x1257   :  { %v6850_v19 = vadd.f32 %v6849_v63, %v6827_v6  ;;  %v6896_v16 = vadd.f32 %v6895_v42, %v6873_v45 }
0x1259   :  { %v6903_v21 = vmul.f32 0.2, %v6850_v19  ;;  %v6904_v8 = vmul.f32 0.2, %v6896_v16 }
0x125b   :  { %v14964_v39 = vmax.f32 %v6850_v19, %v6903_v21  ;;  %v14991_v9 = vmax.f32 %v6896_v16, %v6904_v8 }
0x125c   :  { %v6829_v47 = vpop.f32.mrf.mxu1  ;;  %v6875_v11 = vpop.f32.mrf.mxu0 }
0x125d   :  { %6963 = vrot.lane.b32.xlu1 %v14908_v32, %s8463_s19  ;;  %7175 = vrot.lane.b32.xlu0 %v14923_v12, %s8465_s26  ;;  %16879 = vst [vmem:[#allocation48_spill] sm:$0xff] %v14991_v9  ;;  %v6830_v0 = vadd.f32 %v6829_v47, %v14929_v14  ;;  %v6852_v52 = vpop.f32.mrf.mxu3  ;;  %v6876_v28 = vadd.f32 %v6875_v11, %v14929_v14 }
0x125e   :  { %7095 = vrot.lane.b32.xlu2 %v14923_v12, %s8467_s28  ;;  %v6898_v48 = vpop.f32.mrf.mxu2 }
0x125f   :  { %v6853_v55 = vadd.f32 %v6852_v52, %v6830_v0  ;;  %v6899_v22 = vadd.f32 %v6898_v48, %v6876_v28  ;;  %v8394_v0 = vld [vmem:[%s16147_s5 + $0x48] sm:$0xff]  ;;  %v8393_v52 = vld [vmem:[%s16147_s5 + $0x40] sm:$0xff] }
0x1261   :  { %v6907_v50 = vmul.f32 0.2, %v6853_v55  ;;  %v6908_v40 = vmul.f32 0.2, %v6899_v22 }
0x1263   :  { %v15019_v13 = vmax.f32 %v6853_v55, %v6907_v50  ;;  %v15031_v14 = vmax.f32 %v6899_v22, %v6908_v40 }
0x1265   :  { %6923 = vrot.lane.b32.xlu1 %v14908_v32, %s8470_s13  ;;  %6967 = vrot.lane.b32.xlu0 %v14923_v12, %s8463_s19  ;;  %16883 = vst [vmem:[#allocation49_spill] sm:$0xff] %v15031_v14 }
0x1266   :  { %7047 = vrot.lane.b32.xlu2 %v14923_v12, %s8468_s11 }
0x126d   :  { %7135 = vrot.lane.b32.xlu1 %v14923_v12, %s8466_s27  ;;  %7173 = vrot.lane.b32.xlu0 %v14940_v36, %s8465_s26 }
0x126e   :  { %7007 = vrot.lane.b32.xlu2 %v14923_v12, %s8469_s12 }
0x1275   :  { %7215 = vrot.lane.b32.xlu1 %v14923_v12, %s8464_s25  ;;  %6965 = vrot.lane.b32.xlu0 %v14940_v36, %s8463_s19 }
0x1276   :  { %7093 = vrot.lane.b32.xlu2 %v14940_v36, %s8467_s28 }
0x127d   :  { %7133 = vrot.lane.b32.xlu1 %v14940_v36, %s8466_s27  ;;  %7213 = vrot.lane.b32.xlu0 %v14940_v36, %s8464_s25 }
0x127e   :  { %7137 = vrot.lane.b32.xlu2 %v14956_v4, %s8466_s27 }
0x1285   :  { %7045 = vrot.lane.b32.xlu1 %v14940_v36, %s8468_s11  ;;  %7097 = vrot.lane.b32.xlu0 %v14956_v4, %s8467_s28 }
0x1286   :  { %7099 = vrot.lane.b32.xlu2 %v14964_v39, %s8467_s28 }
0x128d   :  { %7005 = vrot.lane.b32.xlu1 %v14940_v36, %s8469_s12  ;;  %7179 = vrot.lane.b32.xlu0 %v14964_v39, %s8465_s26 }
0x128e   :  { %7009 = vrot.lane.b32.xlu2 %v14956_v4, %s8469_s12 }
0x1295   :  { %6925 = vrot.lane.b32.xlu1 %v14940_v36, %s8470_s13  ;;  %7139 = vrot.lane.b32.xlu0 %v14964_v39, %s8466_s27 }
0x1296   :  { %7051 = vrot.lane.b32.xlu2 %v14964_v39, %s8468_s11 }
0x129d   :  { %7177 = vrot.lane.b32.xlu1 %v14956_v4, %s8465_s26  ;;  %7049 = vrot.lane.b32.xlu0 %v14956_v4, %s8468_s11 }
0x129e   :  { %6929 = vrot.lane.b32.xlu2 %v14956_v4, %s8470_s13 }
0x12a5   :  { %7217 = vrot.lane.b32.xlu1 %v14956_v4, %s8464_s25  ;;  %7011 = vrot.lane.b32.xlu0 %v14964_v39, %s8469_s12 }
0x12a6   :  { %7055 = vrot.lane.b32.xlu2 %v14991_v9, %s8468_s11 }
0x12a8   :  { %v14999_v31 = vpop.permute.xlu2 %7171 }
0x12a9   :  { %16880 = vst [vmem:[#allocation38_spill] sm:$0xff] %v14999_v31 }
0x12ad   :  { %6969 = vrot.lane.b32.xlu1 %v14956_v4, %s8463_s19  ;;  %7015 = vrot.lane.b32.xlu0 %v14991_v9, %s8469_s12 }
0x12ae   :  { %7183 = vrot.lane.b32.xlu2 %v14991_v9, %s8465_s26 }
0x12b0   :  { %v15008_v15 = vpop.permute.xlu2 %7003 }
0x12b5   :  { %7103 = vrot.lane.b32.xlu1 %v14991_v9, %s8467_s28  ;;  %7143 = vrot.lane.b32.xlu0 %v14991_v9, %s8466_s27 }
0x12b6   :  { %6975 = vrot.lane.b32.xlu2 %v14991_v9, %s8463_s19 }
0x12b8   :  { %v15017_v29 = vpop.permute.xlu2 %7095 }
0x12bd   :  { %7101 = vrot.lane.b32.xlu1 %v15019_v13, %s8467_s28  ;;  %7181 = vrot.lane.b32.xlu0 %v15019_v13, %s8465_s26 }
0x12be   :  { %6935 = vrot.lane.b32.xlu2 %v14991_v9, %s8470_s13 }
0x12bf   :  { %v15027_v24 = vpop.permute.xlu0 %7131  ;;  %v15029_v51 = vpop.permute.xlu1 %7091 }
0x12c0   :  { %16881 = vst [vmem:[#allocation44_spill] sm:$0xff] %v15027_v24  ;;  %v7048_v58 = vpop.permute.xlu2 %7047 }
0x12c1   :  { %16882 = vst [vmem:[#allocation41_spill] sm:$0xff] %v15029_v51 }
0x12c5   :  { %7013 = vrot.lane.b32.xlu1 %v15019_v13, %s8469_s12  ;;  %7141 = vrot.lane.b32.xlu0 %v15019_v13, %s8466_s27 }
0x12c6   :  { %7057 = vrot.lane.b32.xlu2 %v15031_v14, %s8468_s11 }
0x12c7   :  { %v15039_v49 = vpop.permute.xlu0 %7211  ;;  %v15041_v17 = vpop.permute.xlu1 %7043 }
0x12c8   :  { %16884 = vst [vmem:[#allocation45_spill] sm:$0xff] %v15039_v49  ;;  %v15043_v53 = vpop.permute.xlu2 %7007  ;;  %v15048_v23 = vsel %vm148_vm4, %v15041_v17, %v7048_v58 }
0x12cd   :  { %7185 = vrot.lane.b32.xlu1 %v15031_v14, %s8465_s26  ;;  %7053 = vrot.lane.b32.xlu0 %v15019_v13, %s8468_s11 }
0x12ce   :  { %7017 = vrot.lane.b32.xlu2 %v15031_v14, %s8469_s12 }
0x12cf   :  { %v15056_v10 = vpop.permute.xlu0 %7175  ;;  %v15058_v54 = vpop.permute.xlu1 %6963 }
0x12d0   :  { %v15060_v57 = vpop.permute.xlu2 %7093  ;;  %v7191_v20 = vsel %vm227_vm1, %v14999_v31, %v15056_v10 }
0x12d1   :  { %16885 = vst [vmem:[#allocation50_spill] sm:$0xff] %v15060_v57 }
0x12d5   :  { %6977 = vrot.lane.b32.xlu1 %v15031_v14, %s8463_s19  ;;  %7145 = vrot.lane.b32.xlu0 %v15031_v14, %s8466_s27 }
0x12d6   :  { %6937 = vrot.lane.b32.xlu2 %v15031_v14, %s8470_s13 }
0x12d7   :  { %v15068_v38 = vpop.permute.xlu0 %6967  ;;  %v15070_v33 = vpop.permute.xlu1 %6923 }
0x12d8   :  { %v15072_v5 = vpop.permute.xlu2 %7137 }
0x12dd   :  { %6927 = vrot.lane.b32.xlu1 %v14923_v12, %s8470_s13  ;;  %7105 = vrot.lane.b32.xlu0 %v15031_v14, %s8467_s28 }
0x12de   :  { %6973 = vrot.lane.b32.xlu2 %v15019_v13, %s8463_s19 }
0x12df   :  { %v15080_v6 = vpop.permute.xlu0 %7173  ;;  %v15082_v63 = vpop.permute.xlu1 %7135 }
0x12e0   :  { %v15084_v19 = vpop.permute.xlu2 %7099  ;;  %v7151_v62 = vsel %vm202_vm2, %v15027_v24, %v15082_v63 }
0x12e1   :  { %v7155_v31 = vmul.f32 %v7151_v62, %v16890_v26 }
0x12e5   :  { %7225 = vrot.lane.b32.xlu1 %v15031_v14, %s8464_s25  ;;  %7221 = vrot.lane.b32.xlu0 %v15019_v13, %s8464_s25 }
0x12e6   :  { %6971 = vrot.lane.b32.xlu2 %v14964_v39, %s8463_s19 }
0x12e7   :  { %v15092_v21 = vpop.permute.xlu0 %6965  ;;  %v15094_v18 = vpop.permute.xlu1 %7215 }
0x12e8   :  { %16886 = vst [vmem:[#allocation42_spill] sm:$0xff] %v15094_v18  ;;  %v15096_v45 = vpop.permute.xlu2 %7009 }
0x12ed   :  { %7223 = vrot.lane.b32.xlu1 %v14991_v9, %s8464_s25  ;;  %7219 = vrot.lane.b32.xlu0 %v14964_v39, %s8464_s25 }
0x12ee   :  { %6933 = vrot.lane.b32.xlu2 %v15019_v13, %s8470_s13 }
0x12ef   :  { %v15104_v42 = vpop.permute.xlu0 %7213  ;;  %v15106_v16 = vpop.permute.xlu1 %7133 }
0x12f0   :  { %16887 = vst [vmem:[#allocation39_spill] sm:$0xff] %v15106_v16  ;;  %v7052_v8 = vpop.permute.xlu2 %7051  ;;  %v7152_v14 = vsel %vm202_vm2, %v15106_v16, %v15072_v5 }
0x12f1   :  { %v15110_v47 = vsel %vm148_vm4, %v7048_v58, %v7052_v8  ;;  %v7159_v60 = vmul.f32 %v7152_v14, %v16890_v26 }
0x12f5   :  { %7330 = vperm.xlu1 %8430, %v8394_v0   ;;  %6931 = vrot.lane.b32.xlu0 %v14964_v39, %s8470_s13 }
0x12f6   :  { %7325 = vperm.xlu2 %8428, %v8393_v52  }
0x12f7   :  { %v15120_v55 = vpop.permute.xlu0 %7097  ;;  %v15122_v11 = vpop.permute.xlu1 %7045 }
0x12f8   :  { %v15124_v50 = vpop.permute.xlu2 %6929 }
0x12ff   :  { %v15126_v28 = vpop.permute.xlu0 %7179  ;;  %v15128_v48 = vpop.permute.xlu1 %7005 }
0x1300   :  { %v7056_v22 = vpop.permute.xlu2 %7055 }
0x1301   :  { %v15132_v40 = vsel %vm148_vm4, %v7052_v8, %v7056_v22 }
0x1302   :  { %16888 = vst [vmem:[#allocation40_spill] sm:$0xff] %v15132_v40  ;;  %v16889_v40 = vld [vmem:[#allocation16_spill] sm:$0xff] }
0x1303   :  { %v7195_v44 = vmul.f32 %v7191_v20, %v16889_v40 }
0x1307   :  { %v15134_v58 = vpop.permute.xlu0 %7139  ;;  %v15136_v0 = vpop.permute.xlu1 %6925 }
0x1308   :  { %v15138_v52 = vpop.permute.xlu2 %7183 }
0x130f   :  { %v15140_v46 = vpop.permute.xlu0 %7049  ;;  %v7178_v35 = vpop.permute.xlu1 %7177 }
0x1310   :  { %v15146_v9 = vpop.permute.xlu2 %6975  ;;  %v7192_v8 = vsel %vm227_vm1, %v15080_v6, %v7178_v35 }
0x1311   :  { %v7199_v25 = vmul.f32 %v7192_v8, %v16889_v40  ;;  %v7112_v8 = vsel %vm177_vm3, %v15060_v57, %v15120_v55  ;;  %v16892_v40 = vld [vmem:[#allocation14_spill] sm:$0xff] }
0x1313   :  { %7339 = vmatpush.msrb.mxu3 %v7199_v25  ;;  %v7111_v25 = vsel %vm177_vm3, %v15029_v51, %v15017_v29 }
0x1315   :  { %7340 = vmatpush.msrb.mxu3 %v7195_v44  ;;  %v7231_v44 = vsel %vm252_vm0, %v15039_v49, %v15094_v18 }
0x1316   :  { %v7235_v51 = vmul.f32 %v7231_v44, %v16892_v40 }
0x1317   :  { %v15167_v59 = vpop.permute.xlu0 %7011  ;;  %7341 = vmatpush.msrb.mxu3 %v7159_v60  ;;  %v15169_v20 = vpop.permute.xlu1 %7217  ;;  %v16891_v60 = vld [vmem:[#allocation25_spill] sm:$0xff] }
0x1318   :  { %v15179_v14 = vpop.permute.xlu2 %6935  ;;  %v7232_v62 = vsel %vm252_vm0, %v15104_v42, %v15169_v20  ;;  %v7119_v26 = vmul.f32 %v7112_v8, %v16891_v60  ;;  %v7115_v24 = vmul.f32 %v7111_v25, %v16891_v60 }
0x1319   :  { %v7239_v57 = vmul.f32 %v7232_v62, %v16892_v40  ;;  %7342 = vmatpush.msrb.mxu3 %v7155_v31  ;;  %v7065_v31 = vsel %vm148_vm4, %v7056_v22, %v15041_v17 }
0x131b   :  { %7343 = vmatpush.msrb.mxu3 %v7119_v26  ;;  %7376 = vmatpush.msrb.mxu1 %v7239_v57 }
0x131d   :  { %7344 = vmatpush.msrb.mxu3 %v7115_v24  ;;  %7377 = vmatpush.msrb.mxu1 %v7235_v51 }
0x131f   :  { %v7016_v16 = vpop.permute.xlu0 %7015  ;;  %7345 = vmatpush.msrb.mxu3 %v14940_v36  ;;  %v15190_v49 = vpop.permute.xlu1 %6969  ;;  %v16893_v36 = vld [vmem:[#allocation29_spill] sm:$0xff] }
0x1320   :  { %v15192_v18 = vpop.permute.xlu2 %7057  ;;  %v15197_v8 = vsel %vm123_vm5, %v15167_v59, %v7016_v16  ;;  %v7067_v51 = vmul.f32 %v7065_v31, %v16893_v36  ;;  %v7025_v17 = vsel %vm123_vm5, %v7016_v16, %v15008_v15 }
0x1321   :  { %v7066_v26 = vsel %vm148_vm4, %v15192_v18, %v15122_v11  ;;  %7346 = vmatpush.msrb.mxu3 %v14908_v32  ;;  %v7027_v62 = vmul.f32 %v7025_v17, %v16863_v30 }
0x1322   :  { %v7071_v24 = vmul.f32 %v7066_v26, %v16893_v36 }
0x1324   :  { %7347 = vmatpush.msrb.mxu3 %v7071_v24  ;;  %v7189_v24 = vsel %vm227_vm1, %v15056_v10, %v15126_v28 }
0x1326   :  { %7348 = vmatpush.msrb.mxu3 %v7067_v51  ;;  %v16894_v51 = vld [vmem:[#allocation17_spill] sm:$0xff] }
0x1327   :  { %v15209_v57 = vpop.permute.xlu0 %7143  ;;  %v15211_v25 = vpop.permute.xlu1 %7103  ;;  %v7196_v40 = vmul.f32 %v7189_v24, %v16894_v51 }
0x1328   :  { %v15213_v44 = vpop.permute.xlu2 %7017 }
0x1329   :  { %v7026_v32 = vsel %vm123_vm5, %v15213_v44, %v15128_v48 }
0x132a   :  { %v7031_v22 = vmul.f32 %v7026_v32, %v16863_v30 }
0x132c   :  { %7349 = vmatpush.msrb.mxu3 %v7031_v22  ;;  %v7149_v22 = vsel %vm202_vm2, %v15082_v63, %v15134_v58  ;;  %v16896_v63 = vld [vmem:[#allocation26_spill] sm:$0xff] }
0x132e   :  { %7350 = vmatpush.msrb.mxu3 %v7027_v62  ;;  %v16895_v62 = vld [vmem:[#allocation19_spill] sm:$0xff] }
0x132f   :  { %v7182_v31 = vpop.permute.xlu0 %7181  ;;  %v15224_v26 = vpop.permute.xlu1 %7101  ;;  %v7156_v24 = vmul.f32 %v7149_v22, %v16895_v62 }
0x1330   :  { %v7190_v16 = vsel %vm227_vm1, %v7178_v35, %v7182_v31 }
0x1331   :  { %v7200_v36 = vmul.f32 %v7190_v16, %v16894_v51 }
0x1333   :  { %7385 = vmatpush.msrb.mxu2 %v7200_v36  ;;  %v7110_v36 = vsel %vm177_vm3, %v15120_v55, %v15224_v26 }
0x1334   :  { %v7120_v16 = vmul.f32 %v7110_v36, %v16896_v63  ;;  %v15274_v36 = vpop.permute.xlu2 %6937 }
0x1335   :  { %7386 = vmatpush.msrb.mxu2 %v7196_v40  ;;  %v15248_v40 = vld [vmem:[#allocation3 + $0x88] sm:$0xff] }
0x1336   :  { %8395 = vmatmul.msk.f32.vlgmr.msrb.gmra.mxu1 %vm846_vm9, %v15248_v40 }
0x1337   :  { %v7142_v17 = vpop.permute.xlu0 %7141  ;;  %v15234_v32 = vpop.permute.xlu1 %7013 }
0x1338   :  { %v7150_v10 = vsel %vm202_vm2, %v15072_v5, %v7142_v17  ;;  %v7109_v5 = vsel %vm177_vm3, %v15017_v29, %v15084_v19  ;;  %v7064_v29 = vsel %vm148_vm4, %v15122_v11, %v15140_v46  ;;  %v7024_v11 = vsel %vm123_vm5, %v15128_v48, %v15096_v45 }
0x1339   :  { %v7160_v35 = vmul.f32 %v7150_v10, %v16895_v62  ;;  %v7116_v10 = vmul.f32 %v7109_v5, %v16896_v63  ;;  %v15277_v5 = vld [vmem:[#allocation3 + $0x98] sm:$0xff] }
0x133b   :  { %7387 = vmatpush.msrb.mxu2 %v7160_v35  ;;  %v7187_v35 = vsel %vm227_vm1, %v15126_v28, %v15138_v52  ;;  %v16897_v28 = vld [vmem:[#allocation30_spill] sm:$0xff] }
0x133d   :  { %7388 = vmatpush.msrb.mxu2 %v7156_v24 }
0x133e   :  { %8396 = vmatmul.msk.f32.gmra.mxu1 %vm846_vm9, %v15277_v5 }
0x133f   :  { %v15259_v30 = vpop.permute.xlu0 %7053  ;;  %7389 = vmatpush.msrb.mxu2 %v7120_v16  ;;  %v15261_v55 = vpop.permute.xlu1 %7185  ;;  %v7072_v16 = vmul.f32 %v7064_v29, %v16897_v28  ;;  %v16898_v29 = vld [vmem:[#allocation33_spill] sm:$0xff] }
0x1340   :  { %v7188_v22 = vsel %vm227_vm1, %v7182_v31, %v15261_v55  ;;  %v7197_v31 = vmul.f32 %v7187_v35, %v16865_v34  ;;  %v7023_v35 = vsel %vm123_vm5, %v15008_v15, %v15043_v53  ;;  %v6985_v15 = vsel %vm98_vm6, %v15146_v9, %v15058_v54 }
0x1341   :  { %7390 = vmatpush.msrb.mxu2 %v7116_v10  ;;  %v7201_v24 = vmul.f32 %v7188_v22, %v16865_v34  ;;  %v7068_v10 = vmul.f32 %v15048_v23, %v16897_v28 }
0x1343   :  { %7391 = vmatpush.msrb.mxu2 %v14956_v4  ;;  %7431 = vmatpush.msra.mxu1 %v7201_v24  ;;  %v7032_v24 = vmul.f32 %v7024_v11, %v16898_v29  ;;  %v6946_v11 = vsel %vm73_vm7, %v15274_v36, %v15136_v0 }
0x1345   :  { %7392 = vmatpush.msrb.mxu2 %v14923_v12  ;;  %7432 = vmatpush.msra.mxu1 %v7197_v31  ;;  %v7147_v12 = vsel %vm202_vm2, %v15134_v58, %v15209_v57  ;;  %v6984_v58 = vsel %vm98_vm6, %v15092_v21, %v15190_v49 }
0x1346   :  { %v7157_v34 = vmul.f32 %v7147_v12, %v16830_v41  ;;  %v16899_v12 = vld [vmem:[#allocation35_spill] sm:$0xff] }
0x1347   :  { %v15291_v4 = vpop.permute.xlu0 %7145  ;;  %7393 = vmatpush.msrb.mxu2 %v7072_v16  ;;  %v15293_v22 = vpop.permute.xlu1 %6977  ;;  %v7028_v16 = vmul.f32 %v7023_v35, %v16898_v29  ;;  %v6945_v35 = vsel %vm73_vm7, %v15179_v14, %v15070_v33 }
0x1348   :  { %v7148_v48 = vsel %vm202_vm2, %v7142_v17, %v15291_v4  ;;  %v6986_v23 = vsel %vm98_vm6, %v15293_v22, %v15092_v21  ;;  %v6987_v21 = vmul.f32 %v6985_v15, %v16797_v56 }
0x1349   :  { %v7161_v31 = vmul.f32 %v7148_v48, %v16830_v41  ;;  %7394 = vmatpush.msrb.mxu2 %v7068_v10  ;;  %v6991_v17 = vmul.f32 %v6986_v23, %v16797_v56  ;;  %v6983_v10 = vsel %vm98_vm6, %v15058_v54, %v15068_v38  ;;  %v15332_v48 = vpop.permute.xlu2 %6973  ;;  %v6992_v23 = vmul.f32 %v6984_v58, %v16899_v12  ;;  %v15358_v58 = vld [vmem:[#allocation3 + $0x80] sm:$0xff] }
0x134a   :  { %v6951_v54 = vmul.f32 %v6946_v11, %v16552_v1  ;;  %v6988_v15 = vmul.f32 %v6983_v10, %v16899_v12  ;;  %v6947_v41 = vmul.f32 %v6945_v35, %v16552_v1  ;;  %v7107_v10 = vsel %vm177_vm3, %v15084_v19, %v15211_v25 }
0x134b   :  { %7395 = vmatpush.msrb.mxu2 %v7032_v24  ;;  %7433 = vmatpush.msra.mxu1 %v7161_v31  ;;  %v6944_v24 = vsel %vm73_vm7, %v15136_v0, %v15124_v50  ;;  %v7062_v19 = vsel %vm148_vm4, %v15140_v46, %v15259_v30 }
0x134c   :  { %7351 = vmatpush.msrb.mxu3 %v6991_v17 }
0x134d   :  { %7396 = vmatpush.msrb.mxu2 %v7028_v16  ;;  %7434 = vmatpush.msra.mxu1 %v7157_v34  ;;  %v16900_v16 = vld [vmem:[#allocation37_spill] sm:$0xff] }
0x134e   :  { %7352 = vmatpush.msrb.mxu3 %v6987_v21  ;;  %v6952_v11 = vmul.f32 %v6944_v24, %v16900_v16 }
0x134f   :  { %v15345_v31 = vpop.permute.xlu0 %7105  ;;  %7397 = vmatpush.msrb.mxu2 %v6992_v23  ;;  %v15347_v17 = vpop.permute.xlu1 %6927 }
0x1350   :  { %v7108_v34 = vsel %vm177_vm3, %v15224_v26, %v15345_v31  ;;  %7353 = vmatpush.msrb.mxu3 %v6951_v54  ;;  %v6943_v0 = vsel %vm73_vm7, %v15070_v33, %v15347_v17  ;;  %v7117_v33 = vmul.f32 %v7107_v10, %v8672_v37  ;;  %v7073_v10 = vmul.f32 %v7062_v19, %v16723_v3 }
0x1351   :  { %v7121_v21 = vmul.f32 %v7108_v34, %v8672_v37  ;;  %7398 = vmatpush.msrb.mxu2 %v6988_v15  ;;  %v6948_v26 = vmul.f32 %v6943_v0, %v16900_v16  ;;  %v15369_v35 = vpop.permute.xlu2 %6971  ;;  %v15385_v34 = vld [vmem:[#allocation3 + $0x90] sm:$0xff] }
0x1352   :  { %7354 = vmatpush.msrb.mxu3 %v6947_v41 }
0x1353   :  { %7355 = vmatmul.f32.vlgmr.msrb.gmra.mxu3 %v15358_v58  ;;  %7399 = vmatpush.msrb.mxu2 %v6952_v11 }
0x1354   :  { %7435 = vmatpush.msra.mxu1 %v7121_v21 }
0x1355   :  { %7400 = vmatpush.msrb.mxu2 %v6948_v26 }
0x1356   :  { %7436 = vmatpush.msra.mxu1 %v7117_v33  ;;  %7401 = vmatmul.f32.vlgmr.msrb.gmra.mxu2 %v15358_v58  ;;  %v16901_v33 = vld [vmem:[#allocation42_spill] sm:$0xff] }
0x1357   :  { %v7222_v41 = vpop.permute.xlu0 %7221  ;;  %v7226_v23 = vpop.permute.xlu1 %7225 }
0x1358   :  { %v7230_v24 = vsel %vm252_vm0, %v15169_v20, %v7222_v41  ;;  %7437 = vmatpush.msra.mxu1 %v15019_v13  ;;  %v7228_v54 = vsel %vm252_vm0, %v7222_v41, %v7226_v23  ;;  %v7234_v15 = vsel %vm252_vm0, %v7226_v23, %v15104_v42  ;;  %v7022_v13 = vsel %vm123_vm5, %v15096_v45, %v15234_v32  ;;  %v16902_v23 = vld [vmem:[#allocation45_spill] sm:$0xff] }
0x1359   :  { %v7240_v0 = vmul.f32 %v7230_v24, %v16833_v2  ;;  %v7241_v46 = vmul.f32 %v7228_v54, %v16624_v43  ;;  %v7242_v11 = vmul.f32 %v7234_v15, %v16767_v27  ;;  %v7069_v42 = vmul.f32 %v15110_v47, %v16723_v3  ;;  %v16903_v15 = vld [vmem:[#allocation24_spill] sm:$0xff] }
0x135a   :  { %7438 = vmatpush.msra.mxu1 %v14964_v39  ;;  %v7021_v20 = vsel %vm123_vm5, %v15043_v53, %v15167_v59  ;;  %v7033_v39 = vmul.f32 %v7022_v13, %v16870_v61  ;;  %v6982_v47 = vsel %vm98_vm6, %v15190_v49, %v15332_v48  ;;  %v7194_v59 = vsel %vm227_vm1, %v15261_v55, %v15080_v6  ;;  %v15414_v53 = vpop.permute.xlu2 %6933  ;;  %v16905_v13 = vld [vmem:[#allocation7_spill] sm:$0xff] }
0x135b   :  { %7358 = vmatmul.f32.gmra.mxu3 %v15385_v34  ;;  %7422 = vmatpush.msrb.mxu0 %v7240_v0  ;;  %v7029_v45 = vmul.f32 %v7021_v20, %v16870_v61  ;;  %v6981_v24 = vsel %vm98_vm6, %v15068_v38, %v15369_v35  ;;  %v6993_v0 = vmul.f32 %v6982_v47, %v16903_v15  ;;  %v16906_v20 = vld [vmem:[#allocation39_spill] sm:$0xff]  ;;  %v16908_v47 = vld [vmem:[#allocation44_spill] sm:$0xff] }
0x135c   :  { %7439 = vmatpush.msra.mxu1 %v7073_v10  ;;  %7468 = vmatpush.msra.mxu3 %v7241_v46  ;;  %v16904_v46 = vld [vmem:[#allocation38_spill] sm:$0xff]  ;;  %v6942_v10 = vsel %vm73_vm7, %v15124_v50, %v15414_v53  ;;  %v6989_v38 = vmul.f32 %v6981_v24, %v16903_v15  ;;  %v16912_v24 = vld [vmem:[#allocation13_spill] sm:$0xff]  ;;  %v16926_v15 = vld [vmem:[#allocation16_spill] sm:$0xff] }
0x135d   :  { %7514 = vmatpush.msra.mxu2 %v7242_v11  ;;  %v7193_v11 = vsel %vm227_vm1, %v15138_v52, %v16904_v46  ;;  %v16907_v52 = vld [vmem:[#allocation27_spill] sm:$0xff]  ;;  %v7020_v46 = vsel %vm123_vm5, %v15234_v32, %v15213_v44  ;;  %v6979_v44 = vsel %vm98_vm6, %v15369_v35, %v15146_v9  ;;  %v16918_v32 = vld [vmem:[#allocation28_spill] sm:$0xff] }
0x135e   :  { %7440 = vmatpush.msra.mxu1 %v7069_v42  ;;  %7404 = vmatmul.f32.gmra.mxu2 %v15385_v34  ;;  %v7202_v42 = vmul.f32 %v7194_v59, %v16905_v13  ;;  %v7198_v50 = vmul.f32 %v7193_v11, %v16905_v13 }
0x135f   :  { %v7220_v21 = vpop.permute.xlu0 %7219  ;;  %v7224_v26 = vpop.permute.xlu1 %7223 }
0x1360   :  { %v7229_v19 = vsel %vm252_vm0, %v16901_v33, %v7220_v21  ;;  %7441 = vmatpush.msra.mxu1 %v7033_v39  ;;  %v7227_v41 = vsel %vm252_vm0, %v7220_v21, %v7224_v26  ;;  %v7233_v49 = vsel %vm252_vm0, %v7224_v26, %v16902_v23  ;;  %v7154_v39 = vsel %vm202_vm2, %v15291_v4, %v16906_v20  ;;  %v16909_v4 = vld [vmem:[#allocation11_spill] sm:$0xff] }
0x1361   :  { %v7236_v6 = vmul.f32 %v7229_v19, %v16833_v2  ;;  %v7237_v55 = vmul.f32 %v7227_v41, %v16624_v43  ;;  %v7238_v54 = vmul.f32 %v7233_v49, %v16767_v27  ;;  %v7153_v21 = vsel %vm202_vm2, %v15209_v57, %v16908_v47  ;;  %v16910_v19 = vld [vmem:[#allocation50_spill] sm:$0xff]  ;;  %v16911_v49 = vld [vmem:[#allocation41_spill] sm:$0xff] }
0x1362   :  { %7442 = vmatpush.msra.mxu1 %v7029_v45  ;;  %v6953_v45 = vmul.f32 %v6942_v10, %v16907_v52  ;;  %v7162_v59 = vmul.f32 %v7154_v39, %v16909_v4  ;;  %v7114_v41 = vsel %vm177_vm3, %v15345_v31, %v16910_v19  ;;  %v7158_v57 = vmul.f32 %v7153_v21, %v16909_v4  ;;  %v16917_v10 = vld [vmem:[#allocation22_spill] sm:$0xff]  ;;  %v15519_v35 = vpop.permute.xlu2 %7325 }
0x1363   :  { %7423 = vmatpush.msrb.mxu0 %v7236_v6  ;;  %7469 = vmatpush.msra.mxu3 %v7237_v55  ;;  %v7122_v6 = vmul.f32 %v7114_v41, %v16912_v24  ;;  %v16914_v55 = vld [vmem:[#allocation21_spill] sm:$0xff]  ;;  %v6940_v20 = vsel %vm73_vm7, %v15414_v53, %v15274_v36  ;;  %v6990_v39 = vmul.f32 %v6979_v44, %v16918_v32 }
0x1364   :  { %7443 = vmatpush.msra.mxu1 %v6993_v0  ;;  %7515 = vmatpush.msra.mxu2 %v7238_v54  ;;  %v16915_v0 = vld [vmem:[#allocation48_spill] sm:$0xff] }
0x1365   :  { %8397 = vmatmul.msk.f32.vlgmr.msrb.gmra.mxu0 %vm846_vm9, %v15248_v40  ;;  %8399 = vmatmul.msk.f32.vlgmr.msra.gmra.mxu3 %vm846_vm9, %v15248_v40 }
0x1366   :  { %7477 = vmatpush.msra.mxu0 %v7202_v42  ;;  %7444 = vmatpush.msra.mxu1 %v6989_v38  ;;  %v7034_v38 = vmul.f32 %v7020_v46, %v16917_v10 }
0x1367   :  { %v6932_v26 = vpop.permute.xlu0 %6931  ;;  %8401 = vmatmul.msk.f32.vlgmr.msra.gmra.mxu2 %vm846_vm9, %v15248_v40  ;;  %v7113_v40 = vsel %vm177_vm3, %v15211_v25, %v16911_v49  ;;  %v7060_v25 = vsel %vm148_vm4, %v15259_v30, %v15192_v18  ;;  %v6980_v30 = vsel %vm98_vm6, %v15332_v48, %v15293_v22  ;;  %v7030_v18 = vmul.f32 %v15197_v8, %v16917_v10  ;;  %v16919_v22 = vld [vmem:[#allocation31_spill] sm:$0xff] }
0x1368   :  { %7478 = vmatpush.msra.mxu0 %v7198_v50  ;;  %v6941_v33 = vsel %vm73_vm7, %v15347_v17, %v6932_v26  ;;  %7445 = vmatpush.msra.mxu1 %v6953_v45  ;;  %v7118_v31 = vmul.f32 %v7113_v40, %v16912_v24  ;;  %v16913_v17 = vld [vmem:[#allocation49_spill] sm:$0xff]  ;;  %v7074_v54 = vmul.f32 %v7060_v25, %v16914_v55 }
0x1369   :  { %v6949_v23 = vmul.f32 %v6941_v33, %v16907_v52  ;;  %v6994_v42 = vmul.f32 %v6980_v30, %v16918_v32  ;;  %v6939_v8 = vsel %vm73_vm7, %v6932_v26, %v15179_v14  ;;  %v6954_v48 = vmul.f32 %v6940_v20, %v16919_v22 }
0x136a   :  { %7479 = vmatpush.msra.mxu0 %v7162_v59  ;;  %v6950_v9 = vmul.f32 %v6939_v8, %v16919_v22 }
0x136b   :  { %7446 = vmatpush.msra.mxu1 %v6949_v23 }
0x136c   :  { %7480 = vmatpush.msra.mxu0 %v7158_v57  ;;  %7447 = vmatmul.f32.vlgmr.msra.gmra.mxu1 %v15358_v58 }
0x136d   :  { %8398 = vmatmul.msk.f32.gmra.mxu0 %vm846_vm9, %v15277_v5  ;;  %8400 = vmatmul.msk.f32.gmra.mxu3 %vm846_vm9, %v15277_v5 }
0x136e   :  { %7481 = vmatpush.msra.mxu0 %v7122_v6 }
0x136f   :  { %8402 = vmatmul.msk.f32.gmra.mxu2 %vm846_vm9, %v15277_v5  ;;  %v16916_v5 = vld [vmem:[#allocation40_spill] sm:$0xff] }
0x1370   :  { %7482 = vmatpush.msra.mxu0 %v7118_v31  ;;  %v7070_v11 = vmul.f32 %v16916_v5, %v16914_v55 }
0x1372   :  { %7483 = vmatpush.msra.mxu0 %v16913_v17 }
0x1374   :  { %7484 = vmatpush.msra.mxu0 %v16915_v0  ;;  %7450 = vmatmul.f32.gmra.mxu1 %v15385_v34 }
0x1376   :  { %7485 = vmatpush.msra.mxu0 %v7074_v54 }
0x1378   :  { %7486 = vmatpush.msra.mxu0 %v7070_v11 }
0x137a   :  { %7487 = vmatpush.msra.mxu0 %v7034_v38 }
0x137c   :  { %7488 = vmatpush.msra.mxu0 %v7030_v18 }
0x137e   :  { %7489 = vmatpush.msra.mxu0 %v6994_v42 }
0x1380   :  { %7490 = vmatpush.msra.mxu0 %v6990_v39 }
0x1382   :  { %7491 = vmatpush.msra.mxu0 %v6954_v48 }
0x1384   :  { %7492 = vmatpush.msra.mxu0 %v6950_v9 }
0x1385   :  { %7493 = vmatmul.f32.vlgmr.msra.gmra.mxu0 %v15358_v58  ;;  %v15528_v58 = vpop.permute.xlu1 %7330 }
0x138d   :  { %7496 = vmatmul.f32.gmra.mxu0 %v15385_v34 }
0x13b3   :  { %v7379_v53 = vpop.f32.mrf.mxu1 }
0x13bb   :  { %v7382_v59 = vpop.f32.mrf.mxu1 }
0x13d6   :  { %v7356_v36 = vpop.f32.mrf.mxu3 }
0x13d7   :  { %v7357_v50 = vadd.f32 %v7356_v36, %v15519_v35 }
0x13d9   :  { %v7380_v45 = vadd.f32 %v7379_v53, %v7357_v50  ;;  %v7402_v34 = vpop.f32.mrf.mxu2 }
0x13da   :  { %v7403_v19 = vadd.f32 %v7402_v34, %v15519_v35 }
0x13db   :  { %v7523_v47 = vmul.f32 0.2, %v7380_v45 }
0x13dd   :  { %v15522_v14 = vmax.f32 %v7380_v45, %v7523_v47 }
0x13de   :  { %v7359_v21 = vpop.f32.mrf.mxu3 }
0x13df   :  { %7713 = vrot.lane.b32.xlu1 %v15522_v14, %s8467_s28  ;;  %7753 = vrot.lane.b32.xlu0 %v15522_v14, %s8466_s27  ;;  %v7360_v26 = vadd.f32 %v7359_v21, %v15528_v58 }
0x13e0   :  { %7793 = vrot.lane.b32.xlu2 %v15522_v14, %s8465_s26 }
0x13e1   :  { %v7383_v41 = vadd.f32 %v7382_v59, %v7360_v26  ;;  %v7405_v0 = vpop.f32.mrf.mxu2 }
0x13e2   :  { %v7425_v33 = vpop.f32.mrf.mxu0  ;;  %v7406_v11 = vadd.f32 %v7405_v0, %v15528_v58 }
0x13e3   :  { %v7426_v23 = vadd.f32 %v7425_v33, %v7403_v19  ;;  %v7527_v57 = vmul.f32 0.2, %v7383_v41 }
0x13e5   :  { %v7524_v49 = vmul.f32 0.2, %v7426_v23  ;;  %v15540_v40 = vmax.f32 %v7383_v41, %v7527_v57 }
0x13e7   :  { %7625 = vrot.lane.b32.xlu1 %v15522_v14, %s8469_s12  ;;  %7585 = vrot.lane.b32.xlu0 %v15522_v14, %s8463_s19  ;;  %v15542_v6 = vmax.f32 %v7426_v23, %v7524_v49 }
0x13e8   :  { %7665 = vrot.lane.b32.xlu2 %v15522_v14, %s8468_s11  ;;  %v7471_v17 = vpop.f32.mrf.mxu3 }
0x13e9   :  { %v7448_v31 = vpop.f32.mrf.mxu1 }
0x13ea   :  { %v7449_v25 = vadd.f32 %v7448_v31, %v15519_v35  ;;  %v7428_v5 = vpop.f32.mrf.mxu0  ;;  %v7517_v39 = vpop.f32.mrf.mxu2 }
0x13eb   :  { %v7429_v38 = vadd.f32 %v7428_v5, %v7406_v11 }
0x13ec   :  { %v7472_v54 = vadd.f32 %v7471_v17, %v7449_v25 }
0x13ed   :  { %v7528_v18 = vmul.f32 0.2, %v7429_v38 }
0x13ee   :  { %v7525_v46 = vmul.f32 0.2, %v7472_v54 }
0x13ef   :  { %7757 = vrot.lane.b32.xlu0 %v15542_v6, %s8466_s27  ;;  %7715 = vrot.lane.b32.xlu1 %v15540_v40, %s8467_s28  ;;  %v15578_v44 = vmax.f32 %v7429_v38, %v7528_v18 }
0x13f0   :  { %7545 = vrot.lane.b32.xlu2 %v15522_v14, %s8470_s13  ;;  %v15570_v30 = vmax.f32 %v7472_v54, %v7525_v46  ;;  %v7474_v53 = vpop.f32.mrf.mxu3 }
0x13f1   :  { %v7451_v48 = vpop.f32.mrf.mxu1 }
0x13f2   :  { %16920 = vst [vmem:[#allocation15_spill] sm:$0xff] %v15570_v30  ;;  %v7452_v9 = vadd.f32 %v7451_v48, %v15528_v58  ;;  %v7520_v23 = vpop.f32.mrf.mxu2 }
0x13f4   :  { %v7475_v50 = vadd.f32 %v7474_v53, %v7452_v9 }
0x13f7   :  { %7717 = vrot.lane.b32.xlu0 %v15542_v6, %s8467_s28  ;;  %7627 = vrot.lane.b32.xlu1 %v15540_v40, %s8469_s12 }
0x13f8   :  { %7797 = vrot.lane.b32.xlu2 %v15542_v6, %s8465_s26 }
0x13ff   :  { %7669 = vrot.lane.b32.xlu0 %v15542_v6, %s8468_s11  ;;  %7589 = vrot.lane.b32.xlu1 %v15542_v6, %s8463_s19 }
0x1400   :  { %7795 = vrot.lane.b32.xlu2 %v15540_v40, %s8465_s26 }
0x1402   :  { %v7494_v42 = vpop.f32.mrf.mxu0 }
0x1403   :  { %v7495_v20 = vadd.f32 %v7494_v42, %v15519_v35  ;;  %v7529_v35 = vmul.f32 0.2, %v7475_v50 }
0x1405   :  { %v7518_v8 = vadd.f32 %v7517_v39, %v7495_v20  ;;  %v15616_v21 = vmax.f32 %v7475_v50, %v7529_v35  ;;  %v8404_v35 = vld [vmem:[%s16147_s5 + $0x58] sm:$0xff] }
0x1407   :  { %7549 = vrot.lane.b32.xlu0 %v15542_v6, %s8470_s13  ;;  %7547 = vrot.lane.b32.xlu1 %v15540_v40, %s8470_s13  ;;  %v7526_v36 = vmul.f32 0.2, %v7518_v8  ;;  %16922 = vst [vmem:[#allocation46_spill] sm:$0xff] %v15616_v21 }
0x1408   :  { %7755 = vrot.lane.b32.xlu2 %v15540_v40, %s8466_s27 }
0x1409   :  { %v15606_v45 = vmax.f32 %v7518_v8, %v7526_v36 }
0x140a   :  { %v7497_v59 = vpop.f32.mrf.mxu0 }
0x140b   :  { %16921 = vst [vmem:[#allocation6_spill] sm:$0xff] %v15606_v45  ;;  %v7498_v33 = vadd.f32 %v7497_v59, %v15528_v58  ;;  %v8403_v59 = vld [vmem:[%s16147_s5 + $0x50] sm:$0xff] }
0x140d   :  { %v7521_v49 = vadd.f32 %v7520_v23, %v7498_v33 }
0x140f   :  { %7801 = vrot.lane.b32.xlu0 %v15570_v30, %s8465_s26  ;;  %7837 = vrot.lane.b32.xlu1 %v15542_v6, %s8464_s25  ;;  %v7530_v31 = vmul.f32 0.2, %v7521_v49 }
0x1410   :  { %7667 = vrot.lane.b32.xlu2 %v15540_v40, %s8468_s11 }
0x1411   :  { %v15659_v54 = vmax.f32 %v7521_v49, %v7530_v31 }
0x1413   :  { %16923 = vst [vmem:[#allocation43_spill] sm:$0xff] %v15659_v54 }
0x1417   :  { %7799 = vrot.lane.b32.xlu0 %v15578_v44, %s8465_s26  ;;  %7835 = vrot.lane.b32.xlu1 %v15540_v40, %s8464_s25 }
0x1418   :  { %7629 = vrot.lane.b32.xlu2 %v15542_v6, %s8469_s12 }
0x141f   :  { %7719 = vrot.lane.b32.xlu0 %v15578_v44, %s8467_s28  ;;  %7761 = vrot.lane.b32.xlu1 %v15570_v30, %s8466_s27 }
0x1420   :  { %7587 = vrot.lane.b32.xlu2 %v15540_v40, %s8463_s19 }
0x1427   :  { %7671 = vrot.lane.b32.xlu0 %v15578_v44, %s8468_s11  ;;  %7721 = vrot.lane.b32.xlu1 %v15570_v30, %s8467_s28 }
0x1428   :  { %7841 = vrot.lane.b32.xlu2 %v15570_v30, %s8464_s25 }
0x142f   :  { %7591 = vrot.lane.b32.xlu0 %v15578_v44, %s8463_s19  ;;  %7759 = vrot.lane.b32.xlu1 %v15578_v44, %s8466_s27 }
0x1430   :  { %7673 = vrot.lane.b32.xlu2 %v15570_v30, %s8468_s11 }
0x1437   :  { %7765 = vrot.lane.b32.xlu0 %v15606_v45, %s8466_s27  ;;  %7839 = vrot.lane.b32.xlu1 %v15578_v44, %s8464_s25 }
0x1438   :  { %7631 = vrot.lane.b32.xlu2 %v15578_v44, %s8469_s12 }
0x143a   :  { %v15614_v47 = vpop.permute.xlu2 %7793 }
0x143f   :  { %7637 = vrot.lane.b32.xlu0 %v15606_v45, %s8469_s12  ;;  %7803 = vrot.lane.b32.xlu1 %v15616_v21, %s8465_s26 }
0x1440   :  { %7551 = vrot.lane.b32.xlu2 %v15578_v44, %s8470_s13 }
0x1442   :  { %v15624_v34 = vpop.permute.xlu2 %7665 }
0x1447   :  { %7597 = vrot.lane.b32.xlu0 %v15606_v45, %s8463_s19  ;;  %7723 = vrot.lane.b32.xlu1 %v15616_v21, %s8467_s28 }
0x1448   :  { %7763 = vrot.lane.b32.xlu2 %v15616_v21, %s8466_s27 }
0x144a   :  { %v15632_v26 = vpop.permute.xlu2 %7545 }
0x144f   :  { %7557 = vrot.lane.b32.xlu0 %v15606_v45, %s8470_s13  ;;  %7805 = vrot.lane.b32.xlu1 %v15606_v45, %s8465_s26 }
0x1450   :  { %7725 = vrot.lane.b32.xlu2 %v15606_v45, %s8467_s28 }
0x1451   :  { %v15641_v19 = vpop.permute.xlu0 %7753  ;;  %v15643_v41 = vpop.permute.xlu1 %7713 }
0x1452   :  { %v15645_v57 = vpop.permute.xlu2 %7797 }
0x1453   :  { %v7813_v49 = vsel %vm227_vm1, %v15614_v47, %v15645_v57 }
0x1454   :  { %v7817_v22 = vmul.f32 %v7813_v49, %v16926_v15  ;;  %v16928_v49 = vld [vmem:[#allocation18_spill] sm:$0xff] }
0x1457   :  { %7635 = vrot.lane.b32.xlu0 %v15616_v21, %s8469_s12  ;;  %7677 = vrot.lane.b32.xlu1 %v15606_v45, %s8468_s11 }
0x1458   :  { %7843 = vrot.lane.b32.xlu2 %v15616_v21, %s8464_s25 }
0x1459   :  { %v15653_v25 = vpop.permute.xlu0 %7585  ;;  %v15655_v58 = vpop.permute.xlu1 %7625 }
0x145a   :  { %v15657_v17 = vpop.permute.xlu2 %7795 }
0x145f   :  { %7807 = vrot.lane.b32.xlu0 %v15659_v54, %s8465_s26  ;;  %7675 = vrot.lane.b32.xlu1 %v15616_v21, %s8468_s11 }
0x1460   :  { %7767 = vrot.lane.b32.xlu2 %v15659_v54, %s8466_s27 }
0x1461   :  { %v15667_v0 = vpop.permute.xlu0 %7757  ;;  %v15669_v46 = vpop.permute.xlu1 %7715 }
0x1462   :  { %v15671_v5 = vpop.permute.xlu2 %7755 }
0x1467   :  { %7679 = vrot.lane.b32.xlu0 %v15659_v54, %s8468_s11  ;;  %7727 = vrot.lane.b32.xlu1 %v15659_v54, %s8467_s28 }
0x1468   :  { %7639 = vrot.lane.b32.xlu2 %v15659_v54, %s8469_s12 }
0x1469   :  { %v15679_v11 = vpop.permute.xlu0 %7717  ;;  %v15681_v38 = vpop.permute.xlu1 %7627 }
0x146a   :  { %v15683_v18 = vpop.permute.xlu2 %7667 }
0x146f   :  { %7833 = vrot.lane.b32.xlu0 %v15522_v14, %s8464_s25  ;;  %7599 = vrot.lane.b32.xlu1 %v15659_v54, %s8463_s19 }
0x1470   :  { %7633 = vrot.lane.b32.xlu2 %v15570_v30, %s8469_s12 }
0x1471   :  { %v15691_v42 = vpop.permute.xlu0 %7669  ;;  %v15693_v20 = vpop.permute.xlu1 %7589 }
0x1472   :  { %v15695_v39 = vpop.permute.xlu2 %7629 }
0x1477   :  { %7559 = vrot.lane.b32.xlu0 %v15659_v54, %s8470_s13  ;;  %7595 = vrot.lane.b32.xlu1 %v15616_v21, %s8463_s19 }
0x1478   :  { %7847 = vrot.lane.b32.xlu2 %v15659_v54, %s8464_s25 }
0x1479   :  { %v15703_v8 = vpop.permute.xlu0 %7549  ;;  %v15705_v48 = vpop.permute.xlu1 %7547 }
0x147a   :  { %v15707_v9 = vpop.permute.xlu2 %7587 }
0x147f   :  { %7593 = vrot.lane.b32.xlu0 %v15570_v30, %s8463_s19  ;;  %7845 = vrot.lane.b32.xlu1 %v15606_v45, %s8464_s25  ;;  %v7733_v45 = vsel %vm177_vm3, %v15643_v41, %v15679_v11 }
0x1480   :  { %7555 = vrot.lane.b32.xlu2 %v15616_v21, %s8470_s13  ;;  %v7737_v56 = vmul.f32 %v7733_v45, %v16891_v60 }
0x1481   :  { %v15715_v36 = vpop.permute.xlu0 %7801  ;;  %v15717_v53 = vpop.permute.xlu1 %7837 }
0x1482   :  { %v15719_v50 = vpop.permute.xlu2 %7841 }
0x1483   :  { %16924 = vst [vmem:[#allocation47_spill] sm:$0xff] %v15719_v50 }
0x1487   :  { %7553 = vrot.lane.b32.xlu0 %v15570_v30, %s8470_s13  ;;  %7952 = vperm.xlu1 %8430, %v8404_v35  }
0x1488   :  { %7947 = vperm.xlu2 %8428, %v8403_v59   ;;  %v8162_v59 = vld [vmem:[%s16151_s9] sm:$0x7] }
0x1489   :  { %v7800_v33 = vpop.permute.xlu0 %7799  ;;  %v15729_v23 = vpop.permute.xlu1 %7835 }
0x148a   :  { %v7814_v31 = vsel %vm227_vm1, %v15657_v17, %v7800_v33  ;;  %v15738_v52 = vpop.permute.xlu2 %7673 }
0x148b   :  { %16925 = vst [vmem:[#allocation25_spill] sm:$0xff] %v15738_v52  ;;  %v7821_v61 = vmul.f32 %v7814_v31, %v16926_v15  ;;  %v15745_v35 = vsel %vm148_vm4, %v15691_v42, %v15738_v52  ;;  %v7773_v15 = vsel %vm202_vm2, %v15641_v19, %v15667_v0 }
0x148c   :  { %16927 = vst [vmem:[#allocation17_spill] sm:$0xff] %v15745_v35  ;;  %v7777_v10 = vmul.f32 %v7773_v15, %v16928_v49 }
0x148d   :  { %7961 = vmatpush.msrb.mxu3 %v7821_v61 }
0x148f   :  { %8165 = vperm.xlu0 %8429, %v8162_v59   ;;  %7962 = vmatpush.msrb.mxu3 %v7817_v22 }
0x1491   :  { %v7720_v30 = vpop.permute.xlu0 %7719  ;;  %v7762_v3 = vpop.permute.xlu1 %7761 }
0x1492   :  { %v15751_v21 = vpop.permute.xlu2 %7631  ;;  %v7734_v1 = vsel %vm177_vm3, %v15669_v46, %v7720_v30 }
0x1493   :  { %v7741_v55 = vmul.f32 %v7734_v1, %v16891_v60  ;;  %v16931_v60 = vld [vmem:[#allocation14_spill] sm:$0xff] }
0x1499   :  { %v15753_v31 = vpop.permute.xlu0 %7671  ;;  %v7722_v43 = vpop.permute.xlu1 %7721 }
0x149a   :  { %v15755_v37 = vpop.permute.xlu2 %7551 }
0x14a1   :  { %v15757_v32 = vpop.permute.xlu0 %7591  ;;  %v7760_v35 = vpop.permute.xlu1 %7759 }
0x14a2   :  { %v15763_v61 = vpop.permute.xlu2 %7763  ;;  %v7774_v22 = vsel %vm202_vm2, %v15671_v5, %v7760_v35 }
0x14a3   :  { %v7781_v59 = vmul.f32 %v7774_v22, %v16928_v49 }
0x14a5   :  { %7963 = vmatpush.msrb.mxu3 %v7781_v59  ;;  %v7811_v59 = vsel %vm227_vm1, %v15645_v57, %v15715_v36  ;;  %v7772_v57 = vsel %vm202_vm2, %v7760_v35, %v15763_v61 }
0x14a7   :  { %7964 = vmatpush.msrb.mxu3 %v7777_v10 }
0x14a9   :  { %v15779_v52 = vpop.permute.xlu0 %7765  ;;  %7965 = vmatpush.msrb.mxu3 %v7741_v55  ;;  %v7840_v22 = vpop.permute.xlu1 %7839 }
0x14aa   :  { %v15784_v54 = vsel %vm202_vm2, %v7762_v3, %v15779_v52  ;;  %v15786_v15 = vpop.permute.xlu2 %7725  ;;  %v7854_v49 = vsel %vm252_vm0, %v15729_v23, %v7840_v22 }
0x14ab   :  { %16929 = vst [vmem:[#allocation19_spill] sm:$0xff] %v15784_v54  ;;  %v15794_v1 = vsel %vm177_vm3, %v7722_v43, %v15786_v15  ;;  %7966 = vmatpush.msrb.mxu3 %v7737_v56  ;;  %v7861_v55 = vmul.f32 %v7854_v49, %v16931_v60 }
0x14ac   :  { %16930 = vst [vmem:[#allocation26_spill] sm:$0xff] %v15794_v1  ;;  %v7818_v1 = vmul.f32 %v7811_v59, %v16894_v51 }
0x14ad   :  { %7967 = vmatpush.msrb.mxu3 %v15540_v40  ;;  %7998 = vmatpush.msrb.mxu1 %v7861_v55 }
0x14af   :  { %7968 = vmatpush.msrb.mxu3 %v15522_v14  ;;  %v7851_v14 = vsel %vm252_vm0, %v15717_v53, %v15719_v50  ;;  %v7771_v50 = vsel %vm202_vm2, %v15667_v0, %v7762_v3 }
0x14b1   :  { %v15799_v10 = vpop.permute.xlu0 %7637  ;;  %v15801_v45 = vpop.permute.xlu1 %7803 }
0x14b2   :  { %v15807_v54 = vpop.permute.xlu2 %7843  ;;  %v7812_v56 = vsel %vm227_vm1, %v7800_v33, %v15801_v45  ;;  %v7858_v33 = vmul.f32 %v7851_v14, %v16833_v2  ;;  %v7646_v14 = vsel %vm123_vm5, %v15681_v38, %v15751_v21 }
0x14b3   :  { %16932 = vst [vmem:[#allocation30_spill] sm:$0xff] %v15807_v54  ;;  %v7852_v40 = vsel %vm252_vm0, %v7840_v22, %v15807_v54  ;;  %v7822_v49 = vmul.f32 %v7812_v56, %v16894_v51  ;;  %v7782_v22 = vmul.f32 %v7772_v57, %v16895_v62  ;;  %v7778_v56 = vmul.f32 %v7771_v50, %v16895_v62 }
0x14b4   :  { %v7862_v55 = vmul.f32 %v7852_v40, %v16833_v2  ;;  %v7731_v2 = vsel %vm177_vm3, %v15679_v11, %v7722_v43  ;;  %v7686_v43 = vsel %vm148_vm4, %v15683_v18, %v15753_v31  ;;  %v15870_v40 = vld [vmem:[#allocation3 + $0xb8] sm:$0xff] }
0x14b5   :  { %8007 = vmatpush.msrb.mxu2 %v7822_v49  ;;  %v7738_v62 = vmul.f32 %v7731_v2, %v16896_v63  ;;  %v7694_v59 = vmul.f32 %v7686_v43, %v16897_v28  ;;  %v7606_v49 = vsel %vm98_vm6, %v15707_v9, %v15757_v32 }
0x14b6   :  { %8044 = vmatpush.msrb.mxu0 %v7862_v55 }
0x14b7   :  { %8008 = vmatpush.msrb.mxu2 %v7818_v1  ;;  %v15844_v1 = vld [vmem:[#allocation3 + $0xa8] sm:$0xff] }
0x14b8   :  { %8045 = vmatpush.msrb.mxu0 %v7858_v33  ;;  %v7605_v33 = vsel %vm98_vm6, %v15653_v25, %v15693_v20 }
0x14b9   :  { %v15831_v54 = vpop.permute.xlu0 %7597  ;;  %8009 = vmatpush.msrb.mxu2 %v7782_v22  ;;  %v15833_v35 = vpop.permute.xlu1 %7723  ;;  %8407 = vmatmul.msk.f32.vlgmr.msrb.gmra.mxu0 %vm846_vm9, %v15844_v1  ;;  %v7610_v2 = vmul.f32 %v7605_v33, %v16899_v12 }
0x14ba   :  { %v15838_v51 = vpop.permute.xlu2 %7767  ;;  %v7732_v3 = vsel %vm177_vm3, %v7720_v30, %v15833_v35 }
0x14bb   :  { %v7742_v0 = vmul.f32 %v7732_v3, %v16896_v63  ;;  %8010 = vmatpush.msrb.mxu2 %v7778_v56  ;;  %v7685_v63 = vsel %vm148_vm4, %v15624_v34, %v15691_v42  ;;  %v7645_v42 = vsel %vm123_vm5, %v15655_v58, %v15695_v39  ;;  %v7614_v56 = vmul.f32 %v7606_v49, %v16899_v12 }
0x14bc   :  { %v7650_v57 = vmul.f32 %v7645_v42, %v16898_v29  ;;  %v7565_v3 = vsel %vm73_vm7, %v15632_v26, %v15703_v8  ;;  %v7775_v49 = vsel %vm202_vm2, %v15779_v52, %v15641_v19 }
0x14bd   :  { %8011 = vmatpush.msrb.mxu2 %v7742_v0 }
0x14bf   :  { %8012 = vmatpush.msrb.mxu2 %v7738_v62  ;;  %v7570_v62 = vmul.f32 %v7565_v3, %v16900_v16 }
0x14c1   :  { %v15853_v11 = vpop.permute.xlu0 %7557  ;;  %8013 = vmatpush.msrb.mxu2 %v15578_v44  ;;  %v15856_v30 = vpop.permute.xlu1 %7805  ;;  %v7690_v44 = vmul.f32 %v7685_v63, %v16897_v28  ;;  %8408 = vmatmul.msk.f32.gmra.mxu0 %vm846_vm9, %v15870_v40 }
0x14c2   :  { %v15862_v50 = vpop.permute.xlu2 %7639  ;;  %v7815_v12 = vsel %vm227_vm1, %v15856_v30, %v15614_v47 }
0x14c3   :  { %8014 = vmatpush.msrb.mxu2 %v15542_v6  ;;  %v7654_v6 = vmul.f32 %v7646_v14, %v16898_v29  ;;  %v7566_v29 = vsel %vm73_vm7, %v15705_v48, %v15755_v37 }
0x14c4   :  { %v7574_v0 = vmul.f32 %v7566_v29, %v16900_v16  ;;  %v16933_v29 = vld [vmem:[#allocation29_spill] sm:$0xff] }
0x14c5   :  { %8015 = vmatpush.msrb.mxu2 %v7694_v59  ;;  %v15909_v59 = vld [vmem:[#allocation3 + $0xa0] sm:$0xff] }
0x14c7   :  { %8016 = vmatpush.msrb.mxu2 %v7690_v44 }
0x14c9   :  { %v15885_v28 = vpop.permute.xlu0 %7635  ;;  %8017 = vmatpush.msrb.mxu2 %v7654_v6  ;;  %v15887_v55 = vpop.permute.xlu1 %7677  ;;  %v7776_v6 = vsel %vm202_vm2, %v15838_v51, %v15671_v5 }
0x14ca   :  { %v15893_v22 = vpop.permute.xlu2 %7633 }
0x14cb   :  { %8018 = vmatpush.msrb.mxu2 %v7650_v57  ;;  %v7780_v57 = vmul.f32 %v7775_v49, %v16909_v4  ;;  %v16938_v49 = vld [vmem:[#allocation9_spill] sm:$0xff] }
0x14cd   :  { %8019 = vmatpush.msrb.mxu2 %v7614_v56  ;;  %v15938_v56 = vld [vmem:[#allocation3 + $0xb0] sm:$0xff] }
0x14cf   :  { %8020 = vmatpush.msrb.mxu2 %v7610_v2 }
0x14d1   :  { %v7808_v43 = vpop.permute.xlu0 %7807  ;;  %8021 = vmatpush.msrb.mxu2 %v7574_v0  ;;  %v15907_v63 = vpop.permute.xlu1 %7675 }
0x14d2   :  { %v7816_v14 = vsel %vm227_vm1, %v7808_v43, %v15657_v17  ;;  %v15918_v44 = vpop.permute.xlu2 %7847  ;;  %v7820_v17 = vmul.f32 %v7815_v12, %v16905_v13 }
0x14d3   :  { %v7824_v42 = vmul.f32 %v7816_v14, %v16905_v13  ;;  %v7856_v16 = vsel %vm252_vm0, %v15918_v44, %v15729_v23  ;;  %8022 = vmatpush.msrb.mxu2 %v7570_v62  ;;  %v7784_v23 = vmul.f32 %v7776_v6, %v16909_v4  ;;  %v7687_v13 = vsel %vm148_vm4, %v15887_v55, %v15624_v34  ;;  %v16936_v6 = vld [vmem:[#allocation25_spill] sm:$0xff] }
0x14d4   :  { %v7864_v47 = vmul.f32 %v7856_v16, %v16767_v27  ;;  %8023 = vmatmul.f32.vlgmr.msrb.gmra.mxu2 %v15909_v59  ;;  %v7735_v4 = vsel %vm177_vm3, %v15786_v15, %v15643_v41  ;;  %v7648_v34 = vsel %vm123_vm5, %v15862_v50, %v15681_v38  ;;  %v7647_v41 = vsel %vm123_vm5, %v15799_v10, %v15655_v58  ;;  %v16934_v15 = vld [vmem:[#allocation32_spill] sm:$0xff]  ;;  %v16935_v16 = vld [vmem:[#allocation43_spill] sm:$0xff] }
0x14d5   :  { %8099 = vmatpush.msra.mxu0 %v7824_v42  ;;  %v7653_v0 = vmul.f32 %v7648_v34, %v16934_v15  ;;  %v7649_v38 = vmul.f32 %v7647_v41, %v16934_v15  ;;  %v7810_v62 = vsel %vm227_vm1, %v15801_v45, %v7808_v43  ;;  %v7607_v58 = vsel %vm98_vm6, %v15831_v54, %v15653_v25 }
0x14d6   :  { %8136 = vmatpush.msra.mxu2 %v7864_v47  ;;  %v7809_v43 = vsel %vm227_vm1, %v15715_v36, %v15856_v30  ;;  %v7681_v25 = vsel %vm148_vm4, %v16936_v6, %v15887_v55  ;;  %v7642_v36 = vsel %vm123_vm5, %v15885_v28, %v15862_v50  ;;  %v16941_v50 = vld [vmem:[#allocation22_spill] sm:$0xff] }
0x14d7   :  { %8100 = vmatpush.msra.mxu0 %v7820_v17  ;;  %v16937_v17 = vld [vmem:[#allocation34_spill] sm:$0xff]  ;;  %v7819_v30 = vmul.f32 %v7809_v43, %v16938_v49  ;;  %v7684_v43 = vsel %vm148_vm4, %v15753_v31, %v15907_v63 }
0x14d9   :  { %v7680_v33 = vpop.permute.xlu0 %7679  ;;  %8101 = vmatpush.msra.mxu0 %v7784_v23  ;;  %v7728_v5 = vpop.permute.xlu1 %7727  ;;  %v7823_v23 = vmul.f32 %v7810_v62, %v16938_v49  ;;  %v16946_v62 = vld [vmem:[#allocation30_spill] sm:$0xff] }
0x14da   :  { %v7688_v52 = vsel %vm148_vm4, %v7680_v33, %v15683_v18  ;;  %v7736_v19 = vsel %vm177_vm3, %v7728_v5, %v15669_v46  ;;  %v7689_v18 = vmul.f32 %v7687_v13, %v16933_v29  ;;  %v7740_v46 = vmul.f32 %v7735_v4, %v16912_v24  ;;  %v7556_v6 = vpop.permute.xlu2 %7555 }
0x14db   :  { %v7693_v2 = vmul.f32 %v7688_v52, %v16933_v29  ;;  %8102 = vmatpush.msra.mxu0 %v7780_v57  ;;  %v7744_v3 = vmul.f32 %v7736_v19, %v16912_v24  ;;  %v7682_v24 = vsel %vm148_vm4, %v15907_v63, %v7680_v33  ;;  %v16939_v57 = vld [vmem:[#allocation21_spill] sm:$0xff]  ;;  %v7609_v13 = vmul.f32 %v7607_v58, %v16937_v17 }
0x14dc   :  { %8026 = vmatmul.f32.gmra.mxu2 %v15938_v56  ;;  %v7696_v33 = vmul.f32 %v7682_v24, %v16939_v57  ;;  %v7692_v55 = vmul.f32 %v7681_v25, %v16939_v57  ;;  %v7641_v52 = vsel %vm123_vm5, %v15893_v22, %v15799_v10  ;;  %v7656_v19 = vmul.f32 %v7642_v36, %v16941_v50  ;;  %v16951_v57 = vld [vmem:[#allocation46_spill] sm:$0xff] }
0x14dd   :  { %7969 = vmatpush.msrb.mxu3 %v7693_v2  ;;  %8103 = vmatpush.msra.mxu0 %v7744_v3  ;;  %v7567_v4 = vsel %vm73_vm7, %v15853_v11, %v15632_v26  ;;  %v7652_v34 = vmul.f32 %v7641_v52, %v16941_v50  ;;  %v7730_v10 = vsel %vm177_vm3, %v15833_v35, %v7728_v5  ;;  %v16944_v26 = vld [vmem:[#allocation36_spill] sm:$0xff] }
0x14de   :  { %v7850_v35 = vsel %vm252_vm0, %v16946_v62, %v15918_v44  ;;  %v16947_v5 = vld [vmem:[#allocation12_spill] sm:$0xff] }
0x14df   :  { %7970 = vmatpush.msrb.mxu3 %v7689_v18  ;;  %8104 = vmatpush.msra.mxu0 %v7740_v46  ;;  %v16943_v46 = vld [vmem:[#allocation19_spill] sm:$0xff]  ;;  %v7743_v24 = vmul.f32 %v7730_v10, %v16947_v5 }
0x14e1   :  { %v15975_v12 = vpop.permute.xlu0 %7833  ;;  %7971 = vmatpush.msrb.mxu3 %v7653_v0  ;;  %v7600_v14 = vpop.permute.xlu1 %7599  ;;  %8105 = vmatpush.msra.mxu0 %v16935_v16  ;;  %v16945_v0 = vld [vmem:[#allocation28_spill] sm:$0xff] }
0x14e2   :  { %v7853_v42 = vsel %vm252_vm0, %v15975_v12, %v15717_v53  ;;  %v7608_v45 = vsel %vm98_vm6, %v7600_v14, %v15707_v9  ;;  %v16940_v9 = vld [vmem:[#allocation6_spill] sm:$0xff] }
0x14e3   :  { %v7857_v47 = vmul.f32 %v7853_v42, %v16931_v60  ;;  %v7613_v53 = vmul.f32 %v7608_v45, %v16937_v17  ;;  %7972 = vmatpush.msrb.mxu3 %v7649_v38  ;;  %8106 = vmatpush.msra.mxu0 %v16940_v9  ;;  %v7770_v60 = vsel %vm202_vm2, %v15763_v61, %v15838_v51  ;;  %v16942_v61 = vld [vmem:[#allocation10_spill] sm:$0xff]  ;;  %v16949_v42 = vld [vmem:[#allocation8_spill] sm:$0xff]  ;;  %v16953_v9 = vld [vmem:[#allocation15_spill] sm:$0xff] }
0x14e4   :  { %v7783_v51 = vmul.f32 %v7770_v60, %v16942_v61  ;;  %v7779_v41 = vmul.f32 %v16943_v46, %v16942_v61  ;;  %v7863_v16 = vmul.f32 %v7850_v35, %v16949_v42  ;;  %v16955_v60 = vld [vmem:[#allocation17_spill] sm:$0xff] }
0x14e5   :  { %7973 = vmatpush.msrb.mxu3 %v7613_v53  ;;  %7999 = vmatpush.msrb.mxu1 %v7857_v47  ;;  %v16950_v47 = vld [vmem:[#allocation47_spill] sm:$0xff] }
0x14e6   :  { %8107 = vmatpush.msra.mxu0 %v7696_v33  ;;  %8405 = vmatmul.msk.f32.vlgmr.msrb.gmra.mxu1 %vm846_vm9, %v15844_v1 }
0x14e7   :  { %8053 = vmatpush.msra.mxu1 %v7823_v23  ;;  %7974 = vmatpush.msrb.mxu3 %v7609_v13  ;;  %v16954_v13 = vld [vmem:[#allocation31_spill] sm:$0xff] }
0x14e8   :  { %8108 = vmatpush.msra.mxu0 %v7692_v55 }
0x14e9   :  { %8054 = vmatpush.msra.mxu1 %v7819_v30  ;;  %v7560_v29 = vpop.permute.xlu0 %7559  ;;  %v7596_v2 = vpop.permute.xlu1 %7595 }
0x14ea   :  { %v7568_v3 = vsel %vm73_vm7, %v7560_v29, %v15705_v48  ;;  %8109 = vmatpush.msra.mxu0 %v7656_v19  ;;  %v7602_v18 = vsel %vm98_vm6, %v7596_v2, %v7600_v14  ;;  %v7569_v48 = vmul.f32 %v7567_v4, %v16944_v26  ;;  %v16948_v14 = vld [vmem:[#allocation26_spill] sm:$0xff]  ;;  %v7562_v49 = vsel %vm73_vm7, %v7556_v6, %v7560_v29  ;;  %v16958_v4 = vld [vmem:[#allocation27_spill] sm:$0xff] }
0x14eb   :  { %v7573_v15 = vmul.f32 %v7568_v3, %v16944_v26  ;;  %v7616_v38 = vmul.f32 %v7602_v18, %v16945_v0  ;;  %8055 = vmatpush.msra.mxu1 %v7783_v51  ;;  %v7739_v58 = vmul.f32 %v16948_v14, %v16947_v5  ;;  %v7576_v36 = vmul.f32 %v7562_v49, %v16954_v13  ;;  %v7948_v3 = vpop.permute.xlu2 %7947 }
0x14ec   :  { %8110 = vmatpush.msra.mxu0 %v7652_v34  ;;  %v7604_v52 = vsel %vm98_vm6, %v15757_v32, %v7596_v2  ;;  %v7564_v32 = vsel %vm73_vm7, %v15755_v37, %v7556_v6 }
0x14ed   :  { %8056 = vmatpush.msra.mxu1 %v7779_v41  ;;  %7975 = vmatpush.msrb.mxu3 %v7573_v15  ;;  %v7575_v29 = vmul.f32 %v7564_v32, %v16958_v4 }
0x14ee   :  { %8111 = vmatpush.msra.mxu0 %v7616_v38  ;;  %8406 = vmatmul.msk.f32.gmra.mxu1 %vm846_vm9, %v15870_v40 }
0x14ef   :  { %8057 = vmatpush.msra.mxu1 %v7743_v24  ;;  %7976 = vmatpush.msrb.mxu3 %v7569_v48 }
0x14f0   :  { %7977 = vmatmul.f32.vlgmr.msrb.gmra.mxu3 %v15909_v59 }
0x14f1   :  { %8058 = vmatpush.msra.mxu1 %v7739_v58  ;;  %8090 = vmatpush.msra.mxu3 %v7863_v16  ;;  %v7594_v44 = vpop.permute.xlu0 %7593  ;;  %v7846_v45 = vpop.permute.xlu1 %7845 }
0x14f2   :  { %v7601_v25 = vsel %vm98_vm6, %v7594_v44, %v15831_v54  ;;  %v7849_v17 = vsel %vm252_vm0, %v16950_v47, %v7846_v45  ;;  %v7855_v53 = vsel %vm252_vm0, %v7846_v45, %v15975_v12  ;;  %v16952_v54 = vld [vmem:[#allocation20_spill] sm:$0xff]  ;;  %v7644_v12 = vsel %vm123_vm5, %v15751_v21, %v15885_v28  ;;  %v16956_v21 = vld [vmem:[#allocation23_spill] sm:$0xff] }
0x14f3   :  { %v7612_v23 = vmul.f32 %v7601_v25, %v16945_v0  ;;  %v7859_v31 = vmul.f32 %v7849_v17, %v16949_v42  ;;  %v7860_v63 = vmul.f32 %v7855_v53, %v16767_v27  ;;  %8059 = vmatpush.msra.mxu1 %v16951_v57  ;;  %v7695_v33 = vmul.f32 %v7684_v43, %v16952_v54  ;;  %v8161_v53 = vld [vmem:[%s16150_s8] sm:$0x7] }
0x14f4   :  { %v7691_v30 = vmul.f32 %v16955_v60, %v16952_v54  ;;  %v7643_v27 = vsel %vm123_vm5, %v15695_v39, %v15893_v22  ;;  %v7655_v28 = vmul.f32 %v7644_v12, %v16956_v21  ;;  %v7603_v39 = vsel %vm98_vm6, %v15693_v20, %v7594_v44  ;;  %v16957_v22 = vld [vmem:[#allocation24_spill] sm:$0xff] }
0x14f5   :  { %8060 = vmatpush.msra.mxu1 %v16953_v9  ;;  %8091 = vmatpush.msra.mxu3 %v7859_v31  ;;  %v7651_v19 = vmul.f32 %v7643_v27, %v16956_v21  ;;  %v7615_v51 = vmul.f32 %v7604_v52, %v16957_v22 }
0x14f6   :  { %8112 = vmatpush.msra.mxu0 %v7612_v23  ;;  %8137 = vmatpush.msra.mxu2 %v7860_v63 }
0x14f7   :  { %8061 = vmatpush.msra.mxu1 %v7695_v33  ;;  %8411 = vmatmul.msk.f32.vlgmr.msra.gmra.mxu2 %vm846_vm9, %v15844_v1 }
0x14f8   :  { %8113 = vmatpush.msra.mxu0 %v7576_v36  ;;  %7980 = vmatmul.f32.gmra.mxu3 %v15938_v56 }
0x14f9   :  { %8062 = vmatpush.msra.mxu1 %v7691_v30  ;;  %v7554_v55 = vpop.permute.xlu0 %7553  ;;  %v7953_v46 = vpop.permute.xlu1 %7952 }
0x14fa   :  { %v7561_v50 = vsel %vm73_vm7, %v7554_v55, %v15853_v11  ;;  %v7611_v11 = vmul.f32 %v7603_v39, %v16957_v22  ;;  %v7563_v20 = vsel %vm73_vm7, %v15703_v8, %v7554_v55 }
0x14fb   :  { %v7572_v61 = vmul.f32 %v7561_v50, %v16954_v13  ;;  %8063 = vmatpush.msra.mxu1 %v7655_v28  ;;  %v7571_v37 = vmul.f32 %v7563_v20, %v16958_v4  ;;  %v8432_v4 = vld [vmem:[%s16142_s0 + $0x18] sm:$0xff] }
0x14fd   :  { %8064 = vmatpush.msra.mxu1 %v7651_v19  ;;  %8114 = vmatpush.msra.mxu0 %v7572_v61 }
0x14fe   :  { %8115 = vmatmul.f32.vlgmr.msra.gmra.mxu0 %v15909_v59 }
0x14ff   :  { %8065 = vmatpush.msra.mxu1 %v7615_v51  ;;  %8412 = vmatmul.msk.f32.gmra.mxu2 %vm846_vm9, %v15870_v40 }
0x1500   :  { %8409 = vmatmul.msk.f32.vlgmr.msra.gmra.mxu3 %vm846_vm9, %v15844_v1 }
0x1501   :  { %8066 = vmatpush.msra.mxu1 %v7611_v11  ;;  %v8166_v50 = vpop.permute.xlu0 %8165  ;;  %v8431_v11 = vld [vmem:[%s16142_s0 + $0x8] sm:$0xff] }
0x1503   :  { %8067 = vmatpush.msra.mxu1 %v7575_v29 }
0x1505   :  { %8068 = vmatpush.msra.mxu1 %v7571_v37 }
0x1506   :  { %8069 = vmatmul.f32.vlgmr.msra.gmra.mxu1 %v15909_v59  ;;  %8118 = vmatmul.f32.gmra.mxu0 %v15938_v56 }
0x1508   :  { %8410 = vmatmul.msk.f32.gmra.mxu3 %vm846_vm9, %v15870_v40 }
0x150e   :  { %8072 = vmatmul.f32.gmra.mxu1 %v15938_v56 }
0x1536   :  { %v8047_v8 = vpop.f32.mrf.mxu0 }
0x153e   :  { %v8050_v34 = vpop.f32.mrf.mxu0 }
0x1557   :  { %v8024_v7 = vpop.f32.mrf.mxu2 }
0x1558   :  { %v8025_v38 = vadd.f32 %v8024_v7, %v7948_v3  ;;  %v8433_v7 = vld [vmem:[%s16142_s0] sm:$0xff] }
0x155a   :  { %v8048_v56 = vadd.f32 %v8047_v8, %v8025_v38 }
0x155c   :  { %v8146_v43 = vmul.f32 0.2, %v8048_v56 }
0x155e   :  { %v8154_v31 = vmax.f32 %v8048_v56, %v8146_v43 }
0x155f   :  { %v8027_v1 = vpop.f32.mrf.mxu2 }
0x1560   :  { %v8028_v26 = vadd.f32 %v8027_v1, %v7953_v46 }
0x1562   :  { %v8051_v40 = vadd.f32 %v8050_v34, %v8028_v26  ;;  %v8434_v34 = vld [vmem:[%s16142_s0 + $0x10] sm:$0xff] }
0x1563   :  { %v8001_v2 = vpop.f32.mrf.mxu1 }
0x1564   :  { %v8150_v58 = vmul.f32 0.2, %v8051_v40 }
0x1566   :  { %v8158_v49 = vmax.f32 %v8051_v40, %v8150_v58 }
0x156b   :  { %v8004_v41 = vpop.f32.mrf.mxu1 }
0x1573   :  { %v7978_v10 = vpop.f32.mrf.mxu3 }
0x1574   :  { %v7979_v18 = vadd.f32 %v7978_v10, %v7948_v3 }
0x1576   :  { %v8002_v62 = vadd.f32 %v8001_v2, %v7979_v18 }
0x1578   :  { %v8145_v5 = vmul.f32 0.2, %v8002_v62 }
0x157a   :  { %v8139_v15 = vpop.f32.mrf.mxu2  ;;  %v8153_v17 = vmax.f32 %v8002_v62, %v8145_v5 }
0x157b   :  { %v7981_v59 = vpop.f32.mrf.mxu3  ;;  %v8116_v0 = vpop.f32.mrf.mxu0 }
0x157c   :  { %v7982_v35 = vadd.f32 %v7981_v59, %v7953_v46  ;;  %v8117_v14 = vadd.f32 %v8116_v0, %v7948_v3 }
0x157e   :  { %v8005_v48 = vadd.f32 %v8004_v41, %v7982_v35  ;;  %v8140_v6 = vadd.f32 %v8139_v15, %v8117_v14 }
0x1580   :  { %v8149_v24 = vmul.f32 0.2, %v8005_v48  ;;  %v8148_v63 = vmul.f32 0.2, %v8140_v6 }
0x1582   :  { %v8157_v42 = vmax.f32 %v8005_v48, %v8149_v24  ;;  %v8142_v16 = vpop.f32.mrf.mxu2  ;;  %v8156_v12 = vmax.f32 %v8140_v6, %v8148_v63 }
0x1583   :  { %v8070_v44 = vpop.f32.mrf.mxu1  ;;  %v8119_v45 = vpop.f32.mrf.mxu0 }
0x1584   :  { %v8120_v25 = vadd.f32 %v8119_v45, %v7953_v46  ;;  %v8093_v47 = vpop.f32.mrf.mxu3  ;;  %8185 = vmatpush.msrb.mxu3 %v8157_v42  ;;  %v8071_v57 = vadd.f32 %v8070_v44, %v7948_v3 }
0x1586   :  { %v8143_v23 = vadd.f32 %v8142_v16, %v8120_v25  ;;  %8186 = vmatpush.msrb.mxu3 %v8153_v17  ;;  %v8094_v13 = vadd.f32 %v8093_v47, %v8071_v57 }
0x1587   :  { %8413 = vmatmul.msk.f32.vlgmr.msrb.gmra.mxu3 %vm846_vm9, %v8161_v53 }
0x1588   :  { %v8152_v54 = vmul.f32 0.2, %v8143_v23  ;;  %8205 = vmatpush.msra.mxu3 %v8158_v49  ;;  %v8147_v27 = vmul.f32 0.2, %v8094_v13 }
0x158a   :  { %v8160_v33 = vmax.f32 %v8143_v23, %v8152_v54  ;;  %8206 = vmatpush.msra.mxu3 %v8154_v31  ;;  %v8155_v55 = vmax.f32 %v8094_v13, %v8147_v27 }
0x158b   :  { %v8073_v9 = vpop.f32.mrf.mxu1 }
0x158c   :  { %v8074_v36 = vadd.f32 %v8073_v9, %v7953_v46  ;;  %v8096_v60 = vpop.f32.mrf.mxu3  ;;  %8245 = vmatpush.msrb.mxu2 %v8160_v33 }
0x158e   :  { %v8097_v30 = vadd.f32 %v8096_v60, %v8074_v36  ;;  %8246 = vmatpush.msrb.mxu2 %v8156_v12 }
0x158f   :  { %8414 = vmatmul.msk.f32.vlgmr.msra.gmra.mxu3 %vm846_vm9, %v8161_v53  ;;  %8416 = vmatmul.msk.f32.vlgmr.msrb.gmra.mxu2 %vm846_vm9, %v8161_v53 }
0x1590   :  { %v8151_v21 = vmul.f32 0.2, %v8097_v30 }
0x1592   :  { %v8159_v28 = vmax.f32 %v8097_v30, %v8151_v21 }
0x1594   :  { %8225 = vmatpush.msrb.mxu1 %v8159_v28 }
0x1596   :  { %8226 = vmatpush.msrb.mxu1 %v8155_v55 }
0x1597   :  { %8415 = vmatmul.msk.f32.vlgmr.msrb.gmra.mxu1 %vm846_vm9, %v8161_v53 }
0x160a   :  { %v8188_v52 = vpop.f32.mrf.mxu3 }
0x160b   :  { %v8189_v39 = vadd.f32 %v8188_v52, %v8166_v50 }
0x160d   :  { %v8251_v8 = vadd.f32 %v8433_v7, %v8189_v39 }
0x1612   :  { %v8208_v19 = vpop.f32.mrf.mxu3  ;;  %v8248_v61 = vpop.f32.mrf.mxu2 }
0x1613   :  { %v8209_v22 = vadd.f32 %v8208_v19, %v8166_v50  ;;  %v8249_v51 = vadd.f32 %v8248_v61, %v8166_v50 }
0x1614   :  { %v8228_v32 = vpop.f32.mrf.mxu1 }
0x1615   :  { %v8252_v20 = vadd.f32 %v8431_v11, %v8209_v22  ;;  %v8254_v29 = vadd.f32 %v8432_v4, %v8249_v51  ;;  %v8229_v37 = vadd.f32 %v8228_v32, %v8166_v50 }
0x1617   :  { %v8259_v2 = vrot.slane %v8252_v20, 4  ;;  %v8260_v1 = vrot.slane %v8254_v29, 4  ;;  %v8253_v10 = vadd.f32 %v8434_v34, %v8229_v37 }
0x1619   :  { %v8262_v3 = vsel %vm8261_vm10, %v8251_v8, %v8259_v2  ;;  %v8263_v18 = vsel %vm8261_vm10, %v8253_v10, %v8260_v1 }
0x161a   :  { %8266 = vst [vmem:[%s16152_s10] sm:$0x77] %v8262_v3 }
0x161b   :  { %8267 = vst [vmem:[%s16152_s10 + $0x8] sm:$0x77] %v8263_v18 }
0x161c   :  { %8272 = vsyncpa [#allocation4], 1 }

</bundles_post_ra>
